<compile_context>
chip_gen: v7x
topology: tpu7x:2x2x1
jax: 0.10.0
libtpu: 0.0.40
codegen_flags: <defaults>
</compile_context>

<pallas_src>
import jax
import jax.numpy as jnp
from jax import lax
from jax.experimental import pallas as pl
from jax.experimental.pallas import tpu as pltpu

HARTREE2EV = 27.211386245988
NUM_SPECIES = 4                      # synthetic species set: H, C, N, O (ANI2x has 7)
NUM_SHIFTS = 8                       # radial shifts (ANI2x uses 16)
AEV_DIM = NUM_SPECIES * NUM_SHIFTS   # 32 ; feature index f = s_neighbor * NUM_SHIFTS + k
HIDDEN = 32
SH = NUM_SPECIES * HIDDEN            # 128 = fused hidden width (all species nets side by side)
R_CUT = 5.2                          # radial cutoff (Angstrom), like ANI2x Rcr
ETA = 16.0
SHIFTS = tuple(0.9 + i * (R_CUT - 0.9) / NUM_SHIFTS for i in range(NUM_SHIFTS))
CELU_ALPHA = 0.1
LANES = 128
B_TILE = LANES                       # molecules per grid step (one molecule per lane)
ATOMIC_NUMBERS = (1, 6, 7, 8)        # H, C, N, O -> species index 0..3


def _celu(x):
    # CELU(alpha=0.1), the activation ANI uses.
    return jnp.where(x > 0, x, CELU_ALPHA * (jnp.exp(jnp.minimum(x, 0.0) / CELU_ALPHA) - 1.0))


def nnp_kernel(sp_ref, coords_ref, shifts_ref, w1f_ref, b1f_ref, w2l_ref, bias_ref, out_ref):
    # sp_ref:     (N, B)       int32  species index, -1 = pad   (molecules on the lane axis)
    # coords_ref: (3, N, B)    f32    x/y/z rows, molecules on the lane axis
    # shifts_ref: (K, LANES)   f32    radial shifts, lane-broadcast constant
    # w1f_ref:    (F, S*H)     bf16   fused first-layer weights (all 4 species nets)
    # b1f_ref:    (1, S*H)     f32
    # w2l_ref:    (S*H, LANES) f32    second-layer weights, lane-broadcast
    # bias_ref:   (S, LANES)   f32    b2 + atomic self-energy per species, lane-broadcast
    # out_ref:    (1, B)       f32    per-molecule energies (eV), one per lane
    sp = sp_ref[...]                                   # [N, B]
    x = coords_ref[0]                                  # [N, B]
    y = coords_ref[1]
    z = coords_ref[2]
    n, b = sp.shape

    # ---------------- pairwise distances / cosine cutoff (lane-dense over molecules) -------
    dx = x[:, None, :] - x[None, :, :]                 # [N, N, B]
    dy = y[:, None, :] - y[None, :, :]
    dz = z[:, None, :] - z[None, :, :]
    r = jnp.sqrt(dx * dx + dy * dy + dz * dz + 1e-12)  # [N, N, B]

    ii = lax.broadcasted_iota(jnp.int32, (n, n, b), 0)
    jj = lax.broadcasted_iota(jnp.int32, (n, n, b), 1)
    pair_ok = (ii != jj) & (r < R_CUT)
    fc = jnp.where(pair_ok, 0.5 * jnp.cos(jnp.pi / R_CUT * r) + 0.5, 0.0)

    # ---------------- all radial shells with ONE exp; invalid / non-finite pairs masked ----
    r_safe = jnp.where(pair_ok, r, 2.0 * R_CUT)        # finite sentinel (kills NaN/pad pairs)
    d = r_safe[:, :, None, :] - shifts_ref[...][None, None, :, :]     # [N, N, K, B]
    g = 0.25 * jnp.exp(-ETA * d * d) * fc[:, :, None, :]              # [N, N, K, B]

    # ---------------- neighbor-species one-hot (pad species -1 -> all-zero row) ------------
    s_iota = lax.broadcasted_iota(jnp.int32, (n, NUM_SPECIES, b), 1)
    onehot = (sp[:, None, :] == s_iota).astype(jnp.float32)           # [N, S, B]

    # ---------------- radial AEV: neighbor sum split by neighbor species --------------------
    aev_parts = []
    for s in range(NUM_SPECIES):
        m_s = onehot[:, s, :]                                          # [N, B]
        aev_parts.append(jnp.sum(g * m_s[None, :, None, :], axis=1))   # [N, K, B]
    aev = jnp.concatenate(aev_parts, axis=1)                           # [N, F, B]

    # atom-major rows for the fused MXU MLP: [(atom, molecule), F]
    aev2 = jnp.swapaxes(aev, 1, 2).reshape(n * b, AEV_DIM)             # [n*b, 32]

    # ---------------- fused species MLPs: one [n*b, 32] @ [32, 128] matmul ------------------
    h = jnp.dot(aev2.astype(jnp.bfloat16), w1f_ref[...],
                preferred_element_type=jnp.float32) + b1f_ref[...]     # [n*b, S*H] f32
    h = _celu(h)

    # back to molecule-on-lanes for the species-masked second layer + reductions
    h3 = jnp.swapaxes(h.reshape(n, b, SH), 1, 2)                       # [N, S*H, B]

    e_at = jnp.zeros((n, b), jnp.float32)
    for s in range(NUM_SPECIES):
        hs = h3[:, s * HIDDEN:(s + 1) * HIDDEN, :]                     # [N, H, B]
        w2s = w2l_ref[s * HIDDEN:(s + 1) * HIDDEN, :]                  # [H, B]
        e_s = jnp.sum(hs * w2s[None, :, :], axis=1)                    # [N, B]
        e_at = e_at + (e_s + bias_ref[s, :][None, :]) * onehot[:, s, :]

    energies = jnp.sum(e_at, axis=0) * HARTREE2EV                      # [B] (eV), lane-dense
    out_ref[0, :] = energies.astype(out_ref.dtype)


def make_params(key):
    k1, k2, k3, k4 = jax.random.split(key, 4)
    w1 = jax.random.normal(k1, (NUM_SPECIES, AEV_DIM, HIDDEN), jnp.float32) * 0.1
    b1 = jax.random.normal(k2, (NUM_SPECIES, HIDDEN), jnp.float32) * 0.01
    w2 = jax.random.normal(k3, (NUM_SPECIES, HIDDEN), jnp.float32) * 0.1
    b2 = jax.random.normal(k4, (NUM_SPECIES,), jnp.float32) * 0.01
    # rough atomic self-energies (Hartree) for H, C, N, O (EnergyShifter analogue)
    eself = jnp.array([-0.50, -38.08, -54.71, -75.19], jnp.float32)
    return w1, b1, w2, b2, eself


def pack_params(raw):
    """Fuse the per-species nets / biases into the lane-dense operands the kernel expects."""
    w1, b1, w2, b2, eself = raw
    w1f = jnp.transpose(w1, (1, 0, 2)).reshape(AEV_DIM, SH).astype(jnp.bfloat16)   # [32, 128]
    b1f = b1.reshape(1, SH).astype(jnp.float32)                                    # [1, 128]
    w2l = jnp.tile(w2.reshape(SH, 1), (1, LANES)).astype(jnp.float32)              # [128, 128]
    bias_lanes = jnp.tile((b2 + eself).reshape(NUM_SPECIES, 1), (1, LANES)).astype(jnp.float32)
    shifts_lanes = jnp.tile(jnp.array(SHIFTS, jnp.float32).reshape(NUM_SHIFTS, 1), (1, LANES))
    return w1f, b1f, w2l, bias_lanes, shifts_lanes


def map_species(species_z):
    # atomic number -> internal species index; unknown / pad (-1) -> -1
    idx = jnp.full(species_z.shape, -1, jnp.int32)
    for i, zn in enumerate(ATOMIC_NUMBERS):
        idx = jnp.where(species_z == zn, i, idx)
    return idx


def user_nnp_forward(packed_params, species, coords, charges):
    """species [B,N] atomic numbers (-1 pad); coords [B,N,3]; charges [B] (unused).
    Returns energies [B] in eV."""
    del charges  # ANI2x ignores molecular charge, same as the torch module's forward
    w1f, b1f, w2l, bias_lanes, shifts_lanes = packed_params
    B, N = species.shape
    n_blocks = pl.cdiv(B, B_TILE)
    B_pad = n_blocks * B_TILE

    sp_idx = map_species(species).astype(jnp.int32)
    # transposed, lane-dense layouts: molecules on the last (lane) axis, padded to B_TILE
    sp_t = jnp.full((N, B_pad), -1, jnp.int32).at[:, :B].set(sp_idx.T)
    coords_t = jnp.zeros((3, N, B_pad), jnp.float32).at[:, :, :B].set(
        jnp.transpose(coords.astype(jnp.float32), (2, 1, 0)))

    out = pl.pallas_call(
        nnp_kernel,
        out_shape=jax.ShapeDtypeStruct((n_blocks, B_TILE), jnp.float32),
        grid_spec=pltpu.PrefetchScalarGridSpec(
            num_scalar_prefetch=0,
            grid=(n_blocks,),
            in_specs=[
                pl.BlockSpec((N, B_TILE), lambda i: (0, i)),          # species  (block of mols)
                pl.BlockSpec((3, N, B_TILE), lambda i: (0, 0, i)),    # coords   (block of mols)
                pl.BlockSpec(shifts_lanes.shape, lambda i: (0, 0)),   # resident constants below
                pl.BlockSpec(w1f.shape, lambda i: (0, 0)),
                pl.BlockSpec(b1f.shape, lambda i: (0, 0)),
                pl.BlockSpec(w2l.shape, lambda i: (0, 0)),
                pl.BlockSpec(bias_lanes.shape, lambda i: (0, 0)),
            ],
            out_specs=pl.BlockSpec((1, B_TILE), lambda i: (i, 0)),
        ),
        compiler_params=pltpu.CompilerParams(dimension_semantics=("parallel",)),
    )(sp_t, coords_t, shifts_lanes, w1f, b1f, w2l, bias_lanes)
    return out.reshape(B_pad)[:B]


if __name__ == "__main__":
    B, N = 2, 8
    key = jax.random.PRNGKey(0)
    k_sp, k_xyz, k_par = jax.random.split(key, 3)

    # deterministic small inputs: atomic numbers drawn from {H,C,N,O}, pad last 2 atoms of mol 1
    species = jax.random.choice(k_sp, jnp.array(ATOMIC_NUMBERS, jnp.int32), shape=(B, N))
    species = species.at[1, -2:].set(-1)
    coords = jax.random.normal(k_xyz, (B, N, 3), jnp.float32) * 2.0
    charges = jnp.zeros((B,), jnp.float32)

    params = pack_params(make_params(k_par))

    energies = user_nnp_forward(params, species, coords, charges)
    energies = jax.block_until_ready(energies)
    assert energies.shape == (B,)
    assert bool(jnp.all(jnp.isfinite(energies)))
    print("KERNEL_OK")
</pallas_src>

<mosaic_0001>
module attributes {stable_mosaic.version = 11 : i64} {
  func.func @nnp_kernel(%arg0: i32, %arg1: memref<8x128xi32, #tpu.memory_space<vmem>>, %arg2: memref<3x8x128xf32, #tpu.memory_space<vmem>>, %arg3: memref<8x128xf32, #tpu.memory_space<vmem>>, %arg4: memref<32x128xbf16, #tpu.memory_space<vmem>>, %arg5: memref<1x128xf32, #tpu.memory_space<vmem>>, %arg6: memref<128x128xf32, #tpu.memory_space<vmem>>, %arg7: memref<4x128xf32, #tpu.memory_space<vmem>>, %arg8: memref<1x128xf32, #tpu.memory_space<vmem>>) attributes {dimension_semantics = [#tpu.dimension_semantics<parallel>], iteration_bounds = array<i64: 1>, scalar_prefetch = 0 : i64, scratch_operands = 0 : i64, tpu.core_type = #tpu.core_type<tc>, window_params = [{transform_indices = @transform_0, window_bounds = array<i64: 8, 128>}, {transform_indices = @transform_1, window_bounds = array<i64: 3, 8, 128>}, {pipeline_mode = #tpu.pipeline_mode<synchronous>, transform_indices = @transform_2, window_bounds = array<i64: 8, 128>}, {pipeline_mode = #tpu.pipeline_mode<synchronous>, transform_indices = @transform_3, window_bounds = array<i64: 32, 128>}, {pipeline_mode = #tpu.pipeline_mode<synchronous>, transform_indices = @transform_4, window_bounds = array<i64: 1, 128>}, {pipeline_mode = #tpu.pipeline_mode<synchronous>, transform_indices = @transform_5, window_bounds = array<i64: 128, 128>}, {pipeline_mode = #tpu.pipeline_mode<synchronous>, transform_indices = @transform_6, window_bounds = array<i64: 4, 128>}, {transform_indices = @transform_7, window_bounds = array<i64: 1, 128>}]} {
    %c0 = arith.constant 0 : index
    %c0_0 = arith.constant 0 : index
    %0 = vector.load %arg1[%c0, %c0_0] : memref<8x128xi32, #tpu.memory_space<vmem>>, vector<8x128xi32>
    %c0_1 = arith.constant 0 : index
    %c0_2 = arith.constant 0 : index
    %c0_3 = arith.constant 0 : index
    %1 = vector.load %arg2[%c0_1, %c0_2, %c0_3] : memref<3x8x128xf32, #tpu.memory_space<vmem>>, vector<1x8x128xf32>
    %2 = vector.shape_cast %1 : vector<1x8x128xf32> to vector<8x128xf32>
    %c1 = arith.constant 1 : index
    %c0_4 = arith.constant 0 : index
    %c0_5 = arith.constant 0 : index
    %3 = vector.load %arg2[%c1, %c0_4, %c0_5] : memref<3x8x128xf32, #tpu.memory_space<vmem>>, vector<1x8x128xf32>
    %4 = vector.shape_cast %3 : vector<1x8x128xf32> to vector<8x128xf32>
    %c2 = arith.constant 2 : index
    %c0_6 = arith.constant 0 : index
    %c0_7 = arith.constant 0 : index
    %5 = vector.load %arg2[%c2, %c0_6, %c0_7] : memref<3x8x128xf32, #tpu.memory_space<vmem>>, vector<1x8x128xf32>
    %6 = vector.shape_cast %5 : vector<1x8x128xf32> to vector<8x128xf32>
    %7 = vector.shape_cast %2 : vector<8x128xf32> to vector<8x1x128xf32>
    %8 = vector.shape_cast %2 : vector<8x128xf32> to vector<1x8x128xf32>
    %9 = vector.broadcast %7 : vector<8x1x128xf32> to vector<8x8x128xf32>
    %10 = vector.broadcast %8 : vector<1x8x128xf32> to vector<8x8x128xf32>
    %11 = arith.subf %9, %10 : vector<8x8x128xf32>
    %12 = vector.shape_cast %4 : vector<8x128xf32> to vector<8x1x128xf32>
    %13 = vector.shape_cast %4 : vector<8x128xf32> to vector<1x8x128xf32>
    %14 = vector.broadcast %12 : vector<8x1x128xf32> to vector<8x8x128xf32>
    %15 = vector.broadcast %13 : vector<1x8x128xf32> to vector<8x8x128xf32>
    %16 = arith.subf %14, %15 : vector<8x8x128xf32>
    %17 = vector.shape_cast %6 : vector<8x128xf32> to vector<8x1x128xf32>
    %18 = vector.shape_cast %6 : vector<8x128xf32> to vector<1x8x128xf32>
    %19 = vector.broadcast %17 : vector<8x1x128xf32> to vector<8x8x128xf32>
    %20 = vector.broadcast %18 : vector<1x8x128xf32> to vector<8x8x128xf32>
    %21 = arith.subf %19, %20 : vector<8x8x128xf32>
    %22 = arith.mulf %11, %11 : vector<8x8x128xf32>
    %23 = arith.mulf %16, %16 : vector<8x8x128xf32>
    %24 = arith.addf %22, %23 : vector<8x8x128xf32>
    %25 = arith.mulf %21, %21 : vector<8x8x128xf32>
    %26 = arith.addf %24, %25 : vector<8x8x128xf32>
    %cst = arith.constant 9.99999996E-13 : f32
    %27 = vector.broadcast %cst : f32 to vector<8x8x128xf32>
    %28 = arith.addf %26, %27 : vector<8x8x128xf32>
    %29 = math.sqrt %28 : vector<8x8x128xf32>
    %30 = tpu.iota {dimensions = array<i32: 0>} : vector<8x8x128xi32>
    %31 = tpu.iota {dimensions = array<i32: 1>} : vector<8x8x128xi32>
    %32 = arith.cmpi ne, %30, %31 : vector<8x8x128xi32>
    %cst_8 = arith.constant 5.200000e+00 : f32
    %33 = vector.broadcast %cst_8 : f32 to vector<8x8x128xf32>
    %34 = arith.cmpf olt, %29, %33 : vector<8x8x128xf32>
    %35 = arith.andi %32, %34 : vector<8x8x128xi1>
    %cst_9 = arith.constant 0.604152441 : f32
    %36 = vector.broadcast %cst_9 : f32 to vector<8x8x128xf32>
    %37 = arith.mulf %36, %29 : vector<8x8x128xf32>
    %38 = math.cos %37 : vector<8x8x128xf32>
    %cst_10 = arith.constant 5.000000e-01 : f32
    %39 = vector.broadcast %cst_10 : f32 to vector<8x8x128xf32>
    %40 = arith.mulf %39, %38 : vector<8x8x128xf32>
    %cst_11 = arith.constant 5.000000e-01 : f32
    %41 = vector.broadcast %cst_11 : f32 to vector<8x8x128xf32>
    %42 = arith.addf %40, %41 : vector<8x8x128xf32>
    %cst_12 = arith.constant 0.000000e+00 : f32
    %43 = vector.broadcast %cst_12 : f32 to vector<8x8x128xf32>
    %44 = arith.select %35, %42, %43 : vector<8x8x128xi1>, vector<8x8x128xf32>
    %cst_13 = arith.constant 1.040000e+01 : f32
    %45 = vector.broadcast %cst_13 : f32 to vector<8x8x128xf32>
    %46 = arith.select %35, %29, %45 : vector<8x8x128xi1>, vector<8x8x128xf32>
    %47 = vector.shape_cast %46 : vector<8x8x128xf32> to vector<8x8x1x128xf32>
    %c0_14 = arith.constant 0 : index
    %c0_15 = arith.constant 0 : index
    %48 = vector.load %arg3[%c0_14, %c0_15] : memref<8x128xf32, #tpu.memory_space<vmem>>, vector<8x128xf32>
    %49 = vector.shape_cast %48 : vector<8x128xf32> to vector<1x1x8x128xf32>
    %50 = vector.broadcast %47 : vector<8x8x1x128xf32> to vector<8x8x8x128xf32>
    %51 = vector.broadcast %49 : vector<1x1x8x128xf32> to vector<8x8x8x128xf32>
    %52 = arith.subf %50, %51 : vector<8x8x8x128xf32>
    %cst_16 = arith.constant -1.600000e+01 : f32
    %53 = vector.broadcast %cst_16 : f32 to vector<8x8x8x128xf32>
    %54 = arith.mulf %53, %52 : vector<8x8x8x128xf32>
    %55 = arith.mulf %54, %52 : vector<8x8x8x128xf32>
    %56 = math.exp %55 : vector<8x8x8x128xf32>
    %cst_17 = arith.constant 2.500000e-01 : f32
    %57 = vector.broadcast %cst_17 : f32 to vector<8x8x8x128xf32>
    %58 = arith.mulf %57, %56 : vector<8x8x8x128xf32>
    %59 = vector.shape_cast %44 : vector<8x8x128xf32> to vector<8x8x1x128xf32>
    %60 = vector.broadcast %59 : vector<8x8x1x128xf32> to vector<8x8x8x128xf32>
    %61 = arith.mulf %58, %60 : vector<8x8x8x128xf32>
    %62 = tpu.iota {dimensions = array<i32: 1>} : vector<8x4x128xi32>
    %63 = vector.shape_cast %0 : vector<8x128xi32> to vector<8x1x128xi32>
    %64 = vector.broadcast %63 : vector<8x1x128xi32> to vector<8x4x128xi32>
    %65 = arith.cmpi eq, %64, %62 : vector<8x4x128xi32>
    %66 = arith.extui %65 : vector<8x4x128xi1> to vector<8x4x128xi32>
    %67 = arith.sitofp %66 : vector<8x4x128xi32> to vector<8x4x128xf32>
    %68 = vector.extract_strided_slice %67 {offsets = [0, 0, 0], sizes = [8, 1, 128], strides = [1, 1, 1]} : vector<8x4x128xf32> to vector<8x1x128xf32>
    %69 = vector.shape_cast %68 : vector<8x1x128xf32> to vector<8x128xf32>
    %70 = vector.shape_cast %69 : vector<8x128xf32> to vector<1x8x1x128xf32>
    %71 = vector.broadcast %70 : vector<1x8x1x128xf32> to vector<8x8x8x128xf32>
    %72 = arith.mulf %61, %71 : vector<8x8x8x128xf32>
    %cst_18 = arith.constant dense<0.000000e+00> : vector<8x8x128xf32>
    %73 = vector.multi_reduction <add>, %72, %cst_18 [1] : vector<8x8x8x128xf32> to vector<8x8x128xf32>
    %74 = vector.extract_strided_slice %67 {offsets = [0, 1, 0], sizes = [8, 1, 128], strides = [1, 1, 1]} : vector<8x4x128xf32> to vector<8x1x128xf32>
    %75 = vector.shape_cast %74 : vector<8x1x128xf32> to vector<8x128xf32>
    %76 = vector.shape_cast %75 : vector<8x128xf32> to vector<1x8x1x128xf32>
    %77 = vector.broadcast %76 : vector<1x8x1x128xf32> to vector<8x8x8x128xf32>
    %78 = arith.mulf %61, %77 : vector<8x8x8x128xf32>
    %cst_19 = arith.constant dense<0.000000e+00> : vector<8x8x128xf32>
    %79 = vector.multi_reduction <add>, %78, %cst_19 [1] : vector<8x8x8x128xf32> to vector<8x8x128xf32>
    %80 = vector.extract_strided_slice %67 {offsets = [0, 2, 0], sizes = [8, 1, 128], strides = [1, 1, 1]} : vector<8x4x128xf32> to vector<8x1x128xf32>
    %81 = vector.shape_cast %80 : vector<8x1x128xf32> to vector<8x128xf32>
    %82 = vector.shape_cast %81 : vector<8x128xf32> to vector<1x8x1x128xf32>
    %83 = vector.broadcast %82 : vector<1x8x1x128xf32> to vector<8x8x8x128xf32>
    %84 = arith.mulf %61, %83 : vector<8x8x8x128xf32>
    %cst_20 = arith.constant dense<0.000000e+00> : vector<8x8x128xf32>
    %85 = vector.multi_reduction <add>, %84, %cst_20 [1] : vector<8x8x8x128xf32> to vector<8x8x128xf32>
    %86 = vector.extract_strided_slice %67 {offsets = [0, 3, 0], sizes = [8, 1, 128], strides = [1, 1, 1]} : vector<8x4x128xf32> to vector<8x1x128xf32>
    %87 = vector.shape_cast %86 : vector<8x1x128xf32> to vector<8x128xf32>
    %88 = vector.shape_cast %87 : vector<8x128xf32> to vector<1x8x1x128xf32>
    %89 = vector.broadcast %88 : vector<1x8x1x128xf32> to vector<8x8x8x128xf32>
    %90 = arith.mulf %61, %89 : vector<8x8x8x128xf32>
    %cst_21 = arith.constant dense<0.000000e+00> : vector<8x8x128xf32>
    %91 = vector.multi_reduction <add>, %90, %cst_21 [1] : vector<8x8x8x128xf32> to vector<8x8x128xf32>
    %92 = tpu.concatenate %73, %79, %85, %91 in 1 : vector<8x8x128xf32>, vector<8x8x128xf32>, vector<8x8x128xf32>, vector<8x8x128xf32> -> vector<8x32x128xf32>
    %93 = tpu.transpose %92, [0, 2, 1] : vector<8x32x128xf32> -> vector<8x128x32xf32>
    %94 = vector.shape_cast %93 : vector<8x128x32xf32> to vector<1024x32xf32>
    %95 = arith.truncf %94 : vector<1024x32xf32> to vector<1024x32xbf16>
    %c0_22 = arith.constant 0 : index
    %c0_23 = arith.constant 0 : index
    %96 = vector.load %arg4[%c0_22, %c0_23] : memref<32x128xbf16, #tpu.memory_space<vmem>>, vector<32x128xbf16>
    %cst_24 = arith.constant dense<0.000000e+00> : vector<1024x128xf32>
    %97 = tpu.matmul %95, %96, %cst_24 {dimension_numbers = #tpu.dot_dimension_numbers<[1], [0], [0], [1], [0, 0, 1, 1], [], []>} : vector<1024x32xbf16>, vector<32x128xbf16>, vector<1024x128xf32> -> vector<1024x128xf32>
    %c0_25 = arith.constant 0 : index
    %c0_26 = arith.constant 0 : index
    %98 = vector.load %arg5[%c0_25, %c0_26] : memref<1x128xf32, #tpu.memory_space<vmem>>, vector<1x128xf32>
    %99 = vector.broadcast %98 : vector<1x128xf32> to vector<1024x128xf32>
    %100 = arith.addf %97, %99 : vector<1024x128xf32>
    %cst_27 = arith.constant 0.000000e+00 : f32
    %101 = vector.broadcast %cst_27 : f32 to vector<1024x128xf32>
    %102 = arith.cmpf ogt, %100, %101 : vector<1024x128xf32>
    %cst_28 = arith.constant 0.000000e+00 : f32
    %103 = vector.broadcast %cst_28 : f32 to vector<1024x128xf32>
    %104 = arith.minimumf %100, %103 : vector<1024x128xf32>
    %cst_29 = arith.constant 1.000000e-01 : f32
    %105 = vector.broadcast %cst_29 : f32 to vector<1024x128xf32>
    %106 = arith.divf %104, %105 : vector<1024x128xf32>
    %107 = math.exp %106 : vector<1024x128xf32>
    %cst_30 = arith.constant 1.000000e+00 : f32
    %108 = vector.broadcast %cst_30 : f32 to vector<1024x128xf32>
    %109 = arith.subf %107, %108 : vector<1024x128xf32>
    %cst_31 = arith.constant 1.000000e-01 : f32
    %110 = vector.broadcast %cst_31 : f32 to vector<1024x128xf32>
    %111 = arith.mulf %110, %109 : vector<1024x128xf32>
    %112 = arith.select %102, %100, %111 : vector<1024x128xi1>, vector<1024x128xf32>
    %113 = vector.shape_cast %112 : vector<1024x128xf32> to vector<8x128x128xf32>
    %114 = tpu.transpose %113, [0, 2, 1] : vector<8x128x128xf32> -> vector<8x128x128xf32>
    %cst_32 = arith.constant 0.000000e+00 : f32
    %115 = vector.broadcast %cst_32 : f32 to vector<8x128xf32>
    %116 = vector.extract_strided_slice %114 {offsets = [0, 0, 0], sizes = [8, 32, 128], strides = [1, 1, 1]} : vector<8x128x128xf32> to vector<8x32x128xf32>
    %c0_33 = arith.constant 0 : index
    %c0_34 = arith.constant 0 : index
    %117 = vector.load %arg6[%c0_33, %c0_34] : memref<128x128xf32, #tpu.memory_space<vmem>>, vector<32x128xf32>
    %118 = vector.shape_cast %117 : vector<32x128xf32> to vector<1x32x128xf32>
    %119 = vector.broadcast %118 : vector<1x32x128xf32> to vector<8x32x128xf32>
    %120 = arith.mulf %116, %119 : vector<8x32x128xf32>
    %cst_35 = arith.constant dense<0.000000e+00> : vector<8x128xf32>
    %121 = vector.multi_reduction <add>, %120, %cst_35 [1] : vector<8x32x128xf32> to vector<8x128xf32>
    %c0_36 = arith.constant 0 : index
    %c0_37 = arith.constant 0 : index
    %122 = vector.load %arg7[%c0_36, %c0_37] : memref<4x128xf32, #tpu.memory_space<vmem>>, vector<1x128xf32>
    %123 = vector.shape_cast %122 : vector<1x128xf32> to vector<128xf32>
    %124 = vector.shape_cast %123 : vector<128xf32> to vector<1x128xf32>
    %125 = vector.broadcast %124 : vector<1x128xf32> to vector<8x128xf32>
    %126 = arith.addf %121, %125 : vector<8x128xf32>
    %127 = vector.extract_strided_slice %67 {offsets = [0, 0, 0], sizes = [8, 1, 128], strides = [1, 1, 1]} : vector<8x4x128xf32> to vector<8x1x128xf32>
    %128 = vector.shape_cast %127 : vector<8x1x128xf32> to vector<8x128xf32>
    %129 = arith.mulf %126, %128 : vector<8x128xf32>
    %130 = arith.addf %115, %129 : vector<8x128xf32>
    %131 = vector.extract_strided_slice %114 {offsets = [0, 32, 0], sizes = [8, 32, 128], strides = [1, 1, 1]} : vector<8x128x128xf32> to vector<8x32x128xf32>
    %c32 = arith.constant 32 : index
    %c0_38 = arith.constant 0 : index
    %132 = vector.load %arg6[%c32, %c0_38] : memref<128x128xf32, #tpu.memory_space<vmem>>, vector<32x128xf32>
    %133 = vector.shape_cast %132 : vector<32x128xf32> to vector<1x32x128xf32>
    %134 = vector.broadcast %133 : vector<1x32x128xf32> to vector<8x32x128xf32>
    %135 = arith.mulf %131, %134 : vector<8x32x128xf32>
    %cst_39 = arith.constant dense<0.000000e+00> : vector<8x128xf32>
    %136 = vector.multi_reduction <add>, %135, %cst_39 [1] : vector<8x32x128xf32> to vector<8x128xf32>
    %c1_40 = arith.constant 1 : index
    %c0_41 = arith.constant 0 : index
    %137 = vector.load %arg7[%c1_40, %c0_41] : memref<4x128xf32, #tpu.memory_space<vmem>>, vector<1x128xf32>
    %138 = vector.shape_cast %137 : vector<1x128xf32> to vector<128xf32>
    %139 = vector.shape_cast %138 : vector<128xf32> to vector<1x128xf32>
    %140 = vector.broadcast %139 : vector<1x128xf32> to vector<8x128xf32>
    %141 = arith.addf %136, %140 : vector<8x128xf32>
    %142 = vector.extract_strided_slice %67 {offsets = [0, 1, 0], sizes = [8, 1, 128], strides = [1, 1, 1]} : vector<8x4x128xf32> to vector<8x1x128xf32>
    %143 = vector.shape_cast %142 : vector<8x1x128xf32> to vector<8x128xf32>
    %144 = arith.mulf %141, %143 : vector<8x128xf32>
    %145 = arith.addf %130, %144 : vector<8x128xf32>
    %146 = vector.extract_strided_slice %114 {offsets = [0, 64, 0], sizes = [8, 32, 128], strides = [1, 1, 1]} : vector<8x128x128xf32> to vector<8x32x128xf32>
    %c64 = arith.constant 64 : index
    %c0_42 = arith.constant 0 : index
    %147 = vector.load %arg6[%c64, %c0_42] : memref<128x128xf32, #tpu.memory_space<vmem>>, vector<32x128xf32>
    %148 = vector.shape_cast %147 : vector<32x128xf32> to vector<1x32x128xf32>
    %149 = vector.broadcast %148 : vector<1x32x128xf32> to vector<8x32x128xf32>
    %150 = arith.mulf %146, %149 : vector<8x32x128xf32>
    %cst_43 = arith.constant dense<0.000000e+00> : vector<8x128xf32>
    %151 = vector.multi_reduction <add>, %150, %cst_43 [1] : vector<8x32x128xf32> to vector<8x128xf32>
    %c2_44 = arith.constant 2 : index
    %c0_45 = arith.constant 0 : index
    %152 = vector.load %arg7[%c2_44, %c0_45] : memref<4x128xf32, #tpu.memory_space<vmem>>, vector<1x128xf32>
    %153 = vector.shape_cast %152 : vector<1x128xf32> to vector<128xf32>
    %154 = vector.shape_cast %153 : vector<128xf32> to vector<1x128xf32>
    %155 = vector.broadcast %154 : vector<1x128xf32> to vector<8x128xf32>
    %156 = arith.addf %151, %155 : vector<8x128xf32>
    %157 = vector.extract_strided_slice %67 {offsets = [0, 2, 0], sizes = [8, 1, 128], strides = [1, 1, 1]} : vector<8x4x128xf32> to vector<8x1x128xf32>
    %158 = vector.shape_cast %157 : vector<8x1x128xf32> to vector<8x128xf32>
    %159 = arith.mulf %156, %158 : vector<8x128xf32>
    %160 = arith.addf %145, %159 : vector<8x128xf32>
    %161 = vector.extract_strided_slice %114 {offsets = [0, 96, 0], sizes = [8, 32, 128], strides = [1, 1, 1]} : vector<8x128x128xf32> to vector<8x32x128xf32>
    %c96 = arith.constant 96 : index
    %c0_46 = arith.constant 0 : index
    %162 = vector.load %arg6[%c96, %c0_46] : memref<128x128xf32, #tpu.memory_space<vmem>>, vector<32x128xf32>
    %163 = vector.shape_cast %162 : vector<32x128xf32> to vector<1x32x128xf32>
    %164 = vector.broadcast %163 : vector<1x32x128xf32> to vector<8x32x128xf32>
    %165 = arith.mulf %161, %164 : vector<8x32x128xf32>
    %cst_47 = arith.constant dense<0.000000e+00> : vector<8x128xf32>
    %166 = vector.multi_reduction <add>, %165, %cst_47 [1] : vector<8x32x128xf32> to vector<8x128xf32>
    %c3 = arith.constant 3 : index
    %c0_48 = arith.constant 0 : index
    %167 = vector.load %arg7[%c3, %c0_48] : memref<4x128xf32, #tpu.memory_space<vmem>>, vector<1x128xf32>
    %168 = vector.shape_cast %167 : vector<1x128xf32> to vector<128xf32>
    %169 = vector.shape_cast %168 : vector<128xf32> to vector<1x128xf32>
    %170 = vector.broadcast %169 : vector<1x128xf32> to vector<8x128xf32>
    %171 = arith.addf %166, %170 : vector<8x128xf32>
    %172 = vector.extract_strided_slice %67 {offsets = [0, 3, 0], sizes = [8, 1, 128], strides = [1, 1, 1]} : vector<8x4x128xf32> to vector<8x1x128xf32>
    %173 = vector.shape_cast %172 : vector<8x1x128xf32> to vector<8x128xf32>
    %174 = arith.mulf %171, %173 : vector<8x128xf32>
    %175 = arith.addf %160, %174 : vector<8x128xf32>
    %cst_49 = arith.constant dense<0.000000e+00> : vector<128xf32>
    %176 = vector.multi_reduction <add>, %175, %cst_49 [0] : vector<8x128xf32> to vector<128xf32>
    %cst_50 = arith.constant 27.2113857 : f32
    %177 = vector.broadcast %cst_50 : f32 to vector<128xf32>
    %178 = arith.mulf %176, %177 : vector<128xf32>
    %c0_51 = arith.constant 0 : index
    %c0_52 = arith.constant 0 : index
    %179 = vector.load %arg8[%c0_51, %c0_52] : memref<1x128xf32, #tpu.memory_space<vmem>>, vector<1x128xf32>
    %180 = vector.shape_cast %179 : vector<1x128xf32> to vector<128xf32>
    %181 = vector.shape_cast %178 : vector<128xf32> to vector<1x128xf32>
    tpu.vector_store %arg8[%c0_51, %c0_52], %181 {strides = array<i32>} : memref<1x128xf32, #tpu.memory_space<vmem>>, vector<1x128xf32>,
    return
  }
  func.func @transform_0(%arg0: i32) -> (i32, i32) {
    %c0_i32 = arith.constant 0 : i32
    %c0_i32_0 = arith.constant 0 : i32
    return %c0_i32, %arg0 : i32, i32
  }
  func.func @transform_1(%arg0: i32) -> (i32, i32, i32) {
    %c0_i32 = arith.constant 0 : i32
    %c0_i32_0 = arith.constant 0 : i32
    %c0_i32_1 = arith.constant 0 : i32
    return %c0_i32, %c0_i32_0, %arg0 : i32, i32, i32
  }
  func.func @transform_2(%arg0: i32) -> (i32, i32) {
    %c0_i32 = arith.constant 0 : i32
    %c0_i32_0 = arith.constant 0 : i32
    %c0_i32_1 = arith.constant 0 : i32
    return %c0_i32, %c0_i32_0 : i32, i32
  }
  func.func @transform_3(%arg0: i32) -> (i32, i32) {
    %c0_i32 = arith.constant 0 : i32
    %c0_i32_0 = arith.constant 0 : i32
    %c0_i32_1 = arith.constant 0 : i32
    return %c0_i32, %c0_i32_0 : i32, i32
  }
  func.func @transform_4(%arg0: i32) -> (i32, i32) {
    %c0_i32 = arith.constant 0 : i32
    %c0_i32_0 = arith.constant 0 : i32
    %c0_i32_1 = arith.constant 0 : i32
    return %c0_i32, %c0_i32_0 : i32, i32
  }
  func.func @transform_5(%arg0: i32) -> (i32, i32) {
    %c0_i32 = arith.constant 0 : i32
    %c0_i32_0 = arith.constant 0 : i32
    %c0_i32_1 = arith.constant 0 : i32
    return %c0_i32, %c0_i32_0 : i32, i32
  }
  func.func @transform_6(%arg0: i32) -> (i32, i32) {
    %c0_i32 = arith.constant 0 : i32
    %c0_i32_0 = arith.constant 0 : i32
    %c0_i32_1 = arith.constant 0 : i32
    return %c0_i32, %c0_i32_0 : i32, i32
  }
  func.func @transform_7(%arg0: i32) -> (i32, i32) {
    %c0_i32 = arith.constant 0 : i32
    %c0_i32_0 = arith.constant 0 : i32
    return %arg0, %c0_i32 : i32, i32
  }
}

</mosaic_0001>

<bundles_post_ra>
// kernel: tpu_custom_call.1
= control target key start
LH: loop header
LB: loop body
LE: loop exit
PB: predicated region body
PF: predicated region fallthrough
CT: control target
= control target key end

     0   :  { %12 = vsyncpa [#allocation3], 0  ;;  %s13201_s0 = inlined_call_operand.hbm [shape: s32[8,128], index: 0, kind: input, shape index: {}]   ;;  %s13202_s1 = inlined_call_operand.hbm [shape: f32[3,8,128], index: 1, kind: input, shape index: {}]   ;;  %s13203_s2 = inlined_call_operand.hbm [shape: f32[8,128], index: 2, kind: input, shape index: {}]   ;;  %s13204_s3 = inlined_call_operand.hbm [shape: bf16[32,128], index: 3, kind: input, shape index: {}]   ;;  %s13205_s4 = inlined_call_operand.vmem [shape: f32[1,128], index: 4, kind: input, shape index: {}]   ;;  %s13206_s5 = inlined_call_operand.hbm [shape: f32[128,128], index: 5, kind: input, shape index: {}]   ;;  %s13207_s6 = inlined_call_operand.vmem [shape: f32[4,128], index: 6, kind: input, shape index: {}]   ;;  %s13208_s7 = inlined_call_operand.hbm [shape: f32[1,128], index: 7, kind: output, shape index: {}]  }
   0x1   :  { %13 = vsyncpa [#allocation6], 0 }
   0x2   :  { %14 = vsyncpa [#allocation9], 0 }
   0x3   :  { %15 = vsyncpa [#allocation4], 0  ;;  %s8460_s24 = smov [#allocation5]   ;;  %s8320_s28 = scalar_lea.hbm %s13202_s1, 384 }
   0x4   :  { %s31_s25 = sshll.u32 %s8460_s24, 4  ;;  %p8321_p0 = scmp.ne.s32.totalorder %s13202_s1, %s8320_s28  ;;  %s32_s25 = int_to_ptr.vmem [resolvable:$true] %s31_s25 }
   0x5   :  { %p8324_p1 = scmp.lt.u32.totalorder %s8320_s28, %s13202_s1 }
   0x7   :  { %p8326_p2 = pnand %p8324_p1, %p8321_p0 }
   0x9   :  { %8329 = shalt.err (!%p8326_p2)
}
   0xa   :  { %s8330_s10 = scalar_lea.vmem %s32_s25, 384  ;;  %p8335_p4 = scmp.lt.s32.totalorder %s32_s25, %s32_s25 }
   0xb   :  { %p8331_p3 = scmp.ne.s32.totalorder %s32_s25, %s8330_s10  ;;  %p8336_p5 = scmp.lt.s32.totalorder %s8330_s10, %s8330_s10 }
   0xd   :  { %p8337_p6 = por %p8336_p5, %p8335_p4 }
   0xf   :  { %p8338_p7 = pnand %p8337_p6, %p8331_p3 }
  0x11   :  { %8341 = shalt.err (!%p8338_p7)
}
  0x12   :  { %s8461_s11 = smov 128   ;;  %s8462_s12 = smov 8  }
  0x13   :  { %37 = dma.hbm_to_vmem [thread:$0]  %s13202_s1, 384, %s32_s25, [#allocation6], %s8461_s11, %s8461_s11, %s8462_s12  }
  0x14   :  { %s8463_s15 = smov [#allocation8]   ;;  %s8342_s19 = scalar_lea.hbm %s13204_s3, 256 }
  0x15   :  { %s53_s16 = sshll.u32 %s8463_s15, 4  ;;  %p8343_p8 = scmp.ne.s32.totalorder %s13204_s3, %s8342_s19  ;;  %s54_s16 = int_to_ptr.vmem [resolvable:$true] %s53_s16 }
  0x16   :  { %p8346_p9 = scmp.lt.u32.totalorder %s8342_s19, %s13204_s3 }
  0x18   :  { %p8348_p10 = pnand %p8346_p9, %p8343_p8 }
  0x1a   :  { %8351 = shalt.err (!%p8348_p10)
}
  0x1b   :  { %s8352_s24 = scalar_lea.vmem %s54_s16, 256  ;;  %p8357_p12 = scmp.lt.s32.totalorder %s54_s16, %s54_s16 }
  0x1c   :  { %p8353_p11 = scmp.ne.s32.totalorder %s54_s16, %s8352_s24  ;;  %p8358_p13 = scmp.lt.s32.totalorder %s8352_s24, %s8352_s24 }
  0x1e   :  { %p8359_p0 = por %p8358_p13, %p8357_p12 }
  0x20   :  { %p8360_p1 = pnand %p8359_p0, %p8353_p11 }
  0x22   :  { %8363 = shalt.err (!%p8360_p1)
}
  0x23   :  { %s8464_s1 = smov 64   ;;  %s8465_s25 = smov 4  }
  0x24   :  { %59 = dma.hbm_to_vmem [thread:$0]  %s13204_s3, 256, %s54_s16, [#allocation9], %s8464_s1, %s8464_s1, %s8465_s25  }
  0x25   :  { %s8466_s28 = smov [#allocation2]   ;;  %s8467_s30 = smov [#allocation7]  }
  0x26   :  { %s22_s29 = sshll.u32 %s8466_s28, 4  ;;  %s44_s8 = sshll.u32 %s8467_s30, 4  ;;  %s23_s29 = int_to_ptr.vmem [resolvable:$true] %s22_s29  ;;  %s45_s8 = int_to_ptr.vmem [resolvable:$true] %s44_s8 }
  0x27   :  { %s8364_s13 = scalar_lea.hbm %s13201_s0, 128 }
  0x28   :  { %p8365_p2 = scmp.ne.s32.totalorder %s13201_s0, %s8364_s13  ;;  %p8368_p3 = scmp.lt.u32.totalorder %s8364_s13, %s13201_s0 }
  0x2a   :  { %p8370_p4 = pnand %p8368_p3, %p8365_p2 }
  0x2c   :  { %8373 = shalt.err (!%p8370_p4)
}
  0x2d   :  { %s8374_s3 = scalar_lea.vmem %s23_s29, 128  ;;  %p8379_p6 = scmp.lt.s32.totalorder %s23_s29, %s23_s29 }
  0x2e   :  { %p8375_p5 = scmp.ne.s32.totalorder %s23_s29, %s8374_s3  ;;  %p8380_p7 = scmp.lt.s32.totalorder %s8374_s3, %s8374_s3 }
  0x30   :  { %p8381_p8 = por %p8380_p7, %p8379_p6 }
  0x32   :  { %p8382_p9 = pnand %p8381_p8, %p8375_p5 }
  0x34   :  { %8385 = shalt.err (!%p8382_p9)
}
  0x35   :  { %25 = dma.hbm_to_vmem [thread:$0]  %s13201_s0, 128, %s23_s29, [#allocation3]  }
  0x36   :  { %s8386_s22 = scalar_lea.hbm %s13203_s2, 128 }
  0x37   :  { %p8387_p10 = scmp.ne.s32.totalorder %s13203_s2, %s8386_s22  ;;  %p8390_p11 = scmp.lt.u32.totalorder %s8386_s22, %s13203_s2 }
  0x39   :  { %p8392_p12 = pnand %p8390_p11, %p8387_p10 }
  0x3b   :  { %8395 = shalt.err (!%p8392_p12)
}
  0x3c   :  { %s8396_s26 = scalar_lea.vmem %s45_s8, 128  ;;  %p8401_p0 = scmp.lt.s32.totalorder %s45_s8, %s45_s8 }
  0x3d   :  { %p8397_p13 = scmp.ne.s32.totalorder %s45_s8, %s8396_s26  ;;  %p8402_p1 = scmp.lt.s32.totalorder %s8396_s26, %s8396_s26 }
  0x3f   :  { %p8403_p2 = por %p8402_p1, %p8401_p0 }
  0x41   :  { %p8404_p3 = pnand %p8403_p2, %p8397_p13 }
  0x43   :  { %8407 = shalt.err (!%p8404_p3)
}
  0x44   :  { %47 = dma.hbm_to_vmem [thread:$0]  %s13203_s2, 128, %s45_s8, [#allocation6]  }
  0x45   :  { %s8468_s28 = smov [#allocation10]   ;;  %s8408_s10 = scalar_lea.hbm %s13206_s5, 2048 }
  0x46   :  { %s67_s29 = sshll.u32 %s8468_s28, 4  ;;  %p8409_p4 = scmp.ne.s32.totalorder %s13206_s5, %s8408_s10  ;;  %s68_s29 = int_to_ptr.vmem [resolvable:$true] %s67_s29 }
  0x47   :  { %p8412_p5 = scmp.lt.u32.totalorder %s8408_s10, %s13206_s5 }
  0x49   :  { %p8414_p6 = pnand %p8412_p5, %p8409_p4 }
  0x4b   :  { %8417 = shalt.err (!%p8414_p6)
}
  0x4c   :  { %s8418_s18 = scalar_lea.vmem %s68_s29, 2048  ;;  %p8423_p8 = scmp.lt.s32.totalorder %s68_s29, %s68_s29 }
  0x4d   :  { %p8419_p7 = scmp.ne.s32.totalorder %s68_s29, %s8418_s18  ;;  %p8424_p9 = scmp.lt.s32.totalorder %s8418_s18, %s8418_s18 }
  0x4f   :  { %p8425_p10 = por %p8424_p9, %p8423_p8 }
  0x51   :  { %p8426_p11 = pnand %p8425_p10, %p8419_p7 }
  0x53   :  { %8429 = shalt.err (!%p8426_p11)
}
  0x54   :  { %73 = dma.hbm_to_vmem [thread:$0]  %s13206_s5, 2048, %s68_s29, [#allocation9], %s8461_s11, %s8461_s11, %s8462_s12  }
  0x55   :  { %8452 = dma.done.wait [#allocation3], 128  }
  0x56   :  { %8453 = vsyncadd [#allocation3], 4294967168 }
  0x57   :  { %8454 = dma.done.wait [#allocation6], 512  }
  0x58   :  { %8455 = vsyncadd [#allocation6], 4294966784 }
  0x59   :  { %8456 = dma.done.wait [#allocation9], 2304  }
  0x5a   :  { %8457 = vsyncadd [#allocation9], 4294964992  ;;  %v103_v0 = vlaneseq  ;;  %v8469_v1 = vmov 1966171168   ;;  %v8589_v6 = vld [vmem:[#allocation5] sm:$0xff]  ;;  %v92_v7 = vld [vmem:[#allocation2] sm:$0xff] }
  0x5b   :  { %v101_v2 = vunpack.c.l.s4 %v8469_v1  ;;  %v8591_v8 = vld [vmem:[#allocation5 + $0x8] sm:$0xff]  ;;  %v8593_v9 = vld [vmem:[#allocation5 + $0x10] sm:$0xff]  ;;  %v99_v10 = vcombine.high %v8589_v6, %v8589_v6  ;;  %v3275_v44 = vcombine.high %v92_v7, %v92_v7 }
  0x5c   :  { %v8584_v3 = vshrl.u32 %v103_v0, 7  ;;  %13572 = vst [vmem:[#allocation17_spill] sm:$0xff] %v8591_v8  ;;  %13573 = vst [vmem:[#allocation18_spill] sm:$0xff] %v8593_v9  ;;  %v197_v13 = vcombine.high %v8591_v8, %v8591_v8  ;;  %v295_v15 = vcombine.high %v8593_v9, %v8593_v9 }
  0x5d   :  { %v102_v4 = vunpack.c.0.s8 %v101_v2 }
  0x5e   :  { %13571 = vst [vmem:[#allocation16_spill] sm:$0xff] %v8584_v3  ;;  %v8602_v12 = vsub.s32 0, %v8584_v3  ;;  %vm498_vm9 = vcmp.ne.s32.totalorder %v8584_v3, 0  ;;  %vm502_vm13 = vcmp.ne.s32.totalorder %v8584_v3, 4 }
  0x5f   :  { %v8587_v5 = vsub.s32 %v102_v4, %v8584_v3 }
  0x61   :  { %v8599_v11 = vrot.slane %v8589_v6, %v8587_v5  ;;  %v8608_v14 = vrot.slane %v8591_v8, %v8587_v5  ;;  %v8614_v16 = vrot.slane %v8593_v9, %v8587_v5  ;;  %v8617_v17 = vrot.slane %v99_v10, %v8587_v5 }
  0x62   :  { %v8624_v19 = vrot.slane %v197_v13, %v8587_v5  ;;  %v8631_v21 = vrot.slane %v295_v15, %v8587_v5  ;;  %v3282_v25 = vrot.slane %v92_v7, %v8587_v5  ;;  %v3289_v49 = vrot.slane %v3275_v44, %v8587_v5 }
  0x63   :  { %v8621_v18 = vrot.slane %v8599_v11, %v8587_v5  ;;  %v8628_v20 = vrot.slane %v8608_v14, %v8587_v5  ;;  %v8635_v22 = vrot.slane %v8614_v16, %v8587_v5  ;;  %v8639_v23 = vrot.slane %v8617_v17, %v8587_v5 }
  0x64   :  { %v8646_v26 = vrot.slane %v8624_v19, %v8587_v5  ;;  %v8652_v28 = vrot.slane %v8631_v21, %v8587_v5  ;;  %v3290_v38 = vcombine.high %v3282_v25, %v3282_v25  ;;  %v3298_v45 = vrot.slane %v3282_v25, %v8587_v5 }
  0x65   :  { %13574 = vst [vmem:[#allocation19_spill] sm:$0xff] %v8621_v18  ;;  %13575 = vst [vmem:[#allocation20_spill] sm:$0xff] %v8628_v20  ;;  %v151_v24 = vrot.slane %v8621_v18, %v8602_v12  ;;  %v249_v27 = vrot.slane %v8628_v20, %v8602_v12  ;;  %v347_v29 = vrot.slane %v8635_v22, %v8602_v12  ;;  %v13244_v18 = vmov 2131351028  }
  0x66   :  { %13576 = vst [vmem:[#allocation21_spill] sm:$0xff] %v8635_v22  ;;  %13577 = vst [vmem:[#allocation22_spill] sm:$0xff] %v8639_v23  ;;  %v167_v30 = vrot.slane %v8639_v23, %v8602_v12  ;;  %v265_v32 = vrot.slane %v8646_v26, %v8602_v12  ;;  %v363_v34 = vrot.slane %v8652_v28, %v8602_v12 }
  0x67   :  { %13578 = vst [vmem:[#allocation23_spill] sm:$0xff] %v8646_v26  ;;  %13579 = vst [vmem:[#allocation24_spill] sm:$0xff] %v8652_v28  ;;  %v188_v31 = vsub.f32 %v151_v24, %v8589_v6  ;;  %v286_v33 = vsub.f32 %v249_v27, %v8591_v8  ;;  %v384_v35 = vsub.f32 %v347_v29, %v8593_v9  ;;  %v8470_v29 = vmov 0.0  }
  0x68   :  { %v192_v36 = vsub.f32 %v167_v30, %v8589_v6  ;;  %v290_v39 = vsub.f32 %v265_v32, %v8591_v8  ;;  %v388_v40 = vsub.f32 %v363_v34, %v8593_v9  ;;  %v3312_v52 = vrot.slane %v3290_v38, %v8587_v5 }
  0x69   :  { %v392_v37 = vmul.f32 %v188_v31, %v188_v31  ;;  %v400_v41 = vmul.f32 %v286_v33, %v286_v33  ;;  %v416_v42 = vmul.f32 %v384_v35, %v384_v35  ;;  %v3291_v53 = vcombine.high %v3289_v49, %v3289_v49 }
  0x6a   :  { %v396_v43 = vmul.f32 %v192_v36, %v192_v36  ;;  %v404_v46 = vmul.f32 %v290_v39, %v290_v39  ;;  %v420_v48 = vmul.f32 %v388_v40, %v388_v40  ;;  %v3320_v54 = vcombine.high %v3298_v45, %v3298_v45 }
  0x6b   :  { %v408_v47 = vadd.f32 %v400_v41, %v392_v37  ;;  %v3305_v57 = vrot.slane %v3289_v49, %v8587_v5  ;;  %v3322_v58 = vcombine.high %v3312_v52, %v3312_v52  ;;  %v3319_v59 = vrot.slane %v3291_v53, %v8587_v5 }
  0x6c   :  { %v412_v50 = vadd.f32 %v404_v46, %v396_v43  ;;  %v3327_v61 = vrot.slane %v3298_v45, %v8602_v12  ;;  %v3331_v62 = vrot.slane %v3312_v52, %v8602_v12  ;;  %v3335_v1 = vrot.slane %v3320_v54, %v8602_v12 }
  0x6d   :  { %v424_v51 = vadd.f32 %v416_v42, %v408_v47  ;;  %v3321_v63 = vcombine.high %v3305_v57, %v3305_v57  ;;  %v3323_v0 = vcombine.high %v3319_v59, %v3319_v59  ;;  %v3339_v2 = vrot.slane %v3322_v58, %v8602_v12 }
  0x6e   :  { %v428_v55 = vadd.f32 %v420_v48, %v412_v50  ;;  %v3343_v4 = vrot.slane %v3305_v57, %v8602_v12  ;;  %v114_v7 = vcombine.high %v8599_v11, %v8599_v11  ;;  %v3347_v10 = vrot.slane %v3319_v59, %v8602_v12 }
  0x6f   :  { %v432_v56 = vadd.f32 1e-12, %v424_v51  ;;  %v3351_v13 = vrot.slane %v3321_v63, %v8602_v12  ;;  %v3355_v15 = vrot.slane %v3323_v0, %v8602_v12  ;;  %vm3356_vm0 = vcmp.eq.s32.totalorder %v3327_v61, %v8584_v3 }
  0x70   :  { %v8673_v60 = vadd.f32 1e-12, %v428_v55  ;;  %vm3357_vm1 = vcmp.eq.s32.totalorder %v3331_v62, %v8584_v3  ;;  %vm3358_vm2 = vcmp.eq.s32.totalorder %v3335_v1, %v8584_v3  ;;  %vm3359_vm3 = vcmp.eq.s32.totalorder %v3339_v2, %v8584_v3 }
  0x71   :  { %7858 = vrsqrt.f32 %v432_v56  ;;  %vm8691_vm4 = vcmp.eq.s32.totalorder %v3343_v4, %v8584_v3  ;;  %v115_v11 = vcombine.high %v8617_v17, %v8617_v17  ;;  %v8698_v25 = vrot.slane %v114_v7, %v8587_v5 }
  0x72   :  { %7860 = vrsqrt.f32 %v8673_v60  ;;  %vm8701_vm5 = vcmp.eq.s32.totalorder %v3347_v10, %v8584_v3  ;;  %vm3362_vm6 = vcmp.eq.s32.totalorder %v3351_v13, %v8584_v3  ;;  %v8706_v30 = vsel %vm3356_vm0, 1.0, %v8470_v29 }
  0x73   :  { %13582 = vst [vmem:[#allocation25_spill] sm:$0xff] %v8698_v25  ;;  %13585 = vst [vmem:[#allocation26_spill] sm:$0xff] %v8706_v30  ;;  %v8708_v31 = vsel %vm3357_vm1, 1.0, %v8470_v29  ;;  %vm442_vm7 = vcmp.eq.f32.partialorder %v432_v56, inf  ;;  %vm444_vm8 = vcmp.eq.f32.partialorder %v432_v56, 0.0  ;;  %vm3363_vm10 = vcmp.eq.s32.totalorder %v3355_v15, %v8584_v3 }
  0x74   :  { %13586 = vst [vmem:[#allocation27_spill] sm:$0xff] %v8708_v31  ;;  %v8712_v17 = vsel %vm3358_vm2, 1.0, %v8470_v29  ;;  %v445_v32 = vand.u32 2147483648, %v432_v56  ;;  %vm470_vm11 = vcmp.eq.f32.partialorder %v8673_v60, inf  ;;  %v8717_v33 = vsel %vm3359_vm3, 1.0, %v8470_v29 }
  0x75   :  { %13587 = vst [vmem:[#allocation28_spill] sm:$0xff] %v8712_v17  ;;  %13588 = vst [vmem:[#allocation29_spill] sm:$0xff] %v8717_v33  ;;  %v8721_v34 = vsel %vm8691_vm4, 1.0, %v8470_v29  ;;  %vm472_vm12 = vcmp.eq.f32.partialorder %v8673_v60, 0.0  ;;  %v473_v36 = vand.u32 2147483648, %v8673_v60  ;;  %v8727_v37 = vsel %vm8701_vm5, 1.0, %v8470_v29 }
  0x76   :  { %13589 = vst [vmem:[#allocation30_spill] sm:$0xff] %v8721_v34  ;;  %13590 = vst [vmem:[#allocation31_spill] sm:$0xff] %v8727_v37  ;;  %v8731_v38 = vsel %vm3362_vm6, 1.0, %v8470_v29  ;;  %v8733_v40 = vsel %vm3363_vm10, 1.0, %v8470_v29  ;;  %v8737_v41 = vrot.slane %v8706_v30, %v8602_v12  ;;  %v8741_v42 = vrot.slane %v8708_v31, %v8602_v12 }
  0x77   :  { %13591 = vst [vmem:[#allocation32_spill] sm:$0xff] %v8731_v38  ;;  %13592 = vst [vmem:[#allocation33_spill] sm:$0xff] %v8733_v40  ;;  %v8746_v44 = vrot.slane %v8712_v17, %v8602_v12  ;;  %v8750_v45 = vrot.slane %v8717_v33, %v8602_v12  ;;  %v8754_v46 = vrot.slane %v8721_v34, %v8602_v12  ;;  %v3534_v47 = vsub.s32 1, %v8584_v3 }
  0x78   :  { %13593 = vst [vmem:[#allocation34_spill] sm:$0xff] %v8737_v41  ;;  %13594 = vst [vmem:[#allocation35_spill] sm:$0xff] %v8741_v42  ;;  %v8761_v50 = vrot.slane %v8727_v37, %v8602_v12  ;;  %v8765_v51 = vrot.slane %v8731_v38, %v8602_v12  ;;  %v8770_v53 = vrot.slane %v8733_v40, %v8602_v12  ;;  %v8773_v54 = vsub.s32 2, %v8584_v3 }
  0x79   :  { %13595 = vst [vmem:[#allocation36_spill] sm:$0xff] %v8746_v44  ;;  %13596 = vst [vmem:[#allocation37_spill] sm:$0xff] %v8750_v45  ;;  %v8776_v55 = vrot.slane %v115_v11, %v8587_v5  ;;  %v212_v59 = vcombine.high %v8608_v14, %v8608_v14  ;;  %v8790_v62 = vrot.slane %v8706_v30, %v3534_v47  ;;  %v13609_v13 = vmov 0 }
  0x7a   :  { %13597 = vst [vmem:[#allocation38_spill] sm:$0xff] %v8754_v46  ;;  %13598 = vst [vmem:[#allocation39_spill] sm:$0xff] %v8761_v50  ;;  %v8793_v63 = vrot.slane %v8708_v31, %v3534_v47  ;;  %v8799_v2 = vrot.slane %v8712_v17, %v3534_v47  ;;  %v8802_v4 = vrot.slane %v8717_v33, %v3534_v47  ;;  %v8829_v11 = vsub.s32 3, %v8584_v3 }
  0x7b   :  { %v7859_v35 = vpop.eup %7858  ;;  %13599 = vst [vmem:[#allocation40_spill] sm:$0xff] %v8765_v51  ;;  %13600 = vst [vmem:[#allocation41_spill] sm:$0xff] %v8770_v53  ;;  %v8809_v7 = vrot.slane %v8727_v37, %v3534_v47  ;;  %v8813_v10 = vrot.slane %v8706_v30, %v8773_v54  ;;  %v8822_v15 = vrot.slane %v8731_v38, %v3534_v47 }
  0x7c   :  { %v441_v39 = vmul.f32 %v7859_v35, %v432_v56  ;;  %v7861_v43 = vpop.eup %7860  ;;  %13601 = vst [vmem:[#allocation42_spill] sm:$0xff] %v8776_v55  ;;  %13602 = vst [vmem:[#allocation43_spill] sm:$0xff] %v8790_v62  ;;  %v8826_v24 = vrot.slane %v8708_v31, %v8773_v54  ;;  %v171_v27 = vrot.slane %v8776_v55, %v8602_v12 }
  0x7d   :  { %v469_v49 = vmul.f32 %v7861_v43, %v8673_v60  ;;  %13603 = vst [vmem:[#allocation44_spill] sm:$0xff] %v8793_v63  ;;  %13604 = vst [vmem:[#allocation45_spill] sm:$0xff] %v8799_v2  ;;  %v8843_v43 = vrot.slane %v8717_v33, %v8773_v54  ;;  %v8859_v55 = vrot.slane %v8733_v40, %v3534_v47 }
  0x7e   :  { %v443_v48 = vsel %vm442_vm7, %v432_v56, %v441_v39  ;;  %v155_v56 = vrot.slane %v8698_v25, %v8602_v12  ;;  %13605 = vst [vmem:[#allocation46_spill] sm:$0xff] %v8802_v4  ;;  %13607 = vst [vmem:[#allocation48_spill] sm:$0xff] %v8809_v7  ;;  %v8839_v39 = vrot.slane %v8712_v17, %v8773_v54 }
  0x7f   :  { %v446_v52 = vsel %vm444_vm8, %v445_v32, %v443_v48  ;;  %v471_v57 = vsel %vm470_vm11, %v8673_v60, %v469_v49  ;;  %v8806_v60 = vrot.slane %v8721_v34, %v3534_v47  ;;  %13608 = vst [vmem:[#allocation49_spill] sm:$0xff] %v8813_v10  ;;  %13612 = vst [vmem:[#allocation51_spill] sm:$0xff] %v8822_v15 }
  0x80   :  { %v8781_v58 = vmul.f32 0.60415244, %v446_v52  ;;  %v474_v61 = vsel %vm472_vm12, %v473_v36, %v471_v57  ;;  %vm506_vm14 = vcmp.lt.f32.partialorder %v446_v52, 5.2  ;;  %13613 = vst [vmem:[#allocation52_spill] sm:$0xff] %v8826_v24  ;;  %13614 = vst [vmem:[#allocation53_spill] sm:$0xff] %v8839_v39  ;;  %v8846_v48 = vsub.f32 %v155_v56, %v8589_v6 }
  0x81   :  { %v8795_v0 = vmul.f32 0.60415244, %v474_v61  ;;  %13606 = vst [vmem:[#allocation47_spill] sm:$0xff] %v8806_v60  ;;  %vm8817_vm15 = vmand %vm498_vm9, %vm506_vm14  ;;  %vm510_vm0 = vcmp.lt.f32.partialorder %v474_v61, 5.2  ;;  %v13617_v36 = vmov 0  ;;  %v8863_v56 = vrot.slane %v8721_v34, %v8773_v54 }
  0x82   :  { %v13209_v1 = vand.u32 2147483647, %v8781_v58  ;;  %v533_v14 = vand.u32 2139095040, %v8781_v58  ;;  %v13610_v13 = vsel %vm8817_vm15, 4294967295, %v13609_v13  ;;  %13615 = vst [vmem:[#allocation54_spill] sm:$0xff] %v8843_v43  ;;  %13616 = vst [vmem:[#allocation55_spill] sm:$0xff] %v8846_v48  ;;  %v8874_v3 = vsub.f32 %v171_v27, %v8589_v6 }
  0x83   :  { %13611 = vst [vmem:[#allocation50_spill] sm:$0xff] %v13610_v13  ;;  %v945_v35 = vand.u32 2139095040, %v8795_v0  ;;  %vm8854_vm1 = vmand %vm502_vm13, %vm510_vm0  ;;  %v13625_v47 = vand.u32 2147483647, %v8795_v0  ;;  %v8893_v6 = vrot.slane %v8712_v17, %v8829_v11  ;;  %v13251_v24 = vmov 1326507024  }
  0x84   :  { %v534_v29 = vshrl.u32 %v533_v14, 23  ;;  %v537_v32 = vand.u32 8388607, %v13209_v1  ;;  %v1378_v14 = vsel %vm8817_vm15, %v446_v52, 10.4  ;;  %v213_v1 = vcombine.high %v8624_v19, %v8624_v19  ;;  %13620 = vst [vmem:[#allocation57_spill] sm:$0xff] %v8859_v55 }
  0x85   :  { %v946_v57 = vshrl.u32 %v945_v35, 23  ;;  %v13618_v36 = vsel %vm8854_vm1, 4294967295, %v13617_v36  ;;  %13621 = vst [vmem:[#allocation58_spill] sm:$0xff] %v8863_v56  ;;  %v8871_v19 = vrot.slane %v8708_v31, %v8829_v11  ;;  %13624 = vst [vmem:[#allocation61_spill] sm:$0xff] %v8874_v3  ;;  %v8878_v28 = vand.u32 8388607, %v13625_v47 }
  0x86   :  { %v7009_v49 = vadd.s32 4294967169, %v534_v29  ;;  %13619 = vst [vmem:[#allocation56_spill] sm:$0xff] %v13618_v36  ;;  %v8867_v29 = vrot.slane %v8706_v30, %v8829_v11  ;;  %v538_v52 = vor.u32 8388608, %v537_v32  ;;  %v1394_v22 = vcombine.high %v1378_v14, %v1378_v14  ;;  %13627 = vst [vmem:[#allocation63_spill] sm:$0xff] %v8893_v6 }
  0x87   :  { %13623 = vst [vmem:[#allocation60_spill] sm:$0xff] %v8871_v19  ;;  %v7025_v25 = vadd.s32 4294967169, %v946_v57  ;;  %v8881_v26 = vrot.slane %v1378_v14, %v8587_v5  ;;  %v8885_v30 = vrot.slane %v8727_v37, %v8773_v54  ;;  %v8889_v32 = vsel %vm8854_vm1, %v474_v61, 10.4 }
  0x88   :  { %13622 = vst [vmem:[#allocation59_spill] sm:$0xff] %v8867_v29  ;;  %v540_v35 = vadd.s32 1, %v7009_v49  ;;  %v8898_v57 = vrot.slane %v212_v59, %v8587_v5  ;;  %v8901_v14 = vrot.slane %v213_v1, %v8587_v5  ;;  %v8903_v23 = vshll.u32 %v538_v52, 8 }
  0x89   :  { %13626 = vst [vmem:[#allocation62_spill] sm:$0xff] %v8885_v30  ;;  %v952_v31 = vadd.s32 1, %v7025_v25  ;;  %v8907_v17 = vrot.slane %v1394_v22, %v8587_v5  ;;  %v8913_v59 = vrot.slane %v8889_v32, %v8587_v5  ;;  %v13239_v1 = vmov 683565275  }
  0x8a   :  { %vm541_vm2 = vcmp.gt.s32.totalorder %v540_v35, 0  ;;  %v13246_v6 = vmov 2102212464   ;;  %v13248_v19 = vmov 920167782   ;;  %vm532_vm14 = vcmp.lt.s32.totalorder %v8781_v58, 0 }
  0x8b   :  { %v542_v27 = vsel %vm541_vm2, %v540_v35, 0  ;;  %vm953_vm3 = vcmp.gt.s32.totalorder %v952_v31, 0  ;;  %vm944_vm2 = vcmp.lt.s32.totalorder %v8795_v0, 0 }
  0x8c   :  { %v543_v47 = vshrl.u32 %v542_v27, 5  ;;  %v544_v25 = vand.u32 31, %v542_v27  ;;  %v13242_v27 = vmov 2475754826   ;;  %v954_v29 = vsel %vm953_vm3, %v952_v31, 0 }
  0x8d   :  { %v956_v4 = vand.u32 31, %v954_v29 }
  0x8e   :  { %v545_v49 = vsub.s32 32, %v544_v25  ;;  %v547_v20 = vshll.u32 %v13239_v1, %v544_v25  ;;  %v550_v52 = vshll.u32 %v13242_v27, %v544_v25  ;;  %v553_v61 = vshll.u32 %v13244_v18, %v544_v25 }
  0x8f   :  { %v556_v22 = vshll.u32 %v13246_v6, %v544_v25  ;;  %v559_v35 = vshll.u32 %v13248_v19, %v544_v25  ;;  %vm562_vm4 = vcmp.lt.s32.totalorder %v543_v47, 1  ;;  %vm563_vm5 = vcmp.lt.s32.totalorder %v543_v47, 2 }
  0x90   :  { %v546_v30 = vshrl.u32 %v13239_v1, %v545_v49  ;;  %v548_v56 = vshrl.u32 %v13242_v27, %v545_v49  ;;  %v551_v43 = vshrl.u32 %v13244_v18, %v545_v49  ;;  %v554_v39 = vshrl.u32 %v13246_v6, %v545_v49 }
  0x91   :  { %v557_v55 = vshrl.u32 %v13248_v19, %v545_v49  ;;  %v560_v10 = vshrl.u32 %v13251_v24, %v545_v49  ;;  %vm564_vm6 = vcmp.lt.s32.totalorder %v543_v47, 3  ;;  %vm565_vm7 = vcmp.lt.s32.totalorder %v543_v47, 4 }
  0x92   :  { %v549_v15 = vor.u32 %v548_v56, %v547_v20  ;;  %v552_v25 = vor.u32 %v551_v43, %v550_v52  ;;  %v555_v7 = vor.u32 %v554_v39, %v553_v61  ;;  %v955_v1 = vshrl.u32 %v954_v29, 5 }
  0x93   :  { %v558_v31 = vor.u32 %v557_v55, %v556_v22  ;;  %v561_v60 = vor.u32 %v560_v10, %v559_v35  ;;  %v957_v53 = vsub.s32 32, %v956_v4  ;;  %v13628_v10 = vmov 683565275  }
  0x94   :  { %v566_v27 = vsel %vm562_vm4, %v546_v30, %v549_v15  ;;  %v567_v18 = vsel %vm565_vm7, %v555_v7, 2102212464  ;;  %v570_v6 = vsel %vm562_vm4, %v549_v15, %v552_v25  ;;  %v574_v19 = vsel %vm562_vm4, %v552_v25, %v555_v7 }
  0x95   :  { %v568_v2 = vsel %vm564_vm6, %v552_v25, %v567_v18  ;;  %v571_v49 = vsel %vm565_vm7, %v558_v31, 920167782  ;;  %v575_v24 = vsel %vm565_vm7, %v561_v60, 1326507024  ;;  %v959_v43 = vshll.u32 %v13628_v10, %v956_v4 }
  0x96   :  { %v569_v20 = vsel %vm563_vm5, %v566_v27, %v568_v2  ;;  %v572_v39 = vsel %vm564_vm6, %v555_v7, %v571_v49  ;;  %v576_v55 = vsel %vm564_vm6, %v558_v31, %v575_v24  ;;  %v958_v29 = vshrl.u32 %v13628_v10, %v957_v53 }
  0x97   :  { %v573_v30 = vsel %vm563_vm5, %v570_v6, %v572_v39  ;;  %v577_v56 = vsel %vm563_vm5, %v574_v19, %v576_v55  ;;  %v585_v15 = vmul.u32 %v8903_v23, %v569_v20  ;;  %v13629_v7 = vmov 2475754826  }
  0x98   :  { %v8940_v18 = vmul.u32.u64.low %v8903_v23, %v577_v56  ;;  %v8941_v60 = vmul.u32.u64.high %v8903_v23, %v577_v56, %v8940_v18  ;;  %v8944_v2 = vmul.u32.u64.low %v8903_v23, %v573_v30  ;;  %v8945_v61 = vmul.u32.u64.high %v8903_v23, %v573_v30, %v8944_v2 }
  0x99   :  { %v960_v24 = vshrl.u32 %v13629_v7, %v957_v53  ;;  %v962_v35 = vshll.u32 %v13629_v7, %v956_v4  ;;  %v13630_v6 = vmov 2131351028   ;;  %v13631_v27 = vmov 2102212464  }
  0x9a   :  { %v963_v47 = vshrl.u32 %v13630_v6, %v957_v53  ;;  %v965_v19 = vshll.u32 %v13630_v6, %v956_v4  ;;  %v966_v52 = vshrl.u32 %v13631_v27, %v957_v53  ;;  %v968_v22 = vshll.u32 %v13631_v27, %v956_v4 }
  0x9b   :  { %v13632_v25 = vmov 920167782   ;;  %v961_v20 = vor.u32 %v960_v24, %v959_v43  ;;  %v13633_v39 = vmov 1326507024   ;;  %vm974_vm8 = vcmp.lt.s32.totalorder %v955_v1, 1 }
  0x9c   :  { %v969_v31 = vshrl.u32 %v13632_v25, %v957_v53  ;;  %v971_v49 = vshll.u32 %v13632_v25, %v956_v4  ;;  %v964_v23 = vor.u32 %v963_v47, %v962_v35  ;;  %v972_v55 = vshrl.u32 %v13633_v39, %v957_v53 }
  0x9d   :  { %vm587_vm9 = vc.u32 %v8941_v60, %v8944_v2  ;;  %v588_v30 = vadd.s32 1, %v8945_v61  ;;  %v967_v56 = vor.u32 %v966_v52, %v965_v19  ;;  %v13634_v18 = vor.u32 8388608, %v8878_v28 }
  0x9e   :  { %v970_v7 = vor.u32 %v969_v31, %v968_v22  ;;  %v973_v27 = vor.u32 %v972_v55, %v971_v49  ;;  %vm975_vm10 = vcmp.lt.s32.totalorder %v955_v1, 2  ;;  %vm976_vm11 = vcmp.lt.s32.totalorder %v955_v1, 3 }
  0x9f   :  { %v990_v6 = vshll.u32 %v13634_v18, 8  ;;  %v589_v4 = vsel %vm587_vm9, %v588_v30, %v8945_v61  ;;  %vm977_vm12 = vcmp.lt.s32.totalorder %v955_v1, 4  ;;  %v978_v43 = vsel %vm974_vm8, %v958_v29, %v961_v20 }
  0xa0   :  { %v982_v53 = vsel %vm974_vm8, %v961_v20, %v964_v23  ;;  %v590_v24 = vadd.s32 %v589_v4, %v585_v15  ;;  %v979_v35 = vsel %vm977_vm12, %v967_v56, 2102212464  ;;  %v983_v47 = vsel %vm977_vm12, %v970_v7, 920167782 }
  0xa1   :  { %v986_v39 = vsel %vm974_vm8, %v964_v23, %v967_v56  ;;  %v980_v19 = vsel %vm976_vm11, %v964_v23, %v979_v35  ;;  %v984_v52 = vsel %vm976_vm11, %v967_v56, %v983_v47  ;;  %v987_v28 = vsel %vm977_vm12, %v973_v27, 1326507024 }
  0xa2   :  { %v8968_v22 = vrot.slane %v8881_v26, %v8587_v5  ;;  %v591_v31 = vadd.s32 536870912, %v590_v24  ;;  %v985_v61 = vsel %vm975_vm10, %v982_v53, %v984_v52  ;;  %v988_v49 = vsel %vm976_vm11, %v970_v7, %v987_v28 }
  0xa3   :  { %v13635_v29 = vcombine.high %v8889_v32, %v8889_v32  ;;  %v981_v20 = vsel %vm975_vm10, %v978_v43, %v980_v19  ;;  %v989_v55 = vsel %vm975_vm10, %v986_v39, %v988_v49  ;;  %v1410_v4 = vcombine.high %v8907_v17, %v8907_v17 }
  0xa4   :  { %v8977_v23 = vmul.u32.u64.low %v990_v6, %v985_v61  ;;  %v8978_v30 = vmul.u32.u64.high %v990_v6, %v985_v61, %v8977_v23  ;;  %v592_v27 = vshrl.u32 %v591_v31, 30  ;;  %v13636_v7 = vand.u32 2147483647, %v8781_v58 }
  0xa5   :  { %v1604_v15 = vrot.slane %v13635_v29, %v8587_v5  ;;  %v8980_v56 = vmul.u32.u64.low %v990_v6, %v989_v55  ;;  %v8981_v18 = vmul.u32.u64.high %v990_v6, %v989_v55, %v8980_v56  ;;  %v8994_v32 = vrot.slane %v8907_v17, %v8587_v5 }
  0xa6   :  { %vm8987_vm13 = vcmp.le.f32.partialorder %v13636_v7, 0.7853982  ;;  %v8998_v1 = vrot.slane %v8731_v38, %v8773_v54  ;;  %v593_v39 = vshll.u32 %v592_v27, 30  ;;  %v616_v43 = vsub.s32 4, %v592_v27 }
  0xa7   :  { %v997_v35 = vmul.u32 %v990_v6, %v981_v20  ;;  %v1605_v47 = vcombine.high %v8913_v59, %v8913_v59  ;;  %v1000_v19 = vadd.s32 1, %v8978_v30  ;;  %v13640_v52 = vcombine.high %v8881_v26, %v8881_v26 }
  0xa8   :  { %13639 = vst [vmem:[#allocation64_spill] sm:$0xff] %v8998_v1  ;;  %v1606_v31 = vcombine.high %v1604_v15, %v1604_v15  ;;  %v9009_v17 = vrot.slane %v8913_v59, %v8587_v5  ;;  %v9011_v61 = vsub.s32 %v590_v24, %v593_v39  ;;  %vm999_vm0 = vc.u32 %v8981_v18, %v8977_v23 }
  0xa9   :  { %v1431_v28 = vrot.slane %v13640_v52, %v8587_v5  ;;  %v1438_v6 = vrot.slane %v1410_v4, %v8587_v5  ;;  %v1439_v49 = vcombine.high %v8968_v22, %v8968_v22  ;;  %v1001_v29 = vsel %vm999_vm0, %v1000_v19, %v8978_v30 }
  0xaa   :  { %v1440_v26 = vcombine.high %v8994_v32, %v8994_v32  ;;  %v9021_v55 = vrot.slane %v1604_v15, %v8587_v5  ;;  %v596_v59 = vsub.s32 0, %v9011_v61  ;;  %v617_v24 = vsel %vm532_vm14, %v616_v43, %v592_v27 }
  0xab   :  { %v1441_v20 = vcombine.high %v1431_v28, %v1431_v28  ;;  %v1002_v56 = vadd.s32 %v1001_v29, %v997_v35  ;;  %v1627_v4 = vrot.slane %v1605_v47, %v8587_v5  ;;  %v586_v7 = vadd.s32 %v8944_v2, %v8941_v60 }
  0xac   :  { %v1442_v39 = vcombine.high %v1438_v6, %v1438_v6  ;;  %v9030_v30 = vrot.slane %v1606_v31, %v8587_v5  ;;  %v1635_v19 = vcombine.high %v9009_v17, %v9009_v17  ;;  %v7010_v15 = vmin.u32 %v596_v59, %v9011_v61 }
  0xad   :  { %v1636_v52 = vcombine.high %v9021_v55, %v9021_v55  ;;  %v1637_v25 = vcombine.high %v1627_v4, %v1627_v4  ;;  %v1790_v27 = vrot.slane %v8968_v22, %v8602_v12  ;;  %v619_v43 = vsel %vm8987_vm13, 0, %v617_v24 }
  0xae   :  { %v1003_v60 = vadd.s32 536870912, %v1002_v56  ;;  %v1638_v2 = vcombine.high %v9030_v30, %v9030_v30  ;;  %v1794_v35 = vrot.slane %v1431_v28, %v8602_v12  ;;  %v598_v47 = vclz %v7010_v15 }
  0xaf   :  { %v1798_v31 = vrot.slane %v1439_v49, %v8602_v12  ;;  %v1802_v29 = vrot.slane %v1441_v20, %v8602_v12  ;;  %v1806_v59 = vrot.slane %v8994_v32, %v8602_v12  ;;  %v9050_v22 = vadd.s32 %v8977_v23, %v8981_v18  ;;  %v1786_v18 = vld [vmem:[#allocation7] sm:$0xff] }
  0xb0   :  { %v1004_v24 = vshrl.u32 %v1003_v60, 30  ;;  %v1810_v10 = vrot.slane %v1438_v6, %v8602_v12  ;;  %v1814_v1 = vrot.slane %v1440_v26, %v8602_v12  ;;  %v7011_v51 = vadd.s32 4294967294, %v598_v47 }
  0xb1   :  { %v9054_v28 = vand.u32 3, %v619_v43  ;;  %v1818_v15 = vrot.slane %v1442_v39, %v8602_v12  ;;  %v1918_v49 = vrot.slane %v9009_v17, %v8602_v12  ;;  %v13641_v20 = vand.u32 2147483647, %v8795_v0 }
  0xb2   :  { %v1005_v23 = vshll.u32 %v1004_v24, 30  ;;  %v1922_v6 = vrot.slane %v1627_v4, %v8602_v12  ;;  %v1926_v26 = vrot.slane %v1635_v19, %v8602_v12  ;;  %v1930_v43 = vrot.slane %v1637_v25, %v8602_v12 }
  0xb3   :  { %vm9061_vm3 = vcmp.le.f32.partialorder %v13641_v20, 0.7853982  ;;  %vm7012_vm4 = vcmp.lt.s32.totalorder %v7011_v51, 0  ;;  %v1934_v39 = vrot.slane %v9021_v55, %v8602_v12  ;;  %v1938_v17 = vrot.slane %v9030_v30, %v8602_v12 }
  0xb4   :  { %v1942_v60 = vrot.slane %v1636_v52, %v8602_v12  ;;  %v601_v47 = vsel %vm7012_vm4, 0, %v7011_v51  ;;  %v9073_v20 = vsub.s32 %v1002_v56, %v1005_v23  ;;  %v1028_v63 = vsub.s32 4, %v1004_v24 }
  0xb5   :  { %v1946_v62 = vrot.slane %v1638_v2, %v8602_v12  ;;  %v602_v4 = vsub.s32 32, %v601_v47  ;;  %v603_v19 = vshll.u32 %v9011_v61, %v601_v47  ;;  %v606_v50 = vsub.s32 4294967266, %v601_v47 }
  0xb6   :  { %v2107_v25 = vsub.f32 %v1790_v27, %v1786_v18  ;;  %v1008_v46 = vsub.s32 0, %v9073_v20  ;;  %v2108_v45 = vsub.f32 %v1794_v35, %v1786_v18  ;;  %v2109_v55 = vsub.f32 %v1798_v31, %v1786_v18 }
  0xb7   :  { %v2110_v44 = vsub.f32 %v1802_v29, %v1786_v18  ;;  %v604_v42 = vshrl.u32 %v586_v7, %v602_v4  ;;  %v607_v30 = vadd.s32 127, %v606_v50  ;;  %v2111_v41 = vsub.f32 %v1806_v59, %v1786_v18 }
  0xb8   :  { %v2112_v52 = vsub.f32 %v1810_v10, %v1786_v18  ;;  %v7026_v51 = vmin.u32 %v1008_v46, %v9073_v20  ;;  %v9081_v56 = vsel %vm944_vm2, %v1028_v63, %v1004_v24  ;;  %v2113_v2 = vsub.f32 %v1814_v1, %v1786_v18 }
  0xb9   :  { %v2114_v23 = vsub.f32 %v1818_v15, %v1786_v18  ;;  %v605_v61 = vor.u32 %v604_v42, %v603_v19  ;;  %v608_v47 = vshll.u32 %v607_v30, 23  ;;  %v9083_v27 = vsub.f32 %v1918_v49, %v1786_v18 }
  0xba   :  { %v9085_v36 = vsub.f32 %v1922_v6, %v1786_v18  ;;  %v1010_v35 = vclz %v7026_v51  ;;  %v9087_v31 = vsub.f32 %v1926_v26, %v1786_v18  ;;  %v9089_v50 = vsub.f32 %v1930_v43, %v1786_v18 }
  0xbb   :  { %v9091_v10 = vsub.f32 %v1934_v39, %v1786_v18  ;;  %v609_v46 = vor.u32 4788187, %v608_v47  ;;  %v612_v7 = vcvt.s32.f32 %v605_v61  ;;  %v9096_v1 = vsub.f32 %v1938_v17, %v1786_v18 }
  0xbc   :  { %v7027_v42 = vadd.s32 4294967294, %v1010_v35  ;;  %v9098_v29 = vsub.f32 %v1942_v60, %v1786_v18  ;;  %v9100_v59 = vsub.f32 %v1946_v62, %v1786_v18  ;;  %v2171_v24 = vmul.f32 -16.0, %v2107_v25 }
  0xbd   :  { %v610_v15 = vand.u32 2147483647, %v609_v46  ;;  %v2172_v49 = vmul.f32 -16.0, %v2108_v45  ;;  %v2173_v6 = vmul.f32 -16.0, %v2109_v55  ;;  %v2174_v26 = vmul.f32 -16.0, %v2110_v44 }
  0xbe   :  { %vm7028_vm5 = vcmp.lt.s32.totalorder %v7027_v42, 0  ;;  %v2175_v43 = vmul.f32 -16.0, %v2111_v41  ;;  %v2176_v39 = vmul.f32 -16.0, %v2112_v52  ;;  %v2177_v4 = vmul.f32 -16.0, %v2113_v2 }
  0xbf   :  { %v613_v19 = vmul.f32 %v612_v7, %v610_v15  ;;  %v1013_v30 = vsel %vm7028_vm5, 0, %v7027_v42  ;;  %v2178_v51 = vmul.f32 -16.0, %v2114_v23  ;;  %v2203_v17 = vmul.f32 -16.0, %v9083_v27 }
  0xc0   :  { %v1014_v61 = vsub.s32 32, %v1013_v30  ;;  %v1015_v60 = vshll.u32 %v9073_v20, %v1013_v30  ;;  %v1018_v47 = vsub.s32 4294967266, %v1013_v30  ;;  %v2204_v62 = vmul.f32 -16.0, %v9085_v36 }
  0xc1   :  { %v614_v18 = vxor.u32 2147483648, %v613_v19  ;;  %v2205_v35 = vmul.f32 -16.0, %v9087_v31  ;;  %v2206_v46 = vmul.f32 -16.0, %v9089_v50  ;;  %v2235_v63 = vmul.f32 %v2171_v24, %v2107_v25 }
  0xc2   :  { %v1016_v3 = vshrl.u32 %v9050_v22, %v1014_v61  ;;  %v1019_v48 = vadd.s32 127, %v1018_v47  ;;  %v2207_v7 = vmul.f32 -16.0, %v9091_v10  ;;  %v2236_v42 = vmul.f32 %v2172_v49, %v2108_v45 }
  0xc3   :  { %v615_v15 = vsel %vm532_vm14, %v614_v18, %v613_v19  ;;  %v2208_v20 = vmul.f32 -16.0, %v9096_v1  ;;  %v2237_v30 = vmul.f32 %v2173_v6, %v2109_v55  ;;  %v2238_v9 = vmul.f32 %v2174_v26, %v2110_v44 }
  0xc4   :  { %v618_v13 = vsel %vm8987_vm13, %v8781_v58, %v615_v15  ;;  %v1017_v8 = vor.u32 %v1016_v3, %v1015_v60  ;;  %v1020_v38 = vshll.u32 %v1019_v48, 23  ;;  %v2239_v25 = vmul.f32 %v2175_v43, %v2111_v41 }
  0xc5   :  { %7862 = vcosq.f32 %v618_v13  ;;  %v2240_v22 = vmul.f32 %v2176_v39, %v2112_v52  ;;  %v2241_v24 = vmul.f32 %v2177_v4, %v2113_v2  ;;  %v2299_v61 = vmul.f32 1.442695, %v2235_v63 }
  0xc6   :  { %7864 = vsinq.f32 %v618_v13  ;;  %v1021_v45 = vor.u32 4788187, %v1020_v38  ;;  %v1024_v49 = vcvt.s32.f32 %v1017_v8  ;;  %v2301_v47 = vmul.f32 1.442695, %v2236_v42 }
  0xc7   :  { %vm628_vm6 = vcmp.eq.s32.totalorder %v9054_v28, 2  ;;  %v2209_v55 = vmul.f32 -16.0, %v9098_v29  ;;  %v2242_v44 = vmul.f32 %v2178_v51, %v2114_v23  ;;  %v2303_v6 = vmul.f32 1.442695, %v2237_v30 }
  0xc8   :  { %v2305_v26 = vmul.f32 1.442695, %v2238_v9  ;;  %vm625_vm7 = vcmp.eq.s32.totalorder %v9054_v28, 0  ;;  %v1022_v3 = vand.u32 2147483647, %v1021_v45  ;;  %v2210_v41 = vmul.f32 -16.0, %v9100_v59 }
  0xc9   :  { %7866 = vpow2.f32 %v2299_v61  ;;  %v2307_v48 = vmul.f32 1.442695, %v2239_v25  ;;  %vm624_vm8 = vcmp.lt.s32.totalorder %v9054_v28, 2  ;;  %v2267_v38 = vmul.f32 %v2203_v17, %v9083_v27 }
  0xca   :  { %v2268_v8 = vmul.f32 %v2204_v62, %v9085_v36  ;;  %7868 = vpow2.f32 %v2301_v47  ;;  %v2309_v13 = vmul.f32 1.442695, %v2240_v22  ;;  %vm622_vm9 = vweird.f32 %v8781_v58 }
  0xcb   :  { %v1025_v53 = vmul.f32 %v1024_v49, %v1022_v3  ;;  %v2269_v9 = vmul.f32 %v2205_v35, %v9087_v31  ;;  %7870 = vpow2.f32 %v2303_v6  ;;  %v2311_v52 = vmul.f32 1.442695, %v2241_v24 }
  0xcc   :  { %v2270_v2 = vmul.f32 %v2206_v46, %v9089_v50  ;;  %v2271_v23 = vmul.f32 %v2207_v7, %v9091_v10  ;;  %7872 = vpow2.f32 %v2305_v26  ;;  %v2313_v63 = vmul.f32 1.442695, %v2242_v44  ;;  %v13649_v26 = vld [vmem:[#allocation32_spill] sm:$0xff] }
  0xcd   :  { %v1026_v43 = vxor.u32 2147483648, %v1025_v53  ;;  %v13644_v36 = vsel %vm9061_vm3, 0, %v9081_v56  ;;  %v2272_v39 = vmul.f32 %v2208_v20, %v9096_v1  ;;  %7874 = vpow2.f32 %v2307_v48 }
  0xce   :  { %v9130_v27 = vand.u32 3, %v13644_v36  ;;  %v2273_v31 = vmul.f32 %v2209_v55, %v9098_v29  ;;  %v2274_v4 = vmul.f32 %v2210_v41, %v9100_v59  ;;  %7876 = vpow2.f32 %v2309_v13 }
  0xcf   :  { %v2363_v50 = vmul.f32 1.442695, %v2267_v38  ;;  %v1027_v10 = vsel %vm944_vm2, %v1026_v43, %v1025_v53  ;;  %7878 = vpow2.f32 %v2311_v52  ;;  %v2365_v19 = vmul.f32 1.442695, %v2268_v8  ;;  %v7863_v17 = vpop.eup %7862  ;;  %v13652_v38 = vld [vmem:[#allocation17_spill] sm:$0xff] }
  0xd0   :  { %v2367_v51 = vmul.f32 1.442695, %v2269_v9  ;;  %v1030_v56 = vsel %vm9061_vm3, %v8795_v0, %v1027_v10  ;;  %7880 = vpow2.f32 %v2313_v63  ;;  %v2369_v1 = vmul.f32 1.442695, %v2270_v2  ;;  %v7865_v62 = vpop.eup %7864 }
  0xd1   :  { %v2371_v60 = vmul.f32 1.442695, %v2271_v23  ;;  %v629_v29 = vxor.u32 2147483648, %v7863_v17  ;;  %7882 = vcosq.f32 %v1030_v56  ;;  %v310_v59 = vcombine.high %v8614_v16, %v8614_v16 }
  0xd2   :  { %v311_v18 = vcombine.high %v8631_v21, %v8631_v21  ;;  %v626_v35 = vxor.u32 2147483648, %v7865_v62  ;;  %7884 = vsinq.f32 %v1030_v56  ;;  %v2373_v46 = vmul.f32 1.442695, %v2272_v39 }
  0xd3   :  { %v2375_v7 = vmul.f32 1.442695, %v2273_v31  ;;  %v7867_v42 = vpop.eup %7866  ;;  %v630_v32 = vsel %vm628_vm6, %v629_v29, %v7865_v62  ;;  %vm1040_vm10 = vcmp.eq.s32.totalorder %v9130_v27, 2  ;;  %v2377_v15 = vmul.f32 1.442695, %v2274_v4 }
  0xd4   :  { %v9149_v20 = vrot.slane %v8733_v40, %v8773_v54  ;;  %v9152_v16 = vrot.slane %v310_v59, %v8587_v5  ;;  %v7869_v30 = vpop.eup %7868  ;;  %v627_v21 = vsel %vm625_vm7, %v7863_v17, %v626_v35  ;;  %vm1037_vm11 = vcmp.eq.s32.totalorder %v9130_v27, 0  ;;  %v13655_v59 = vld [vmem:[#allocation55_spill] sm:$0xff] }
  0xd5   :  { %7886 = vpow2.f32 %v2363_v50  ;;  %v253_v25 = vrot.slane %v8898_v57, %v8602_v12  ;;  %v269_v22 = vrot.slane %v8901_v14, %v8602_v12  ;;  %v7871_v24 = vpop.eup %7870  ;;  %v631_v54 = vsel %vm624_vm8, %v627_v21, %v630_v32  ;;  %v13654_v50 = vld [vmem:[#allocation18_spill] sm:$0xff] }
  0xd6   :  { %13645 = vst [vmem:[#allocation65_spill] sm:$0xff] %v9149_v20  ;;  %vm1036_vm12 = vcmp.lt.s32.totalorder %v9130_v27, 2  ;;  %7888 = vpow2.f32 %v2365_v19  ;;  %v9166_v61 = vrot.slane %v8717_v33, %v8829_v11  ;;  %v9169_v45 = vrot.slane %v311_v18, %v8587_v5  ;;  %v7873_v49 = vpop.eup %7872 }
  0xd7   :  { %v632_v47 = vsel %vm622_vm9, nan, %v631_v54  ;;  %vm1034_vm13 = vweird.f32 %v8795_v0  ;;  %7890 = vpow2.f32 %v2367_v51  ;;  %v9176_v28 = vrot.slane %v8721_v34, %v8829_v11  ;;  %v7875_v44 = vpop.eup %7874 }
  0xd8   :  { %13646 = vst [vmem:[#allocation66_spill] sm:$0xff] %v9166_v61  ;;  %v9180_v55 = vrot.slane %v8727_v37, %v8829_v11  ;;  %v1354_v6 = vmul.f32 0.5, %v632_v47  ;;  %7892 = vpow2.f32 %v2369_v1  ;;  %v9184_v3 = vrot.slane %v13649_v26, %v8829_v11  ;;  %v7877_v41 = vpop.eup %7876 }
  0xd9   :  { %13647 = vst [vmem:[#allocation67_spill] sm:$0xff] %v9176_v28  ;;  %v351_v58 = vrot.slane %v9152_v16, %v8602_v12  ;;  %7894 = vpow2.f32 %v2371_v60  ;;  %v9190_v48 = vrot.slane %v8733_v40, %v8829_v11  ;;  %v287_v8 = vsub.f32 %v253_v25, %v13652_v38  ;;  %v7879_v53 = vpop.eup %7878 }
  0xda   :  { %13648 = vst [vmem:[#allocation68_spill] sm:$0xff] %v9180_v55  ;;  %13650 = vst [vmem:[#allocation69_spill] sm:$0xff] %v9184_v3  ;;  %v291_v13 = vsub.f32 %v269_v22, %v13652_v38  ;;  %v1362_v9 = vadd.f32 0.5, %v1354_v6  ;;  %7896 = vpow2.f32 %v2373_v46  ;;  %v9194_v52 = vmul.f32 0.25, %v7867_v42  ;;  %v7881_v23 = vpop.eup %7880  ;;  %v13656_v22 = vld [vmem:[#allocation61_spill] sm:$0xff] }
  0xdb   :  { %13651 = vst [vmem:[#allocation70_spill] sm:$0xff] %v9190_v48  ;;  %v367_v2 = vrot.slane %v9169_v45, %v8602_v12  ;;  %7898 = vpow2.f32 %v2375_v7  ;;  %v2428_v63 = vmul.f32 0.25, %v7869_v30  ;;  %v9198_v43 = vmul.f32 0.25, %v7871_v24  ;;  %v7883_v11 = vpop.eup %7882 }
  0xdc   :  { %v9200_v36 = vmul.f32 0.25, %v7873_v49  ;;  %v1370_v31 = vsel %vm8817_vm15, %v1362_v9, 0.0  ;;  %7900 = vpow2.f32 %v2377_v15  ;;  %v9204_v4 = vmul.f32 0.25, %v7875_v44  ;;  %v7885_v19 = vpop.eup %7884 }
  0xdd   :  { %v385_v10 = vsub.f32 %v351_v58, %v13654_v50  ;;  %v1041_v51 = vxor.u32 2147483648, %v7883_v11  ;;  %v9207_v17 = vmul.f32 0.25, %v7877_v41  ;;  %v2499_v56 = vcombine.high %v1370_v31, %v1370_v31 }
  0xde   :  { %v2506_v1 = vrot.slane %v1370_v31, %v8587_v5  ;;  %v1038_v60 = vxor.u32 2147483648, %v7885_v19  ;;  %v9210_v62 = vmul.f32 0.25, %v7879_v53  ;;  %v389_v29 = vsub.f32 %v367_v2, %v13654_v50 }
  0xdf   :  { %v393_v18 = vmul.f32 %v13655_v59, %v13655_v59  ;;  %v7887_v35 = vpop.eup %7886  ;;  %v1042_v46 = vsel %vm1040_vm10, %v1041_v51, %v7885_v19  ;;  %v2513_v7 = vrot.slane %v2499_v56, %v8587_v5  ;;  %v401_v32 = vmul.f32 %v287_v8, %v287_v8 }
  0xe0   :  { %v2514_v42 = vcombine.high %v2506_v1, %v2506_v1  ;;  %v7889_v15 = vpop.eup %7888  ;;  %v1039_v30 = vsel %vm1037_vm11, %v7883_v11, %v1038_v60  ;;  %v9220_v21 = vmul.f32 0.25, %v7881_v23  ;;  %v2522_v25 = vrot.slane %v2506_v1, %v8587_v5 }
  0xe1   :  { %v9225_v24 = vmul.f32 %v13656_v22, %v13656_v22  ;;  %v7891_v54 = vpop.eup %7890  ;;  %v1043_v49 = vsel %vm1036_vm12, %v1039_v30, %v1042_v46  ;;  %v2515_v47 = vcombine.high %v2513_v7, %v2513_v7  ;;  %v9229_v44 = vmul.f32 %v291_v13, %v291_v13 }
  0xe2   :  { %v9231_v6 = vmul.f32 %v385_v10, %v385_v10  ;;  %v7893_v58 = vpop.eup %7892  ;;  %v1044_v41 = vsel %vm1034_vm13, nan, %v1043_v49  ;;  %v2459_v38 = vmul.f32 0.25, %v7887_v35  ;;  %v2536_v8 = vrot.slane %v2514_v42, %v8587_v5 }
  0xe3   :  { %v2544_v53 = vcombine.high %v2522_v25, %v2522_v25  ;;  %v7895_v9 = vpop.eup %7894  ;;  %v1358_v2 = vmul.f32 0.5, %v1044_v41  ;;  %v2529_v23 = vrot.slane %v2513_v7, %v8587_v5  ;;  %v9237_v11 = vadd.f32 %v401_v32, %v393_v18 }
  0xe4   :  { %v9239_v27 = vmul.f32 %v389_v29, %v389_v29  ;;  %v7897_v13 = vpop.eup %7896  ;;  %v2543_v39 = vrot.slane %v2515_v47, %v8587_v5  ;;  %v2546_v31 = vcombine.high %v2536_v8, %v2536_v8  ;;  %v2894_v50 = vrot.slane %v2522_v25, %v8602_v12 }
  0xe5   :  { %v2898_v0 = vrot.slane %v2536_v8, %v8602_v12  ;;  %v7899_v10 = vpop.eup %7898  ;;  %v1366_v19 = vadd.f32 0.5, %v1358_v2  ;;  %v2460_v51 = vmul.f32 0.25, %v7889_v15  ;;  %v2461_v56 = vmul.f32 0.25, %v7891_v54 }
  0xe6   :  { %v2902_v1 = vrot.slane %v2544_v53, %v8602_v12  ;;  %v7901_v60 = vpop.eup %7900  ;;  %v2462_v59 = vmul.f32 0.25, %v7893_v58  ;;  %v2463_v18 = vmul.f32 0.25, %v7895_v9  ;;  %v2545_v35 = vcombine.high %v2529_v23, %v2529_v23 }
  0xe7   :  { %v2547_v29 = vcombine.high %v2543_v39, %v2543_v39  ;;  %v1374_v7 = vsel %vm8854_vm1, %v1366_v19, 0.0  ;;  %v2906_v42 = vrot.slane %v2546_v31, %v8602_v12  ;;  %v9249_v32 = vmul.f32 %v2894_v50, %v9194_v52 }
  0xe8   :  { %v9251_v30 = vmul.f32 %v2898_v0, %v2428_v63  ;;  %v2464_v25 = vmul.f32 0.25, %v7897_v13  ;;  %v2465_v15 = vmul.f32 0.25, %v7899_v10  ;;  %v2695_v22 = vcombine.high %v1374_v7, %v1374_v7  ;;  %v13658_v13 = vld [vmem:[#allocation34_spill] sm:$0xff] }
  0xe9   :  { %v2702_v54 = vrot.slane %v1374_v7, %v8587_v5  ;;  %v2466_v49 = vmul.f32 0.25, %v7901_v60  ;;  %v2910_v47 = vrot.slane %v2529_v23, %v8602_v12  ;;  %v2914_v58 = vrot.slane %v2543_v39, %v8602_v12  ;;  %v13659_v39 = vld [vmem:[#allocation35_spill] sm:$0xff]  ;;  %v13660_v60 = vld [vmem:[#allocation36_spill] sm:$0xff] }
  0xea   :  { %v9257_v41 = vmul.f32 %v2902_v1, %v9198_v43  ;;  %v2709_v8 = vrot.slane %v2695_v22, %v8587_v5  ;;  %v2918_v63 = vrot.slane %v2545_v35, %v8602_v12  ;;  %v2922_v9 = vrot.slane %v2547_v29, %v8602_v12 }
  0xeb   :  { %v2710_v53 = vcombine.high %v2702_v54, %v2702_v54  ;;  %v2718_v52 = vrot.slane %v2702_v54, %v8587_v5  ;;  %v9264_v2 = vmul.f32 %v2906_v42, %v9200_v36  ;;  %v3412_v23 = vmul.f32 %v13658_v13, %v9249_v32 }
  0xec   :  { %v3413_v31 = vmul.f32 %v13659_v39, %v9251_v30  ;;  %v2711_v43 = vcombine.high %v2709_v8, %v2709_v8  ;;  %v2725_v50 = vrot.slane %v2709_v8, %v8587_v5  ;;  %v9274_v1 = vmul.f32 %v2910_v47, %v9204_v4 }
  0xed   :  { %v2732_v0 = vrot.slane %v2710_v53, %v8587_v5  ;;  %v2740_v10 = vcombine.high %v2718_v52, %v2718_v52  ;;  %v3022_v19 = vrot.slane %v2718_v52, %v8602_v12  ;;  %v9277_v36 = vmul.f32 %v2914_v58, %v9207_v17  ;;  %v13661_v53 = vld [vmem:[#allocation37_spill] sm:$0xff] }
  0xee   :  { %v3414_v35 = vmul.f32 %v13660_v60, %v9257_v41  ;;  %v2739_v29 = vrot.slane %v2711_v43, %v8587_v5  ;;  %v2741_v46 = vcombine.high %v2725_v50, %v2725_v50  ;;  %v3038_v54 = vrot.slane %v2725_v50, %v8602_v12 }
  0xef   :  { %v2742_v7 = vcombine.high %v2732_v0, %v2732_v0  ;;  %v3026_v42 = vrot.slane %v2732_v0, %v8602_v12  ;;  %v3030_v22 = vrot.slane %v2740_v10, %v8602_v12  ;;  %v9285_v8 = vmul.f32 %v3022_v19, %v2459_v38 }
  0xf0   :  { %v3476_v4 = vadd.f32 %v3413_v31, %v3412_v23  ;;  %v2743_v47 = vcombine.high %v2739_v29, %v2739_v29  ;;  %v9289_v58 = vmul.f32 %v2918_v63, %v9210_v62  ;;  %v3415_v52 = vmul.f32 %v13661_v53, %v9264_v2  ;;  %v13662_v62 = vld [vmem:[#allocation38_spill] sm:$0xff] }
  0xf1   :  { %v3034_v17 = vrot.slane %v2742_v7, %v8602_v12  ;;  %v3042_v43 = vrot.slane %v2739_v29, %v8602_v12  ;;  %v9294_v40 = vmul.f32 %v3026_v42, %v2460_v51  ;;  %v9296_v0 = vmul.f32 %v3030_v22, %v2461_v56 }
  0xf2   :  { %v3444_v38 = vmul.f32 %v13658_v13, %v9285_v8  ;;  %v3046_v23 = vrot.slane %v2741_v46, %v8602_v12  ;;  %v3050_v31 = vrot.slane %v2743_v47, %v8602_v12  ;;  %v3416_v63 = vmul.f32 %v13662_v62, %v9274_v1  ;;  %v13663_v46 = vld [vmem:[#allocation39_spill] sm:$0xff] }
  0xf3   :  { %v9302_v50 = vmul.f32 %v3034_v17, %v2462_v59  ;;  %v9306_v10 = vmul.f32 %v3038_v54, %v2463_v18  ;;  %v3445_v51 = vmul.f32 %v13659_v39, %v9294_v40  ;;  %v3446_v56 = vmul.f32 %v13660_v60, %v9296_v0 }
  0xf4   :  { %v3477_v19 = vadd.f32 %v3476_v4, %v3414_v35  ;;  %v9313_v29 = vmul.f32 %v2922_v9, %v9220_v21  ;;  %v3417_v7 = vmul.f32 %v13663_v46, %v9277_v36  ;;  %v9319_v59 = vadd.f32 %v9229_v44, %v9225_v24  ;;  %v13664_v4 = vld [vmem:[#allocation43_spill] sm:$0xff]  ;;  %v13665_v24 = vld [vmem:[#allocation44_spill] sm:$0xff] }
  0xf5   :  { %v9323_v18 = vadd.f32 %v9231_v6, %v9237_v11  ;;  %v9325_v42 = vmul.f32 %v3042_v43, %v2464_v25  ;;  %v3447_v22 = vmul.f32 %v13661_v53, %v9302_v50  ;;  %v3504_v54 = vadd.f32 %v3445_v51, %v3444_v38  ;;  %v13666_v6 = vld [vmem:[#allocation40_spill] sm:$0xff] }
  0xf6   :  { %v3478_v35 = vadd.f32 %v3477_v19, %v3415_v52  ;;  %v9329_v21 = vmul.f32 %v3046_v23, %v2465_v15  ;;  %v9331_v9 = vmul.f32 %v3050_v31, %v2466_v49  ;;  %v3564_v47 = vmul.f32 %v13664_v4, %v9249_v32  ;;  %v13667_v52 = vld [vmem:[#allocation41_spill] sm:$0xff] }
  0xf7   :  { %v3565_v44 = vmul.f32 %v13665_v24, %v9251_v30  ;;  %v3418_v11 = vmul.f32 %v13666_v6, %v9289_v58  ;;  %v3448_v25 = vmul.f32 %v13662_v62, %v9306_v10  ;;  %v3505_v43 = vadd.f32 %v3504_v54, %v3446_v56  ;;  %v13668_v49 = vld [vmem:[#allocation45_spill] sm:$0xff]  ;;  %v13669_v54 = vld [vmem:[#allocation46_spill] sm:$0xff] }
  0xf8   :  { %v3479_v17 = vadd.f32 %v3478_v35, %v3416_v63  ;;  %v3419_v15 = vmul.f32 %v13667_v52, %v9313_v29  ;;  %v3566_v38 = vmul.f32 %v13668_v49, %v9257_v41  ;;  %v3596_v23 = vmul.f32 %v13664_v4, %v9285_v8 }
  0xf9   :  { %v3597_v31 = vmul.f32 %v13665_v24, %v9294_v40  ;;  %v3449_v51 = vmul.f32 %v13663_v46, %v9325_v42  ;;  %v3506_v26 = vadd.f32 %v3505_v43, %v3447_v22  ;;  %v3598_v63 = vmul.f32 %v13668_v49, %v9296_v0  ;;  %v13670_v22 = vld [vmem:[#allocation47_spill] sm:$0xff]  ;;  %v13671_v43 = vld [vmem:[#allocation48_spill] sm:$0xff] }
  0xfa   :  { %v3480_v19 = vadd.f32 %v3479_v17, %v3417_v7  ;;  %v3450_v56 = vmul.f32 %v13666_v6, %v9329_v21  ;;  %v3451_v35 = vmul.f32 %v13667_v52, %v9331_v9  ;;  %v3567_v33 = vmul.f32 %v13669_v54, %v9264_v2  ;;  %v13672_v6 = vld [vmem:[#allocation51_spill] sm:$0xff] }
  0xfb   :  { %v3628_v37 = vadd.f32 %v3565_v44, %v3564_v47  ;;  %v3507_v24 = vadd.f32 %v3506_v26, %v3448_v25  ;;  %v3599_v4 = vmul.f32 %v13669_v54, %v9302_v50  ;;  %v3656_v7 = vadd.f32 %v3597_v31, %v3596_v23  ;;  %v13673_v23 = vld [vmem:[#allocation49_spill] sm:$0xff] }
  0xfc   :  { %v3481_v34 = vadd.f32 %v3480_v19, %v3418_v11  ;;  %v3568_v17 = vmul.f32 %v13670_v22, %v9274_v1  ;;  %v3569_v49 = vmul.f32 %v13671_v43, %v9277_v36  ;;  %v3570_v46 = vmul.f32 %v13672_v6, %v9289_v58  ;;  %v13674_v19 = vld [vmem:[#allocation52_spill] sm:$0xff] }
  0xfd   :  { %v3629_v52 = vadd.f32 %v3628_v37, %v3566_v38  ;;  %v3508_v62 = vadd.f32 %v3507_v24, %v3449_v51  ;;  %v3600_v47 = vmul.f32 %v13670_v22, %v9306_v10  ;;  %v3601_v26 = vmul.f32 %v13671_v43, %v9325_v42  ;;  %v13675_v38 = vld [vmem:[#allocation57_spill] sm:$0xff] }
  0xfe   :  { %v3657_v44 = vadd.f32 %v3656_v7, %v3598_v63  ;;  %v3482_v11 = vadd.f32 %v3481_v34, %v3419_v15  ;;  %v3716_v31 = vmul.f32 %v13673_v23, %v9249_v32  ;;  %v3717_v54 = vmul.f32 %v13674_v19, %v9251_v30 }
  0xff   :  { %v3630_v25 = vadd.f32 %v3629_v52, %v3567_v33  ;;  %v3509_v53 = vadd.f32 %v3508_v62, %v3450_v56  ;;  %v3748_v37 = vmul.f32 %v13673_v23, %v9285_v8  ;;  %v3749_v24 = vmul.f32 %v13674_v19, %v9294_v40  ;;  %v13676_v33 = vld [vmem:[#allocation53_spill] sm:$0xff]  ;;  %v13677_v56 = vld [vmem:[#allocation54_spill] sm:$0xff] }
 0x100   :  { %v3658_v60 = vadd.f32 %v3657_v44, %v3599_v4  ;;  %v3571_v51 = vmul.f32 %v13675_v38, %v9313_v29  ;;  %v3718_v34 = vmul.f32 %v13676_v33, %v9257_v41  ;;  %v3750_v52 = vmul.f32 %v13676_v33, %v9296_v0 }
 0x101   :  { %v3631_v63 = vadd.f32 %v3630_v25, %v3568_v17  ;;  %v3510_v15 = vadd.f32 %v3509_v53, %v3451_v35  ;;  %v3602_v62 = vmul.f32 %v13672_v6, %v9329_v21  ;;  %v3719_v7 = vmul.f32 %v13677_v56, %v9264_v2  ;;  %v13678_v53 = vld [vmem:[#allocation58_spill] sm:$0xff] }
 0x102   :  { %v3659_v4 = vadd.f32 %v3658_v60, %v3600_v47  ;;  %v3751_v19 = vmul.f32 %v13677_v56, %v9302_v50  ;;  %v3780_v23 = vadd.f32 %v3717_v54, %v3716_v31  ;;  %v3808_v17 = vadd.f32 %v3749_v24, %v3748_v37  ;;  %v13680_v31 = vld [vmem:[#allocation59_spill] sm:$0xff] }
 0x103   :  { %v3632_v44 = vadd.f32 %v3631_v63, %v3569_v49  ;;  %v7500_v25 = vpack.i.bf16 %v3510_v15, %v3482_v11  ;;  %v3603_v43 = vmul.f32 %v13675_v38, %v9331_v9  ;;  %v3720_v35 = vmul.f32 %v13678_v53, %v9274_v1  ;;  %v13679_v63 = vld [vmem:[#allocation62_spill] sm:$0xff] }
 0x104   :  { %v3660_v22 = vadd.f32 %v3659_v4, %v3601_v26  ;;  %v3752_v60 = vmul.f32 %v13678_v53, %v9306_v10  ;;  %v3781_v47 = vadd.f32 %v3780_v23, %v3718_v34  ;;  %v3809_v6 = vadd.f32 %v3808_v17, %v3750_v52  ;;  %v13682_v23 = vld [vmem:[#allocation64_spill] sm:$0xff] }
 0x105   :  { %v3633_v33 = vadd.f32 %v3632_v44, %v3570_v46  ;;  %7501 = vxpose.xlu0.b32.start [1/4] (short) %v7500_v25, 128  ;;  %v3721_v54 = vmul.f32 %v13679_v63, %v9277_v36  ;;  %v3753_v11 = vmul.f32 %v13679_v63, %v9325_v42  ;;  %v3868_v26 = vmul.f32 %v13680_v31, %v9249_v32  ;;  %v13681_v46 = vld [vmem:[#allocation60_spill] sm:$0xff] }
 0x106   :  { %v3661_v49 = vadd.f32 %v3660_v22, %v3602_v62  ;;  %v3782_v24 = vadd.f32 %v3781_v47, %v3719_v7  ;;  %v3810_v15 = vadd.f32 %v3809_v6, %v3751_v19  ;;  %v3869_v4 = vmul.f32 %v13681_v46, %v9251_v30  ;;  %v13683_v6 = vld [vmem:[#allocation63_spill] sm:$0xff] }
 0x107   :  { %v3634_v37 = vadd.f32 %v3633_v33, %v3571_v51  ;;  %v3722_v34 = vmul.f32 %v13682_v23, %v9289_v58  ;;  %v3900_v22 = vmul.f32 %v13680_v31, %v9285_v8  ;;  %v3901_v52 = vmul.f32 %v13681_v46, %v9294_v40 }
 0x108   :  { %v3662_v44 = vadd.f32 %v3661_v49, %v3603_v43  ;;  %v3754_v62 = vmul.f32 %v13682_v23, %v9329_v21  ;;  %v3783_v32 = vadd.f32 %v3782_v24, %v3720_v35  ;;  %v3811_v51 = vadd.f32 %v3810_v15, %v3752_v60 }
 0x109   :  { %v3870_v19 = vmul.f32 %v13683_v6, %v9257_v41  ;;  %v3723_v30 = vmul.f32 %v9149_v20, %v9313_v29  ;;  %v3755_v43 = vmul.f32 %v9149_v20, %v9331_v9  ;;  %v3902_v8 = vmul.f32 %v13683_v6, %v9296_v0 }
 0x10a   :  { %v7502_v33 = vpack.i.bf16 %v3662_v44, %v3634_v37  ;;  %v3784_v7 = vadd.f32 %v3783_v32, %v3721_v54  ;;  %v3812_v40 = vadd.f32 %v3811_v51, %v3753_v11  ;;  %v3871_v17 = vmul.f32 %v9166_v61, %v9264_v2 }
 0x10b   :  { %v3932_v25 = vadd.f32 %v3869_v4, %v3868_v26  ;;  %v3903_v41 = vmul.f32 %v9166_v61, %v9302_v50  ;;  %v3960_v35 = vadd.f32 %v3901_v52, %v3900_v22  ;;  %v429_v60 = vadd.f32 %v9239_v27, %v9319_v59  ;;  %v13684_v52 = vld [vmem:[#allocation19_spill] sm:$0xff] }
 0x10c   :  { %7503 = vxpose.xlu0.b32.cont [2/4] (short) %v7502_v33, 128  ;;  %v433_v47 = vadd.f32 1e-12, %v9323_v18  ;;  %v3785_v49 = vadd.f32 %v3784_v7, %v3722_v34  ;;  %v3813_v37 = vadd.f32 %v3812_v40, %v3754_v62  ;;  %v3872_v0 = vmul.f32 %v9176_v28, %v9274_v1 }
 0x10d   :  { %v3933_v54 = vadd.f32 %v3932_v25, %v3870_v19  ;;  %v3904_v2 = vmul.f32 %v9176_v28, %v9306_v10  ;;  %v3961_v11 = vadd.f32 %v3960_v35, %v3902_v8  ;;  %v437_v26 = vadd.f32 1e-12, %v429_v60  ;;  %v13685_v19 = vld [vmem:[#allocation20_spill] sm:$0xff]  ;;  %v13688_v35 = vld [vmem:[#allocation21_spill] sm:$0xff] }
 0x10e   :  { %7902 = vrsqrt.f32 %v433_v47  ;;  %v3786_v24 = vadd.f32 %v3785_v49, %v3723_v30  ;;  %v3814_v50 = vadd.f32 %v3813_v37, %v3755_v43  ;;  %v3873_v15 = vmul.f32 %v9180_v55, %v9277_v36 }
 0x10f   :  { %v3934_v27 = vadd.f32 %v3933_v54, %v3871_v17  ;;  %v3905_v59 = vmul.f32 %v9180_v55, %v9325_v42  ;;  %v3962_v18 = vadd.f32 %v3961_v11, %v3903_v41  ;;  %7904 = vrsqrt.f32 %v437_v26  ;;  %v13687_v17 = vld [vmem:[#allocation23_spill] sm:$0xff] }
 0x110   :  { %v7504_v4 = vpack.i.bf16 %v3814_v50, %v3786_v24  ;;  %v3874_v1 = vmul.f32 %v9184_v3, %v9289_v58  ;;  %v3906_v10 = vmul.f32 %v9184_v3, %v9329_v21  ;;  %v3875_v22 = vmul.f32 %v9190_v48, %v9313_v29  ;;  %v13686_v21 = vld [vmem:[#allocation22_spill] sm:$0xff] }
 0x111   :  { %v3935_v44 = vadd.f32 %v3934_v27, %v3872_v0  ;;  %v3963_v34 = vadd.f32 %v3962_v18, %v3904_v2  ;;  %v144_v62 = vcombine.high %v13684_v52, %v13684_v52  ;;  %v3907_v42 = vmul.f32 %v9190_v48, %v9331_v9  ;;  %v9457_v50 = vld [vmem:[#allocation5] sm:$0xff] }
 0x112   :  { %7505 = vxpose.xlu0.b32.cont [3/4] (short) %v7504_v4, 128  ;;  %v242_v58 = vcombine.high %v13685_v19, %v13685_v19  ;;  %v145_v43 = vcombine.high %v13686_v21, %v13686_v21  ;;  %vm449_vm15 = vcmp.eq.f32.partialorder %v433_v47, inf  ;;  %v452_v40 = vand.u32 2147483648, %v433_v47 }
 0x113   :  { %v3936_v36 = vadd.f32 %v3935_v44, %v3873_v15  ;;  %v3964_v32 = vadd.f32 %v3963_v34, %v3905_v59  ;;  %v159_v8 = vrot.slane %v144_v62, %v8602_v12  ;;  %v243_v25 = vcombine.high %v13687_v17, %v13687_v17  ;;  %v13689_v59 = vld [vmem:[#allocation24_spill] sm:$0xff]  ;;  %v9465_v44 = vld [vmem:[#allocation5 + $0x8] sm:$0xff] }
 0x114   :  { %vm451_vm1 = vcmp.eq.f32.partialorder %v433_v47, 0.0  ;;  %v257_v41 = vrot.slane %v242_v58, %v8602_v12  ;;  %v340_v60 = vcombine.high %v13688_v35, %v13688_v35  ;;  %vm477_vm14 = vcmp.eq.f32.partialorder %v437_v26, inf }
 0x115   :  { %v3937_v51 = vadd.f32 %v3936_v36, %v3874_v1  ;;  %v3965_v33 = vadd.f32 %v3964_v32, %v3906_v10  ;;  %v480_v0 = vand.u32 2147483648, %v437_v26  ;;  %vm479_vm0 = vcmp.eq.f32.partialorder %v437_v26, 0.0 }
 0x116   :  { %v175_v11 = vrot.slane %v145_v43, %v8602_v12  ;;  %v190_v15 = vsub.f32 %v159_v8, %v9457_v50  ;;  %v273_v27 = vrot.slane %v243_v25, %v8602_v12  ;;  %v341_v18 = vcombine.high %v13689_v59, %v13689_v59 }
 0x117   :  { %v3938_v30 = vadd.f32 %v3937_v51, %v3875_v22  ;;  %v3966_v7 = vadd.f32 %v3965_v33, %v3907_v42  ;;  %v355_v10 = vrot.slane %v340_v60, %v8602_v12  ;;  %v8292_v51 = vld [vmem:[#allocation5 + $0x10] sm:$0xff]  ;;  %v342_v17 = vcombine.high %v9152_v16, %v9152_v16 }
 0x118   :  { %v7903_v29 = vpop.eup %7902  ;;  %v194_v62 = vsub.f32 %v175_v11, %v9457_v50  ;;  %v394_v42 = vmul.f32 %v190_v15, %v190_v15  ;;  %v371_v32 = vrot.slane %v341_v18, %v8602_v12  ;;  %v13690_v33 = vld [vmem:[#allocation16_spill] sm:$0xff] }
 0x119   :  { %v448_v9 = vmul.f32 %v7903_v29, %v433_v47  ;;  %v7905_v49 = vpop.eup %7904  ;;  %v7506_v37 = vpack.i.bf16 %v3966_v7, %v3938_v30  ;;  %v386_v19 = vsub.f32 %v355_v10, %v8292_v51  ;;  %vm499_vm2 = vcmp.ne.s32.totalorder %v13690_v33, 1 }
 0x11a   :  { %v476_v2 = vmul.f32 %v7905_v49, %v437_v26  ;;  %vm503_vm4 = vcmp.ne.s32.totalorder %v13690_v33, 5  ;;  %v390_v25 = vsub.f32 %v371_v32, %v8292_v51  ;;  %v13695_v32 = vmov 683565275  }
 0x11b   :  { %v450_v54 = vsel %vm449_vm15, %v433_v47, %v448_v9  ;;  %7507 = vxpose.xlu0.b32.end [4/4] (short) %v7506_v37, 128  ;;  %v288_v47 = vsub.f32 %v257_v41, %v9465_v44  ;;  %v418_v35 = vmul.f32 %v386_v19, %v386_v19  ;;  %v13696_v19 = vmov 2475754826  }
 0x11c   :  { %v453_v24 = vsel %vm451_vm1, %v452_v40, %v450_v54  ;;  %v478_v4 = vsel %vm477_vm14, %v437_v26, %v476_v2  ;;  %v292_v26 = vsub.f32 %v273_v27, %v9465_v44  ;;  %v398_v40 = vmul.f32 %v194_v62, %v194_v62 }
 0x11d   :  { %v9463_v1 = vmul.f32 0.60415244, %v453_v24  ;;  %v481_v34 = vsel %vm479_vm0, %v480_v0, %v478_v4  ;;  %v402_v58 = vmul.f32 %v288_v47, %v288_v47  ;;  %vm507_vm3 = vcmp.lt.f32.partialorder %v453_v24, 5.2 }
 0x11e   :  { %v9469_v22 = vmul.f32 0.60415244, %v481_v34  ;;  %vm511_vm5 = vcmp.lt.f32.partialorder %v481_v34, 5.2  ;;  %vm9482_vm6 = vmand %vm499_vm2, %vm507_vm3  ;;  %v406_v9 = vmul.f32 %v292_v26, %v292_v26  ;;  %v9500_v59 = vmul.f32 %v390_v25, %v390_v25 }
 0x11f   :  { %v13302_v36 = vand.u32 2147483647, %v9463_v1  ;;  %v636_v52 = vand.u32 2139095040, %v9463_v1  ;;  %v410_v41 = vadd.f32 %v402_v58, %v394_v42  ;;  %vm9486_vm7 = vmand %vm503_vm4, %vm511_vm5  ;;  %v9496_v11 = vsel %vm9482_vm6, %v453_v24, 10.4 }
 0x120   :  { %v1048_v21 = vand.u32 2139095040, %v9469_v22  ;;  %v13301_v8 = vand.u32 2147483647, %v9469_v22  ;;  %v9498_v27 = vadd.f32 %v406_v9, %v398_v40  ;;  %v9506_v10 = vsel %vm9486_vm7, %v481_v34, 10.4 }
 0x121   :  { %v637_v30 = vshrl.u32 %v636_v52, 23  ;;  %v640_v43 = vand.u32 8388607, %v13302_v36  ;;  %v9502_v18 = vadd.f32 %v418_v35, %v410_v41  ;;  %v9515_v42 = vrot.slane %v9496_v11, %v8587_v5 }
 0x122   :  { %v1049_v7 = vshrl.u32 %v1048_v21, 23  ;;  %v9492_v54 = vand.u32 8388607, %v13301_v8  ;;  %v13698_v34 = vmov 2102212464   ;;  %vm635_vm4 = vcmp.lt.s32.totalorder %v9463_v1, 0 }
 0x123   :  { %v7013_v29 = vadd.s32 4294967169, %v637_v30  ;;  %v641_v0 = vor.u32 8388608, %v640_v43  ;;  %v13697_v30 = vmov 2131351028  }
 0x124   :  { %v7029_v49 = vadd.s32 4294967169, %v1049_v7  ;;  %v1053_v62 = vor.u32 8388608, %v9492_v54 }
 0x125   :  { %v643_v60 = vadd.s32 1, %v7013_v29  ;;  %v9508_v52 = vshll.u32 %v641_v0, 8  ;;  %v13699_v29 = vmov 920167782  }
 0x126   :  { %v1055_v2 = vadd.s32 1, %v7029_v49  ;;  %v13700_v49 = vmov 1326507024  }
 0x127   :  { %vm644_vm8 = vcmp.gt.s32.totalorder %v643_v60, 0 }
 0x128   :  { %v645_v15 = vsel %vm644_vm8, %v643_v60, 0  ;;  %vm1056_vm9 = vcmp.gt.s32.totalorder %v1055_v2, 0  ;;  %vm1047_vm8 = vcmp.lt.s32.totalorder %v9469_v22, 0 }
 0x129   :  { %v646_v4 = vshrl.u32 %v645_v15, 5  ;;  %v647_v47 = vand.u32 31, %v645_v15  ;;  %v1057_v40 = vsel %vm1056_vm9, %v1055_v2, 0 }
 0x12a   :  { %v1058_v36 = vshrl.u32 %v1057_v40, 5  ;;  %v1059_v24 = vand.u32 31, %v1057_v40 }
 0x12b   :  { %v648_v26 = vsub.s32 32, %v647_v47  ;;  %v650_v51 = vshll.u32 %v13695_v32, %v647_v47  ;;  %v653_v58 = vshll.u32 %v13696_v19, %v647_v47  ;;  %v656_v21 = vshll.u32 %v13697_v30, %v647_v47 }
 0x12c   :  { %v659_v43 = vshll.u32 %v13698_v34, %v647_v47  ;;  %v662_v7 = vshll.u32 %v13699_v29, %v647_v47  ;;  %vm665_vm10 = vcmp.lt.s32.totalorder %v646_v4, 1  ;;  %vm666_vm11 = vcmp.lt.s32.totalorder %v646_v4, 2 }
 0x12d   :  { %v649_v25 = vshrl.u32 %v13695_v32, %v648_v26  ;;  %v651_v9 = vshrl.u32 %v13696_v19, %v648_v26  ;;  %v654_v41 = vshrl.u32 %v13697_v30, %v648_v26  ;;  %v657_v35 = vshrl.u32 %v13698_v34, %v648_v26 }
 0x12e   :  { %v660_v60 = vshrl.u32 %v13699_v29, %v648_v26  ;;  %v663_v0 = vshrl.u32 %v13700_v49, %v648_v26  ;;  %vm667_vm12 = vcmp.lt.s32.totalorder %v646_v4, 3  ;;  %vm668_vm13 = vcmp.lt.s32.totalorder %v646_v4, 4 }
 0x12f   :  { %v652_v54 = vor.u32 %v651_v9, %v650_v51  ;;  %v655_v15 = vor.u32 %v654_v41, %v653_v58  ;;  %v658_v8 = vor.u32 %v657_v35, %v656_v21  ;;  %v1060_v6 = vsub.s32 32, %v1059_v24 }
 0x130   :  { %v661_v47 = vor.u32 %v660_v60, %v659_v43  ;;  %v664_v2 = vor.u32 %v663_v0, %v662_v7  ;;  %v1062_v43 = vshll.u32 %v13695_v32, %v1059_v24  ;;  %v1071_v35 = vshll.u32 %v13698_v34, %v1059_v24 }
 0x131   :  { %v669_v48 = vsel %vm665_vm10, %v649_v25, %v652_v54  ;;  %v670_v3 = vsel %vm668_vm13, %v658_v8, 2102212464  ;;  %v673_v55 = vsel %vm665_vm10, %v652_v54, %v655_v15  ;;  %v677_v33 = vsel %vm665_vm10, %v655_v15, %v658_v8 }
 0x132   :  { %v671_v28 = vsel %vm667_vm12, %v655_v15, %v670_v3  ;;  %v674_v26 = vsel %vm668_vm13, %v661_v47, 920167782  ;;  %v678_v61 = vsel %vm668_vm13, %v664_v2, 1326507024  ;;  %v1061_v9 = vshrl.u32 %v13695_v32, %v1060_v6 }
 0x133   :  { %v672_v51 = vsel %vm666_vm11, %v669_v48, %v671_v28  ;;  %v675_v58 = vsel %vm667_vm12, %v658_v8, %v674_v26  ;;  %v679_v21 = vsel %vm667_vm12, %v661_v47, %v678_v61  ;;  %v1063_v61 = vshrl.u32 %v13696_v19, %v1060_v6 }
 0x134   :  { %v676_v7 = vsel %vm666_vm11, %v673_v55, %v675_v58  ;;  %v680_v40 = vsel %vm666_vm11, %v677_v33, %v679_v21  ;;  %v688_v25 = vmul.u32 %v9508_v52, %v672_v51  ;;  %v1065_v8 = vshll.u32 %v13696_v19, %v1059_v24 }
 0x135   :  { %v9541_v3 = vmul.u32.u64.low %v9508_v52, %v680_v40  ;;  %v9542_v41 = vmul.u32.u64.high %v9508_v52, %v680_v40, %v9541_v3  ;;  %v9545_v28 = vmul.u32.u64.low %v9508_v52, %v676_v7  ;;  %v9546_v48 = vmul.u32.u64.high %v9508_v52, %v676_v7, %v9545_v28 }
 0x136   :  { %v1066_v55 = vshrl.u32 %v13697_v30, %v1060_v6  ;;  %v1068_v33 = vshll.u32 %v13697_v30, %v1059_v24  ;;  %v1069_v4 = vshrl.u32 %v13698_v34, %v1060_v6  ;;  %v1072_v60 = vshrl.u32 %v13699_v29, %v1060_v6 }
 0x137   :  { %v1074_v0 = vshll.u32 %v13699_v29, %v1059_v24  ;;  %v1064_v54 = vor.u32 %v1063_v61, %v1062_v43  ;;  %v1075_v15 = vshrl.u32 %v13700_v49, %v1060_v6  ;;  %vm1077_vm15 = vcmp.lt.s32.totalorder %v1058_v36, 1 }
 0x138   :  { %v1067_v52 = vor.u32 %v1066_v55, %v1065_v8  ;;  %vm690_vm1 = vc.u32 %v9542_v41, %v9545_v28  ;;  %v691_v47 = vadd.s32 1, %v9546_v48  ;;  %v1070_v2 = vor.u32 %v1069_v4, %v1068_v33 }
 0x139   :  { %v1093_v26 = vshll.u32 %v1053_v62, 8  ;;  %v1073_v51 = vor.u32 %v1072_v60, %v1071_v35  ;;  %v1076_v58 = vor.u32 %v1075_v15, %v1074_v0  ;;  %vm1078_vm14 = vcmp.lt.s32.totalorder %v1058_v36, 2 }
 0x13a   :  { %vm1079_vm0 = vcmp.lt.s32.totalorder %v1058_v36, 3  ;;  %v692_v21 = vsel %vm690_vm1, %v691_v47, %v9546_v48  ;;  %vm1080_vm2 = vcmp.lt.s32.totalorder %v1058_v36, 4  ;;  %v1081_v24 = vsel %vm1077_vm15, %v1061_v9, %v1064_v54 }
 0x13b   :  { %v1085_v43 = vsel %vm1077_vm15, %v1064_v54, %v1067_v52  ;;  %v693_v6 = vadd.s32 %v692_v21, %v688_v25  ;;  %v1082_v7 = vsel %vm1080_vm2, %v1070_v2, 2102212464  ;;  %v1086_v40 = vsel %vm1080_vm2, %v1073_v51, 920167782 }
 0x13c   :  { %v1089_v3 = vsel %vm1077_vm15, %v1067_v52, %v1070_v2  ;;  %v1083_v61 = vsel %vm1079_vm0, %v1067_v52, %v1082_v7  ;;  %v1087_v8 = vsel %vm1079_vm0, %v1070_v2, %v1086_v40  ;;  %v1090_v55 = vsel %vm1080_vm2, %v1076_v58, 1326507024 }
 0x13d   :  { %v1639_v62 = vcombine.high %v9506_v10, %v9506_v10  ;;  %v694_v33 = vadd.s32 536870912, %v693_v6  ;;  %v1088_v4 = vsel %vm1078_vm14, %v1085_v43, %v1087_v8  ;;  %v1091_v48 = vsel %vm1079_vm0, %v1073_v51, %v1090_v55 }
 0x13e   :  { %v13701_v9 = vcombine.high %v9496_v11, %v9496_v11  ;;  %v1084_v25 = vsel %vm1078_vm14, %v1081_v24, %v1083_v61  ;;  %v1092_v60 = vsel %vm1078_vm14, %v1089_v3, %v1091_v48  ;;  %v1646_v2 = vrot.slane %v9506_v10, %v8587_v5 }
 0x13f   :  { %v9574_v0 = vmul.u32.u64.low %v1093_v26, %v1088_v4  ;;  %v9575_v54 = vmul.u32.u64.high %v1093_v26, %v1088_v4, %v9574_v0  ;;  %v695_v52 = vshrl.u32 %v694_v33, 30  ;;  %v1458_v51 = vcombine.high %v9515_v42, %v9515_v42 }
 0x140   :  { %v1457_v35 = vrot.slane %v13701_v9, %v8587_v5  ;;  %v9577_v15 = vmul.u32.u64.low %v1093_v26, %v1092_v60  ;;  %v9578_v47 = vmul.u32.u64.high %v1093_v26, %v1092_v60, %v9577_v15  ;;  %v1653_v11 = vrot.slane %v1639_v62, %v8587_v5 }
 0x141   :  { %v9587_v58 = vadd.f32 %v9500_v59, %v9498_v27  ;;  %v9590_v36 = vadd.f32 1e-12, %v9502_v18  ;;  %v696_v21 = vshll.u32 %v695_v52, 30  ;;  %v1100_v24 = vmul.u32 %v1093_v26, %v1084_v25 }
 0x142   :  { %v1459_v43 = vcombine.high %v1457_v35, %v1457_v35  ;;  %v9594_v7 = vrot.slane %v9515_v42, %v8587_v5  ;;  %v13702_v10 = vand.u32 2147483647, %v9463_v1  ;;  %v719_v27 = vsub.s32 4, %v695_v52 }
 0x143   :  { %v1103_v59 = vadd.s32 1, %v9575_v54  ;;  %v9604_v18 = vsub.s32 %v693_v6, %v696_v21  ;;  %vm1102_vm5 = vc.u32 %v9578_v47, %v9574_v0  ;;  %v9608_v26 = vrot.slane %v1457_v35, %v8587_v5 }
 0x144   :  { %vm9598_vm3 = vcmp.le.f32.partialorder %v13702_v10, 0.7853982  ;;  %v1654_v42 = vcombine.high %v1646_v2, %v1646_v2  ;;  %v1480_v61 = vrot.slane %v1458_v51, %v8587_v5  ;;  %v1655_v8 = vcombine.high %v1653_v11, %v1653_v11 }
 0x145   :  { %v1104_v3 = vsel %vm1102_vm5, %v1103_v59, %v9575_v54  ;;  %v9613_v55 = vrot.slane %v1646_v2, %v8587_v5  ;;  %v699_v62 = vsub.s32 0, %v9604_v18  ;;  %v1487_v6 = vrot.slane %v1459_v43, %v8587_v5 }
 0x146   :  { %v1105_v33 = vadd.s32 %v1104_v3, %v1100_v24  ;;  %v1488_v4 = vcombine.high %v9594_v7, %v9594_v7  ;;  %v720_v48 = vsel %vm635_vm4, %v719_v27, %v695_v52  ;;  %v1489_v9 = vcombine.high %v9608_v26, %v9608_v26 }
 0x147   :  { %v1490_v35 = vcombine.high %v1480_v61, %v1480_v61  ;;  %v9624_v25 = vrot.slane %v1653_v11, %v8587_v5  ;;  %v689_v60 = vadd.s32 %v9545_v28, %v9542_v41  ;;  %v7014_v54 = vmin.u32 %v699_v62, %v9604_v18 }
 0x148   :  { %v1491_v15 = vcombine.high %v1487_v6, %v1487_v6  ;;  %v1676_v2 = vrot.slane %v1654_v42, %v8587_v5  ;;  %v1106_v51 = vadd.s32 536870912, %v1105_v33  ;;  %v9631_v21 = vrot.slane %v1655_v8, %v8587_v5 }
 0x149   :  { %v1684_v52 = vcombine.high %v9613_v55, %v9613_v55  ;;  %v1685_v24 = vcombine.high %v9624_v25, %v9624_v25  ;;  %v701_v11 = vclz %v7014_v54  ;;  %v722_v43 = vsel %vm9598_vm3, 0, %v720_v48 }
 0x14a   :  { %v1686_v41 = vcombine.high %v1676_v2, %v1676_v2  ;;  %v1822_v28 = vrot.slane %v9594_v7, %v8602_v12  ;;  %v1107_v10 = vshrl.u32 %v1106_v51, 30  ;;  %v1687_v27 = vcombine.high %v9631_v21, %v9631_v21 }
 0x14b   :  { %v1826_v59 = vrot.slane %v1480_v61, %v8602_v12  ;;  %v1830_v42 = vrot.slane %v1488_v4, %v8602_v12  ;;  %v7015_v3 = vadd.s32 4294967294, %v701_v11  ;;  %v9647_v8 = vadd.s32 %v9574_v0, %v9578_v47 }
 0x14c   :  { %v1834_v62 = vrot.slane %v1490_v35, %v8602_v12  ;;  %v1838_v48 = vrot.slane %v9608_v26, %v8602_v12  ;;  %v9652_v7 = vand.u32 3, %v722_v43  ;;  %v1108_v54 = vshll.u32 %v1107_v10, 30 }
 0x14d   :  { %v1842_v51 = vrot.slane %v1487_v6, %v8602_v12  ;;  %v1846_v61 = vrot.slane %v1489_v9, %v8602_v12  ;;  %vm7016_vm9 = vcmp.lt.s32.totalorder %v7015_v3, 0  ;;  %v1850_v4 = vrot.slane %v1491_v15, %v8602_v12 }
 0x14e   :  { %v1950_v11 = vrot.slane %v9613_v55, %v8602_v12  ;;  %v1954_v0 = vrot.slane %v1676_v2, %v8602_v12  ;;  %v704_v47 = vsel %vm7016_vm9, 0, %v7015_v3  ;;  %v13705_v35 = vand.u32 2147483647, %v9469_v22 }
 0x14f   :  { %v9666_v43 = vsub.s32 %v1105_v33, %v1108_v54  ;;  %v1958_v6 = vrot.slane %v1684_v52, %v8602_v12  ;;  %v1962_v9 = vrot.slane %v1686_v41, %v8602_v12  ;;  %v705_v49 = vsub.s32 32, %v704_v47  ;;  %v8293_v41 = vld [vmem:[#allocation7] sm:$0xff] }
 0x150   :  { %vm9662_vm10 = vcmp.le.f32.partialorder %v13705_v35, 0.7853982  ;;  %v706_v15 = vshll.u32 %v9604_v18, %v704_v47  ;;  %v709_v29 = vsub.s32 4294967266, %v704_v47  ;;  %v1966_v55 = vrot.slane %v9624_v25, %v8602_v12 }
 0x151   :  { %v1111_v2 = vsub.s32 0, %v9666_v43  ;;  %v1131_v3 = vsub.s32 4, %v1107_v10  ;;  %v1970_v35 = vrot.slane %v9631_v21, %v8602_v12  ;;  %v1974_v33 = vrot.slane %v1685_v24, %v8602_v12 }
 0x152   :  { %v707_v54 = vshrl.u32 %v689_v60, %v705_v49  ;;  %v710_v34 = vadd.s32 127, %v709_v29  ;;  %v1978_v52 = vrot.slane %v1687_v27, %v8602_v12  ;;  %v2115_v30 = vsub.f32 %v1822_v28, %v8293_v41 }
 0x153   :  { %v7030_v18 = vmin.u32 %v1111_v2, %v9666_v43  ;;  %v2116_v47 = vsub.f32 %v1826_v59, %v8293_v41  ;;  %v2117_v19 = vsub.f32 %v1830_v42, %v8293_v41  ;;  %v2118_v32 = vsub.f32 %v1834_v62, %v8293_v41 }
 0x154   :  { %v708_v25 = vor.u32 %v707_v54, %v706_v15  ;;  %v711_v20 = vshll.u32 %v710_v34, 23  ;;  %v2119_v46 = vsub.f32 %v1838_v48, %v8293_v41  ;;  %v2120_v31 = vsub.f32 %v1842_v51, %v8293_v41 }
 0x155   :  { %v1113_v23 = vclz %v7030_v18  ;;  %v9681_v21 = vsel %vm1047_vm8, %v1131_v3, %v1107_v10  ;;  %v2121_v49 = vsub.f32 %v1846_v61, %v8293_v41  ;;  %v2122_v29 = vsub.f32 %v1850_v4, %v8293_v41 }
 0x156   :  { %v712_v60 = vor.u32 4788187, %v711_v20  ;;  %v715_v24 = vcvt.s32.f32 %v708_v25  ;;  %v9683_v27 = vsub.f32 %v1950_v11, %v8293_v41  ;;  %v9685_v28 = vsub.f32 %v1954_v0, %v8293_v41 }
 0x157   :  { %v7031_v59 = vadd.s32 4294967294, %v1113_v23  ;;  %v9687_v42 = vsub.f32 %v1958_v6, %v8293_v41  ;;  %v9689_v62 = vsub.f32 %v1962_v9, %v8293_v41  ;;  %v9691_v34 = vsub.f32 %v1966_v55, %v8293_v41 }
 0x158   :  { %v713_v48 = vand.u32 2147483647, %v712_v60  ;;  %v9696_v51 = vsub.f32 %v1970_v35, %v8293_v41  ;;  %v2179_v20 = vmul.f32 -16.0, %v2115_v30  ;;  %v9698_v61 = vsub.f32 %v1974_v33, %v8293_v41 }
 0x159   :  { %vm7032_vm11 = vcmp.lt.s32.totalorder %v7031_v59, 0  ;;  %v9700_v4 = vsub.f32 %v1978_v52, %v8293_v41  ;;  %v2180_v23 = vmul.f32 -16.0, %v2116_v47  ;;  %v2181_v6 = vmul.f32 -16.0, %v2117_v19 }
 0x15a   :  { %v716_v11 = vmul.f32 %v715_v24, %v713_v48  ;;  %v1116_v0 = vsel %vm7032_vm11, 0, %v7031_v59  ;;  %v2182_v9 = vmul.f32 -16.0, %v2118_v32  ;;  %v2183_v3 = vmul.f32 -16.0, %v2119_v46 }
 0x15b   :  { %v1117_v15 = vsub.s32 32, %v1116_v0  ;;  %v1118_v55 = vshll.u32 %v9666_v43, %v1116_v0  ;;  %v1121_v2 = vsub.s32 4294967266, %v1116_v0  ;;  %v2184_v18 = vmul.f32 -16.0, %v2120_v31 }
 0x15c   :  { %v717_v54 = vxor.u32 2147483648, %v716_v11  ;;  %v2185_v35 = vmul.f32 -16.0, %v2121_v49  ;;  %v2243_v25 = vmul.f32 %v2179_v20, %v2115_v30  ;;  %v2186_v10 = vmul.f32 -16.0, %v2122_v29 }
 0x15d   :  { %v1119_v60 = vshrl.u32 %v9647_v8, %v1117_v15  ;;  %v1122_v33 = vadd.s32 127, %v1121_v2  ;;  %v2244_v52 = vmul.f32 %v2180_v23, %v2116_v47  ;;  %v2211_v24 = vmul.f32 -16.0, %v9683_v27 }
 0x15e   :  { %v718_v41 = vsel %vm635_vm4, %v717_v54, %v716_v11  ;;  %v2245_v59 = vmul.f32 %v2181_v6, %v2117_v19  ;;  %v2246_v48 = vmul.f32 %v2182_v9, %v2118_v32  ;;  %v2247_v53 = vmul.f32 %v2183_v3, %v2119_v46 }
 0x15f   :  { %v721_v43 = vsel %vm9598_vm3, %v9463_v1, %v718_v41  ;;  %v1120_v0 = vor.u32 %v1119_v60, %v1118_v55  ;;  %v1123_v63 = vshll.u32 %v1122_v33, 23  ;;  %v2248_v30 = vmul.f32 %v2184_v18, %v2120_v31 }
 0x160   :  { %7906 = vcosq.f32 %v721_v43  ;;  %v2249_v8 = vmul.f32 %v2185_v35, %v2121_v49  ;;  %v2315_v20 = vmul.f32 1.442695, %v2243_v25  ;;  %v2317_v15 = vmul.f32 1.442695, %v2244_v52 }
 0x161   :  { %7908 = vsinq.f32 %v721_v43  ;;  %v1124_v47 = vor.u32 4788187, %v1123_v63  ;;  %v1127_v23 = vcvt.s32.f32 %v1120_v0  ;;  %vm731_vm12 = vcmp.eq.s32.totalorder %v9652_v7, 2 }
 0x162   :  { %v2212_v19 = vmul.f32 -16.0, %v9685_v28  ;;  %v2250_v32 = vmul.f32 %v2186_v10, %v2122_v29  ;;  %v2319_v11 = vmul.f32 1.442695, %v2245_v59  ;;  %v2321_v6 = vmul.f32 1.442695, %v2246_v48 }
 0x163   :  { %vm728_vm13 = vcmp.eq.s32.totalorder %v9652_v7, 0  ;;  %v1125_v40 = vand.u32 2147483647, %v1124_v47  ;;  %v2213_v46 = vmul.f32 -16.0, %v9687_v42  ;;  %7910 = vpow2.f32 %v2315_v20 }
 0x164   :  { %v2323_v31 = vmul.f32 1.442695, %v2247_v53  ;;  %vm727_vm15 = vcmp.lt.s32.totalorder %v9652_v7, 2  ;;  %v2214_v63 = vmul.f32 -16.0, %v9689_v62  ;;  %v2215_v49 = vmul.f32 -16.0, %v9691_v34 }
 0x165   :  { %7912 = vpow2.f32 %v2317_v15  ;;  %v2325_v9 = vmul.f32 1.442695, %v2248_v30  ;;  %vm725_vm1 = vweird.f32 %v9463_v1  ;;  %v1128_v29 = vmul.f32 %v1127_v23, %v1125_v40  ;;  %v13710_v23 = vld [vmem:[#allocation42_spill] sm:$0xff] }
 0x166   :  { %v2216_v10 = vmul.f32 -16.0, %v9696_v51  ;;  %7914 = vpow2.f32 %v2319_v11  ;;  %v2327_v55 = vmul.f32 1.442695, %v2249_v8  ;;  %v2217_v2 = vmul.f32 -16.0, %v9698_v61 }
 0x167   :  { %v2275_v3 = vmul.f32 %v2211_v24, %v9683_v27  ;;  %7916 = vpow2.f32 %v2321_v6  ;;  %v2329_v53 = vmul.f32 1.442695, %v2250_v32  ;;  %v1129_v54 = vxor.u32 2147483648, %v1128_v29 }
 0x168   :  { %v2218_v18 = vmul.f32 -16.0, %v9700_v4  ;;  %v2276_v35 = vmul.f32 %v2212_v19, %v9685_v28  ;;  %7918 = vpow2.f32 %v2323_v31  ;;  %v13708_v25 = vsel %vm9662_vm10, 0, %v9681_v21 }
 0x169   :  { %v9727_v60 = vand.u32 3, %v13708_v25  ;;  %v2277_v33 = vmul.f32 %v2213_v46, %v9687_v42  ;;  %v2278_v52 = vmul.f32 %v2214_v63, %v9689_v62  ;;  %7920 = vpow2.f32 %v2325_v9 }
 0x16a   :  { %v1130_v27 = vsel %vm1047_vm8, %v1129_v54, %v1128_v29  ;;  %v2279_v41 = vmul.f32 %v2215_v49, %v9691_v34  ;;  %v2280_v24 = vmul.f32 %v2216_v10, %v9696_v51  ;;  %7922 = vpow2.f32 %v2327_v55  ;;  %v7907_v28 = vpop.eup %7906  ;;  %v13709_v51 = vld [vmem:[#allocation25_spill] sm:$0xff] }
 0x16b   :  { %v1133_v21 = vsel %vm9662_vm10, %v9469_v22, %v1130_v27  ;;  %v2281_v59 = vmul.f32 %v2217_v2, %v9698_v61  ;;  %7924 = vpow2.f32 %v2329_v53  ;;  %v2379_v42 = vmul.f32 1.442695, %v2275_v3  ;;  %v7909_v48 = vpop.eup %7908 }
 0x16c   :  { %v732_v62 = vxor.u32 2147483648, %v7907_v28  ;;  %7926 = vcosq.f32 %v1133_v21  ;;  %v2282_v43 = vmul.f32 %v2218_v18, %v9700_v4  ;;  %v2381_v0 = vmul.f32 1.442695, %v2276_v35 }
 0x16d   :  { %v729_v30 = vxor.u32 2147483648, %v7909_v48  ;;  %7928 = vsinq.f32 %v1133_v21  ;;  %v2383_v34 = vmul.f32 1.442695, %v2277_v33  ;;  %v146_v8 = vcombine.high %v13709_v51, %v13709_v51  ;;  %v7911_v20 = vpop.eup %7910 }
 0x16e   :  { %v733_v26 = vsel %vm731_vm12, %v732_v62, %v7909_v48  ;;  %v2385_v47 = vmul.f32 1.442695, %v2278_v52  ;;  %v9745_v61 = vadd.f32 1e-12, %v9587_v58  ;;  %v147_v15 = vcombine.high %v13710_v23, %v13710_v23 }
 0x16f   :  { %v7913_v19 = vpop.eup %7912  ;;  %v730_v4 = vsel %vm728_vm13, %v7907_v28, %v729_v30  ;;  %vm1140_vm14 = vcmp.eq.s32.totalorder %v9727_v60, 0  ;;  %vm1143_vm0 = vcmp.eq.s32.totalorder %v9727_v60, 2  ;;  %7930 = vpow2.f32 %v2379_v42 }
 0x170   :  { %v2387_v32 = vmul.f32 1.442695, %v2279_v41  ;;  %v7915_v11 = vpop.eup %7914  ;;  %v734_v6 = vsel %vm727_vm15, %v730_v4, %v733_v26  ;;  %vm1139_vm2 = vcmp.lt.s32.totalorder %v9727_v60, 2  ;;  %7932 = vpow2.f32 %v2381_v0 }
 0x171   :  { %v2389_v58 = vmul.f32 1.442695, %v2280_v24  ;;  %v2391_v40 = vmul.f32 1.442695, %v2281_v59  ;;  %v7917_v46 = vpop.eup %7916  ;;  %v735_v31 = vsel %vm725_vm1, nan, %v734_v6  ;;  %vm1137_vm3 = vweird.f32 %v9469_v22 }
 0x172   :  { %7934 = vpow2.f32 %v2383_v34  ;;  %v2393_v63 = vmul.f32 1.442695, %v2282_v43  ;;  %v163_v49 = vrot.slane %v146_v8, %v8602_v12  ;;  %v7919_v9 = vpop.eup %7918  ;;  %v1355_v29 = vmul.f32 0.5, %v735_v31 }
 0x173   :  { %7936 = vpow2.f32 %v2385_v47  ;;  %v179_v7 = vrot.slane %v147_v15, %v8602_v12  ;;  %v244_v10 = vcombine.high %v8898_v57, %v8898_v57  ;;  %v7921_v55 = vpop.eup %7920  ;;  %v245_v3 = vcombine.high %v8901_v14, %v8901_v14 }
 0x174   :  { %7938 = vpow2.f32 %v2387_v32  ;;  %v7923_v53 = vpop.eup %7922  ;;  %v1363_v54 = vadd.f32 0.5, %v1355_v29  ;;  %v9767_v18 = vmul.f32 0.25, %v7911_v20  ;;  %v9769_v35 = vmul.f32 0.25, %v7913_v19 }
 0x175   :  { %7940 = vpow2.f32 %v2389_v58  ;;  %v7925_v25 = vpop.eup %7924  ;;  %v9771_v33 = vmul.f32 0.25, %v7915_v11  ;;  %v9773_v57 = vmul.f32 0.25, %v7917_v46  ;;  %v9776_v52 = vsub.f32 %v163_v49, %v9457_v50 }
 0x176   :  { %7942 = vpow2.f32 %v2391_v40  ;;  %v7927_v27 = vpop.eup %7926  ;;  %v1371_v14 = vsel %vm9482_vm6, %v1363_v54, 0.0  ;;  %v9781_v41 = vsub.f32 %v179_v7, %v9457_v50  ;;  %v261_v24 = vrot.slane %v244_v10, %v8602_v12 }
 0x177   :  { %7944 = vpow2.f32 %v2393_v63  ;;  %v7929_v28 = vpop.eup %7928  ;;  %v1144_v21 = vxor.u32 2147483648, %v7927_v27  ;;  %v2548_v59 = vcombine.high %v1371_v14, %v1371_v14  ;;  %v2555_v42 = vrot.slane %v1371_v14, %v8587_v5 }
 0x178   :  { %v277_v48 = vrot.slane %v245_v3, %v8602_v12  ;;  %v1141_v62 = vxor.u32 2147483648, %v7929_v28  ;;  %v2439_v43 = vmul.f32 0.25, %v7919_v9  ;;  %v9786_v0 = vmul.f32 0.25, %v7921_v55 }
 0x179   :  { %v7931_v30 = vpop.eup %7930  ;;  %v1145_v50 = vsel %vm1143_vm0, %v1144_v21, %v7929_v28  ;;  %v9792_v34 = vmul.f32 0.25, %v7923_v53  ;;  %v2562_v51 = vrot.slane %v2548_v59, %v8587_v5  ;;  %v2563_v8 = vcombine.high %v2555_v42, %v2555_v42 }
 0x17a   :  { %v7933_v20 = vpop.eup %7932  ;;  %v1142_v26 = vsel %vm1140_vm14, %v7927_v27, %v1141_v62  ;;  %v9797_v47 = vmul.f32 0.25, %v7925_v25  ;;  %v2571_v23 = vrot.slane %v2555_v42, %v8587_v5  ;;  %v9801_v15 = vsub.f32 %v261_v24, %v9465_v44 }
 0x17b   :  { %v1146_v4 = vsel %vm1139_vm2, %v1142_v26, %v1145_v50  ;;  %v2564_v32 = vcombine.high %v2562_v51, %v2562_v51  ;;  %7946 = vrsqrt.f32 %v9590_v36  ;;  %v9807_v11 = vsub.f32 %v277_v48, %v9465_v44 }
 0x17c   :  { %v7935_v19 = vpop.eup %7934  ;;  %v1147_v58 = vsel %vm1137_vm3, nan, %v1146_v4  ;;  %v2585_v40 = vrot.slane %v2563_v8, %v8587_v5  ;;  %v2593_v46 = vcombine.high %v2571_v23, %v2571_v23  ;;  %v2467_v60 = vmul.f32 0.25, %v7931_v30 }
 0x17d   :  { %v7937_v6 = vpop.eup %7936  ;;  %v1359_v49 = vmul.f32 0.5, %v1147_v58  ;;  %v2468_v9 = vmul.f32 0.25, %v7933_v20  ;;  %v2578_v29 = vrot.slane %v2562_v51, %v8587_v5  ;;  %v2592_v44 = vrot.slane %v2564_v32, %v8587_v5 }
 0x17e   :  { %v7939_v63 = vpop.eup %7938  ;;  %v2595_v10 = vcombine.high %v2585_v40, %v2585_v40  ;;  %v2926_v55 = vrot.slane %v2571_v23, %v8602_v12  ;;  %v2930_v22 = vrot.slane %v2585_v40, %v8602_v12  ;;  %v2469_v54 = vmul.f32 0.25, %v7935_v19 }
 0x17f   :  { %v7941_v7 = vpop.eup %7940  ;;  %v1367_v53 = vadd.f32 0.5, %v1359_v49  ;;  %v2594_v25 = vcombine.high %v2578_v29, %v2578_v29  ;;  %v2934_v27 = vrot.slane %v2593_v46, %v8602_v12  ;;  %v2470_v24 = vmul.f32 0.25, %v7937_v6 }
 0x180   :  { %v7943_v3 = vpop.eup %7942  ;;  %v2471_v28 = vmul.f32 0.25, %v7939_v63  ;;  %v2596_v21 = vcombine.high %v2592_v44, %v2592_v44  ;;  %v2938_v59 = vrot.slane %v2595_v10, %v8602_v12  ;;  %v2942_v48 = vrot.slane %v2578_v29, %v8602_v12 }
 0x181   :  { %v7945_v14 = vpop.eup %7944  ;;  %v1375_v42 = vsel %vm9486_vm7, %v1367_v53, 0.0  ;;  %v9824_v62 = vmul.f32 %v2926_v55, %v9767_v18  ;;  %v9827_v30 = vmul.f32 %v2930_v22, %v9769_v35  ;;  %v2472_v50 = vmul.f32 0.25, %v7941_v7 }
 0x182   :  { %v2473_v51 = vmul.f32 0.25, %v7943_v3  ;;  %v2744_v8 = vcombine.high %v1375_v42, %v1375_v42  ;;  %v2751_v20 = vrot.slane %v1375_v42, %v8587_v5  ;;  %v2474_v26 = vmul.f32 0.25, %v7945_v14 }
 0x183   :  { %v2946_v23 = vrot.slane %v2592_v44, %v8602_v12  ;;  %v2950_v19 = vrot.slane %v2594_v25, %v8602_v12  ;;  %v9833_v37 = vmul.f32 %v2934_v27, %v9771_v33  ;;  %v2954_v35 = vrot.slane %v2596_v21, %v8602_v12 }
 0x184   :  { %v2758_v4 = vrot.slane %v2744_v8, %v8587_v5  ;;  %v2759_v18 = vcombine.high %v2751_v20, %v2751_v20  ;;  %v2767_v32 = vrot.slane %v2751_v20, %v8587_v5  ;;  %v9841_v58 = vmul.f32 %v2938_v59, %v9773_v57 }
 0x185   :  { %v9838_v6 = vpop.eup %7946  ;;  %v9843_v40 = vmul.f32 %v2942_v48, %v2439_v43  ;;  %v3420_v46 = vmul.f32 %v13658_v13, %v9824_v62  ;;  %v3421_v33 = vmul.f32 %v13659_v39, %v9827_v30  ;;  %v9853_v10 = vmul.f32 %v2946_v23, %v9786_v0  ;;  %v13711_v43 = vld [vmem:[#allocation36_spill] sm:$0xff]  ;;  %v13712_v48 = vld [vmem:[#allocation37_spill] sm:$0xff] }
 0x186   :  { %v2760_v63 = vcombine.high %v2758_v4, %v2758_v4  ;;  %v2774_v49 = vrot.slane %v2758_v4, %v8587_v5  ;;  %v2781_v29 = vrot.slane %v2759_v18, %v8587_v5  ;;  %v2789_v7 = vcombine.high %v2767_v32, %v2767_v32 }
 0x187   :  { %v3054_v44 = vrot.slane %v2767_v32, %v8602_v12  ;;  %v9856_v57 = vmul.f32 %v2950_v19, %v9792_v34  ;;  %v3422_v55 = vmul.f32 %v13711_v43, %v9833_v37  ;;  %v3483_v0 = vadd.f32 %v3421_v33, %v3420_v46  ;;  %v13713_v46 = vld [vmem:[#allocation38_spill] sm:$0xff] }
 0x188   :  { %v2788_v22 = vrot.slane %v2760_v63, %v8587_v5  ;;  %v2790_v3 = vcombine.high %v2774_v49, %v2774_v49  ;;  %v2791_v53 = vcombine.high %v2781_v29, %v2781_v29  ;;  %v3058_v25 = vrot.slane %v2781_v29, %v8602_v12 }
 0x189   :  { %v3062_v27 = vrot.slane %v2789_v7, %v8602_v12  ;;  %v3070_v14 = vrot.slane %v2774_v49, %v8602_v12  ;;  %v9864_v21 = vmul.f32 %v3054_v44, %v2467_v60  ;;  %v3423_v8 = vmul.f32 %v13712_v48, %v9841_v58  ;;  %v13714_v7 = vld [vmem:[#allocation39_spill] sm:$0xff] }
 0x18a   :  { %v2792_v59 = vcombine.high %v2788_v22, %v2788_v22  ;;  %v3066_v34 = vrot.slane %v2791_v53, %v8602_v12  ;;  %v3074_v42 = vrot.slane %v2788_v22, %v8602_v12  ;;  %v3078_v20 = vrot.slane %v2790_v3, %v8602_v12  ;;  %v13715_v22 = vld [vmem:[#allocation40_spill] sm:$0xff]  ;;  %v13716_v53 = vld [vmem:[#allocation43_spill] sm:$0xff] }
 0x18b   :  { %v9871_v23 = vmul.f32 %v3058_v25, %v2468_v9  ;;  %v9873_v19 = vmul.f32 %v3062_v27, %v2469_v54  ;;  %v3452_v4 = vmul.f32 %v13658_v13, %v9864_v21  ;;  %v9879_v18 = vmul.f32 %v2954_v35, %v9797_v47  ;;  %v13717_v27 = vld [vmem:[#allocation44_spill] sm:$0xff] }
 0x18c   :  { %v3082_v60 = vrot.slane %v2792_v59, %v8602_v12  ;;  %v9881_v32 = vmul.f32 %v3066_v34, %v2470_v24  ;;  %v3424_v33 = vmul.f32 %v13713_v46, %v9843_v40  ;;  %v9885_v63 = vmul.f32 %v3070_v14, %v2471_v28  ;;  %v13719_v34 = vld [vmem:[#allocation45_spill] sm:$0xff] }
 0x18d   :  { %v3453_v9 = vmul.f32 %v13659_v39, %v9871_v23  ;;  %v3454_v54 = vmul.f32 %v13711_v43, %v9873_v19  ;;  %v3484_v49 = vadd.f32 %v3483_v0, %v3422_v55  ;;  %v9891_v29 = vmul.f32 %v3074_v42, %v2472_v50 }
 0x18e   :  { %v3425_v47 = vmul.f32 %v13714_v7, %v9853_v10  ;;  %7948 = vrsqrt.f32 %v9745_v61  ;;  %v9900_v24 = vrot.slane %v342_v17, %v8602_v12  ;;  %v9902_v28 = vmul.f32 %v3078_v20, %v2473_v51  ;;  %v13718_v17 = vld [vmem:[#allocation41_spill] sm:$0xff] }
 0x18f   :  { %v3455_v35 = vmul.f32 %v13712_v48, %v9881_v32  ;;  %v3485_v44 = vadd.f32 %v3484_v49, %v3423_v8  ;;  %v3511_v55 = vadd.f32 %v3453_v9, %v3452_v4  ;;  %v9906_v50 = vmul.f32 %v3082_v60, %v2474_v26  ;;  %v13720_v49 = vld [vmem:[#allocation46_spill] sm:$0xff] }
 0x190   :  { %v3426_v3 = vmul.f32 %v13715_v22, %v9856_v57  ;;  %v3572_v25 = vmul.f32 %v13716_v53, %v9824_v62  ;;  %v3573_v16 = vmul.f32 %v13717_v27, %v9827_v30  ;;  %v3427_v51 = vmul.f32 %v13718_v17, %v9879_v18 }
 0x191   :  { %v3456_v14 = vmul.f32 %v13713_v46, %v9885_v63  ;;  %v3486_v0 = vadd.f32 %v3485_v44, %v3424_v33  ;;  %v3512_v59 = vadd.f32 %v3511_v55, %v3454_v54  ;;  %v3457_v26 = vmul.f32 %v13714_v7, %v9891_v29  ;;  %v13721_v55 = vld [vmem:[#allocation47_spill] sm:$0xff] }
 0x192   :  { %v3574_v42 = vmul.f32 %v13719_v34, %v9833_v37  ;;  %v3604_v8 = vmul.f32 %v13716_v53, %v9864_v21  ;;  %v3605_v20 = vmul.f32 %v13717_v27, %v9871_v23  ;;  %v3458_v4 = vmul.f32 %v13715_v22, %v9902_v28 }
 0x193   :  { %v3487_v60 = vadd.f32 %v3486_v0, %v3425_v47  ;;  %v3513_v9 = vadd.f32 %v3512_v59, %v3455_v35  ;;  %v3606_v33 = vmul.f32 %v13719_v34, %v9873_v19  ;;  %v3459_v54 = vmul.f32 %v13718_v17, %v9906_v50  ;;  %v13722_v35 = vld [vmem:[#allocation48_spill] sm:$0xff]  ;;  %v13723_v59 = vld [vmem:[#allocation51_spill] sm:$0xff] }
 0x194   :  { %v3575_v44 = vmul.f32 %v13720_v49, %v9841_v58  ;;  %v3576_v31 = vmul.f32 %v13721_v55, %v9843_v40  ;;  %v3635_v1 = vadd.f32 %v3573_v16, %v3572_v25  ;;  %v3607_v53 = vmul.f32 %v13720_v49, %v9881_v32  ;;  %v13725_v49 = vld [vmem:[#allocation52_spill] sm:$0xff] }
 0x195   :  { %v3488_v2 = vadd.f32 %v3487_v60, %v3426_v3  ;;  %v3514_v27 = vadd.f32 %v3513_v9, %v3456_v14  ;;  %v3663_v47 = vadd.f32 %v3605_v20, %v3604_v8  ;;  %v3577_v0 = vmul.f32 %v13722_v35, %v9853_v10  ;;  %v13724_v60 = vld [vmem:[#allocation49_spill] sm:$0xff] }
 0x196   :  { %v3578_v34 = vmul.f32 %v13723_v59, %v9856_v57  ;;  %v3579_v17 = vmul.f32 %v13675_v38, %v9879_v18  ;;  %v3636_v22 = vadd.f32 %v3635_v1, %v3574_v42  ;;  %v3608_v25 = vmul.f32 %v13721_v55, %v9885_v63 }
 0x197   :  { %v3515_v7 = vadd.f32 %v3514_v27, %v3457_v26  ;;  %v3609_v3 = vmul.f32 %v13722_v35, %v9891_v29  ;;  %v3664_v16 = vadd.f32 %v3663_v47, %v3606_v33  ;;  %v3489_v8 = vadd.f32 %v3488_v2, %v3427_v51  ;;  %v13726_v2 = vld [vmem:[#allocation53_spill] sm:$0xff] }
 0x198   :  { %v7949_v14 = vpop.eup %7948  ;;  %v3637_v20 = vadd.f32 %v3636_v22, %v3575_v44  ;;  %v3724_v9 = vmul.f32 %v13724_v60, %v9824_v62  ;;  %v3725_v46 = vmul.f32 %v13725_v49, %v9827_v30  ;;  %v3756_v1 = vmul.f32 %v13724_v60, %v9864_v21 }
 0x199   :  { %v3516_v48 = vadd.f32 %v3515_v7, %v3458_v4  ;;  %v3665_v43 = vadd.f32 %v3664_v16, %v3607_v53  ;;  %v3757_v27 = vmul.f32 %v13725_v49, %v9871_v23  ;;  %v3610_v26 = vmul.f32 %v13723_v59, %v9902_v28 }
 0x19a   :  { %v3638_v42 = vadd.f32 %v3637_v20, %v3576_v31  ;;  %v3726_v22 = vmul.f32 %v13726_v2, %v9833_v37  ;;  %v3758_v51 = vmul.f32 %v13726_v2, %v9873_v19  ;;  %v3611_v7 = vmul.f32 %v13675_v38, %v9906_v50 }
 0x19b   :  { %v3517_v33 = vadd.f32 %v3516_v48, %v3459_v54  ;;  %v3666_v53 = vadd.f32 %v3665_v43, %v3608_v25  ;;  %v3727_v4 = vmul.f32 %v13677_v56, %v9841_v58  ;;  %v3759_v47 = vmul.f32 %v13677_v56, %v9881_v32  ;;  %v13727_v48 = vld [vmem:[#allocation58_spill] sm:$0xff] }
 0x19c   :  { %v3639_v44 = vadd.f32 %v3638_v42, %v3577_v0  ;;  %v3787_v16 = vadd.f32 %v3725_v46, %v3724_v9  ;;  %v3815_v31 = vadd.f32 %v3757_v27, %v3756_v1  ;;  %vm456_vm6 = vcmp.eq.f32.partialorder %v9590_v36, inf  ;;  %v13728_v43 = vld [vmem:[#allocation62_spill] sm:$0xff] }
 0x19d   :  { %vm484_vm7 = vcmp.eq.f32.partialorder %v9745_v61, inf  ;;  %v7588_v20 = vpack.i.bf16 %v3517_v33, %v3489_v8  ;;  %v3667_v2 = vadd.f32 %v3666_v53, %v3609_v3  ;;  %v3728_v54 = vmul.f32 %v13727_v48, %v9843_v40  ;;  %v13729_v3 = vld [vmem:[#allocation64_spill] sm:$0xff]  ;;  %v13730_v33 = vld [vmem:[#allocation59_spill] sm:$0xff] }
 0x19e   :  { %v3729_v25 = vmul.f32 %v13728_v43, %v9853_v10  ;;  %vm458_vm4 = vcmp.eq.f32.partialorder %v9590_v36, 0.0  ;;  %v3640_v0 = vadd.f32 %v3639_v44, %v3578_v34  ;;  %v3760_v42 = vmul.f32 %v13727_v48, %v9885_v63  ;;  %v13731_v48 = vld [vmem:[#allocation60_spill] sm:$0xff] }
 0x19f   :  { %v3788_v46 = vadd.f32 %v3787_v16, %v3726_v22  ;;  %v3816_v9 = vadd.f32 %v3815_v31, %v3758_v51  ;;  %vm486_vm5 = vcmp.eq.f32.partialorder %v9745_v61, 0.0  ;;  %7589 = vxpose.xlu1.b32.start [1/4] (short) %v7588_v20, 128  ;;  %v3668_v1 = vadd.f32 %v3667_v2, %v3610_v26  ;;  %v13732_v16 = vld [vmem:[#allocation65_spill] sm:$0xff] }
 0x1a0   :  { %v3730_v8 = vmul.f32 %v13729_v3, %v9856_v57  ;;  %v3761_v27 = vmul.f32 %v13728_v43, %v9891_v29  ;;  %v3876_v53 = vmul.f32 %v13730_v33, %v9824_v62  ;;  %v3641_v56 = vadd.f32 %v3640_v0, %v3579_v17 }
 0x1a1   :  { %v3789_v34 = vadd.f32 %v3788_v46, %v3727_v4  ;;  %v3817_v44 = vadd.f32 %v3816_v9, %v3759_v47  ;;  %v3877_v22 = vmul.f32 %v13731_v48, %v9827_v30  ;;  %v3669_v51 = vadd.f32 %v3668_v1, %v3611_v7  ;;  %v13733_v4 = vld [vmem:[#allocation63_spill] sm:$0xff]  ;;  %v13734_v7 = vld [vmem:[#allocation66_spill] sm:$0xff] }
 0x1a2   :  { %v3731_v31 = vmul.f32 %v13732_v16, %v9879_v18  ;;  %v3908_v26 = vmul.f32 %v13730_v33, %v9864_v21  ;;  %v3909_v2 = vmul.f32 %v13731_v48, %v9871_v23  ;;  %v3762_v20 = vmul.f32 %v13729_v3, %v9902_v28  ;;  %v13735_v1 = vld [vmem:[#allocation67_spill] sm:$0xff] }
 0x1a3   :  { %v3790_v62 = vadd.f32 %v3789_v34, %v3728_v54  ;;  %v3818_v17 = vadd.f32 %v3817_v44, %v3760_v42  ;;  %v3878_v47 = vmul.f32 %v13733_v4, %v9833_v37  ;;  %v7590_v0 = vpack.i.bf16 %v3669_v51, %v3641_v56 }
 0x1a4   :  { %v3763_v30 = vmul.f32 %v13732_v16, %v9906_v50  ;;  %v3879_v46 = vmul.f32 %v13734_v7, %v9841_v58  ;;  %v3910_v21 = vmul.f32 %v13733_v4, %v9873_v19  ;;  %v3880_v48 = vmul.f32 %v13735_v1, %v9843_v40  ;;  %v13736_v58 = vld [vmem:[#allocation16_spill] sm:$0xff] }
 0x1a5   :  { %v3791_v9 = vadd.f32 %v3790_v62, %v3729_v25  ;;  %v3819_v23 = vadd.f32 %v3818_v17, %v3761_v27  ;;  %v3939_v54 = vadd.f32 %v3877_v22, %v3876_v53  ;;  %7591 = vxpose.xlu1.b32.cont [2/4] (short) %v7590_v0, 128  ;;  %v3911_v37 = vmul.f32 %v13734_v7, %v9881_v32  ;;  %v13737_v25 = vld [vmem:[#allocation68_spill] sm:$0xff] }
 0x1a6   :  { %v3967_v56 = vadd.f32 %v3909_v2, %v3908_v26  ;;  %v455_v42 = vmul.f32 %v9838_v6, %v9590_v36  ;;  %v483_v34 = vmul.f32 %v7949_v14, %v9745_v61  ;;  %vm500_vm8 = vcmp.ne.s32.totalorder %v13736_v58, 2 }
 0x1a7   :  { %v3792_v44 = vadd.f32 %v3791_v9, %v3730_v8  ;;  %v3820_v19 = vadd.f32 %v3819_v23, %v3762_v20  ;;  %v3881_v27 = vmul.f32 %v13737_v25, %v9853_v10  ;;  %v3940_v51 = vadd.f32 %v3939_v54, %v3878_v47 }
 0x1a8   :  { %v3912_v40 = vmul.f32 %v13735_v1, %v9885_v63  ;;  %v3968_v53 = vadd.f32 %v3967_v56, %v3910_v21  ;;  %v457_v32 = vsel %vm456_vm6, %v9590_v36, %v455_v42  ;;  %v485_v6 = vsel %vm484_vm7, %v9745_v61, %v483_v34 }
 0x1a9   :  { %vm504_vm9 = vcmp.ne.s32.totalorder %v13736_v58, 6  ;;  %v3793_v14 = vadd.f32 %v3792_v44, %v3731_v31  ;;  %v3821_v8 = vadd.f32 %v3820_v19, %v3763_v30  ;;  %v3941_v22 = vadd.f32 %v3940_v51, %v3879_v46  ;;  %v13740_v31 = vld [vmem:[#allocation69_spill] sm:$0xff] }
 0x1aa   :  { %v13738_v10 = vand.u32 2147483648, %v9590_v36  ;;  %v3913_v63 = vmul.f32 %v13737_v25, %v9891_v29  ;;  %v3969_v2 = vadd.f32 %v3968_v53, %v3911_v37  ;;  %v13739_v20 = vand.u32 2147483648, %v9745_v61  ;;  %v13741_v61 = vld [vmem:[#allocation70_spill] sm:$0xff] }
 0x1ab   :  { %v7592_v47 = vpack.i.bf16 %v3821_v8, %v3793_v14  ;;  %v3882_v0 = vmul.f32 %v13740_v31, %v9856_v57  ;;  %v3942_v30 = vadd.f32 %v3941_v22, %v3880_v48  ;;  %v3914_v36 = vmul.f32 %v13740_v31, %v9902_v28 }
 0x1ac   :  { %v460_v26 = vsel %vm458_vm4, %v13738_v10, %v457_v32  ;;  %v488_v62 = vsel %vm486_vm5, %v13739_v20, %v485_v6  ;;  %v3970_v21 = vadd.f32 %v3969_v2, %v3912_v40  ;;  %v3883_v23 = vmul.f32 %v13741_v61, %v9879_v18 }
 0x1ad   :  { %v10031_v17 = vmul.f32 0.60415244, %v460_v26  ;;  %v10035_v46 = vmul.f32 0.60415244, %v488_v62  ;;  %7593 = vxpose.xlu1.b32.cont [3/4] (short) %v7592_v47, 128  ;;  %v3915_v54 = vmul.f32 %v13741_v61, %v9906_v50  ;;  %v3943_v37 = vadd.f32 %v3942_v30, %v3881_v27 }
 0x1ae   :  { %v3971_v48 = vadd.f32 %v3970_v21, %v3913_v63  ;;  %vm508_vm10 = vcmp.lt.f32.partialorder %v460_v26, 5.2  ;;  %v13742_v18 = vcombine.high %v9169_v45, %v9169_v45  ;;  %vm512_vm11 = vcmp.lt.f32.partialorder %v488_v62, 5.2  ;;  %v8294_v63 = vld [vmem:[#allocation5 + $0x10] sm:$0xff] }
 0x1af   :  { %v13343_v29 = vand.u32 2147483647, %v10031_v17  ;;  %v739_v9 = vand.u32 2139095040, %v10031_v17  ;;  %v13342_v57 = vand.u32 2147483647, %v10035_v46  ;;  %v3944_v42 = vadd.f32 %v3943_v37, %v3882_v0  ;;  %vm10059_vm12 = vmand %vm500_vm8, %vm508_vm10 }
 0x1b0   :  { %v1151_v34 = vand.u32 2139095040, %v10035_v46  ;;  %v375_v50 = vrot.slane %v13742_v18, %v8602_v12  ;;  %v3972_v19 = vadd.f32 %v3971_v48, %v3914_v36  ;;  %v395_v51 = vmul.f32 %v9776_v52, %v9776_v52  ;;  %vm10067_vm13 = vmand %vm504_vm9, %vm512_vm11 }
 0x1b1   :  { %v740_v56 = vshrl.u32 %v739_v9, 23  ;;  %v743_v28 = vand.u32 8388607, %v13343_v29  ;;  %v1155_v44 = vand.u32 8388607, %v13342_v57  ;;  %v3945_v40 = vadd.f32 %v3944_v42, %v3883_v23 }
 0x1b2   :  { %v1152_v6 = vshrl.u32 %v1151_v34, 23  ;;  %v403_v14 = vmul.f32 %v9801_v15, %v9801_v15  ;;  %v3973_v45 = vadd.f32 %v3972_v19, %v3915_v54  ;;  %v10072_v2 = vsub.f32 %v9900_v24, %v8294_v63 }
 0x1b3   :  { %v7017_v27 = vadd.s32 4294967169, %v740_v56  ;;  %v744_v32 = vor.u32 8388608, %v743_v28  ;;  %v1156_v22 = vor.u32 8388608, %v1155_v44  ;;  %v10074_v20 = vsub.f32 %v375_v50, %v8294_v63 }
 0x1b4   :  { %v7033_v52 = vadd.s32 4294967169, %v1152_v6  ;;  %13747 = vst [vmem:[#allocation17_spill] sm:$0xff] %v10072_v2  ;;  %v10078_v47 = vmul.f32 %v9781_v41, %v9781_v41  ;;  %v7594_v15 = vpack.i.bf16 %v3973_v45, %v3945_v40  ;;  %v10082_v0 = vsel %vm10059_vm12, %v460_v26, 10.4 }
 0x1b5   :  { %v746_v8 = vadd.s32 1, %v7017_v27  ;;  %13748 = vst [vmem:[#allocation50_spill] sm:$0xff] %v10074_v20  ;;  %v10086_v30 = vmul.f32 %v9807_v11, %v9807_v11  ;;  %v10088_v21 = vshll.u32 %v744_v32, 8  ;;  %v10090_v9 = vadd.f32 %v403_v14, %v395_v51 }
 0x1b6   :  { %13749 = vst [vmem:[#allocation18_spill] sm:$0xff] %v10078_v47  ;;  %v1158_v24 = vadd.s32 1, %v7033_v52  ;;  %7595 = vxpose.xlu1.b32.end [4/4] (short) %v7594_v15, 128  ;;  %v10092_v54 = vshll.u32 %v1156_v22, 8  ;;  %v10096_v37 = vsel %vm10067_vm13, %v488_v62, 10.4  ;;  %v10102_v26 = vrot.slane %v10082_v0, %v8587_v5 }
 0x1b7   :  { %vm747_vm15 = vcmp.gt.s32.totalorder %v746_v8, 0  ;;  %13750 = vst [vmem:[#allocation55_spill] sm:$0xff] %v10086_v30  ;;  %13751 = vst [vmem:[#allocation61_spill] sm:$0xff] %v10090_v9  ;;  %v13752_v28 = vmov 683565275   ;;  %vm738_vm10 = vcmp.lt.s32.totalorder %v10031_v17, 0 }
 0x1b8   :  { %v748_v36 = vsel %vm747_vm15, %v746_v8, 0  ;;  %vm1159_vm1 = vcmp.gt.s32.totalorder %v1158_v24, 0  ;;  %v13753_v34 = vmov 2475754826   ;;  %v13754_v18 = vmov 2131351028  }
 0x1b9   :  { %v749_v23 = vshrl.u32 %v748_v36, 5  ;;  %v750_v41 = vand.u32 31, %v748_v36  ;;  %v13755_v62 = vmov 2102212464   ;;  %v13756_v27 = vmov 920167782  }
 0x1ba   :  { %v13757_v8 = vmov 1326507024   ;;  %v1160_v36 = vsel %vm1159_vm1, %v1158_v24, 0  ;;  %vm1150_vm15 = vcmp.lt.s32.totalorder %v10035_v46, 0 }
 0x1bb   :  { %v751_v56 = vsub.s32 32, %v750_v41  ;;  %v753_v42 = vshll.u32 %v13752_v28, %v750_v41  ;;  %v756_v44 = vshll.u32 %v13753_v34, %v750_v41  ;;  %v759_v50 = vshll.u32 %v13754_v18, %v750_v41 }
 0x1bc   :  { %v762_v19 = vshll.u32 %v13755_v62, %v750_v41  ;;  %v765_v51 = vshll.u32 %v13756_v27, %v750_v41  ;;  %vm768_vm14 = vcmp.lt.s32.totalorder %v749_v23, 1  ;;  %vm769_vm0 = vcmp.lt.s32.totalorder %v749_v23, 2 }
 0x1bd   :  { %v752_v40 = vshrl.u32 %v13752_v28, %v751_v56  ;;  %v754_v32 = vshrl.u32 %v13753_v34, %v751_v56  ;;  %v757_v6 = vshrl.u32 %v13754_v18, %v751_v56  ;;  %v760_v14 = vshrl.u32 %v13755_v62, %v751_v56 }
 0x1be   :  { %v763_v45 = vshrl.u32 %v13756_v27, %v751_v56  ;;  %v766_v22 = vshrl.u32 %v13757_v8, %v751_v56  ;;  %vm770_vm2 = vcmp.lt.s32.totalorder %v749_v23, 3  ;;  %vm771_vm3 = vcmp.lt.s32.totalorder %v749_v23, 4 }
 0x1bf   :  { %v755_v52 = vor.u32 %v754_v32, %v753_v42  ;;  %v758_v63 = vor.u32 %v757_v6, %v756_v44  ;;  %v761_v15 = vor.u32 %v760_v14, %v759_v50  ;;  %v10118_v29 = vshrl.u32 %v1160_v36, 5 }
 0x1c0   :  { %v764_v41 = vor.u32 %v763_v45, %v762_v19  ;;  %v767_v57 = vor.u32 %v766_v22, %v765_v51  ;;  %v1162_v48 = vand.u32 31, %v1160_v36  ;;  %v7857_v22 = vld [vmem:[#allocation8 + $0x8] sm:$0xff]  }
 0x1c1   :  { %v772_v11 = vsel %vm768_vm14, %v752_v40, %v755_v52  ;;  %v773_v58 = vsel %vm771_vm3, %v761_v15, 2102212464  ;;  %v776_v9 = vsel %vm768_vm14, %v755_v52, %v758_v63  ;;  %v780_v61 = vsel %vm768_vm14, %v758_v63, %v761_v15 }
 0x1c2   :  { %v774_v56 = vsel %vm770_vm2, %v758_v63, %v773_v58  ;;  %v777_v20 = vsel %vm771_vm3, %v764_v41, 920167782  ;;  %v781_v42 = vsel %vm771_vm3, %v767_v57, 1326507024  ;;  %v1163_v44 = vsub.s32 32, %v1162_v48  ;;  %v7856_v58 = vld [vmem:[#allocation8] sm:$0xff]  }
 0x1c3   :  { %v775_v50 = vsel %vm769_vm0, %v772_v11, %v774_v56  ;;  %v778_v24 = vsel %vm770_vm2, %v761_v15, %v777_v20  ;;  %v782_v19 = vsel %vm770_vm2, %v764_v41, %v781_v42  ;;  %v1165_v51 = vshll.u32 %v13752_v28, %v1162_v48  ;;  %7314 = vmatprep.subr.bf16.mxu0 %v7856_v58 }
 0x1c4   :  { %v779_v40 = vsel %vm769_vm0, %v776_v9, %v778_v24  ;;  %v783_v32 = vsel %vm769_vm0, %v780_v61, %v782_v19  ;;  %v791_v6 = vmul.u32 %v10088_v21, %v775_v50  ;;  %v1164_v14 = vshrl.u32 %v13752_v28, %v1163_v44  ;;  %7446 = vmatprep.subr.bf16.mxu1 %v7856_v58 }
 0x1c5   :  { %v10133_v57 = vmul.u32.u64.low %v10088_v21, %v783_v32  ;;  %v10134_v45 = vmul.u32.u64.high %v10088_v21, %v783_v32, %v10133_v57  ;;  %v10137_v11 = vmul.u32.u64.low %v10088_v21, %v779_v40  ;;  %v10138_v20 = vmul.u32.u64.high %v10088_v21, %v779_v40, %v10137_v11  ;;  %7315 = vmatpush3.bf16.msra.mxu0 %v7856_v58  ;;  %7448 = vmatpush3.bf16.msra.mxu1 %v7856_v58 }
 0x1c6   :  { %v1166_v52 = vshrl.u32 %v13753_v34, %v1163_v44  ;;  %v1168_v9 = vshll.u32 %v13753_v34, %v1162_v48  ;;  %v1169_v61 = vshrl.u32 %v13754_v18, %v1163_v44  ;;  %v1171_v23 = vshll.u32 %v13754_v18, %v1162_v48  ;;  %7316 = vmatprep.subr.bf16.mxu0 %v7857_v22 }
 0x1c7   :  { %v1172_v63 = vshrl.u32 %v13755_v62, %v1163_v44  ;;  %v1174_v15 = vshll.u32 %v13755_v62, %v1162_v48  ;;  %v1175_v36 = vshrl.u32 %v13756_v27, %v1163_v44  ;;  %v1177_v21 = vshll.u32 %v13756_v27, %v1162_v48  ;;  %7447 = vmatprep.subr.bf16.mxu1 %v7857_v22 }
 0x1c8   :  { %v1167_v41 = vor.u32 %v1166_v52, %v1165_v51  ;;  %v1170_v56 = vor.u32 %v1169_v61, %v1168_v9  ;;  %v1178_v42 = vshrl.u32 %v13757_v8, %v1163_v44  ;;  %vm1180_vm6 = vcmp.lt.s32.totalorder %v10118_v29, 1 }
 0x1c9   :  { %vm793_vm7 = vc.u32 %v10134_v45, %v10137_v11  ;;  %v794_v50 = vadd.s32 1, %v10138_v20  ;;  %v1173_v24 = vor.u32 %v1172_v63, %v1171_v23  ;;  %v10156_v19 = vrot.slane %v10096_v37, %v8587_v5  ;;  %7317 = vmatpush3.bf16.msra.mxu0 %v7857_v22  ;;  %7449 = vmatpush3.bf16.msra.mxu1 %v7857_v22 }
 0x1ca   :  { %v1176_v48 = vor.u32 %v1175_v36, %v1174_v15  ;;  %v1179_v51 = vor.u32 %v1178_v42, %v1177_v21  ;;  %vm1181_vm4 = vcmp.lt.s32.totalorder %v10118_v29, 2  ;;  %vm1182_vm5 = vcmp.lt.s32.totalorder %v10118_v29, 3 }
 0x1cb   :  { %v795_v44 = vsel %vm793_vm7, %v794_v50, %v10138_v20  ;;  %vm1183_vm8 = vcmp.lt.s32.totalorder %v10118_v29, 4  ;;  %v1184_v40 = vsel %vm1180_vm6, %v1164_v14, %v1167_v41  ;;  %v1188_v32 = vsel %vm1180_vm6, %v1167_v41, %v1170_v56 }
 0x1cc   :  { %v796_v58 = vadd.s32 %v795_v44, %v791_v6  ;;  %v1185_v57 = vsel %vm1183_vm8, %v1173_v24, 2102212464  ;;  %v1189_v52 = vsel %vm1183_vm8, %v1176_v48, 920167782  ;;  %v1192_v9 = vsel %vm1180_vm6, %v1170_v56, %v1173_v24 }
 0x1cd   :  { %v1186_v61 = vsel %vm1182_vm5, %v1170_v56, %v1185_v57  ;;  %v1190_v20 = vsel %vm1182_vm5, %v1173_v24, %v1189_v52  ;;  %v1193_v23 = vsel %vm1183_vm8, %v1179_v51, 1326507024  ;;  %v13758_v14 = vcombine.high %v10082_v0, %v10082_v0 }
 0x1ce   :  { %v797_v6 = vadd.s32 536870912, %v796_v58  ;;  %v1191_v15 = vsel %vm1181_vm4, %v1188_v32, %v1190_v20  ;;  %v1194_v36 = vsel %vm1182_vm5, %v1176_v48, %v1193_v23  ;;  %v1507_v22 = vcombine.high %v10102_v26, %v10102_v26 }
 0x1cf   :  { %v1506_v63 = vrot.slane %v13758_v14, %v8587_v5  ;;  %v1187_v21 = vsel %vm1181_vm4, %v1184_v40, %v1186_v61  ;;  %v1195_v41 = vsel %vm1181_vm4, %v1192_v9, %v1194_v36  ;;  %v13759_v48 = vcombine.high %v10096_v37, %v10096_v37 }
 0x1d0   :  { %v10187_v56 = vmul.u32.u64.low %v10092_v54, %v1191_v15  ;;  %v10188_v0 = vmul.u32.u64.high %v10092_v54, %v1191_v15, %v10187_v56  ;;  %v798_v42 = vshrl.u32 %v797_v6, 30  ;;  %v13760_v44 = vand.u32 2147483647, %v10031_v17 }
 0x1d1   :  { %v10191_v50 = vmul.u32.u64.low %v10092_v54, %v1195_v41  ;;  %v10192_v24 = vmul.u32.u64.high %v10092_v54, %v1195_v41, %v10191_v50  ;;  %v1702_v51 = vrot.slane %v13759_v48, %v8587_v5  ;;  %v1508_v29 = vcombine.high %v1506_v63, %v1506_v63 }
 0x1d2   :  { %vm10200_vm9 = vcmp.le.f32.partialorder %v13760_v44, 0.7853982  ;;  %v10207_v32 = vrot.slane %v10102_v26, %v8587_v5  ;;  %v799_v57 = vshll.u32 %v798_v42, 30  ;;  %v822_v52 = vsub.s32 4, %v798_v42 }
 0x1d3   :  { %v1203_v9 = vmul.u32 %v10092_v54, %v1187_v21  ;;  %v10211_v37 = vrot.slane %v1506_v63, %v8587_v5  ;;  %v10215_v61 = vadd.s32 %v10137_v11, %v10134_v45  ;;  %v1206_v20 = vadd.s32 1, %v10188_v0 }
 0x1d4   :  { %v10219_v23 = vrot.slane %v1507_v22, %v8587_v5  ;;  %v1703_v26 = vcombine.high %v10156_v19, %v10156_v19  ;;  %v10223_v14 = vsub.s32 %v796_v58, %v799_v57  ;;  %v823_v54 = vsel %vm738_vm10, %v822_v52, %v798_v42 }
 0x1d5   :  { %vm1205_vm11 = vc.u32 %v10192_v24, %v10187_v56  ;;  %v1704_v63 = vcombine.high %v1702_v51, %v1702_v51  ;;  %v10230_v45 = vrot.slane %v1508_v29, %v8587_v5  ;;  %v1537_v11 = vcombine.high %v10207_v32, %v10207_v32 }
 0x1d6   :  { %v1207_v6 = vsel %vm1205_vm11, %v1206_v20, %v10188_v0  ;;  %v10236_v15 = vrot.slane %v10156_v19, %v8587_v5  ;;  %v802_v58 = vsub.s32 0, %v10223_v14  ;;  %v825_v36 = vsel %vm10200_vm9, 0, %v823_v54 }
 0x1d7   :  { %v1208_v22 = vadd.s32 %v1207_v6, %v1203_v9  ;;  %v1538_v21 = vcombine.high %v10211_v37, %v10211_v37  ;;  %v13763_v41 = vand.u32 2147483647, %v10035_v46  ;;  %v1539_v19 = vcombine.high %v10219_v23, %v10219_v23 }
 0x1d8   :  { %v1540_v42 = vcombine.high %v10230_v45, %v10230_v45  ;;  %v10255_v50 = vrot.slane %v1702_v51, %v8587_v5  ;;  %v1725_v48 = vrot.slane %v1703_v26, %v8587_v5  ;;  %v7018_v44 = vmin.u32 %v802_v58, %v10223_v14 }
 0x1d9   :  { %vm10246_vm1 = vcmp.le.f32.partialorder %v13763_v41, 0.7853982  ;;  %v10260_v29 = vadd.s32 %v10187_v56, %v10192_v24  ;;  %v1732_v57 = vrot.slane %v1704_v63, %v8587_v5  ;;  %v1854_v52 = vrot.slane %v10207_v32, %v8602_v12 }
 0x1da   :  { %v10265_v9 = vand.u32 3, %v825_v36  ;;  %v1209_v20 = vadd.s32 536870912, %v1208_v22  ;;  %v1733_v54 = vcombine.high %v10236_v15, %v10236_v15  ;;  %v1734_v51 = vcombine.high %v10255_v50, %v10255_v50 }
 0x1db   :  { %v804_v26 = vclz %v7018_v44  ;;  %v1735_v6 = vcombine.high %v1725_v48, %v1725_v48  ;;  %v1736_v58 = vcombine.high %v1732_v57, %v1732_v57  ;;  %v1858_v56 = vrot.slane %v10219_v23, %v8602_v12 }
 0x1dc   :  { %v1210_v24 = vshrl.u32 %v1209_v20, 30  ;;  %v1862_v63 = vrot.slane %v1537_v11, %v8602_v12  ;;  %v1866_v32 = vrot.slane %v1539_v19, %v8602_v12  ;;  %v1870_v36 = vrot.slane %v10211_v37, %v8602_v12 }
 0x1dd   :  { %v7019_v41 = vadd.s32 4294967294, %v804_v26  ;;  %v1874_v8 = vrot.slane %v10230_v45, %v8602_v12  ;;  %v1878_v27 = vrot.slane %v1538_v21, %v8602_v12  ;;  %v1882_v44 = vrot.slane %v1540_v42, %v8602_v12 }
 0x1de   :  { %v1211_v62 = vshll.u32 %v1210_v24, 30  ;;  %v1234_v18 = vsub.s32 4, %v1210_v24  ;;  %v1982_v23 = vrot.slane %v10236_v15, %v8602_v12  ;;  %v1986_v11 = vrot.slane %v1725_v48, %v8602_v12 }
 0x1df   :  { %vm7020_vm14 = vcmp.lt.s32.totalorder %v7019_v41, 0  ;;  %v1990_v19 = vrot.slane %v1733_v54, %v8602_v12  ;;  %v1994_v37 = vrot.slane %v1735_v6, %v8602_v12  ;;  %v1998_v20 = vrot.slane %v10255_v50, %v8602_v12 }
 0x1e0   :  { %v807_v45 = vsel %vm7020_vm14, 0, %v7019_v41  ;;  %v10288_v26 = vsub.s32 %v1208_v22, %v1211_v62  ;;  %v1235_v21 = vsel %vm1150_vm15, %v1234_v18, %v1210_v24  ;;  %v2002_v42 = vrot.slane %v1732_v57, %v8602_v12  ;;  %v8295_v62 = vld [vmem:[#allocation7] sm:$0xff] }
 0x1e1   :  { %v808_v34 = vsub.s32 32, %v807_v45  ;;  %v809_v15 = vshll.u32 %v10223_v14, %v807_v45  ;;  %v812_v48 = vsub.s32 4294967266, %v807_v45  ;;  %v1237_v54 = vsel %vm10246_vm1, 0, %v1235_v21 }
 0x1e2   :  { %v1214_v6 = vsub.s32 0, %v10288_v26  ;;  %v2006_v28 = vrot.slane %v1734_v51, %v8602_v12  ;;  %v2010_v50 = vrot.slane %v1736_v58, %v8602_v12  ;;  %v2123_v22 = vsub.f32 %v1854_v52, %v8295_v62 }
 0x1e3   :  { %v810_v41 = vshrl.u32 %v10215_v61, %v808_v34  ;;  %v813_v18 = vadd.s32 127, %v812_v48  ;;  %v2124_v24 = vsub.f32 %v1858_v56, %v8295_v62  ;;  %v2125_v57 = vsub.f32 %v1862_v63, %v8295_v62 }
 0x1e4   :  { %v7034_v2 = vmin.u32 %v1214_v6, %v10288_v26  ;;  %v10301_v14 = vand.u32 3, %v1237_v54  ;;  %v2126_v45 = vsub.f32 %v1866_v32, %v8295_v62  ;;  %v2127_v30 = vsub.f32 %v1870_v36, %v8295_v62 }
 0x1e5   :  { %v811_v21 = vor.u32 %v810_v41, %v809_v15  ;;  %v814_v47 = vshll.u32 %v813_v18, 23  ;;  %v2128_v31 = vsub.f32 %v1874_v8, %v8295_v62  ;;  %v2129_v25 = vsub.f32 %v1878_v27, %v8295_v62 }
 0x1e6   :  { %v1216_v51 = vclz %v7034_v2  ;;  %v2130_v1 = vsub.f32 %v1882_v44, %v8295_v62  ;;  %v2155_v58 = vsub.f32 %v1982_v23, %v8295_v62  ;;  %v2156_v7 = vsub.f32 %v1986_v11, %v8295_v62  ;;  %v10305_v44 = vpop.trf.xlu0 }
 0x1e7   :  { %v815_v52 = vor.u32 4788187, %v814_v47  ;;  %v818_v4 = vcvt.s32.f32 %v811_v21  ;;  %v2157_v34 = vsub.f32 %v1990_v19, %v8295_v62  ;;  %v2158_v61 = vsub.f32 %v1994_v37, %v8295_v62 }
 0x1e8   :  { %v7035_v56 = vadd.s32 4294967294, %v1216_v51  ;;  %v2159_v63 = vsub.f32 %v1998_v20, %v8295_v62  ;;  %v2160_v48 = vsub.f32 %v2002_v42, %v8295_v62  ;;  %v10303_v6 = vsub.f32 %v2006_v28, %v8295_v62 }
 0x1e9   :  { %v816_v54 = vand.u32 2147483647, %v815_v52  ;;  %v2162_v32 = vsub.f32 %v2010_v50, %v8295_v62  ;;  %v2187_v36 = vmul.f32 -16.0, %v2123_v22  ;;  %v2188_v15 = vmul.f32 -16.0, %v2124_v24 }
 0x1ea   :  { %vm7036_vm0 = vcmp.lt.s32.totalorder %v7035_v56, 0  ;;  %v2189_v8 = vmul.f32 -16.0, %v2125_v57  ;;  %v2190_v27 = vmul.f32 -16.0, %v2126_v45  ;;  %v2191_v2 = vmul.f32 -16.0, %v2127_v30  ;;  %v10315_v49 = vpop.trf.xlu0 }
 0x1eb   :  { %v819_v23 = vmul.f32 %v818_v4, %v816_v54  ;;  %v1219_v47 = vsel %vm7036_vm0, 0, %v7035_v56  ;;  %v2192_v11 = vmul.f32 -16.0, %v2128_v31  ;;  %v2193_v19 = vmul.f32 -16.0, %v2129_v25 }
 0x1ec   :  { %v1220_v37 = vsub.s32 32, %v1219_v47  ;;  %v1221_v20 = vshll.u32 %v10288_v26, %v1219_v47  ;;  %v1224_v42 = vsub.s32 4294967266, %v1219_v47  ;;  %v2194_v28 = vmul.f32 -16.0, %v2130_v1 }
 0x1ed   :  { %v820_v41 = vxor.u32 2147483648, %v819_v23  ;;  %v2219_v18 = vmul.f32 -16.0, %v2155_v58  ;;  %v2220_v50 = vmul.f32 -16.0, %v2156_v7  ;;  %v2221_v62 = vmul.f32 -16.0, %v2157_v34 }
 0x1ee   :  { %v1222_v21 = vshrl.u32 %v10260_v29, %v1220_v37  ;;  %v1225_v51 = vadd.s32 127, %v1224_v42  ;;  %v2222_v52 = vmul.f32 -16.0, %v2158_v61  ;;  %v2223_v33 = vmul.f32 -16.0, %v2159_v63 }
 0x1ef   :  { %v821_v4 = vsel %vm738_vm10, %v820_v41, %v819_v23  ;;  %v2224_v56 = vmul.f32 -16.0, %v2160_v48  ;;  %v2225_v54 = vmul.f32 -16.0, %v10303_v6  ;;  %v2226_v16 = vmul.f32 -16.0, %v2162_v32 }
 0x1f0   :  { %v824_v26 = vsel %vm10200_vm9, %v10031_v17, %v821_v4  ;;  %v1223_v47 = vor.u32 %v1222_v21, %v1221_v20  ;;  %v1226_v3 = vshll.u32 %v1225_v51, 23  ;;  %v2251_v43 = vmul.f32 %v2187_v36, %v2123_v22 }
 0x1f1   :  { %7950 = vcosq.f32 %v824_v26  ;;  %v2252_v29 = vmul.f32 %v2188_v15, %v2124_v24  ;;  %v2253_v37 = vmul.f32 %v2189_v8, %v2125_v57  ;;  %v2254_v42 = vmul.f32 %v2190_v27, %v2126_v45 }
 0x1f2   :  { %7952 = vsinq.f32 %v824_v26  ;;  %v1227_v60 = vor.u32 4788187, %v1226_v3  ;;  %v1230_v23 = vcvt.s32.f32 %v1223_v47  ;;  %v2255_v41 = vmul.f32 %v2191_v2, %v2127_v30 }
 0x1f3   :  { %vm834_vm2 = vcmp.eq.s32.totalorder %v10265_v9, 2  ;;  %v2256_v38 = vmul.f32 %v2192_v11, %v2128_v31  ;;  %v2257_v59 = vmul.f32 %v2193_v19, %v2129_v25  ;;  %v2258_v35 = vmul.f32 %v2194_v28, %v2130_v1  ;;  %v10321_v25 = vpop.trf.xlu0 }
 0x1f4   :  { %v2283_v40 = vmul.f32 %v2219_v18, %v2155_v58  ;;  %vm831_vm3 = vcmp.eq.s32.totalorder %v10265_v9, 0  ;;  %v1228_v20 = vand.u32 2147483647, %v1227_v60  ;;  %v2284_v22 = vmul.f32 %v2220_v50, %v2156_v7 }
 0x1f5   :  { %v2285_v36 = vmul.f32 %v2221_v62, %v2157_v34  ;;  %v2286_v21 = vmul.f32 %v2222_v52, %v2158_v61  ;;  %vm830_vm6 = vcmp.lt.s32.totalorder %v10265_v9, 2  ;;  %v2331_v24 = vmul.f32 1.442695, %v2251_v43 }
 0x1f6   :  { %v2333_v57 = vmul.f32 1.442695, %v2252_v29  ;;  %v2335_v45 = vmul.f32 1.442695, %v2253_v37  ;;  %vm828_vm7 = vweird.f32 %v10031_v17  ;;  %v1231_v3 = vmul.f32 %v1230_v23, %v1228_v20 }
 0x1f7   :  { %v2287_v30 = vmul.f32 %v2223_v33, %v2159_v63  ;;  %v2288_v15 = vmul.f32 %v2224_v56, %v2160_v48  ;;  %v2337_v31 = vmul.f32 1.442695, %v2254_v42  ;;  %v2289_v1 = vmul.f32 %v2225_v54, %v10303_v6 }
 0x1f8   :  { %v2290_v58 = vmul.f32 %v2226_v16, %v2162_v32  ;;  %7954 = vpow2.f32 %v2331_v24  ;;  %v2339_v60 = vmul.f32 1.442695, %v2255_v41  ;;  %v1232_v7 = vxor.u32 2147483648, %v1231_v3 }
 0x1f9   :  { %7956 = vpow2.f32 %v2333_v57  ;;  %v2341_v34 = vmul.f32 1.442695, %v2256_v38  ;;  %v2343_v61 = vmul.f32 1.442695, %v2257_v59  ;;  %v2345_v43 = vmul.f32 1.442695, %v2258_v35  ;;  %v10329_v59 = vpop.trf.xlu0 }
 0x1fa   :  { %7958 = vpow2.f32 %v2335_v45  ;;  %v2395_v8 = vmul.f32 1.442695, %v2283_v40  ;;  %v2397_v27 = vmul.f32 1.442695, %v2284_v22  ;;  %v1233_v33 = vsel %vm1150_vm15, %v1232_v7, %v1231_v3 }
 0x1fb   :  { %7960 = vpow2.f32 %v2337_v31  ;;  %v2399_v63 = vmul.f32 1.442695, %v2285_v36  ;;  %v2401_v48 = vmul.f32 1.442695, %v2286_v21  ;;  %v7951_v2 = vpop.eup %7950  ;;  %v1236_v16 = vsel %vm10246_vm1, %v10035_v46, %v1233_v33 }
 0x1fc   :  { %7962 = vpow2.f32 %v2339_v60  ;;  %v7953_v6 = vpop.eup %7952  ;;  %v835_v32 = vxor.u32 2147483648, %v7951_v2  ;;  %v2403_v38 = vmul.f32 1.442695, %v2287_v30  ;;  %vm1246_vm4 = vcmp.eq.s32.totalorder %v10301_v14, 2 }
 0x1fd   :  { %7964 = vcosq.f32 %v1236_v16  ;;  %v832_v35 = vxor.u32 2147483648, %v7953_v6  ;;  %v2405_v19 = vmul.f32 1.442695, %v2288_v15  ;;  %v2407_v28 = vmul.f32 1.442695, %v2289_v1  ;;  %v10348_v42 = vpop.trf.xlu0 }
 0x1fe   :  { %7966 = vsinq.f32 %v1236_v16  ;;  %v836_v11 = vsel %vm834_vm2, %v835_v32, %v7953_v6  ;;  %vm1243_vm5 = vcmp.eq.s32.totalorder %v10301_v14, 0  ;;  %vm4331_vm8 = vcmask 261120  }
 0x1ff   :  { %7968 = vpow2.f32 %v2341_v34  ;;  %v833_v0 = vsel %vm831_vm3, %v7951_v2, %v832_v35  ;;  %v7514_v18 = vunpack.i.l.bf16 %v10315_v49  ;;  %v7509_v50 = vunpack.i.l.bf16 %v10305_v44 }
 0x200   :  { %v837_v62 = vsel %vm830_vm6, %v833_v0, %v836_v11  ;;  %vm1242_vm9 = vcmp.lt.s32.totalorder %v10301_v14, 2  ;;  %7970 = vpow2.f32 %v2343_v61  ;;  %v7517_v51 = vunpack.i.h.bf16 %v10315_v49 }
 0x201   :  { %v7512_v52 = vunpack.i.h.bf16 %v10305_v44  ;;  %v838_v56 = vsel %vm828_vm7, nan, %v837_v62  ;;  %vm1240_vm10 = vweird.f32 %v10035_v46  ;;  %7972 = vpow2.f32 %v2345_v43 }
 0x202   :  { %v7955_v4 = vpop.eup %7954  ;;  %v2409_v54 = vmul.f32 1.442695, %v2290_v58  ;;  %v4244_v26 = vpack.c.bf16 %v7514_v18, %v7509_v50  ;;  %v1356_v29 = vmul.f32 0.5, %v838_v56  ;;  %7974 = vpow2.f32 %v2395_v8 }
 0x203   :  { %v7957_v47 = vpop.eup %7956  ;;  %v7522_v9 = vunpack.i.h.bf16 %v10321_v25  ;;  %v4276_v37 = vpack.c.bf16 %v7517_v51, %v7512_v52  ;;  %7976 = vpow2.f32 %v2397_v27  ;;  %v7519_v44 = vunpack.i.l.bf16 %v10321_v25 }
 0x204   :  { %v7959_v49 = vpop.eup %7958  ;;  %7318 = vmatprep.mubr.msk.bf16.mxu0 %vm4331_vm8, %v4244_v26  ;;  %v1364_v23 = vadd.f32 0.5, %v1356_v29  ;;  %7978 = vpow2.f32 %v2399_v63  ;;  %v7527_v41 = vunpack.i.h.bf16 %v10329_v59  ;;  %v7524_v40 = vunpack.i.l.bf16 %v10329_v59 }
 0x205   :  { %v7961_v17 = vpop.eup %7960  ;;  %7382 = vmatprep.mubr.msk.bf16.mxu1 %vm4331_vm8, %v4276_v37  ;;  %7980 = vpow2.f32 %v2401_v48  ;;  %v10355_v22 = vmul.f32 0.25, %v7955_v4  ;;  %v10357_v36 = vmul.f32 0.25, %v7957_v47  ;;  %v10361_v57 = vmul.f32 0.25, %v7959_v49 }
 0x206   :  { %v7963_v20 = vpop.eup %7962  ;;  %v1372_v24 = vsel %vm10059_vm12, %v1364_v23, 0.0  ;;  %7982 = vpow2.f32 %v2403_v38  ;;  %v2446_v30 = vmul.f32 0.25, %v7961_v17  ;;  %v4245_v60 = vpack.c.bf16 %v7524_v40, %v7519_v44 }
 0x207   :  { %v7965_v21 = vpop.eup %7964  ;;  %v2597_v15 = vcombine.high %v1372_v24, %v1372_v24  ;;  %v2604_v31 = vrot.slane %v1372_v24, %v8587_v5  ;;  %7984 = vpow2.f32 %v2405_v19  ;;  %v4277_v27 = vpack.c.bf16 %v7527_v41, %v7522_v9 }
 0x208   :  { %v7967_v45 = vpop.eup %7966  ;;  %v1247_v3 = vxor.u32 2147483648, %v7965_v21  ;;  %7986 = vpow2.f32 %v2407_v28  ;;  %7319 = vmatmul.mubr.msk.bf16.vlgmr.msra.gmra.mrb[0].mxu0 %vm4331_vm8, %v4245_v60  ;;  %v2447_v48 = vmul.f32 0.25, %v7963_v20 }
 0x209   :  { %v7969_v25 = vpop.eup %7968  ;;  %v1244_v1 = vxor.u32 2147483648, %v7967_v45  ;;  %v2611_v53 = vrot.slane %v2597_v15, %v8587_v5  ;;  %v2612_v34 = vcombine.high %v2604_v31, %v2604_v31  ;;  %7988 = vpow2.f32 %v2409_v54  ;;  %7383 = vmatmul.mubr.msk.bf16.vlgmr.msra.gmra.mrb[0].mxu1 %vm4331_vm8, %v4277_v27 }
 0x20a   :  { %v1248_v7 = vsel %vm1246_vm4, %v1247_v3, %v7967_v45  ;;  %v7971_v61 = vpop.eup %7970  ;;  %v2620_v8 = vrot.slane %v2604_v31, %v8587_v5  ;;  %v2448_v28 = vmul.f32 0.25, %v7969_v25 }
 0x20b   :  { %v1245_v43 = vsel %vm1243_vm5, %v7965_v21, %v1244_v1  ;;  %v7973_v33 = vpop.eup %7972  ;;  %v2613_v2 = vcombine.high %v2611_v53, %v2611_v53  ;;  %v2627_v16 = vrot.slane %v2611_v53, %v8587_v5  ;;  %v2634_v38 = vrot.slane %v2612_v34, %v8587_v5 }
 0x20c   :  { %v1249_v63 = vsel %vm1242_vm9, %v1245_v43, %v1248_v7  ;;  %v7975_v6 = vpop.eup %7974  ;;  %v2642_v59 = vcombine.high %v2620_v8, %v2620_v8  ;;  %v2449_v50 = vmul.f32 0.25, %v7971_v61  ;;  %v2450_v62 = vmul.f32 0.25, %v7973_v33 }
 0x20d   :  { %v1250_v32 = vsel %vm1240_vm10, nan, %v1249_v63  ;;  %v7977_v11 = vpop.eup %7976  ;;  %v2641_v14 = vrot.slane %v2613_v2, %v8587_v5  ;;  %v2643_v0 = vcombine.high %v2627_v16, %v2627_v16  ;;  %v2644_v51 = vcombine.high %v2634_v38, %v2634_v38 }
 0x20e   :  { %v1360_v19 = vmul.f32 0.5, %v1250_v32  ;;  %v7979_v18 = vpop.eup %7978  ;;  %v2958_v46 = vrot.slane %v2620_v8, %v8602_v12  ;;  %v2962_v54 = vrot.slane %v2634_v38, %v8602_v12  ;;  %v2966_v26 = vrot.slane %v2642_v59, %v8602_v12 }
 0x20f   :  { %v7981_v52 = vpop.eup %7980  ;;  %v2645_v56 = vcombine.high %v2641_v14, %v2641_v14  ;;  %v2475_v29 = vmul.f32 0.25, %v7975_v6  ;;  %v2476_v9 = vmul.f32 0.25, %v7977_v11  ;;  %v2970_v37 = vrot.slane %v2644_v51, %v8602_v12 }
 0x210   :  { %v1368_v4 = vadd.f32 0.5, %v1360_v19  ;;  %v7983_v47 = vpop.eup %7982  ;;  %v2974_v49 = vrot.slane %v2627_v16, %v8602_v12  ;;  %v2978_v17 = vrot.slane %v2641_v14, %v8602_v12  ;;  %v2982_v23 = vrot.slane %v2643_v0, %v8602_v12 }
 0x211   :  { %v2986_v41 = vrot.slane %v2645_v56, %v8602_v12  ;;  %v7985_v40 = vpop.eup %7984  ;;  %v2477_v20 = vmul.f32 0.25, %v7979_v18  ;;  %v10393_v45 = vmul.f32 %v2958_v46, %v10355_v22  ;;  %v2478_v15 = vmul.f32 0.25, %v7981_v52 }
 0x212   :  { %v1376_v44 = vsel %vm10067_vm13, %v1368_v4, 0.0  ;;  %v7987_v3 = vpop.eup %7986  ;;  %v10396_v31 = vmul.f32 %v2962_v54, %v10357_v36  ;;  %v10399_v10 = vmul.f32 %v2966_v26, %v10361_v57  ;;  %v10401_v25 = vmul.f32 %v2970_v37, %v2446_v30 }
 0x213   :  { %v2793_v21 = vcombine.high %v1376_v44, %v1376_v44  ;;  %v2800_v24 = vrot.slane %v1376_v44, %v8587_v5  ;;  %v7989_v1 = vpop.eup %7988  ;;  %v10405_v34 = vmul.f32 %v2974_v49, %v2447_v48  ;;  %v2479_v22 = vmul.f32 0.25, %v7983_v47  ;;  %v13766_v47 = vld [vmem:[#allocation36_spill] sm:$0xff] }
 0x214   :  { %v10407_v61 = vmul.f32 %v2978_v17, %v2448_v28  ;;  %v10409_v43 = vmul.f32 %v2982_v23, %v2449_v50  ;;  %v10411_v36 = vmul.f32 %v2986_v41, %v2450_v62  ;;  %v2480_v33 = vmul.f32 0.25, %v7985_v40  ;;  %v13768_v23 = vld [vmem:[#allocation38_spill] sm:$0xff]  ;;  %v13769_v40 = vld [vmem:[#allocation39_spill] sm:$0xff] }
 0x215   :  { %v2807_v60 = vrot.slane %v2793_v21, %v8587_v5  ;;  %v2808_v7 = vcombine.high %v2800_v24, %v2800_v24  ;;  %v2816_v53 = vrot.slane %v2800_v24, %v8587_v5  ;;  %v2481_v63 = vmul.f32 0.25, %v7987_v3  ;;  %v13770_v24 = vld [vmem:[#allocation40_spill] sm:$0xff] }
 0x216   :  { %v2482_v2 = vmul.f32 0.25, %v7989_v1  ;;  %v3428_v28 = vmul.f32 %v13658_v13, %v10393_v45  ;;  %v3429_v52 = vmul.f32 %v13659_v39, %v10396_v31  ;;  %v3432_v41 = vmul.f32 %v13768_v23, %v10405_v34 }
 0x217   :  { %v2809_v8 = vcombine.high %v2807_v60, %v2807_v60  ;;  %v2823_v57 = vrot.slane %v2807_v60, %v8587_v5  ;;  %v2830_v30 = vrot.slane %v2808_v7, %v8587_v5  ;;  %v2838_v27 = vcombine.high %v2816_v53, %v2816_v53  ;;  %v13771_v7 = vld [vmem:[#allocation41_spill] sm:$0xff] }
 0x218   :  { %v3086_v16 = vrot.slane %v2816_v53, %v8602_v12  ;;  %v3434_v3 = vmul.f32 %v13770_v24, %v10409_v43  ;;  %v3490_v1 = vadd.f32 %v3429_v52, %v3428_v28  ;;  %v3435_v53 = vmul.f32 %v13771_v7, %v10411_v36 }
 0x219   :  { %v2837_v48 = vrot.slane %v2809_v8, %v8587_v5  ;;  %v2839_v6 = vcombine.high %v2823_v57, %v2823_v57  ;;  %v2840_v32 = vcombine.high %v2830_v30, %v2830_v30  ;;  %v3090_v38 = vrot.slane %v2830_v30, %v8602_v12 }
 0x21a   :  { %v3094_v59 = vrot.slane %v2838_v27, %v8602_v12  ;;  %v3102_v11 = vrot.slane %v2823_v57, %v8602_v12  ;;  %v10420_v19 = vmul.f32 %v3086_v16, %v2475_v29  ;;  %v3430_v29 = vmul.f32 %v13766_v47, %v10399_v10 }
 0x21b   :  { %v2841_v14 = vcombine.high %v2837_v48, %v2837_v48  ;;  %v3098_v0 = vrot.slane %v2840_v32, %v8602_v12  ;;  %v3106_v18 = vrot.slane %v2837_v48, %v8602_v12  ;;  %v3110_v50 = vrot.slane %v2839_v6, %v8602_v12  ;;  %v13774_v6 = vld [vmem:[#allocation45_spill] sm:$0xff] }
 0x21c   :  { %v10427_v62 = vmul.f32 %v3090_v38, %v2476_v9  ;;  %v10429_v51 = vmul.f32 %v3094_v59, %v2477_v20  ;;  %v10431_v46 = vmul.f32 %v3102_v11, %v2479_v22  ;;  %v13767_v9 = vld [vmem:[#allocation37_spill] sm:$0xff]  ;;  %v3460_v49 = vmul.f32 %v13658_v13, %v10420_v19  ;;  %v13775_v38 = vld [vmem:[#allocation46_spill] sm:$0xff] }
 0x21d   :  { %v3114_v4 = vrot.slane %v2841_v14, %v8602_v12  ;;  %v10436_v56 = vmul.f32 %v3098_v0, %v2478_v15  ;;  %v10438_v54 = vmul.f32 %v3106_v18, %v2480_v33  ;;  %v10440_v26 = vmul.f32 %v3110_v50, %v2481_v63  ;;  %v13772_v33 = vld [vmem:[#allocation43_spill] sm:$0xff]  ;;  %v13776_v50 = vld [vmem:[#allocation48_spill] sm:$0xff] }
 0x21e   :  { %v3431_v37 = vmul.f32 %v13767_v9, %v10401_v25  ;;  %v3461_v44 = vmul.f32 %v13659_v39, %v10427_v62  ;;  %v3433_v20 = vmul.f32 %v13769_v40, %v10407_v61  ;;  %v3462_v21 = vmul.f32 %v13766_v47, %v10429_v51 }
 0x21f   :  { %v10450_v17 = vmul.f32 %v3114_v4, %v2482_v2  ;;  %v3463_v15 = vmul.f32 %v13767_v9, %v10436_v56  ;;  %v3464_v22 = vmul.f32 %v13768_v23, %v10431_v46  ;;  %v3465_v8 = vmul.f32 %v13769_v40, %v10438_v54  ;;  %v13773_v2 = vld [vmem:[#allocation44_spill] sm:$0xff]  ;;  %v13777_v4 = vld [vmem:[#allocation51_spill] sm:$0xff] }
 0x220   :  { %v3518_v60 = vadd.f32 %v3461_v44, %v3460_v49  ;;  %v3466_v57 = vmul.f32 %v13770_v24, %v10440_v26  ;;  %v3491_v30 = vadd.f32 %v3490_v1, %v3430_v29  ;;  %v3580_v63 = vmul.f32 %v13772_v33, %v10393_v45  ;;  %v13778_v49 = vld [vmem:[#allocation57_spill] sm:$0xff] }
 0x221   :  { %v3581_v16 = vmul.f32 %v13773_v2, %v10396_v31  ;;  %v3467_v48 = vmul.f32 %v13771_v7, %v10450_v17  ;;  %v3582_v32 = vmul.f32 %v13774_v6, %v10399_v10  ;;  %v3583_v59 = vmul.f32 %v13775_v38, %v10401_v25 }
 0x222   :  { %v3519_v27 = vadd.f32 %v3518_v60, %v3462_v21  ;;  %v3612_v11 = vmul.f32 %v13772_v33, %v10420_v19  ;;  %v3492_v28 = vadd.f32 %v3491_v30, %v3431_v37  ;;  %v3584_v0 = vmul.f32 %v13721_v55, %v10405_v34 }
 0x223   :  { %v3613_v18 = vmul.f32 %v13773_v2, %v10427_v62  ;;  %v3585_v52 = vmul.f32 %v13776_v50, %v10407_v61  ;;  %v3586_v29 = vmul.f32 %v13777_v4, %v10409_v43  ;;  %v3587_v44 = vmul.f32 %v13778_v49, %v10411_v36 }
 0x224   :  { %v3520_v14 = vadd.f32 %v3519_v27, %v3463_v15  ;;  %v3614_v21 = vmul.f32 %v13774_v6, %v10429_v51  ;;  %v3493_v37 = vadd.f32 %v3492_v28, %v3432_v41  ;;  %v3615_v1 = vmul.f32 %v13775_v38, %v10436_v56  ;;  %v13781_v38 = vld [vmem:[#allocation53_spill] sm:$0xff] }
 0x225   :  { %v3642_v60 = vadd.f32 %v3581_v16, %v3580_v63  ;;  %v3616_v30 = vmul.f32 %v13721_v55, %v10431_v46  ;;  %v3617_v27 = vmul.f32 %v13776_v50, %v10438_v54  ;;  %v3618_v58 = vmul.f32 %v13777_v4, %v10440_v26  ;;  %v13780_v16 = vld [vmem:[#allocation52_spill] sm:$0xff] }
 0x226   :  { %v3521_v15 = vadd.f32 %v3520_v14, %v3464_v22  ;;  %v3670_v35 = vadd.f32 %v3613_v18, %v3612_v11  ;;  %v3494_v2 = vadd.f32 %v3493_v37, %v3433_v20  ;;  %v3619_v41 = vmul.f32 %v13778_v49, %v10450_v17  ;;  %v13779_v14 = vld [vmem:[#allocation49_spill] sm:$0xff]  ;;  %v13782_v20 = vld [vmem:[#allocation54_spill] sm:$0xff] }
 0x227   :  { %v3643_v22 = vadd.f32 %v3642_v60, %v3582_v32  ;;  %v3732_v63 = vmul.f32 %v13779_v14, %v10393_v45  ;;  %v3733_v55 = vmul.f32 %v13780_v16, %v10396_v31  ;;  %v3734_v50 = vmul.f32 %v13781_v38, %v10399_v10  ;;  %v13783_v18 = vld [vmem:[#allocation58_spill] sm:$0xff] }
 0x228   :  { %v3522_v33 = vadd.f32 %v3521_v15, %v3465_v8  ;;  %v3671_v28 = vadd.f32 %v3670_v35, %v3614_v21  ;;  %v3495_v6 = vadd.f32 %v3494_v2, %v3434_v3  ;;  %v3735_v8 = vmul.f32 %v13782_v20, %v10401_v25  ;;  %v13784_v3 = vld [vmem:[#allocation62_spill] sm:$0xff]  ;;  %v13785_v2 = vld [vmem:[#allocation64_spill] sm:$0xff] }
 0x229   :  { %v3644_v4 = vadd.f32 %v3643_v22, %v3583_v59  ;;  %v3736_v32 = vmul.f32 %v13783_v18, %v10405_v34  ;;  %v3764_v35 = vmul.f32 %v13779_v14, %v10420_v19  ;;  %v3765_v21 = vmul.f32 %v13780_v16, %v10427_v62 }
 0x22a   :  { %v3523_v7 = vadd.f32 %v3522_v33, %v3466_v57  ;;  %v3672_v11 = vadd.f32 %v3671_v28, %v3615_v1  ;;  %v3496_v37 = vadd.f32 %v3495_v6, %v3435_v53  ;;  %v3737_v57 = vmul.f32 %v13784_v3, %v10407_v61  ;;  %v13786_v1 = vld [vmem:[#allocation65_spill] sm:$0xff] }
 0x22b   :  { %v3645_v60 = vadd.f32 %v3644_v4, %v3584_v0  ;;  %v3738_v59 = vmul.f32 %v13785_v2, %v10409_v43  ;;  %v3739_v22 = vmul.f32 %v13786_v1, %v10411_v36  ;;  %v3766_v28 = vmul.f32 %v13781_v38, %v10429_v51 }
 0x22c   :  { %v3524_v15 = vadd.f32 %v3523_v7, %v3467_v48  ;;  %v3673_v33 = vadd.f32 %v3672_v11, %v3616_v30  ;;  %v3767_v53 = vmul.f32 %v13782_v20, %v10436_v56  ;;  %v3794_v7 = vadd.f32 %v3733_v55, %v3732_v63 }
 0x22d   :  { %v3646_v49 = vadd.f32 %v3645_v60, %v3585_v52  ;;  %v3768_v6 = vmul.f32 %v13783_v18, %v10431_v46  ;;  %v3769_v0 = vmul.f32 %v13784_v3, %v10438_v54  ;;  %v3822_v4 = vadd.f32 %v3765_v21, %v3764_v35 }
 0x22e   :  { %v7676_v14 = vpack.i.bf16 %v3524_v15, %v3496_v37  ;;  %v3674_v48 = vadd.f32 %v3673_v33, %v3617_v27  ;;  %v3770_v11 = vmul.f32 %v13785_v2, %v10440_v26  ;;  %v3771_v52 = vmul.f32 %v13786_v1, %v10450_v17  ;;  %v7533_v15 = vpop.trf.xlu0  ;;  %v13787_v27 = vld [vmem:[#allocation59_spill] sm:$0xff]  ;;  %v13788_v33 = vld [vmem:[#allocation60_spill] sm:$0xff] }
 0x22f   :  { %v3647_v30 = vadd.f32 %v3646_v49, %v3586_v29  ;;  %v3795_v37 = vadd.f32 %v3794_v7, %v3734_v50  ;;  %v3823_v55 = vadd.f32 %v3822_v4, %v3766_v28  ;;  %v3884_v63 = vmul.f32 %v13787_v27, %v10393_v45  ;;  %v13789_v29 = vld [vmem:[#allocation63_spill] sm:$0xff] }
 0x230   :  { %7677 = vxpose.xlu0.b32.start [1/4] (short) %v7676_v14, 128  ;;  %v3675_v60 = vadd.f32 %v3674_v48, %v3618_v58  ;;  %v3885_v18 = vmul.f32 %v13788_v33, %v10396_v31  ;;  %v3886_v49 = vmul.f32 %v13789_v29, %v10399_v10  ;;  %v13790_v14 = vld [vmem:[#allocation66_spill] sm:$0xff]  ;;  %v3916_v58 = vmul.f32 %v13787_v27, %v10420_v19  ;;  %v13791_v28 = vld [vmem:[#allocation67_spill] sm:$0xff] }
 0x231   :  { %v3648_v3 = vadd.f32 %v3647_v30, %v3587_v44  ;;  %v3796_v35 = vadd.f32 %v3795_v37, %v3735_v8  ;;  %v3887_v21 = vmul.f32 %v13790_v14, %v10401_v25  ;;  %v3824_v1 = vadd.f32 %v3823_v55, %v3767_v53  ;;  %v13792_v44 = vld [vmem:[#allocation68_spill] sm:$0xff] }
 0x232   :  { %v3676_v2 = vadd.f32 %v3675_v60, %v3619_v41  ;;  %v3917_v50 = vmul.f32 %v13788_v33, %v10427_v62  ;;  %v3888_v31 = vmul.f32 %v13791_v28, %v10405_v34  ;;  %v3889_v8 = vmul.f32 %v13792_v44, %v10407_v61  ;;  %v13793_v41 = vld [vmem:[#allocation69_spill] sm:$0xff]  ;;  %v10560_v4 = vpop.trf.xlu0 }
 0x233   :  { %v3797_v45 = vadd.f32 %v3796_v35, %v3736_v32  ;;  %v3918_v10 = vmul.f32 %v13789_v29, %v10429_v51  ;;  %v3825_v25 = vadd.f32 %v3824_v1, %v3768_v6  ;;  %v3890_v53 = vmul.f32 %v13793_v41, %v10409_v43  ;;  %v13797_v35 = vld [vmem:[#allocation55_spill] sm:$0xff] }
 0x234   :  { %v7678_v7 = vpack.i.bf16 %v3676_v2, %v3648_v3  ;;  %v3919_v19 = vmul.f32 %v13790_v14, %v10436_v56  ;;  %v3920_v62 = vmul.f32 %v13791_v28, %v10431_v46  ;;  %v3946_v32 = vadd.f32 %v3885_v18, %v3884_v63  ;;  %v13796_v63 = vld [vmem:[#allocation18_spill] sm:$0xff] }
 0x235   :  { %v3798_v48 = vadd.f32 %v3797_v45, %v3737_v57  ;;  %v3974_v34 = vadd.f32 %v3917_v50, %v3916_v58  ;;  %v3826_v61 = vadd.f32 %v3825_v25, %v3769_v0  ;;  %v7537_v30 = vunpack.i.h.bf16 %v7533_v15  ;;  %v13798_v58 = vld [vmem:[#allocation17_spill] sm:$0xff] }
 0x236   :  { %7679 = vxpose.xlu0.b32.cont [2/4] (short) %v7678_v7, 128  ;;  %v3947_v3 = vadd.f32 %v3946_v32, %v3886_v49  ;;  %v7534_v1 = vunpack.i.l.bf16 %v7533_v15  ;;  %v3921_v43 = vmul.f32 %v13792_v44, %v10438_v54  ;;  %v3922_v57 = vmul.f32 %v13793_v41, %v10440_v26 }
 0x237   :  { %v3799_v51 = vadd.f32 %v3798_v48, %v3738_v59  ;;  %v3975_v2 = vadd.f32 %v3974_v34, %v3918_v10  ;;  %v3827_v6 = vadd.f32 %v3826_v61, %v3770_v11  ;;  %v13794_v60 = vunpack.i.l.bf16 %v10348_v42  ;;  %v13801_v10 = vld [vmem:[#allocation61_spill] sm:$0xff] }
 0x238   :  { %v3948_v46 = vadd.f32 %v3947_v3, %v3887_v21  ;;  %v13795_v0 = vunpack.i.h.bf16 %v10348_v42  ;;  %v415_v15 = vadd.f32 %v13797_v35, %v13796_v63  ;;  %v419_v54 = vmul.f32 %v13798_v58, %v13798_v58 }
 0x239   :  { %v3800_v56 = vadd.f32 %v3799_v51, %v3739_v22  ;;  %v3976_v18 = vadd.f32 %v3975_v2, %v3919_v19  ;;  %v3828_v37 = vadd.f32 %v3827_v6, %v3771_v52  ;;  %v4246_v55 = vpack.c.bf16 %v7534_v1, %v13794_v60  ;;  %v13799_v22 = vld [vmem:[#allocation50_spill] sm:$0xff]  ;;  %v10590_v60 = vpop.trf.xlu0 }
 0x23a   :  { %v4278_v59 = vpack.c.bf16 %v7537_v30, %v13795_v0  ;;  %v3949_v11 = vadd.f32 %v3948_v46, %v3888_v31  ;;  %v423_v26 = vmul.f32 %v13799_v22, %v13799_v22  ;;  %v13800_v52 = vld [vmem:[#allocation70_spill] sm:$0xff]  ;;  %v427_v7 = vadd.f32 %v419_v54, %v13801_v10  ;;  %v13802_v46 = vld [vmem:[#allocation16_spill] sm:$0xff] }
 0x23b   :  { %v3977_v49 = vadd.f32 %v3976_v18, %v3920_v62  ;;  %v7680_v21 = vpack.i.bf16 %v3828_v37, %v3800_v56  ;;  %v3891_v50 = vmul.f32 %v13800_v52, %v10411_v36  ;;  %v3923_v45 = vmul.f32 %v13800_v52, %v10450_v17  ;;  %7322 = vmatprep.mubr.msk.bf16.mxu0 %vm4331_vm8, %v4246_v55 }
 0x23c   :  { %7386 = vmatprep.mubr.msk.bf16.mxu1 %vm4331_vm8, %v4278_v59  ;;  %v3950_v42 = vadd.f32 %v3949_v11, %v3889_v8  ;;  %v431_v25 = vadd.f32 %v423_v26, %v415_v15  ;;  %v435_v62 = vadd.f32 1e-12, %v427_v7  ;;  %vm501_vm1 = vcmp.ne.s32.totalorder %v13802_v46, 3 }
 0x23d   :  { %v3978_v31 = vadd.f32 %v3977_v49, %v3921_v43  ;;  %7681 = vxpose.xlu0.b32.cont [3/4] (short) %v7680_v21, 128  ;;  %vm505_vm0 = vcmp.ne.s32.totalorder %v13802_v46, 7 }
 0x23e   :  { %v3951_v19 = vadd.f32 %v3950_v42, %v3890_v53  ;;  %v439_v32 = vadd.f32 1e-12, %v431_v25  ;;  %7990 = vrsqrt.f32 %v435_v62  ;;  %vm463_vm12 = vcmp.eq.f32.partialorder %v435_v62, inf }
 0x23f   :  { %v3979_v48 = vadd.f32 %v3978_v31, %v3922_v57  ;;  %v466_v30 = vand.u32 2147483648, %v435_v62  ;;  %vm465_vm13 = vcmp.eq.f32.partialorder %v435_v62, 0.0 }
 0x240   :  { %v3952_v34 = vadd.f32 %v3951_v19, %v3891_v50  ;;  %7992 = vrsqrt.f32 %v439_v32  ;;  %vm491_vm11 = vcmp.eq.f32.partialorder %v439_v32, inf  ;;  %v494_v3 = vand.u32 2147483648, %v439_v32 }
 0x241   :  { %v3980_v61 = vadd.f32 %v3979_v48, %v3923_v45  ;;  %vm493_vm15 = vcmp.eq.f32.partialorder %v439_v32, 0.0 }
 0x243   :  { %v7682_v36 = vpack.i.bf16 %v3980_v61, %v3952_v34 }
 0x245   :  { %7683 = vxpose.xlu0.b32.end [4/4] (short) %v7682_v36, 128 }
 0x248   :  { %v7991_v17 = vpop.eup %7990 }
 0x249   :  { %v462_v8 = vmul.f32 %v7991_v17, %v435_v62 }
 0x24a   :  { %v7993_v51 = vpop.eup %7992 }
 0x24b   :  { %v490_v2 = vmul.f32 %v7993_v51, %v439_v32  ;;  %v464_v53 = vsel %vm463_vm12, %v435_v62, %v462_v8  ;;  %v13807_v8 = vmov 683565275  }
 0x24c   :  { %v467_v1 = vsel %vm465_vm13, %v466_v30, %v464_v53 }
 0x24d   :  { %v492_v6 = vsel %vm491_vm11, %v439_v32, %v490_v2  ;;  %v10583_v56 = vmul.f32 0.60415244, %v467_v1  ;;  %vm509_vm14 = vcmp.lt.f32.partialorder %v467_v1, 5.2  ;;  %v13808_v2 = vmov 2475754826  }
 0x24e   :  { %v495_v43 = vsel %vm493_vm15, %v494_v3, %v492_v6  ;;  %vm10597_vm3 = vmand %vm501_vm1, %vm509_vm14 }
 0x24f   :  { %v10585_v57 = vmul.f32 0.60415244, %v495_v43  ;;  %v13381_v18 = vand.u32 2147483647, %v10583_v56  ;;  %v842_v37 = vand.u32 2139095040, %v10583_v56 }
 0x250   :  { %vm513_vm2 = vcmp.lt.f32.partialorder %v495_v43, 5.2  ;;  %v1381_v21 = vsel %vm10597_vm3, %v467_v1, 10.4  ;;  %v13809_v1 = vmov 2131351028  }
 0x251   :  { %v13380_v55 = vand.u32 2147483647, %v10585_v57  ;;  %v1254_v0 = vand.u32 2139095040, %v10585_v57  ;;  %v843_v59 = vshrl.u32 %v842_v37, 23  ;;  %v846_v63 = vand.u32 8388607, %v13381_v18  ;;  %vm10603_vm6 = vmand %vm505_vm0, %vm513_vm2 }
 0x252   :  { %v1541_v42 = vcombine.high %v1381_v21, %v1381_v21  ;;  %v10612_v10 = vsel %vm10603_vm6, %v495_v43, 10.4  ;;  %v10617_v19 = vrot.slane %v1381_v21, %v8587_v5  ;;  %v13810_v43 = vmov 2102212464  }
 0x253   :  { %v1255_v15 = vshrl.u32 %v1254_v0, 23  ;;  %v1258_v11 = vand.u32 8388607, %v13380_v55  ;;  %v7021_v49 = vadd.s32 4294967169, %v843_v59  ;;  %v847_v54 = vor.u32 8388608, %v846_v63 }
 0x254   :  { %v10624_v17 = vrot.slane %v1541_v42, %v8587_v5  ;;  %v10628_v30 = vrot.slane %v10612_v10, %v8587_v5  ;;  %v13811_v37 = vmov 920167782   ;;  %vm841_vm0 = vcmp.lt.s32.totalorder %v10583_v56, 0 }
 0x255   :  { %v7037_v22 = vadd.s32 4294967169, %v1255_v15  ;;  %v849_v26 = vadd.s32 1, %v7021_v49  ;;  %v1259_v50 = vor.u32 8388608, %v1258_v11  ;;  %v10614_v25 = vshll.u32 %v847_v54, 8 }
 0x257   :  { %v1261_v45 = vadd.s32 1, %v7037_v22  ;;  %vm850_vm7 = vcmp.gt.s32.totalorder %v849_v26, 0  ;;  %v10621_v36 = vshll.u32 %v1259_v50, 8  ;;  %v13812_v22 = vmov 1326507024  }
 0x258   :  { %v851_v7 = vsel %vm850_vm7, %v849_v26, 0 }
 0x259   :  { %vm1262_vm4 = vcmp.gt.s32.totalorder %v1261_v45, 0  ;;  %v852_v48 = vshrl.u32 %v851_v7, 5  ;;  %v853_v62 = vand.u32 31, %v851_v7 }
 0x25a   :  { %v1263_v32 = vsel %vm1262_vm4, %v1261_v45, 0  ;;  %vm1253_vm4 = vcmp.lt.s32.totalorder %v10585_v57, 0 }
 0x25b   :  { %v1265_v61 = vand.u32 31, %v1263_v32  ;;  %v854_v51 = vsub.s32 32, %v853_v62  ;;  %v856_v3 = vshll.u32 %v13807_v8, %v853_v62  ;;  %v859_v53 = vshll.u32 %v13808_v2, %v853_v62 }
 0x25c   :  { %v862_v6 = vshll.u32 %v13809_v1, %v853_v62  ;;  %v865_v46 = vshll.u32 %v13810_v43, %v853_v62  ;;  %v868_v0 = vshll.u32 %v13811_v37, %v853_v62  ;;  %vm871_vm5 = vcmp.lt.s32.totalorder %v852_v48, 1 }
 0x25d   :  { %v10635_v59 = vshrl.u32 %v1263_v32, 5  ;;  %v855_v63 = vshrl.u32 %v13807_v8, %v854_v51  ;;  %v857_v15 = vshrl.u32 %v13808_v2, %v854_v51  ;;  %v860_v11 = vshrl.u32 %v13809_v1, %v854_v51 }
 0x25e   :  { %v863_v49 = vshrl.u32 %v13810_v43, %v854_v51  ;;  %v866_v54 = vshrl.u32 %v13811_v37, %v854_v51  ;;  %v869_v26 = vshrl.u32 %v13812_v22, %v854_v51  ;;  %vm872_vm9 = vcmp.lt.s32.totalorder %v852_v48, 2 }
 0x25f   :  { %vm874_vm10 = vcmp.lt.s32.totalorder %v852_v48, 4  ;;  %v858_v21 = vor.u32 %v857_v15, %v856_v3  ;;  %v861_v50 = vor.u32 %v860_v11, %v859_v53  ;;  %v1266_v42 = vsub.s32 32, %v1265_v61 }
 0x260   :  { %v864_v45 = vor.u32 %v863_v49, %v862_v6  ;;  %v867_v7 = vor.u32 %v866_v54, %v865_v46  ;;  %v870_v62 = vor.u32 %v869_v26, %v868_v0  ;;  %vm873_vm12 = vcmp.lt.s32.totalorder %v852_v48, 3 }
 0x261   :  { %v1268_v32 = vshll.u32 %v13807_v8, %v1265_v61  ;;  %v875_v31 = vsel %vm871_vm5, %v855_v63, %v858_v21  ;;  %v879_v18 = vsel %vm871_vm5, %v858_v21, %v861_v50  ;;  %v1271_v3 = vshll.u32 %v13808_v2, %v1265_v61 }
 0x262   :  { %v876_v55 = vsel %vm874_vm10, %v864_v45, 2102212464  ;;  %v883_v34 = vsel %vm871_vm5, %v861_v50, %v864_v45  ;;  %v880_v51 = vsel %vm874_vm10, %v867_v7, 920167782  ;;  %v884_v41 = vsel %vm874_vm10, %v870_v62, 1326507024 }
 0x263   :  { %v877_v52 = vsel %vm873_vm12, %v861_v50, %v876_v55  ;;  %v881_v53 = vsel %vm873_vm12, %v864_v45, %v880_v51  ;;  %v885_v6 = vsel %vm873_vm12, %v867_v7, %v884_v41  ;;  %v1267_v46 = vshrl.u32 %v13807_v8, %v1266_v42 }
 0x264   :  { %v1269_v0 = vshrl.u32 %v13808_v2, %v1266_v42  ;;  %v878_v15 = vsel %vm872_vm9, %v875_v31, %v877_v52  ;;  %v882_v63 = vsel %vm872_vm9, %v879_v18, %v881_v53  ;;  %v886_v11 = vsel %vm872_vm9, %v883_v34, %v885_v6 }
 0x265   :  { %v1272_v49 = vshrl.u32 %v13809_v1, %v1266_v42  ;;  %v10655_v55 = vmul.u32.u64.low %v10614_v25, %v886_v11  ;;  %v10656_v54 = vmul.u32.u64.high %v10614_v25, %v886_v11, %v10655_v55  ;;  %v1274_v2 = vshll.u32 %v13809_v1, %v1265_v61 }
 0x266   :  { %v10659_v26 = vmul.u32.u64.low %v10614_v25, %v882_v63  ;;  %v10660_v21 = vmul.u32.u64.high %v10614_v25, %v882_v63, %v10659_v26  ;;  %v1270_v41 = vor.u32 %v1269_v0, %v1268_v32  ;;  %v1275_v52 = vshrl.u32 %v13810_v43, %v1266_v42 }
 0x267   :  { %v1273_v8 = vor.u32 %v1272_v49, %v1271_v3  ;;  %v1277_v18 = vshll.u32 %v13810_v43, %v1265_v61  ;;  %v1278_v31 = vshrl.u32 %v13811_v37, %v1266_v42  ;;  %v1280_v48 = vshll.u32 %v13811_v37, %v1265_v61 }
 0x268   :  { %v1281_v34 = vshrl.u32 %v13812_v22, %v1266_v42  ;;  %v894_v50 = vmul.u32 %v10614_v25, %v878_v15  ;;  %v1276_v45 = vor.u32 %v1275_v52, %v1274_v2  ;;  %vm1283_vm13 = vcmp.lt.s32.totalorder %v10635_v59, 1 }
 0x269   :  { %vm1284_vm11 = vcmp.lt.s32.totalorder %v10635_v59, 2  ;;  %vm896_vm15 = vc.u32 %v10656_v54, %v10659_v26  ;;  %v897_v1 = vadd.s32 1, %v10660_v21  ;;  %v1279_v7 = vor.u32 %v1278_v31, %v1277_v18 }
 0x26a   :  { %vm1285_vm1 = vcmp.lt.s32.totalorder %v10635_v59, 3  ;;  %v1282_v43 = vor.u32 %v1281_v34, %v1280_v48  ;;  %vm1286_vm14 = vcmp.lt.s32.totalorder %v10635_v59, 4  ;;  %v1287_v61 = vsel %vm1283_vm13, %v1267_v46, %v1270_v41 }
 0x26b   :  { %v1291_v37 = vsel %vm1283_vm13, %v1270_v41, %v1273_v8  ;;  %v898_v25 = vsel %vm896_vm15, %v897_v1, %v10660_v21  ;;  %v1288_v22 = vsel %vm1286_vm14, %v1276_v45, 2102212464  ;;  %v1292_v42 = vsel %vm1286_vm14, %v1279_v7, 920167782 }
 0x26c   :  { %v1295_v62 = vsel %vm1283_vm13, %v1273_v8, %v1276_v45  ;;  %v899_v32 = vadd.s32 %v898_v25, %v894_v50  ;;  %v1289_v51 = vsel %vm1285_vm1, %v1273_v8, %v1288_v22  ;;  %v1293_v3 = vsel %vm1285_vm1, %v1276_v45, %v1292_v42 }
 0x26d   :  { %v1296_v53 = vsel %vm1286_vm14, %v1282_v43, 1326507024  ;;  %v1290_v6 = vsel %vm1284_vm11, %v1287_v61, %v1289_v51  ;;  %v1294_v0 = vsel %vm1284_vm11, %v1291_v37, %v1293_v3  ;;  %v1556_v46 = vcombine.high %v10617_v19, %v10617_v19 }
 0x26e   :  { %v1297_v15 = vsel %vm1285_vm1, %v1279_v7, %v1296_v53  ;;  %v900_v63 = vadd.s32 536870912, %v899_v32  ;;  %v10687_v49 = vmul.u32.u64.low %v10621_v36, %v1294_v0  ;;  %v10688_v55 = vmul.u32.u64.high %v10621_v36, %v1294_v0, %v10687_v49 }
 0x26f   :  { %v1298_v11 = vsel %vm1284_vm11, %v1295_v62, %v1297_v15  ;;  %v1557_v8 = vcombine.high %v10624_v17, %v10624_v17  ;;  %v10698_v2 = vrot.slane %v10617_v19, %v8587_v5  ;;  %v13813_v18 = vcombine.high %v10612_v10, %v10612_v10 }
 0x270   :  { %v10691_v21 = vmul.u32.u64.low %v10621_v36, %v1298_v11  ;;  %v10692_v41 = vmul.u32.u64.high %v10621_v36, %v1298_v11, %v10691_v21  ;;  %v901_v59 = vshrl.u32 %v900_v63, 30  ;;  %v13814_v48 = vand.u32 2147483647, %v10583_v56 }
 0x271   :  { %v1751_v31 = vrot.slane %v13813_v18, %v8587_v5  ;;  %v1306_v50 = vmul.u32 %v10621_v36, %v1290_v6  ;;  %v1752_v19 = vcombine.high %v10628_v30, %v10628_v30  ;;  %v1309_v43 = vadd.s32 1, %v10688_v55 }
 0x272   :  { %vm10708_vm2 = vcmp.le.f32.partialorder %v13814_v48, 0.7853982  ;;  %v902_v1 = vshll.u32 %v901_v59, 30  ;;  %v925_v7 = vsub.s32 4, %v901_v59  ;;  %v10719_v10 = vrot.slane %v10624_v17, %v8587_v5 }
 0x273   :  { %vm1308_vm7 = vc.u32 %v10692_v41, %v10687_v49  ;;  %v1578_v61 = vrot.slane %v1556_v46, %v8587_v5  ;;  %v10724_v37 = vrot.slane %v1557_v8, %v8587_v5  ;;  %v1586_v36 = vcombine.high %v10698_v2, %v10698_v2 }
 0x274   :  { %v10728_v25 = vsub.s32 %v899_v32, %v902_v1  ;;  %v926_v22 = vsel %vm841_vm0, %v925_v7, %v901_v59  ;;  %v1310_v42 = vsel %vm1308_vm7, %v1309_v43, %v10688_v55  ;;  %v1753_v62 = vcombine.high %v1751_v31, %v1751_v31 }
 0x275   :  { %v895_v17 = vadd.s32 %v10659_v26, %v10656_v54  ;;  %v1311_v51 = vadd.s32 %v1310_v42, %v1306_v50  ;;  %v1587_v3 = vcombine.high %v10719_v10, %v10719_v10  ;;  %v10740_v53 = vrot.slane %v10628_v30, %v8587_v5 }
 0x276   :  { %v905_v32 = vsub.s32 0, %v10728_v25  ;;  %v1588_v6 = vcombine.high %v1578_v61, %v1578_v61  ;;  %v1589_v0 = vcombine.high %v10724_v37, %v10724_v37  ;;  %v10746_v15 = vrot.slane %v1751_v31, %v8587_v5 }
 0x277   :  { %v928_v54 = vsel %vm10708_vm2, 0, %v926_v22  ;;  %v1312_v26 = vadd.s32 536870912, %v1311_v51  ;;  %v1774_v46 = vrot.slane %v1752_v19, %v8587_v5  ;;  %v1886_v63 = vrot.slane %v10698_v2, %v8602_v12 }
 0x278   :  { %v7022_v30 = vmin.u32 %v905_v32, %v10728_v25  ;;  %v13817_v11 = vand.u32 2147483647, %v10585_v57  ;;  %v10761_v21 = vadd.s32 %v10687_v49, %v10692_v41  ;;  %v1781_v8 = vrot.slane %v1753_v62, %v8587_v5 }
 0x279   :  { %v1890_v59 = vrot.slane %v1578_v61, %v8602_v12  ;;  %v1313_v18 = vshrl.u32 %v1312_v26, 30  ;;  %v1782_v31 = vcombine.high %v10740_v53, %v10740_v53  ;;  %v1783_v2 = vcombine.high %v10746_v15, %v10746_v15 }
 0x27a   :  { %vm10756_vm5 = vcmp.le.f32.partialorder %v13817_v11, 0.7853982  ;;  %v1784_v48 = vcombine.high %v1774_v46, %v1774_v46  ;;  %v907_v50 = vclz %v7022_v30  ;;  %v10769_v19 = vand.u32 3, %v928_v54 }
 0x27b   :  { %v1785_v1 = vcombine.high %v1781_v8, %v1781_v8  ;;  %v1894_v7 = vrot.slane %v1586_v36, %v8602_v12  ;;  %v1314_v49 = vshll.u32 %v1313_v18, 30  ;;  %v1337_v41 = vsub.s32 4, %v1313_v18 }
 0x27c   :  { %v1898_v43 = vrot.slane %v1588_v6, %v8602_v12  ;;  %v1902_v61 = vrot.slane %v10719_v10, %v8602_v12  ;;  %v7023_v22 = vadd.s32 4294967294, %v907_v50  ;;  %v1906_v42 = vrot.slane %v10724_v37, %v8602_v12 }
 0x27d   :  { %v1910_v62 = vrot.slane %v1587_v3, %v8602_v12  ;;  %v1914_v32 = vrot.slane %v1589_v0, %v8602_v12  ;;  %v10779_v54 = vsub.s32 %v1311_v51, %v1314_v49  ;;  %v2014_v36 = vrot.slane %v10740_v53, %v8602_v12  ;;  %v8296_v49 = vld [vmem:[#allocation7] sm:$0xff] }
 0x27e   :  { %v2018_v26 = vrot.slane %v1774_v46, %v8602_v12  ;;  %v2022_v6 = vrot.slane %v1782_v31, %v8602_v12  ;;  %vm7024_vm9 = vcmp.lt.s32.totalorder %v7023_v22, 0  ;;  %v1338_v10 = vsel %vm1253_vm4, %v1337_v41, %v1313_v18 }
 0x27f   :  { %v2026_v30 = vrot.slane %v1784_v48, %v8602_v12  ;;  %v2030_v37 = vrot.slane %v10746_v15, %v8602_v12  ;;  %v910_v3 = vsel %vm7024_vm9, 0, %v7023_v22  ;;  %v1317_v51 = vsub.s32 0, %v10779_v54 }
 0x280   :  { %v2034_v0 = vrot.slane %v1781_v8, %v8602_v12  ;;  %v2038_v53 = vrot.slane %v1783_v2, %v8602_v12  ;;  %v911_v11 = vsub.s32 32, %v910_v3  ;;  %v912_v46 = vshll.u32 %v10728_v25, %v910_v3 }
 0x281   :  { %v915_v31 = vsub.s32 4294967266, %v910_v3  ;;  %v2042_v50 = vrot.slane %v1785_v1, %v8602_v12  ;;  %v7038_v18 = vmin.u32 %v1317_v51, %v10779_v54  ;;  %v1340_v48 = vsel %vm10756_vm5, 0, %v1338_v10 }
 0x282   :  { %v2131_v15 = vsub.f32 %v1886_v63, %v8296_v49  ;;  %v2132_v41 = vsub.f32 %v1890_v59, %v8296_v49  ;;  %v913_v22 = vshrl.u32 %v895_v17, %v911_v11  ;;  %v2133_v52 = vsub.f32 %v1894_v7, %v8296_v49 }
 0x283   :  { %v916_v45 = vadd.s32 127, %v915_v31  ;;  %v2134_v8 = vsub.f32 %v1898_v43, %v8296_v49  ;;  %v1319_v44 = vclz %v7038_v18  ;;  %v2135_v2 = vsub.f32 %v1902_v61, %v8296_v49 }
 0x284   :  { %v2136_v28 = vsub.f32 %v1906_v42, %v8296_v49  ;;  %v2137_v14 = vsub.f32 %v1910_v62, %v8296_v49  ;;  %v914_v25 = vor.u32 %v913_v22, %v912_v46  ;;  %v10798_v29 = vand.u32 3, %v1340_v48 }
 0x285   :  { %v917_v3 = vshll.u32 %v916_v45, 23  ;;  %v2138_v1 = vsub.f32 %v1914_v32, %v8296_v49  ;;  %v7039_v51 = vadd.s32 4294967294, %v1319_v44  ;;  %v2163_v33 = vsub.f32 %v2014_v36, %v8296_v49  ;;  %v10814_v36 = vpop.trf.xlu0 }
 0x286   :  { %v10800_v27 = vsub.f32 %v2018_v26, %v8296_v49  ;;  %v10802_v10 = vsub.f32 %v2022_v6, %v8296_v49  ;;  %v921_v17 = vcvt.s32.f32 %v914_v25  ;;  %v10804_v59 = vsub.f32 %v2026_v30, %v8296_v49 }
 0x287   :  { %v918_v63 = vor.u32 4788187, %v917_v3  ;;  %v10806_v7 = vsub.f32 %v2030_v37, %v8296_v49  ;;  %vm7040_vm10 = vcmp.lt.s32.totalorder %v7039_v51, 0  ;;  %v10808_v43 = vsub.f32 %v2034_v0, %v8296_v49 }
 0x288   :  { %v10810_v61 = vsub.f32 %v2038_v53, %v8296_v49  ;;  %v10812_v45 = vsub.f32 %v2042_v50, %v8296_v49  ;;  %v1322_v44 = vsel %vm7040_vm10, 0, %v7039_v51  ;;  %v2195_v62 = vmul.f32 -16.0, %v2131_v15 }
 0x289   :  { %v919_v42 = vand.u32 2147483647, %v918_v63  ;;  %v2196_v32 = vmul.f32 -16.0, %v2132_v41  ;;  %v1323_v26 = vsub.s32 32, %v1322_v44  ;;  %v1324_v6 = vshll.u32 %v10779_v54, %v1322_v44 }
 0x28a   :  { %v1327_v30 = vsub.s32 4294967266, %v1322_v44  ;;  %v2197_v11 = vmul.f32 -16.0, %v2133_v52  ;;  %v2198_v46 = vmul.f32 -16.0, %v2134_v8  ;;  %v2199_v31 = vmul.f32 -16.0, %v2135_v2 }
 0x28b   :  { %v922_v37 = vmul.f32 %v921_v17, %v919_v42  ;;  %v2200_v0 = vmul.f32 -16.0, %v2136_v28  ;;  %v1325_v53 = vshrl.u32 %v10761_v21, %v1323_v26  ;;  %v2201_v50 = vmul.f32 -16.0, %v2137_v14 }
 0x28c   :  { %v1328_v18 = vadd.s32 127, %v1327_v30  ;;  %v2202_v48 = vmul.f32 -16.0, %v2138_v1  ;;  %v2227_v22 = vmul.f32 -16.0, %v2163_v33  ;;  %v2228_v25 = vmul.f32 -16.0, %v10800_v27  ;;  %v10824_v30 = vpop.trf.xlu0 }
 0x28d   :  { %v923_v49 = vxor.u32 2147483648, %v922_v37  ;;  %v2229_v3 = vmul.f32 -16.0, %v10802_v10  ;;  %v1326_v51 = vor.u32 %v1325_v53, %v1324_v6  ;;  %v2230_v54 = vmul.f32 -16.0, %v10804_v59 }
 0x28e   :  { %v1329_v63 = vshll.u32 %v1328_v18, 23  ;;  %v2231_v17 = vmul.f32 -16.0, %v10806_v7  ;;  %v2259_v44 = vmul.f32 %v2195_v62, %v2131_v15  ;;  %v2260_v21 = vmul.f32 %v2196_v32, %v2132_v41 }
 0x28f   :  { %v924_v42 = vsel %vm841_vm0, %v923_v49, %v922_v37  ;;  %v2261_v26 = vmul.f32 %v2197_v11, %v2133_v52  ;;  %v1333_v16 = vcvt.s32.f32 %v1326_v51  ;;  %v2262_v6 = vmul.f32 %v2198_v46, %v2134_v8 }
 0x290   :  { %v927_v20 = vsel %vm10708_vm2, %v10583_v56, %v924_v42  ;;  %v1330_v38 = vor.u32 4788187, %v1329_v63  ;;  %v2232_v53 = vmul.f32 -16.0, %v10808_v43  ;;  %v2233_v18 = vmul.f32 -16.0, %v10810_v61 }
 0x291   :  { %7994 = vcosq.f32 %v927_v20  ;;  %v2263_v24 = vmul.f32 %v2199_v31, %v2135_v2  ;;  %v2234_v15 = vmul.f32 -16.0, %v10812_v45  ;;  %v2264_v52 = vmul.f32 %v2200_v0, %v2136_v28  ;;  %v10837_v2 = vpop.trf.xlu1 }
 0x292   :  { %7996 = vsinq.f32 %v927_v20  ;;  %v1331_v37 = vand.u32 2147483647, %v1330_v38  ;;  %vm937_vm12 = vcmp.eq.s32.totalorder %v10769_v19, 2  ;;  %v2265_v41 = vmul.f32 %v2201_v50, %v2137_v14  ;;  %v10839_v14 = vpop.trf.xlu0 }
 0x293   :  { %v2266_v62 = vmul.f32 %v2202_v48, %v2138_v1  ;;  %v2347_v34 = vmul.f32 1.442695, %v2259_v44  ;;  %v2349_v32 = vmul.f32 1.442695, %v2260_v21  ;;  %vm934_vm13 = vcmp.eq.s32.totalorder %v10769_v19, 0 }
 0x294   :  { %v1334_v8 = vmul.f32 %v1333_v16, %v1331_v37  ;;  %v2291_v11 = vmul.f32 %v2227_v22, %v2163_v33  ;;  %v2351_v46 = vmul.f32 1.442695, %v2261_v26  ;;  %v2353_v49 = vmul.f32 1.442695, %v2262_v6 }
 0x295   :  { %vm933_vm11 = vcmp.lt.s32.totalorder %v10769_v19, 2  ;;  %v2292_v20 = vmul.f32 %v2228_v25, %v10800_v27  ;;  %v2293_v38 = vmul.f32 %v2229_v3, %v10802_v10  ;;  %7998 = vpow2.f32 %v2347_v34  ;;  %v10853_v25 = vpop.trf.xlu1 }
 0x296   :  { %v2355_v28 = vmul.f32 1.442695, %v2263_v24  ;;  %vm931_vm15 = vweird.f32 %v10583_v56  ;;  %v1335_v1 = vxor.u32 2147483648, %v1334_v8  ;;  %v2294_v16 = vmul.f32 %v2230_v54, %v10804_v59  ;;  %v10855_v3 = vpop.trf.xlu0 }
 0x297   :  { %v2295_v33 = vmul.f32 %v2231_v17, %v10806_v7  ;;  %8000 = vpow2.f32 %v2349_v32  ;;  %v2296_v31 = vmul.f32 %v2232_v53, %v10808_v43  ;;  %v2297_v27 = vmul.f32 %v2233_v18, %v10810_v61 }
 0x298   :  { %v2298_v10 = vmul.f32 %v2234_v15, %v10812_v45  ;;  %8002 = vpow2.f32 %v2351_v46  ;;  %v1336_v24 = vsel %vm1253_vm4, %v1335_v1, %v1334_v8  ;;  %v2357_v0 = vmul.f32 1.442695, %v2264_v52 }
 0x299   :  { %8004 = vpow2.f32 %v2353_v49  ;;  %v2359_v50 = vmul.f32 1.442695, %v2265_v41  ;;  %v1339_v59 = vsel %vm10756_vm5, %v10585_v57, %v1336_v24  ;;  %v2361_v7 = vmul.f32 1.442695, %v2266_v62  ;;  %v10877_v62 = vpop.trf.xlu1 }
 0x29a   :  { %8006 = vpow2.f32 %v2355_v28  ;;  %v2411_v48 = vmul.f32 1.442695, %v2291_v11  ;;  %v7544_v43 = vunpack.i.l.bf16 %v10590_v60  ;;  %v2413_v45 = vmul.f32 1.442695, %v2292_v20  ;;  %v10879_v34 = vpop.trf.xlu0 }
 0x29b   :  { %8008 = vcosq.f32 %v1339_v59  ;;  %v7995_v61 = vpop.eup %7994  ;;  %v2415_v22 = vmul.f32 1.442695, %v2293_v38  ;;  %v2417_v55 = vmul.f32 1.442695, %v2294_v16  ;;  %v13820_v17 = vunpack.i.l.bf16 %v10560_v4 }
 0x29c   :  { %8010 = vsinq.f32 %v1339_v59  ;;  %v7997_v51 = vpop.eup %7996  ;;  %v938_v63 = vxor.u32 2147483648, %v7995_v61  ;;  %v2419_v21 = vmul.f32 1.442695, %v2295_v33  ;;  %v13821_v26 = vunpack.i.h.bf16 %v10560_v4 }
 0x29d   :  { %8012 = vpow2.f32 %v2357_v0  ;;  %v935_v54 = vxor.u32 2147483648, %v7997_v51  ;;  %v4247_v42 = vpack.c.bf16 %v7544_v43, %v13820_v17  ;;  %v13822_v6 = vunpack.i.h.bf16 %v10590_v60  ;;  %v10896_v43 = vpop.trf.xlu1 }
 0x29e   :  { %8014 = vpow2.f32 %v2359_v50  ;;  %v939_v44 = vsel %vm937_vm12, %v938_v63, %v7997_v51  ;;  %vm1343_vm1 = vweird.f32 %v10585_v57  ;;  %vm1345_vm14 = vcmp.lt.s32.totalorder %v10798_v29, 2  ;;  %13823 = vst [vmem:[#allocation56_spill] sm:$0xff] %v10896_v43 }
 0x29f   :  { %8016 = vpow2.f32 %v2361_v7  ;;  %v4279_v53 = vpack.c.bf16 %v13822_v6, %v13821_v26  ;;  %v7999_v18 = vpop.eup %7998  ;;  %v936_v37 = vsel %vm934_vm13, %v7995_v61, %v935_v54  ;;  %7323 = vmatmul.mubr.msk.bf16.gmra.mrb[4].mxu0 %vm4331_vm8, %v4247_v42  ;;  %v2421_v4 = vmul.f32 1.442695, %v2296_v31  ;;  %v10898_v61 = vpop.trf.xlu0 }
 0x2a0   :  { %8018 = vpow2.f32 %v2411_v48  ;;  %v940_v52 = vsel %vm933_vm11, %v936_v37, %v939_v44  ;;  %vm1346_vm0 = vcmp.eq.s32.totalorder %v10798_v29, 0  ;;  %vm1349_vm2 = vcmp.eq.s32.totalorder %v10798_v29, 2 }
 0x2a1   :  { %v8001_v15 = vpop.eup %8000  ;;  %8020 = vpow2.f32 %v2413_v45  ;;  %7387 = vmatmul.mubr.msk.bf16.gmra.mrb[4].mxu1 %vm4331_vm8, %v4279_v53  ;;  %v941_v41 = vsel %vm931_vm15, nan, %v940_v52  ;;  %v2423_v8 = vmul.f32 1.442695, %v2297_v27  ;;  %v2425_v46 = vmul.f32 1.442695, %v2298_v10 }
 0x2a2   :  { %v8003_v60 = vpop.eup %8002  ;;  %8022 = vpow2.f32 %v2415_v22  ;;  %v1357_v32 = vmul.f32 0.5, %v941_v41  ;;  %v10882_v38 = vmul.f32 0.25, %v7999_v18  ;;  %v10885_v33 = vmul.f32 0.25, %v8001_v15 }
 0x2a3   :  { %v8005_v19 = vpop.eup %8004  ;;  %8024 = vpow2.f32 %v2417_v55  ;;  %v10889_v0 = vmul.f32 0.25, %v8003_v60 }
 0x2a4   :  { %v8007_v11 = vpop.eup %8006  ;;  %8026 = vpow2.f32 %v2419_v21  ;;  %v1365_v20 = vadd.f32 0.5, %v1357_v32  ;;  %v10891_v10 = vmul.f32 0.25, %v8005_v19 }
 0x2a5   :  { %v8009_v56 = vpop.eup %8008  ;;  %8028 = vpow2.f32 %v2421_v4  ;;  %v2455_v22 = vmul.f32 0.25, %v8007_v11 }
 0x2a6   :  { %v8011_v1 = vpop.eup %8010  ;;  %v1350_v16 = vxor.u32 2147483648, %v8009_v56  ;;  %v1373_v27 = vsel %vm10597_vm3, %v1365_v20, 0.0  ;;  %8030 = vpow2.f32 %v2423_v8 }
 0x2a7   :  { %v8013_v31 = vpop.eup %8012  ;;  %v1347_v24 = vxor.u32 2147483648, %v8011_v1  ;;  %v2646_v7 = vcombine.high %v1373_v27, %v1373_v27  ;;  %v2653_v48 = vrot.slane %v1373_v27, %v8587_v5  ;;  %8032 = vpow2.f32 %v2425_v46  ;;  %v10911_v46 = vpop.trf.xlu1 }
 0x2a8   :  { %v8015_v50 = vpop.eup %8014  ;;  %v1351_v59 = vsel %vm1349_vm2, %v1350_v16, %v8011_v1  ;;  %v2456_v54 = vmul.f32 0.25, %v8013_v31  ;;  %13824 = vst [vmem:[#allocation34_spill] sm:$0xff] %v10911_v46 }
 0x2a9   :  { %v8017_v45 = vpop.eup %8016  ;;  %v1348_v35 = vsel %vm1346_vm0, %v8009_v56, %v1347_v24  ;;  %v2660_v55 = vrot.slane %v2646_v7, %v8587_v5  ;;  %v2661_v17 = vcombine.high %v2653_v48, %v2653_v48  ;;  %v2457_v21 = vmul.f32 0.25, %v8015_v50  ;;  %v10913_v56 = vpop.trf.xlu0 }
 0x2aa   :  { %v8019_v51 = vpop.eup %8018  ;;  %v1352_v63 = vsel %vm1345_vm14, %v1348_v35, %v1351_v59  ;;  %v2669_v26 = vrot.slane %v2653_v48, %v8587_v5  ;;  %v2458_v18 = vmul.f32 0.25, %v8017_v45 }
 0x2ab   :  { %v8021_v42 = vpop.eup %8020  ;;  %v1353_v44 = vsel %vm1343_vm1, nan, %v1352_v63  ;;  %v2662_v37 = vcombine.high %v2660_v55, %v2660_v55  ;;  %v2676_v15 = vrot.slane %v2660_v55, %v8587_v5  ;;  %v2483_v29 = vmul.f32 0.25, %v8019_v51 }
 0x2ac   :  { %v8023_v6 = vpop.eup %8022  ;;  %v1361_v53 = vmul.f32 0.5, %v1353_v44  ;;  %v2484_v4 = vmul.f32 0.25, %v8021_v42  ;;  %v2683_v60 = vrot.slane %v2661_v17, %v8587_v5  ;;  %v2691_v41 = vcombine.high %v2669_v26, %v2669_v26 }
 0x2ad   :  { %v8025_v52 = vpop.eup %8024  ;;  %v2485_v8 = vmul.f32 0.25, %v8023_v6  ;;  %v2690_v57 = vrot.slane %v2662_v37, %v8587_v5  ;;  %v2692_v11 = vcombine.high %v2676_v15, %v2676_v15  ;;  %v2990_v31 = vrot.slane %v2669_v26, %v8602_v12 }
 0x2ae   :  { %v8027_v19 = vpop.eup %8026  ;;  %v1369_v32 = vadd.f32 0.5, %v1361_v53  ;;  %v2486_v1 = vmul.f32 0.25, %v8025_v52  ;;  %v2693_v16 = vcombine.high %v2683_v60, %v2683_v60  ;;  %v2994_v24 = vrot.slane %v2683_v60, %v8602_v12 }
 0x2af   :  { %v8029_v20 = vpop.eup %8028  ;;  %v2694_v50 = vcombine.high %v2690_v57, %v2690_v57  ;;  %v2998_v59 = vrot.slane %v2691_v41, %v8602_v12  ;;  %v3006_v7 = vrot.slane %v2676_v15, %v8602_v12  ;;  %v2487_v48 = vmul.f32 0.25, %v8027_v19  ;;  %v10942_v19 = vpop.trf.xlu1 }
 0x2b0   :  { %v1377_v27 = vsel %vm10603_vm6, %v1369_v32, 0.0  ;;  %v3002_v51 = vrot.slane %v2693_v16, %v8602_v12  ;;  %v8031_v63 = vpop.eup %8030  ;;  %v2488_v55 = vmul.f32 0.25, %v8029_v20  ;;  %v3010_v17 = vrot.slane %v2690_v57, %v8602_v12  ;;  %13825 = vst [vmem:[#allocation35_spill] sm:$0xff] %v10942_v19  ;;  %v10944_v32 = vpop.trf.xlu0 }
 0x2b1   :  { %v2842_v45 = vcombine.high %v1377_v27, %v1377_v27  ;;  %v2849_v35 = vrot.slane %v1377_v27, %v8587_v5  ;;  %v3014_v42 = vrot.slane %v2692_v11, %v8602_v12  ;;  %v3018_v58 = vrot.slane %v2694_v50, %v8602_v12  ;;  %v8033_v44 = vpop.eup %8032 }
 0x2b2   :  { %v10929_v37 = vmul.f32 %v2990_v31, %v10882_v38  ;;  %v10932_v15 = vmul.f32 %v2994_v24, %v10885_v33  ;;  %v10935_v52 = vmul.f32 %v2998_v59, %v10889_v0  ;;  %v10938_v60 = vmul.f32 %v3002_v51, %v10891_v10 }
 0x2b3   :  { %v2856_v26 = vrot.slane %v2842_v45, %v8587_v5  ;;  %v2857_v6 = vcombine.high %v2849_v35, %v2849_v35  ;;  %v2865_v53 = vrot.slane %v2849_v35, %v8587_v5  ;;  %v10940_v41 = vmul.f32 %v3006_v7, %v2455_v22 }
 0x2b4   :  { %v10949_v16 = vmul.f32 %v3010_v17, %v2456_v54  ;;  %v10951_v0 = vmul.f32 %v3014_v42, %v2457_v21  ;;  %v10953_v10 = vmul.f32 %v3018_v58, %v2458_v18  ;;  %v2489_v50 = vmul.f32 0.25, %v8031_v63  ;;  %v10971_v58 = vpop.trf.xlu1 }
 0x2b5   :  { %v2858_v57 = vcombine.high %v2856_v26, %v2856_v26  ;;  %v2872_v11 = vrot.slane %v2856_v26, %v8587_v5  ;;  %v2879_v38 = vrot.slane %v2857_v6, %v8587_v5  ;;  %v2887_v20 = vcombine.high %v2865_v53, %v2865_v53  ;;  %13827 = vst [vmem:[#allocation20_spill] sm:$0xff] %v10971_v58 }
 0x2b6   :  { %v3118_v33 = vrot.slane %v2865_v53, %v8602_v12  ;;  %v2490_v51 = vmul.f32 0.25, %v8033_v44  ;;  %v3436_v26 = vmul.f32 %v13658_v13, %v10929_v37  ;;  %v3437_v6 = vmul.f32 %v13659_v39, %v10932_v15 }
 0x2b7   :  { %v2886_v22 = vrot.slane %v2858_v57, %v8587_v5  ;;  %v2888_v31 = vcombine.high %v2872_v11, %v2872_v11  ;;  %v2889_v24 = vcombine.high %v2879_v38, %v2879_v38  ;;  %v3122_v27 = vrot.slane %v2879_v38, %v8602_v12 }
 0x2b8   :  { %v3126_v59 = vrot.slane %v2887_v20, %v8602_v12  ;;  %v3134_v7 = vrot.slane %v2872_v11, %v8602_v12  ;;  %v10959_v45 = vmul.f32 %v3118_v33, %v2483_v29  ;;  %v3439_v20 = vmul.f32 %v13767_v9, %v10938_v60 }
 0x2b9   :  { %v10961_v35 = vpop.trf.xlu0  ;;  %v2890_v54 = vcombine.high %v2886_v22, %v2886_v22  ;;  %v3130_v21 = vrot.slane %v2889_v24, %v8602_v12  ;;  %v3138_v18 = vrot.slane %v2886_v22, %v8602_v12  ;;  %v3142_v5 = vrot.slane %v2888_v31, %v8602_v12  ;;  %v13829_v24 = vld [vmem:[#allocation40_spill] sm:$0xff] }
 0x2ba   :  { %13826 = vst [vmem:[#allocation19_spill] sm:$0xff] %v10961_v35  ;;  %v10966_v17 = vmul.f32 %v3122_v27, %v2484_v4  ;;  %v10968_v42 = vmul.f32 %v3126_v59, %v2485_v8  ;;  %v10981_v4 = vmul.f32 %v3134_v7, %v2487_v48  ;;  %v3440_v48 = vmul.f32 %v13768_v23, %v10940_v41 }
 0x2bb   :  { %v3146_v29 = vrot.slane %v2890_v54, %v8602_v12  ;;  %v10979_v57 = vmul.f32 %v3130_v21, %v2486_v1  ;;  %v10983_v8 = vmul.f32 %v3138_v18, %v2488_v55  ;;  %v10988_v38 = vmul.f32 %v3142_v5, %v2489_v50  ;;  %v13830_v50 = vld [vmem:[#allocation41_spill] sm:$0xff]  ;;  %v11016_v21 = vpop.trf.xlu1 }
 0x2bc   :  { %v3438_v12 = vmul.f32 %v13766_v47, %v10935_v52  ;;  %v3468_v1 = vmul.f32 %v13658_v13, %v10959_v45  ;;  %v3469_v55 = vmul.f32 %v13659_v39, %v10966_v17  ;;  %v3470_v22 = vmul.f32 %v13766_v47, %v10968_v42  ;;  %13831 = vst [vmem:[#allocation23_spill] sm:$0xff] %v11016_v21 }
 0x2bd   :  { %v10986_v11 = vpop.trf.xlu0  ;;  %v10996_v33 = vmul.f32 %v3146_v29, %v2490_v51  ;;  %v3441_v31 = vmul.f32 %v13769_v40, %v10949_v16  ;;  %v3442_v27 = vmul.f32 %v13829_v24, %v10951_v0  ;;  %v3443_v13 = vmul.f32 %v13830_v50, %v10953_v10  ;;  %v13833_v29 = vld [vmem:[#allocation43_spill] sm:$0xff] }
 0x2be   :  { %13828 = vst [vmem:[#allocation22_spill] sm:$0xff] %v10986_v11  ;;  %v3497_v59 = vadd.f32 %v3437_v6, %v3436_v26  ;;  %v3471_v7 = vmul.f32 %v13767_v9, %v10979_v57  ;;  %v3472_v54 = vmul.f32 %v13768_v23, %v10981_v4  ;;  %v3473_v39 = vmul.f32 %v13769_v40, %v10983_v8  ;;  %v13834_v9 = vld [vmem:[#allocation44_spill] sm:$0xff]  ;;  %v13835_v40 = vld [vmem:[#allocation45_spill] sm:$0xff] }
 0x2bf   :  { %v3525_v47 = vadd.f32 %v3469_v55, %v3468_v1  ;;  %v3474_v5 = vmul.f32 %v13829_v24, %v10988_v38  ;;  %v3588_v26 = vmul.f32 %v13833_v29, %v10929_v37  ;;  %v3589_v6 = vmul.f32 %v13834_v9, %v10932_v15  ;;  %v13836_v24 = vld [vmem:[#allocation46_spill] sm:$0xff]  ;;  %v11054_v19 = vpop.trf.xlu1 }
 0x2c0   :  { %v3498_v51 = vadd.f32 %v3497_v59, %v3438_v12  ;;  %v3475_v23 = vmul.f32 %v13830_v50, %v10996_v33  ;;  %v3590_v1 = vmul.f32 %v13835_v40, %v10935_v52  ;;  %v3620_v55 = vmul.f32 %v13833_v29, %v10959_v45  ;;  %v13837_v50 = vld [vmem:[#allocation47_spill] sm:$0xff]  ;;  %13842 = vst [vmem:[#allocation25_spill] sm:$0xff] %v11054_v19 }
 0x2c1   :  { %v11018_v18 = vpop.trf.xlu0  ;;  %v3526_v44 = vadd.f32 %v3525_v47, %v3470_v22  ;;  %v3591_v12 = vmul.f32 %v13836_v24, %v10938_v60  ;;  %v3621_v59 = vmul.f32 %v13834_v9, %v10966_v17  ;;  %v3622_v49 = vmul.f32 %v13835_v40, %v10968_v42  ;;  %v13838_v47 = vld [vmem:[#allocation48_spill] sm:$0xff] }
 0x2c2   :  { %13832 = vst [vmem:[#allocation21_spill] sm:$0xff] %v11018_v18  ;;  %v3499_v63 = vadd.f32 %v3498_v51, %v3439_v20  ;;  %v3592_v22 = vmul.f32 %v13837_v50, %v10940_v41  ;;  %v3593_v28 = vmul.f32 %v13838_v47, %v10949_v16  ;;  %v13839_v18 = vld [vmem:[#allocation51_spill] sm:$0xff]  ;;  %v3623_v11 = vmul.f32 %v13836_v24, %v10979_v57 }
 0x2c3   :  { %v3527_v53 = vadd.f32 %v3526_v44, %v3471_v7  ;;  %v3594_v29 = vmul.f32 %v13839_v18, %v10951_v0  ;;  %v3649_v9 = vadd.f32 %v3589_v6, %v3588_v26  ;;  %v3677_v35 = vadd.f32 %v3621_v59, %v3620_v55  ;;  %v13841_v44 = vld [vmem:[#allocation57_spill] sm:$0xff]  ;;  %v13844_v55 = vld [vmem:[#allocation52_spill] sm:$0xff] }
 0x2c4   :  { %v3500_v51 = vadd.f32 %v3499_v63, %v3440_v48  ;;  %v3595_v7 = vmul.f32 %v13841_v44, %v10953_v10  ;;  %v3624_v40 = vmul.f32 %v13837_v50, %v10981_v4  ;;  %v3625_v58 = vmul.f32 %v13838_v47, %v10983_v8 }
 0x2c5   :  { %v11044_v20 = vpop.trf.xlu0  ;;  %v3528_v21 = vadd.f32 %v3527_v53, %v3472_v54  ;;  %v3626_v63 = vmul.f32 %v13839_v18, %v10988_v38  ;;  %v3650_v48 = vadd.f32 %v3649_v9, %v3590_v1  ;;  %v3678_v24 = vadd.f32 %v3677_v35, %v3622_v49  ;;  %v13843_v54 = vld [vmem:[#allocation49_spill] sm:$0xff]  ;;  %v13847_v49 = vld [vmem:[#allocation54_spill] sm:$0xff] }
 0x2c6   :  { %13840 = vst [vmem:[#allocation24_spill] sm:$0xff] %v11044_v20  ;;  %v3501_v46 = vadd.f32 %v3500_v51, %v3441_v31  ;;  %v3627_v53 = vmul.f32 %v13841_v44, %v10996_v33  ;;  %v3740_v6 = vmul.f32 %v13843_v54, %v10929_v37  ;;  %v3741_v59 = vmul.f32 %v13844_v55, %v10932_v15  ;;  %v13846_v51 = vld [vmem:[#allocation53_spill] sm:$0xff] }
 0x2c7   :  { %v3529_v26 = vadd.f32 %v3528_v21, %v3473_v39  ;;  %v3651_v20 = vadd.f32 %v3650_v48, %v3591_v12  ;;  %v3679_v31 = vadd.f32 %v3678_v24, %v3623_v11  ;;  %v3742_v18 = vmul.f32 %v13846_v51, %v10935_v52  ;;  %v13849_v12 = vld [vmem:[#allocation62_spill] sm:$0xff] }
 0x2c8   :  { %v3502_v47 = vadd.f32 %v3501_v46, %v3442_v27  ;;  %v3743_v35 = vmul.f32 %v13847_v49, %v10938_v60  ;;  %v3772_v39 = vmul.f32 %v13843_v54, %v10959_v45  ;;  %v3773_v21 = vmul.f32 %v13844_v55, %v10966_v17  ;;  %v13848_v46 = vld [vmem:[#allocation58_spill] sm:$0xff]  ;;  %v11082_v54 = vpop.trf.xlu1 }
 0x2c9   :  { %v11064_v50 = vpop.trf.xlu0  ;;  %v3530_v1 = vadd.f32 %v3529_v26, %v3474_v5  ;;  %v3652_v44 = vadd.f32 %v3651_v20, %v3592_v22  ;;  %v3680_v19 = vadd.f32 %v3679_v31, %v3624_v40  ;;  %v3744_v27 = vmul.f32 %v13848_v46, %v10940_v41  ;;  %v13850_v5 = vld [vmem:[#allocation64_spill] sm:$0xff]  ;;  %13851 = vst [vmem:[#allocation36_spill] sm:$0xff] %v11082_v54  ;;  %v13853_v20 = vld [vmem:[#allocation65_spill] sm:$0xff] }
 0x2ca   :  { %13845 = vst [vmem:[#allocation42_spill] sm:$0xff] %v11064_v50  ;;  %v3503_v9 = vadd.f32 %v3502_v47, %v3443_v13  ;;  %v3745_v48 = vmul.f32 %v13849_v12, %v10949_v16  ;;  %v3746_v24 = vmul.f32 %v13850_v5, %v10951_v0  ;;  %v3774_v26 = vmul.f32 %v13846_v51, %v10968_v42 }
 0x2cb   :  { %v3531_v11 = vadd.f32 %v3530_v1, %v3475_v23  ;;  %v3653_v13 = vadd.f32 %v3652_v44, %v3593_v28  ;;  %v3681_v22 = vadd.f32 %v3680_v19, %v3625_v58  ;;  %v3747_v40 = vmul.f32 %v13853_v20, %v10953_v10  ;;  %v13856_v44 = vld [vmem:[#allocation63_spill] sm:$0xff] }
 0x2cc   :  { %v3801_v55 = vadd.f32 %v3741_v59, %v3740_v6  ;;  %v3775_v47 = vmul.f32 %v13847_v49, %v10979_v57  ;;  %v3776_v31 = vmul.f32 %v13848_v46, %v10981_v4  ;;  %v3829_v1 = vadd.f32 %v3773_v21, %v3772_v39  ;;  %v13854_v6 = vld [vmem:[#allocation59_spill] sm:$0xff]  ;;  %v13855_v21 = vld [vmem:[#allocation60_spill] sm:$0xff] }
 0x2cd   :  { %v11084_v50 = vpop.trf.xlu0  ;;  %v7764_v23 = vpack.i.bf16 %v3531_v11, %v3503_v9  ;;  %v3654_v43 = vadd.f32 %v3653_v13, %v3594_v29  ;;  %v3682_v51 = vadd.f32 %v3681_v22, %v3626_v63  ;;  %v3777_v54 = vmul.f32 %v13849_v12, %v10983_v8  ;;  %v13860_v13 = vld [vmem:[#allocation69_spill] sm:$0xff] }
 0x2ce   :  { %13852 = vst [vmem:[#allocation37_spill] sm:$0xff] %v11084_v50  ;;  %v3802_v50 = vadd.f32 %v3801_v55, %v3742_v18  ;;  %v3778_v28 = vmul.f32 %v13850_v5, %v10988_v38  ;;  %v3779_v19 = vmul.f32 %v13853_v20, %v10996_v33  ;;  %v3830_v58 = vadd.f32 %v3829_v1, %v3774_v26  ;;  %v11110_v5 = vpop.trf.xlu1 }
 0x2cf   :  { %7765 = vxpose.xlu1.b32.start [1/4] (short) %v7764_v23, 128  ;;  %v3892_v59 = vmul.f32 %v13854_v6, %v10929_v37  ;;  %v3655_v39 = vadd.f32 %v3654_v43, %v3595_v7  ;;  %v3683_v29 = vadd.f32 %v3682_v51, %v3627_v53  ;;  %v3893_v9 = vmul.f32 %v13855_v21, %v10932_v15  ;;  %v13857_v43 = vld [vmem:[#allocation66_spill] sm:$0xff] }
 0x2d0   :  { %v3803_v63 = vadd.f32 %v3802_v50, %v3743_v35  ;;  %v3831_v18 = vadd.f32 %v3830_v58, %v3775_v47  ;;  %v3894_v46 = vmul.f32 %v13856_v44, %v10935_v52  ;;  %v3924_v11 = vmul.f32 %v13854_v6, %v10959_v45  ;;  %v13858_v50 = vld [vmem:[#allocation67_spill] sm:$0xff]  ;;  %v13859_v35 = vld [vmem:[#allocation68_spill] sm:$0xff]  ;;  %v13861_v23 = vld [vmem:[#allocation70_spill] sm:$0xff] }
 0x2d1   :  { %v11100_v49 = vpop.trf.xlu0  ;;  %v3925_v12 = vmul.f32 %v13855_v21, %v10966_v17  ;;  %v7766_v37 = vpack.i.bf16 %v3683_v29, %v3655_v39  ;;  %v3895_v7 = vmul.f32 %v13857_v43, %v10938_v60  ;;  %v3926_v15 = vmul.f32 %v13856_v44, %v10968_v42 }
 0x2d2   :  { %v3804_v26 = vadd.f32 %v3803_v63, %v3744_v27  ;;  %v3832_v53 = vadd.f32 %v3831_v18, %v3776_v31  ;;  %v3896_v52 = vmul.f32 %v13858_v50, %v10940_v41  ;;  %v3897_v45 = vmul.f32 %v13859_v35, %v10949_v16 }
 0x2d3   :  { %v3898_v17 = vmul.f32 %v13860_v13, %v10951_v0  ;;  %7767 = vxpose.xlu1.b32.cont [2/4] (short) %v7766_v37, 128  ;;  %v3927_v60 = vmul.f32 %v13857_v43, %v10979_v57  ;;  %v3953_v20 = vadd.f32 %v3893_v9, %v3892_v59  ;;  %v3981_v55 = vadd.f32 %v3925_v12, %v3924_v11  ;;  %v11142_v59 = vpop.trf.xlu1 }
 0x2d4   :  { %v3805_v27 = vadd.f32 %v3804_v26, %v3745_v48  ;;  %v3833_v42 = vadd.f32 %v3832_v53, %v3777_v54  ;;  %v3899_v47 = vmul.f32 %v13861_v23, %v10953_v10  ;;  %v13862_v41 = vunpack.i.l.bf16 %v10814_v36 }
 0x2d5   :  { %v11122_v22 = vpop.trf.xlu0  ;;  %v13863_v16 = vunpack.i.l.bf16 %v10824_v30  ;;  %v13864_v0 = vunpack.i.h.bf16 %v10814_v36  ;;  %v13865_v1 = vunpack.i.h.bf16 %v10824_v30  ;;  %v3928_v57 = vmul.f32 %v13858_v50, %v10981_v4 }
 0x2d6   :  { %v3806_v48 = vadd.f32 %v3805_v27, %v3746_v24  ;;  %v3954_v58 = vadd.f32 %v3953_v20, %v3894_v46  ;;  %v3982_v6 = vadd.f32 %v3981_v55, %v3926_v15  ;;  %v3834_v54 = vadd.f32 %v3833_v42, %v3778_v28 }
 0x2d7   :  { %v4248_v31 = vpack.c.bf16 %v13863_v16, %v13862_v41  ;;  %v4280_v51 = vpack.c.bf16 %v13865_v1, %v13864_v0  ;;  %v3929_v10 = vmul.f32 %v13859_v35, %v10983_v8  ;;  %v7567_v24 = vunpack.i.h.bf16 %v10855_v3  ;;  %v11155_v12 = vpop.trf.xlu1  ;;  %v13867_v16 = vld [vmem:[#allocation56_spill] sm:$0xff]  ;;  %v13868_v0 = vld [vmem:[#allocation34_spill] sm:$0xff]  ;;  %v13869_v1 = vld [vmem:[#allocation35_spill] sm:$0xff] }
 0x2d8   :  { %v3807_v36 = vadd.f32 %v3806_v48, %v3747_v40  ;;  %v3955_v39 = vadd.f32 %v3954_v58, %v3895_v7  ;;  %v3983_v30 = vadd.f32 %v3982_v6, %v3927_v60  ;;  %v3835_v29 = vadd.f32 %v3834_v54, %v3779_v19 }
 0x2d9   :  { %7326 = vmatprep.mubr.msk.bf16.mxu0 %vm4331_vm8, %v4248_v31  ;;  %7390 = vmatprep.mubr.msk.bf16.mxu1 %vm4331_vm8, %v4280_v51  ;;  %v7564_v4 = vunpack.i.l.bf16 %v10855_v3  ;;  %v11146_v63 = vpop.trf.xlu0  ;;  %v3930_v28 = vmul.f32 %v13860_v13, %v10988_v38  ;;  %v3931_v18 = vmul.f32 %v13861_v23, %v10996_v33  ;;  %v7559_v40 = vunpack.i.l.bf16 %v10839_v14 }
 0x2da   :  { %v3956_v8 = vadd.f32 %v3955_v39, %v3896_v52  ;;  %v3984_v21 = vadd.f32 %v3983_v30, %v3928_v57  ;;  %v7768_v9 = vpack.i.bf16 %v3835_v29, %v3807_v36  ;;  %v13866_v19 = vunpack.i.h.bf16 %v10839_v14  ;;  %v13870_v30 = vld [vmem:[#allocation20_spill] sm:$0xff] }
 0x2db   :  { %v4249_v11 = vpack.c.bf16 %v7564_v4, %v7559_v40  ;;  %v7600_v38 = vunpack.i.h.bf16 %v10837_v2  ;;  %v7577_v33 = vunpack.i.h.bf16 %v10898_v61  ;;  %v7597_v7 = vunpack.i.l.bf16 %v10837_v2  ;;  %v11169_v60 = vpop.trf.xlu1  ;;  %v13873_v40 = vld [vmem:[#allocation36_spill] sm:$0xff] }
 0x2dc   :  { %v3957_v44 = vadd.f32 %v3956_v8, %v3897_v45  ;;  %v3985_v46 = vadd.f32 %v3984_v21, %v3929_v10  ;;  %7769 = vxpose.xlu1.b32.cont [3/4] (short) %v7768_v9, 128  ;;  %v4281_v3 = vpack.c.bf16 %v7567_v24, %v13866_v19  ;;  %v7574_v14 = vunpack.i.l.bf16 %v10898_v61  ;;  %v13871_v8 = vld [vmem:[#allocation23_spill] sm:$0xff] }
 0x2dd   :  { %7327 = vmatmul.mubr.msk.bf16.gmra.mrb[8].mxu0 %vm4331_vm8, %v4249_v11  ;;  %v11161_v43 = vpop.trf.xlu0  ;;  %v7572_v50 = vunpack.i.h.bf16 %v10879_v34  ;;  %v7569_v52 = vunpack.i.l.bf16 %v10879_v34  ;;  %v7602_v35 = vunpack.i.l.bf16 %v10853_v25  ;;  %v7605_v13 = vunpack.i.h.bf16 %v10853_v25 }
 0x2de   :  { %v3958_v37 = vadd.f32 %v3957_v44, %v3898_v17  ;;  %v3986_v26 = vadd.f32 %v3985_v46, %v3930_v28  ;;  %7391 = vmatmul.mubr.msk.bf16.gmra.mrb[8].mxu1 %vm4331_vm8, %v4281_v3  ;;  %v7582_v2 = vunpack.i.h.bf16 %v10913_v56  ;;  %v7587_v20 = vunpack.i.h.bf16 %v10944_v32 }
 0x2df   :  { %v4250_v17 = vpack.c.bf16 %v7574_v14, %v7569_v52  ;;  %v4282_v27 = vpack.c.bf16 %v7577_v33, %v7572_v50  ;;  %v7579_v61 = vunpack.i.l.bf16 %v10913_v56  ;;  %v7584_v34 = vunpack.i.l.bf16 %v10944_v32  ;;  %v7666_v32 = vpop.trf.xlu1 }
 0x2e0   :  { %v3959_v15 = vadd.f32 %v3958_v37, %v3899_v47  ;;  %v3987_v53 = vadd.f32 %v3986_v26, %v3931_v18  ;;  %v4283_v25 = vpack.c.bf16 %v7587_v20, %v7582_v2  ;;  %v4252_v42 = vpack.c.bf16 %v7602_v35, %v7597_v7 }
 0x2e1   :  { %7330 = vmatprep.mubr.msk.bf16.mxu0 %vm4331_vm8, %v4250_v17  ;;  %7394 = vmatprep.mubr.msk.bf16.mxu1 %vm4331_vm8, %v4282_v27  ;;  %v11177_v55 = vpop.trf.xlu0  ;;  %v4251_v23 = vpack.c.bf16 %v7584_v34, %v7579_v61  ;;  %v4284_v47 = vpack.c.bf16 %v7605_v13, %v7600_v38  ;;  %v7610_v41 = vunpack.i.h.bf16 %v10877_v62  ;;  %v7615_v31 = vunpack.i.h.bf16 %v13867_v16 }
 0x2e2   :  { %v7770_v45 = vpack.i.bf16 %v3987_v53, %v3959_v15  ;;  %v7620_v56 = vunpack.i.h.bf16 %v13868_v0  ;;  %v7625_v51 = vunpack.i.h.bf16 %v13869_v1  ;;  %v7617_v48 = vunpack.i.l.bf16 %v13868_v0 }
 0x2e3   :  { %v7622_v57 = vunpack.i.l.bf16 %v13869_v1  ;;  %v7607_v58 = vunpack.i.l.bf16 %v10877_v62  ;;  %v7612_v6 = vunpack.i.l.bf16 %v13867_v16  ;;  %v4285_v36 = vpack.c.bf16 %v7615_v31, %v7610_v41  ;;  %v7671_v4 = vpop.trf.xlu1  ;;  %v13872_v62 = vld [vmem:[#allocation25_spill] sm:$0xff] }
 0x2e4   :  { %7771 = vxpose.xlu1.b32.end [4/4] (short) %v7770_v45, 128  ;;  %v4286_v10 = vpack.c.bf16 %v7625_v51, %v7620_v56  ;;  %v7630_v24 = vunpack.i.h.bf16 %v13870_v30  ;;  %v7627_v28 = vunpack.i.l.bf16 %v13870_v30  ;;  %v7635_v21 = vunpack.i.h.bf16 %v13871_v8  ;;  %v13876_v1 = vld [vmem:[#allocation21_spill] sm:$0xff] }
 0x2e5   :  { %7331 = vmatmul.mubr.msk.bf16.gmra.mrb[12].mxu0 %vm4331_vm8, %v4251_v23  ;;  %v11191_v54 = vpop.trf.xlu0  ;;  %v4254_v39 = vpack.c.bf16 %v7622_v57, %v7617_v48  ;;  %v4253_v29 = vpack.c.bf16 %v7612_v6, %v7607_v58  ;;  %v7632_v9 = vunpack.i.l.bf16 %v13871_v8  ;;  %v7640_v18 = vunpack.i.h.bf16 %v13872_v62  ;;  %v13878_v6 = vld [vmem:[#allocation42_spill] sm:$0xff] }
 0x2e6   :  { %7395 = vmatmul.mubr.msk.bf16.gmra.mrb[12].mxu1 %vm4331_vm8, %v4283_v25  ;;  %7334 = vmatprep.mubr.msk.bf16.mxu0 %vm4331_vm8, %v4252_v42  ;;  %v7645_v44 = vunpack.i.h.bf16 %v13873_v40  ;;  %v7637_v11 = vunpack.i.l.bf16 %v13872_v62  ;;  %v7642_v19 = vunpack.i.l.bf16 %v13873_v40  ;;  %v4287_v3 = vpack.c.bf16 %v7635_v21, %v7630_v24  ;;  %v13875_v25 = vld [vmem:[#allocation22_spill] sm:$0xff] }
 0x2e7   :  { %7398 = vmatprep.mubr.msk.bf16.mxu1 %vm4331_vm8, %v4284_v47  ;;  %v4255_v37 = vpack.c.bf16 %v7632_v9, %v7627_v28  ;;  %v7650_v33 = vunpack.i.h.bf16 %v11110_v5  ;;  %v7647_v7 = vunpack.i.l.bf16 %v11110_v5  ;;  %v7655_v53 = vunpack.i.h.bf16 %v11142_v59 }
 0x2e8   :  { %v4288_v26 = vpack.c.bf16 %v7645_v44, %v7640_v18  ;;  %v4256_v38 = vpack.c.bf16 %v7642_v19, %v7637_v11  ;;  %v7652_v14 = vunpack.i.l.bf16 %v11142_v59  ;;  %v7660_v50 = vunpack.i.h.bf16 %v11155_v12 }
 0x2e9   :  { %v11202_v46 = vpop.trf.xlu0  ;;  %v7665_v52 = vunpack.i.h.bf16 %v11169_v60  ;;  %v7657_v35 = vunpack.i.l.bf16 %v11155_v12  ;;  %v7662_v5 = vunpack.i.l.bf16 %v11169_v60  ;;  %v4289_v45 = vpack.c.bf16 %v7655_v53, %v7650_v33  ;;  %v13874_v12 = vld [vmem:[#allocation19_spill] sm:$0xff] }
 0x2ea   :  { %v4257_v13 = vpack.c.bf16 %v7652_v14, %v7647_v7  ;;  %v7670_v2 = vunpack.i.h.bf16 %v7666_v32  ;;  %v7675_v20 = vunpack.i.h.bf16 %v7671_v4  ;;  %v7667_v61 = vunpack.i.l.bf16 %v7666_v32  ;;  %v13877_v32 = vld [vmem:[#allocation24_spill] sm:$0xff]  ;;  %v7320_v14 = vpop.f32.mrb[0].mxu0 }
 0x2eb   :  { %v4290_v17 = vpack.c.bf16 %v7665_v52, %v7660_v50  ;;  %v4258_v27 = vpack.c.bf16 %v7662_v5, %v7657_v35  ;;  %v7672_v34 = vunpack.i.l.bf16 %v7671_v4  ;;  %v7688_v60 = vunpack.i.h.bf16 %v13874_v12  ;;  %v11271_v50 = vpop.f32.mrb[0].mxu1 }
 0x2ec   :  { %v7693_v42 = vunpack.i.h.bf16 %v13875_v25  ;;  %v7685_v23 = vunpack.i.l.bf16 %v13874_v12  ;;  %v7690_v47 = vunpack.i.l.bf16 %v13875_v25  ;;  %v4291_v16 = vpack.c.bf16 %v7675_v20, %v7670_v2 }
 0x2ed   :  { %7335 = vmatmul.mubr.msk.bf16.gmra.mrb[16].mxu0 %vm4331_vm8, %v4253_v29  ;;  %v11209_v15 = vpop.trf.xlu0  ;;  %v4259_v31 = vpack.c.bf16 %v7672_v34, %v7667_v61  ;;  %v7698_v51 = vunpack.i.h.bf16 %v13876_v1  ;;  %v7703_v48 = vunpack.i.h.bf16 %v13877_v32  ;;  %v7695_v57 = vunpack.i.l.bf16 %v13876_v1 }
 0x2ee   :  { %7399 = vmatmul.mubr.msk.bf16.gmra.mrb[16].mxu1 %vm4331_vm8, %v4285_v36  ;;  %7338 = vmatprep.mubr.msk.bf16.mxu0 %vm4331_vm8, %v4254_v39  ;;  %v4292_v0 = vpack.c.bf16 %v7693_v42, %v7688_v60  ;;  %v4260_v56 = vpack.c.bf16 %v7690_v47, %v7685_v23  ;;  %v7700_v58 = vunpack.i.l.bf16 %v13877_v32  ;;  %v13879_v36 = vld [vmem:[#allocation37_spill] sm:$0xff]  ;;  %v7705_v30 = vunpack.i.l.bf16 %v13878_v6 }
 0x2ef   :  { %7402 = vmatprep.mubr.msk.bf16.mxu1 %vm4331_vm8, %v4286_v10  ;;  %v7708_v10 = vunpack.i.h.bf16 %v13878_v6  ;;  %v7713_v39 = vunpack.i.h.bf16 %v13879_v36  ;;  %v7710_v24 = vunpack.i.l.bf16 %v13879_v36  ;;  %v4293_v29 = vpack.c.bf16 %v7703_v48, %v7698_v51 }
 0x2f0   :  { %v4261_v4 = vpack.c.bf16 %v7700_v58, %v7695_v57  ;;  %v7718_v21 = vunpack.i.h.bf16 %v11100_v49  ;;  %v7723_v9 = vunpack.i.h.bf16 %v11122_v22  ;;  %v7715_v62 = vunpack.i.l.bf16 %v11100_v49  ;;  %v11260_v49 = vld [vmem:[%s13205_s4] ss:$0 sm:$0xff] }
 0x2f1   :  { %v11221_v59 = vpop.trf.xlu0  ;;  %v4294_v28 = vpack.c.bf16 %v7713_v39, %v7708_v10  ;;  %v4262_v8 = vpack.c.bf16 %v7710_v24, %v7705_v30  ;;  %v7720_v18 = vunpack.i.l.bf16 %v11122_v22  ;;  %v7728_v40 = vunpack.i.h.bf16 %v11146_v63 }
 0x2f2   :  { %v7733_v44 = vunpack.i.h.bf16 %v11161_v43  ;;  %v7725_v11 = vunpack.i.l.bf16 %v11146_v63  ;;  %v7730_v19 = vunpack.i.l.bf16 %v11161_v43  ;;  %v7738_v22 = vunpack.i.h.bf16 %v11177_v55 }
 0x2f3   :  { %v7743_v33 = vunpack.i.h.bf16 %v11191_v54  ;;  %v7735_v63 = vunpack.i.l.bf16 %v11177_v55  ;;  %v7740_v43 = vunpack.i.l.bf16 %v11191_v54  ;;  %v7748_v7 = vunpack.i.h.bf16 %v11202_v46  ;;  %v4558_v55 = vpop.f32.mrb[1].mxu0 }
 0x2f4   :  { %v7753_v53 = vunpack.i.h.bf16 %v11209_v15  ;;  %v7745_v52 = vunpack.i.l.bf16 %v11202_v46  ;;  %v7750_v35 = vunpack.i.l.bf16 %v11209_v15  ;;  %v4567_v5 = vadd.f32 %v7320_v14, %v11260_v49 }
 0x2f5   :  { %7339 = vmatmul.mubr.msk.bf16.gmra.mrb[20].mxu0 %vm4331_vm8, %v4255_v37  ;;  %v11231_v41 = vpop.trf.xlu0  ;;  %v4263_v37 = vpack.c.bf16 %v7720_v18, %v7715_v62  ;;  %v4559_v54 = vadd.f32 %v11260_v49, %v4558_v55  ;;  %v4265_v34 = vpack.c.bf16 %v7740_v43, %v7735_v63 }
 0x2f6   :  { %7403 = vmatmul.mubr.msk.bf16.gmra.mrb[20].mxu1 %vm4331_vm8, %v4287_v3  ;;  %7342 = vmatprep.mubr.msk.bf16.mxu0 %vm4331_vm8, %v4256_v38  ;;  %v4295_v3 = vpack.c.bf16 %v7723_v9, %v7718_v21  ;;  %v4264_v38 = vpack.c.bf16 %v7730_v19, %v7725_v11  ;;  %v5199_v2 = vmin.f32 %v4567_v5, 0.0  ;;  %v4298_v12 = vpack.c.bf16 %v7753_v53, %v7748_v7 }
 0x2f7   :  { %7406 = vmatprep.mubr.msk.bf16.mxu1 %vm4331_vm8, %v4288_v26  ;;  %v4296_v26 = vpack.c.bf16 %v7733_v44, %v7728_v40  ;;  %v5197_v15 = vmin.f32 %v4559_v54, 0.0  ;;  %v4266_v25 = vpack.c.bf16 %v7750_v35, %v7745_v52  ;;  %v7760_v1 = vunpack.i.l.bf16 %v11231_v41 }
 0x2f8   :  { %v5328_v23 = vmul.f32 10.0, %v5199_v2  ;;  %vm5069_vm3 = vcmp.gt.f32.partialorder %v4559_v54, 0.0  ;;  %vm5071_vm7 = vcmp.gt.f32.partialorder %v4567_v5, 0.0 }
 0x2f9   :  { %v5326_v47 = vmul.f32 10.0, %v5197_v15 }
 0x2fa   :  { %v5458_v57 = vmul.f32 1.442695, %v5328_v23 }
 0x2fb   :  { %v5454_v51 = vmul.f32 1.442695, %v5326_v47 }
 0x2fd   :  { %7343 = vmatmul.mubr.msk.bf16.gmra.mrb[24].mxu0 %vm4331_vm8, %v4257_v13  ;;  %v7321_v13 = vpop.f32.mrb[2].mxu0  ;;  %8034 = vpow2.f32 %v5454_v51 }
 0x2fe   :  { %7407 = vmatmul.mubr.msk.bf16.gmra.mrb[24].mxu1 %vm4331_vm8, %v4289_v45  ;;  %7346 = vmatprep.mubr.msk.bf16.mxu0 %vm4331_vm8, %v4258_v27  ;;  %v11277_v45 = vpop.f32.mrb[1].mxu1  ;;  %v4297_v27 = vpack.c.bf16 %v7743_v33, %v7738_v22  ;;  %v4570_v20 = vadd.f32 %v7321_v13, %v11260_v49  ;;  %v4561_v61 = vpop.f32.mrb[3].mxu0  ;;  %8036 = vpow2.f32 %v5458_v57 }
 0x2ff   :  { %7410 = vmatprep.mubr.msk.bf16.mxu1 %vm4331_vm8, %v4290_v17  ;;  %v11280_v17 = vpop.f32.mrb[2].mxu1  ;;  %v4562_v60 = vadd.f32 %v11260_v49, %v4561_v61 }
 0x300   :  { %v11283_v46 = vpop.f32.mrb[3].mxu1  ;;  %v5200_v42 = vmin.f32 %v4570_v20, 0.0  ;;  %vm5072_vm4 = vcmp.gt.f32.partialorder %v4570_v20, 0.0 }
 0x301   :  { %vm5070_vm6 = vcmp.gt.f32.partialorder %v4562_v60, 0.0 }
 0x302   :  { %v5329_v48 = vmul.f32 10.0, %v5200_v42 }
 0x304   :  { %v5460_v36 = vmul.f32 1.442695, %v5329_v48 }
 0x305   :  { %7347 = vmatmul.mubr.msk.bf16.gmra.mrb[28].mxu0 %vm4331_vm8, %v4259_v31  ;;  %v7758_v31 = vunpack.i.h.bf16 %v11221_v59 }
 0x306   :  { %7411 = vmatmul.mubr.msk.bf16.gmra.mrb[28].mxu1 %vm4331_vm8, %v4291_v16  ;;  %7350 = vmatprep.mubr.msk.bf16.mxu0 %vm4331_vm8, %v4260_v56  ;;  %v5198_v16 = vmin.f32 %v4562_v60, 0.0  ;;  %v7755_v56 = vunpack.i.l.bf16 %v11221_v59 }
 0x307   :  { %7414 = vmatprep.mubr.msk.bf16.mxu1 %vm4331_vm8, %v4292_v0  ;;  %v7763_v0 = vunpack.i.h.bf16 %v11231_v41  ;;  %v8035_v59 = vpop.eup %8034 }
 0x308   :  { %v5327_v32 = vmul.f32 10.0, %v5198_v16  ;;  %v4267_v10 = vpack.c.bf16 %v7760_v1, %v7755_v56  ;;  %v7116_v41 = vadd.f32 -1.0, %v8035_v59  ;;  %v8037_v39 = vpop.eup %8036 }
 0x309   :  { %v4299_v58 = vpack.c.bf16 %v7763_v0, %v7758_v31 }
 0x30a   :  { %v5456_v6 = vmul.f32 1.442695, %v5327_v32  ;;  %v5838_v30 = vmul.f32 0.1, %v7116_v41 }
 0x30c   :  { %8038 = vpow2.f32 %v5456_v6 }
 0x30d   :  { %7351 = vmatmul.mubr.msk.bf16.gmra.mrb[32].mxu0 %vm4331_vm8, %v4261_v4  ;;  %8040 = vpow2.f32 %v5460_v36 }
 0x30e   :  { %7415 = vmatmul.mubr.msk.bf16.gmra.mrb[32].mxu1 %vm4331_vm8, %v4293_v29  ;;  %7354 = vmatprep.mubr.msk.bf16.mxu0 %vm4331_vm8, %v4262_v8  ;;  %v5966_v29 = vsel %vm5069_vm3, %v4559_v54, %v5838_v30  ;;  %v7118_v8 = vadd.f32 -1.0, %v8037_v39 }
 0x30f   :  { %7418 = vmatprep.mubr.msk.bf16.mxu1 %vm4331_vm8, %v4294_v28  ;;  %6094 = vxpose.xlu0.b32.start [1/16] %v5966_v29, 128 }
 0x310   :  { %v5840_v62 = vmul.f32 0.1, %v7118_v8 }
 0x312   :  { %v5968_v40 = vsel %vm5071_vm7, %v4567_v5, %v5840_v62 }
 0x315   :  { %7355 = vmatmul.mubr.msk.bf16.gmra.mrb[36].mxu0 %vm4331_vm8, %v4263_v37 }
 0x316   :  { %7419 = vmatmul.mubr.msk.bf16.gmra.mrb[36].mxu1 %vm4331_vm8, %v4295_v3  ;;  %7358 = vmatprep.mubr.msk.bf16.mxu0 %vm4331_vm8, %v4264_v38  ;;  %v8039_v24 = vpop.eup %8038 }
 0x317   :  { %7422 = vmatprep.mubr.msk.bf16.mxu1 %vm4331_vm8, %v4296_v26  ;;  %v7117_v4 = vadd.f32 -1.0, %v8039_v24  ;;  %v8041_v28 = vpop.eup %8040 }
 0x318   :  { %v7119_v18 = vadd.f32 -1.0, %v8041_v28 }
 0x319   :  { %v5839_v21 = vmul.f32 0.1, %v7117_v4 }
 0x31a   :  { %v5841_v44 = vmul.f32 0.1, %v7119_v18 }
 0x31b   :  { %v5967_v9 = vsel %vm5070_vm6, %v4562_v60, %v5839_v21 }
 0x31c   :  { %6095 = vxpose.xlu0.b32.cont [2/16] %v5967_v9, 128  ;;  %v5969_v11 = vsel %vm5072_vm4, %v4570_v20, %v5841_v44 }
 0x31d   :  { %7359 = vmatmul.mubr.msk.bf16.gmra.mrb[40].mxu0 %vm4331_vm8, %v4265_v34 }
 0x31e   :  { %7423 = vmatmul.mubr.msk.bf16.gmra.mrb[40].mxu1 %vm4331_vm8, %v4297_v27  ;;  %7362 = vmatprep.mubr.msk.bf16.mxu0 %vm4331_vm8, %v4266_v25 }
 0x31f   :  { %7426 = vmatprep.mubr.msk.bf16.mxu1 %vm4331_vm8, %v4298_v12 }
 0x320   :  { %6096 = vxpose.xlu0.b32.cont [3/16] %v5968_v40, 128 }
 0x324   :  { %6097 = vxpose.xlu0.b32.cont [4/16] %v5969_v11, 128 }
 0x325   :  { %7363 = vmatmul.mubr.msk.bf16.gmra.mrb[44].mxu0 %vm4331_vm8, %v4267_v10 }
 0x326   :  { %7427 = vmatmul.mubr.msk.bf16.gmra.mrb[44].mxu1 %vm4331_vm8, %v4299_v58 }
 0x358   :  { %v7772_v19 = vpop.trf.xlu1 }
 0x359   :  { %v7776_v3 = vunpack.i.h.bf16 %v7772_v19  ;;  %v7773_v37 = vunpack.i.l.bf16 %v7772_v19 }
 0x35c   :  { %v7777_v26 = vpop.trf.xlu1 }
 0x35d   :  { %v7781_v38 = vunpack.i.h.bf16 %v7777_v26  ;;  %v7778_v22 = vunpack.i.l.bf16 %v7777_v26 }
 0x35f   :  { %v4268_v33 = vpack.c.bf16 %v7778_v22, %v7773_v37  ;;  %v4300_v63 = vpack.c.bf16 %v7781_v38, %v7776_v3 }
 0x360   :  { %v7782_v43 = vpop.trf.xlu1 }
 0x361   :  { %7366 = vmatprep.mubr.msk.bf16.mxu0 %vm4331_vm8, %v4268_v33  ;;  %7430 = vmatprep.mubr.msk.bf16.mxu1 %vm4331_vm8, %v4300_v63  ;;  %v7786_v7 = vunpack.i.h.bf16 %v7782_v43  ;;  %v7783_v53 = vunpack.i.l.bf16 %v7782_v43 }
 0x364   :  { %v7787_v14 = vpop.trf.xlu1 }
 0x365   :  { %v7791_v52 = vunpack.i.h.bf16 %v7787_v14  ;;  %v7788_v35 = vunpack.i.l.bf16 %v7787_v14 }
 0x367   :  { %v4269_v5 = vpack.c.bf16 %v7788_v35, %v7783_v53  ;;  %v4301_v55 = vpack.c.bf16 %v7791_v52, %v7786_v7 }
 0x368   :  { %v7792_v54 = vpop.trf.xlu1 }
 0x369   :  { %7367 = vmatmul.mubr.msk.bf16.gmra.mrb[48].mxu0 %vm4331_vm8, %v4269_v5  ;;  %7431 = vmatmul.mubr.msk.bf16.gmra.mrb[48].mxu1 %vm4331_vm8, %v4301_v55  ;;  %v7796_v13 = vunpack.i.h.bf16 %v7792_v54  ;;  %v7793_v27 = vunpack.i.l.bf16 %v7792_v54 }
 0x36c   :  { %v7797_v2 = vpop.trf.xlu1 }
 0x36d   :  { %v7801_v20 = vunpack.i.h.bf16 %v7797_v2  ;;  %v7798_v61 = vunpack.i.l.bf16 %v7797_v2 }
 0x36f   :  { %v4270_v34 = vpack.c.bf16 %v7798_v61, %v7793_v27  ;;  %v4302_v12 = vpack.c.bf16 %v7801_v20, %v7796_v13 }
 0x370   :  { %v7802_v15 = vpop.trf.xlu1 }
 0x371   :  { %7370 = vmatprep.mubr.msk.bf16.mxu0 %vm4331_vm8, %v4270_v34  ;;  %7434 = vmatprep.mubr.msk.bf16.mxu1 %vm4331_vm8, %v4302_v12  ;;  %v7806_v25 = vunpack.i.h.bf16 %v7802_v15  ;;  %v7803_v42 = vunpack.i.l.bf16 %v7802_v15 }
 0x372   :  { %v7324_v60 = vpop.f32.mrb[4].mxu0 }
 0x373   :  { %v11303_v23 = vadd.f32 %v7324_v60, %v11260_v49  ;;  %v4574_v16 = vpop.f32.mrb[5].mxu0 }
 0x374   :  { %v11305_v47 = vpop.f32.mrb[4].mxu1  ;;  %v7807_v31 = vpop.trf.xlu1  ;;  %v11308_v0 = vadd.f32 %v11260_v49, %v4574_v16 }
 0x375   :  { %v11310_v56 = vpop.f32.mrb[5].mxu1  ;;  %v7811_v1 = vunpack.i.h.bf16 %v7807_v31  ;;  %v7808_v51 = vunpack.i.l.bf16 %v7807_v31  ;;  %v7325_v32 = vpop.f32.mrb[6].mxu0  ;;  %v5203_v57 = vmin.f32 %v11303_v23, 0.0  ;;  %v11336_v31 = vadd.f32 %v11271_v50, %v11260_v49 }
 0x376   :  { %v11312_v48 = vpop.f32.mrb[6].mxu1  ;;  %v5201_v58 = vmin.f32 %v11308_v0, 0.0  ;;  %v4577_v6 = vpop.f32.mrb[7].mxu0  ;;  %v11319_v41 = vadd.f32 %v7325_v32, %v11260_v49  ;;  %vm5073_vm5 = vcmp.gt.f32.partialorder %v11308_v0, 0.0  ;;  %v11342_v32 = vadd.f32 %v11260_v49, %v11277_v45 }
 0x377   :  { %v11316_v10 = vpop.f32.mrb[7].mxu1  ;;  %v4271_v36 = vpack.c.bf16 %v7808_v51, %v7803_v42  ;;  %v4303_v59 = vpack.c.bf16 %v7811_v1, %v7806_v25  ;;  %v5332_v24 = vmul.f32 10.0, %v5203_v57  ;;  %v11324_v29 = vadd.f32 %v11260_v49, %v4577_v6 }
 0x378   :  { %v7812_v39 = vpop.trf.xlu1  ;;  %v5330_v30 = vmul.f32 10.0, %v5201_v58  ;;  %v5204_v21 = vmin.f32 %v11319_v41, 0.0  ;;  %vm5075_vm10 = vcmp.gt.f32.partialorder %v11303_v23, 0.0  ;;  %vm5076_vm12 = vcmp.gt.f32.partialorder %v11319_v41, 0.0 }
 0x379   :  { %7371 = vmatmul.mubr.msk.bf16.gmra.mrb[52].mxu0 %vm4331_vm8, %v4271_v36  ;;  %7435 = vmatmul.mubr.msk.bf16.gmra.mrb[52].mxu1 %vm4331_vm8, %v4303_v59  ;;  %v7816_v4 = vunpack.i.h.bf16 %v7812_v39  ;;  %v7813_v28 = vunpack.i.l.bf16 %v7812_v39  ;;  %v5202_v62 = vmin.f32 %v11324_v29, 0.0  ;;  %v5466_v44 = vmul.f32 1.442695, %v5332_v24 }
 0x37a   :  { %v5462_v8 = vmul.f32 1.442695, %v5330_v30  ;;  %v5333_v11 = vmul.f32 10.0, %v5204_v21  ;;  %vm5074_vm9 = vcmp.gt.f32.partialorder %v11324_v29, 0.0  ;;  %v5263_v36 = vmin.f32 %v11336_v31, 0.0 }
 0x37b   :  { %v5331_v37 = vmul.f32 10.0, %v5202_v62  ;;  %v11354_v62 = vadd.f32 %v11280_v17, %v11260_v49  ;;  %v11366_v17 = vadd.f32 %v11305_v47, %v11260_v49  ;;  %vm5135_vm13 = vcmp.gt.f32.partialorder %v11336_v31, 0.0 }
 0x37c   :  { %v7817_v9 = vpop.trf.xlu1  ;;  %8042 = vpow2.f32 %v5462_v8  ;;  %v5468_v63 = vmul.f32 1.442695, %v5333_v11  ;;  %v5392_v8 = vmul.f32 10.0, %v5263_v36 }
 0x37d   :  { %v7821_v18 = vunpack.i.h.bf16 %v7817_v9  ;;  %v7818_v40 = vunpack.i.l.bf16 %v7817_v9  ;;  %v5464_v38 = vmul.f32 1.442695, %v5331_v37  ;;  %8044 = vpow2.f32 %v5466_v44 }
 0x37e   :  { %vm5136_vm1 = vcmp.gt.f32.partialorder %v11354_v62, 0.0  ;;  %vm5139_vm4 = vcmp.gt.f32.partialorder %v11366_v17, 0.0 }
 0x37f   :  { %v4272_v19 = vpack.c.bf16 %v7818_v40, %v7813_v28  ;;  %v4304_v3 = vpack.c.bf16 %v7821_v18, %v7816_v4  ;;  %8046 = vpow2.f32 %v5464_v38  ;;  %v5261_v4 = vmin.f32 %v11342_v32, 0.0 }
 0x380   :  { %v7822_v26 = vpop.trf.xlu1  ;;  %8048 = vpow2.f32 %v5468_v63  ;;  %v5586_v18 = vmul.f32 1.442695, %v5392_v8  ;;  %v11359_v40 = vadd.f32 %v11260_v49, %v11283_v46 }
 0x381   :  { %7374 = vmatprep.mubr.msk.bf16.mxu0 %vm4331_vm8, %v4272_v19  ;;  %7438 = vmatprep.mubr.msk.bf16.mxu1 %vm4331_vm8, %v4304_v3  ;;  %v7826_v22 = vunpack.i.h.bf16 %v7822_v26  ;;  %v7823_v33 = vunpack.i.l.bf16 %v7822_v26  ;;  %v11370_v3 = vadd.f32 %v11260_v49, %v11310_v56 }
 0x382   :  { %8050 = vpow2.f32 %v5586_v18  ;;  %v5262_v19 = vmin.f32 %v11359_v40, 0.0  ;;  %vm5134_vm11 = vcmp.gt.f32.partialorder %v11359_v40, 0.0 }
 0x383   :  { %v5265_v26 = vmin.f32 %v11370_v3, 0.0  ;;  %vm5137_vm6 = vcmp.gt.f32.partialorder %v11370_v3, 0.0 }
 0x384   :  { %v7827_v43 = vpop.trf.xlu1  ;;  %v5391_v37 = vmul.f32 10.0, %v5262_v19 }
 0x385   :  { %v7831_v7 = vunpack.i.h.bf16 %v7827_v43  ;;  %v7828_v53 = vunpack.i.l.bf16 %v7827_v43  ;;  %v5394_v56 = vmul.f32 10.0, %v5265_v26 }
 0x386   :  { %v8043_v5 = vpop.eup %8042  ;;  %v5584_v47 = vmul.f32 1.442695, %v5391_v37 }
 0x387   :  { %v4273_v14 = vpack.c.bf16 %v7828_v53, %v7823_v33  ;;  %v4305_v52 = vpack.c.bf16 %v7831_v7, %v7826_v22  ;;  %v7120_v55 = vadd.f32 -1.0, %v8043_v5  ;;  %v8045_v20 = vpop.eup %8044  ;;  %v11376_v22 = vadd.f32 %v11312_v48, %v11260_v49 }
 0x388   :  { %v7832_v35 = vpop.trf.xlu1  ;;  %v7122_v1 = vadd.f32 -1.0, %v8045_v20  ;;  %v11380_v33 = vadd.f32 %v11260_v49, %v11316_v10  ;;  %v5590_v5 = vmul.f32 1.442695, %v5394_v56 }
 0x389   :  { %7375 = vmatmul.mubr.msk.bf16.gmra.mrb[56].mxu0 %vm4331_vm8, %v4273_v14  ;;  %7439 = vmatmul.mubr.msk.bf16.gmra.mrb[56].mxu1 %vm4331_vm8, %v4305_v52  ;;  %v7836_v54 = vunpack.i.h.bf16 %v7832_v35  ;;  %v7833_v13 = vunpack.i.l.bf16 %v7832_v35  ;;  %v5842_v2 = vmul.f32 0.1, %v7120_v55  ;;  %v8047_v12 = vpop.eup %8046  ;;  %13880 = vst [vmem:[#allocation38_spill] sm:$0xff] %v11376_v22  ;;  %v5268_v53 = vmin.f32 %v11376_v22, 0.0 }
 0x38a   :  { %v7121_v42 = vadd.f32 -1.0, %v8047_v12  ;;  %v8049_v51 = vpop.eup %8048  ;;  %v5844_v59 = vmul.f32 0.1, %v7122_v1  ;;  %13881 = vst [vmem:[#allocation39_spill] sm:$0xff] %v11380_v33  ;;  %v5266_v14 = vmin.f32 %v11380_v33, 0.0 }
 0x38b   :  { %v5970_v15 = vsel %vm5073_vm5, %v11308_v0, %v5842_v2  ;;  %v7123_v39 = vadd.f32 -1.0, %v8049_v51  ;;  %v5397_v55 = vmul.f32 10.0, %v5268_v53 }
 0x38c   :  { %v7837_v27 = vpop.trf.xlu1  ;;  %6098 = vxpose.xlu0.b32.cont [5/16] %v5970_v15, 128  ;;  %v5843_v0 = vmul.f32 0.1, %v7121_v42  ;;  %v5972_v21 = vsel %vm5075_vm10, %v11303_v23, %v5844_v59  ;;  %v5264_v23 = vmin.f32 %v11354_v62, 0.0  ;;  %v8051_v43 = vpop.eup %8050 }
 0x38d   :  { %v7841_v61 = vunpack.i.h.bf16 %v7837_v27  ;;  %v7838_v34 = vunpack.i.l.bf16 %v7837_v27  ;;  %v5845_v9 = vmul.f32 0.1, %v7123_v39  ;;  %v7182_v35 = vadd.f32 -1.0, %v8051_v43 }
 0x38e   :  { %v5971_v50 = vsel %vm5074_vm9, %v11324_v29, %v5843_v0  ;;  %v5390_v29 = vmul.f32 10.0, %v5261_v4  ;;  %v5393_v46 = vmul.f32 10.0, %v5264_v23  ;;  %v5596_v15 = vmul.f32 1.442695, %v5397_v55 }
 0x38f   :  { %v4274_v60 = vpack.c.bf16 %v7838_v34, %v7833_v13  ;;  %v4306_v25 = vpack.c.bf16 %v7841_v61, %v7836_v54  ;;  %v5973_v44 = vsel %vm5076_vm12, %v11319_v41, %v5845_v9  ;;  %v5267_v41 = vmin.f32 %v11366_v17, 0.0 }
 0x390   :  { %v7842_v16 = vpop.trf.xlu1  ;;  %6099 = vxpose.xlu0.b32.cont [6/16] %v5971_v50, 128  ;;  %v5582_v11 = vmul.f32 1.442695, %v5390_v29  ;;  %v5588_v38 = vmul.f32 1.442695, %v5393_v46  ;;  %v5395_v54 = vmul.f32 10.0, %v5266_v14 }
 0x391   :  { %7378 = vmatprep.mubr.msk.bf16.mxu0 %vm4331_vm8, %v4274_v60  ;;  %7442 = vmatprep.mubr.msk.bf16.mxu1 %vm4331_vm8, %v4306_v25  ;;  %v7846_v57 = vunpack.i.h.bf16 %v7842_v16  ;;  %v7843_v58 = vunpack.i.l.bf16 %v7842_v16  ;;  %v5396_v63 = vmul.f32 10.0, %v5267_v41  ;;  %v11385_v27 = vmul.f32 0.1, %v7182_v35 }
 0x392   :  { %8052 = vpow2.f32 %v5582_v11  ;;  %v5592_v60 = vmul.f32 1.442695, %v5395_v54 }
 0x393   :  { %8054 = vpow2.f32 %v5588_v38  ;;  %v5594_v52 = vmul.f32 1.442695, %v5396_v63 }
 0x394   :  { %v7847_v6 = vpop.trf.xlu1  ;;  %6100 = vxpose.xlu0.b32.cont [7/16] %v5972_v21, 128  ;;  %8056 = vpow2.f32 %v5584_v47 }
 0x395   :  { %v7851_v30 = vunpack.i.h.bf16 %v7847_v6  ;;  %v7848_v24 = vunpack.i.l.bf16 %v7847_v6  ;;  %8058 = vpow2.f32 %v5594_v52 }
 0x396   :  { %8060 = vpow2.f32 %v5590_v5 }
 0x397   :  { %v4275_v28 = vpack.c.bf16 %v7848_v24, %v7843_v58  ;;  %v4307_v45 = vpack.c.bf16 %v7851_v30, %v7846_v57  ;;  %8062 = vpow2.f32 %v5596_v15 }
 0x398   :  { %6101 = vxpose.xlu0.b32.cont [8/16] %v5973_v44, 128  ;;  %8064 = vpow2.f32 %v5592_v60 }
 0x399   :  { %7379 = vmatmul.mubr.msk.bf16.gmra.mrb[60].mxu0 %vm4331_vm8, %v4275_v28  ;;  %7443 = vmatmul.mubr.msk.bf16.gmra.mrb[60].mxu1 %vm4331_vm8, %v4307_v45  ;;  %vm5133_vm8 = vcmp.gt.f32.partialorder %v11342_v32, 0.0 }
 0x39c   :  { %v8053_v7 = vpop.eup %8052 }
 0x39d   :  { %v7180_v48 = vadd.f32 -1.0, %v8053_v7  ;;  %v8055_v50 = vpop.eup %8054 }
 0x39e   :  { %v8057_v4 = vpop.eup %8056  ;;  %v7183_v26 = vadd.f32 -1.0, %v8055_v50 }
 0x39f   :  { %v5902_v12 = vmul.f32 0.1, %v7180_v48  ;;  %v7181_v41 = vadd.f32 -1.0, %v8057_v4  ;;  %v11425_v56 = vpop.eup %8058 }
 0x3a0   :  { %v11430_v5 = vpop.eup %8060 }
 0x3a1   :  { %v11423_v43 = vsel %vm5133_vm8, %v11342_v32, %v5902_v12 }
 0x3b0   :  { %v7328_v10 = vpop.f32.mrb[8].mxu0 }
 0x3b1   :  { %v7392_v13 = vpop.f32.mrb[8].mxu1  ;;  %v11388_v2 = vadd.f32 %v7328_v10, %v11260_v49  ;;  %v4590_v61 = vpop.f32.mrb[9].mxu0 }
 0x3b2   :  { %v11391_v20 = vadd.f32 %v7392_v13, %v11260_v49  ;;  %v4846_v34 = vpop.f32.mrb[9].mxu1  ;;  %v11394_v25 = vadd.f32 %v11260_v49, %v4590_v61  ;;  %v7329_v16 = vpop.f32.mrb[10].mxu0 }
 0x3b3   :  { %v11397_v42 = vadd.f32 %v11260_v49, %v4846_v34  ;;  %v7393_v1 = vpop.f32.mrb[10].mxu1  ;;  %v5207_v51 = vmin.f32 %v11388_v2, 0.0  ;;  %v11402_v57 = vadd.f32 %v7329_v16, %v11260_v49  ;;  %v4593_v6 = vpop.f32.mrb[11].mxu0  ;;  %vm5079_vm0 = vcmp.gt.f32.partialorder %v11388_v2, 0.0 }
 0x3b4   :  { %13882 = vst [vmem:[#allocation18_spill] sm:$0xff] %v11391_v20  ;;  %v5271_v0 = vmin.f32 %v11391_v20, 0.0  ;;  %v11405_v58 = vadd.f32 %v7393_v1, %v11260_v49  ;;  %v4849_v36 = vpop.f32.mrb[11].mxu1  ;;  %v5205_v59 = vmin.f32 %v11394_v25, 0.0  ;;  %v11410_v30 = vadd.f32 %v11260_v49, %v4593_v6 }
 0x3b5   :  { %13883 = vst [vmem:[#allocation55_spill] sm:$0xff] %v11397_v42  ;;  %v5269_v39 = vmin.f32 %v11397_v42, 0.0  ;;  %v11413_v24 = vadd.f32 %v11260_v49, %v4849_v36  ;;  %v5336_v28 = vmul.f32 10.0, %v5207_v51  ;;  %v5208_v8 = vmin.f32 %v11402_v57, 0.0 }
 0x3b6   :  { %13884 = vst [vmem:[#allocation17_spill] sm:$0xff] %v11405_v58  ;;  %v5400_v45 = vmul.f32 10.0, %v5271_v0  ;;  %v5272_v21 = vmin.f32 %v11405_v58, 0.0  ;;  %v5334_v9 = vmul.f32 10.0, %v5205_v59  ;;  %v5206_v18 = vmin.f32 %v11410_v30, 0.0 }
 0x3b7   :  { %13885 = vst [vmem:[#allocation50_spill] sm:$0xff] %v11413_v24  ;;  %v5398_v29 = vmul.f32 10.0, %v5269_v39  ;;  %v5270_v44 = vmin.f32 %v11413_v24, 0.0  ;;  %v5474_v11 = vmul.f32 1.442695, %v5336_v28  ;;  %v5337_v19 = vmul.f32 10.0, %v5208_v8 }
 0x3b8   :  { %v5602_v23 = vmul.f32 1.442695, %v5400_v45  ;;  %v5401_v46 = vmul.f32 10.0, %v5272_v21  ;;  %v5335_v37 = vmul.f32 10.0, %v5206_v18  ;;  %v5470_v38 = vmul.f32 1.442695, %v5334_v9 }
 0x3b9   :  { %v5598_v47 = vmul.f32 1.442695, %v5398_v29  ;;  %v7396_v63 = vpop.f32.mrb[12].mxu1  ;;  %8066 = vpow2.f32 %v5474_v11  ;;  %v5476_v7 = vmul.f32 1.442695, %v5337_v19  ;;  %v5399_v53 = vmul.f32 10.0, %v5270_v44  ;;  %v11465_v44 = vpop.eup %8062 }
 0x3ba   :  { %v7332_v14 = vpop.f32.mrb[12].mxu0  ;;  %v11428_v52 = vadd.f32 %v7396_v63, %v11260_v49  ;;  %v4862_v35 = vpop.f32.mrb[13].mxu1  ;;  %8068 = vpow2.f32 %v5602_v23  ;;  %v5604_v48 = vmul.f32 1.442695, %v5401_v46  ;;  %v5472_v13 = vmul.f32 1.442695, %v5335_v37 }
 0x3bb   :  { %v11433_v55 = vadd.f32 %v7332_v14, %v11260_v49  ;;  %v4606_v54 = vpop.f32.mrb[13].mxu0  ;;  %v11436_v32 = vadd.f32 %v11260_v49, %v4862_v35  ;;  %v7397_v10 = vpop.f32.mrb[14].mxu1  ;;  %8070 = vpow2.f32 %v5470_v38  ;;  %v5600_v6 = vmul.f32 1.442695, %v5399_v53 }
 0x3bc   :  { %13886 = vst [vmem:[#allocation61_spill] sm:$0xff] %v11428_v52  ;;  %v5275_v61 = vmin.f32 %v11428_v52, 0.0  ;;  %v11440_v34 = vadd.f32 %v11260_v49, %v4606_v54  ;;  %v7333_v12 = vpop.f32.mrb[14].mxu0  ;;  %v11443_v15 = vadd.f32 %v7397_v10, %v11260_v49  ;;  %v4865_v60 = vpop.f32.mrb[15].mxu1  ;;  %8072 = vpow2.f32 %v5598_v47 }
 0x3bd   :  { %13887 = vst [vmem:[#allocation16_spill] sm:$0xff] %v11436_v32  ;;  %v5211_v16 = vmin.f32 %v11433_v55, 0.0  ;;  %v5273_v1 = vmin.f32 %v11436_v32, 0.0  ;;  %v11448_v51 = vadd.f32 %v7333_v12, %v11260_v49  ;;  %v4609_v0 = vpop.f32.mrb[15].mxu0  ;;  %8074 = vpow2.f32 %v5476_v7 }
 0x3be   :  { %13888 = vst [vmem:[#allocation40_spill] sm:$0xff] %v11443_v15  ;;  %v5404_v36 = vmul.f32 10.0, %v5275_v61  ;;  %v5209_v50 = vmin.f32 %v11440_v34, 0.0  ;;  %v5276_v4 = vmin.f32 %v11443_v15, 0.0  ;;  %8076 = vpow2.f32 %v5472_v13 }
 0x3bf   :  { %v5340_v59 = vmul.f32 10.0, %v5211_v16  ;;  %v5212_v39 = vmin.f32 %v11448_v51, 0.0  ;;  %v5903_v45 = vmul.f32 0.1, %v7181_v41  ;;  %v11458_v8 = vsel %vm5135_vm13, %v11336_v31, %v11385_v27  ;;  %v11470_v31 = vpop.eup %8064 }
 0x3c0   :  { %v5338_v28 = vmul.f32 10.0, %v5209_v50  ;;  %8078 = vpow2.f32 %v5604_v48  ;;  %v5402_v21 = vmul.f32 10.0, %v5273_v1  ;;  %v11461_v9 = vadd.f32 %v11260_v49, %v4609_v0  ;;  %v7336_v46 = vpop.f32.mrb[16].mxu0 }
 0x3c1   :  { %v7400_v29 = vpop.f32.mrb[16].mxu1  ;;  %v11463_v18 = vmul.f32 0.1, %v7183_v26  ;;  %8080 = vpow2.f32 %v5600_v6  ;;  %v5610_v11 = vmul.f32 1.442695, %v5404_v36  ;;  %v5341_v23 = vmul.f32 10.0, %v5212_v39 }
 0x3c2   :  { %v11468_v19 = vadd.f32 %v11260_v49, %v4865_v60  ;;  %v4878_v37 = vpop.f32.mrb[17].mxu1  ;;  %v5482_v27 = vmul.f32 1.442695, %v5340_v59  ;;  %v5405_v41 = vmul.f32 10.0, %v5276_v4  ;;  %v5210_v38 = vmin.f32 %v11461_v9, 0.0  ;;  %v4622_v26 = vpop.f32.mrb[17].mxu0 }
 0x3c3   :  { %v11474_v47 = vadd.f32 %v7336_v46, %v11260_v49  ;;  %v7401_v63 = vpop.f32.mrb[18].mxu1  ;;  %v11476_v7 = vpop.eup %8066  ;;  %v5478_v53 = vmul.f32 1.442695, %v5338_v28  ;;  %v11480_v35 = vadd.f32 %v7400_v29, %v11260_v49  ;;  %v11483_v48 = vadd.f32 %v11260_v49, %v4622_v26 }
 0x3c4   :  { %13889 = vst [vmem:[#allocation41_spill] sm:$0xff] %v11468_v19  ;;  %v5274_v14 = vmin.f32 %v11468_v19, 0.0  ;;  %v7337_v54 = vpop.f32.mrb[18].mxu0  ;;  %v4881_v10 = vpop.f32.mrb[19].mxu1  ;;  %v5606_v61 = vmul.f32 1.442695, %v5402_v21  ;;  %v11489_v16 = vadd.f32 %v11260_v49, %v4878_v37  ;;  %8082 = vpow2.f32 %v5610_v11 }
 0x3c5   :  { %13890 = vst [vmem:[#allocation43_spill] sm:$0xff] %v11480_v35  ;;  %v11485_v13 = vpop.eup %8068  ;;  %v5339_v12 = vmul.f32 10.0, %v5210_v38  ;;  %v5215_v60 = vmin.f32 %v11474_v47, 0.0  ;;  %v4625_v1 = vpop.f32.mrb[19].mxu0  ;;  %v5484_v0 = vmul.f32 1.442695, %v5341_v23  ;;  %8084 = vpow2.f32 %v5482_v27 }
 0x3c6   :  { %13891 = vst [vmem:[#allocation44_spill] sm:$0xff] %v11485_v13  ;;  %13892 = vst [vmem:[#allocation45_spill] sm:$0xff] %v11489_v16  ;;  %v5403_v6 = vmul.f32 10.0, %v5274_v14  ;;  %v5279_v36 = vmin.f32 %v11480_v35, 0.0  ;;  %v8071_v50 = vpop.eup %8070  ;;  %v5612_v59 = vmul.f32 1.442695, %v5405_v41  ;;  %8086 = vpow2.f32 %v5478_v53 }
 0x3c7   :  { %v5344_v39 = vmul.f32 10.0, %v5215_v60  ;;  %v5213_v4 = vmin.f32 %v11483_v48, 0.0  ;;  %v11493_v28 = vpop.eup %8072  ;;  %v11496_v29 = vadd.f32 %v7337_v54, %v11260_v49  ;;  %v11501_v11 = vsel %vm5134_vm11, %v11359_v40, %v5903_v45 }
 0x3c8   :  { %13893 = vst [vmem:[#allocation46_spill] sm:$0xff] %v11493_v28  ;;  %v5408_v21 = vmul.f32 10.0, %v5279_v36  ;;  %v11503_v23 = vpop.eup %8074  ;;  %8088 = vpow2.f32 %v5606_v61  ;;  %v5480_v46 = vmul.f32 1.442695, %v5339_v12  ;;  %v5277_v37 = vmin.f32 %v11489_v16, 0.0  ;;  %v7340_v14 = vpop.f32.mrb[20].mxu0 }
 0x3c9   :  { %v11507_v27 = vadd.f32 %v7401_v63, %v11260_v49  ;;  %v7404_v41 = vpop.f32.mrb[20].mxu1  ;;  %v8077_v38 = vpop.eup %8076  ;;  %8090 = vpow2.f32 %v5484_v0  ;;  %v5608_v26 = vmul.f32 1.442695, %v5403_v6  ;;  %v5216_v53 = vmin.f32 %v11496_v29, 0.0 }
 0x3ca   :  { %vm5077_vm15 = vcmp.gt.f32.partialorder %v11394_v25, 0.0  ;;  %v11511_v40 = vpop.eup %8078  ;;  %8092 = vpow2.f32 %v5612_v59  ;;  %v5490_v45 = vmul.f32 1.442695, %v5344_v39  ;;  %v5342_v54 = vmul.f32 10.0, %v5213_v4  ;;  %v4638_v12 = vpop.f32.mrb[21].mxu0 }
 0x3cb   :  { %13894 = vst [vmem:[#allocation47_spill] sm:$0xff] %v11507_v27  ;;  %13895 = vst [vmem:[#allocation48_spill] sm:$0xff] %v11511_v40  ;;  %v7124_v61 = vadd.f32 -1.0, %v8071_v50  ;;  %v4894_v60 = vpop.f32.mrb[21].mxu1  ;;  %v11514_v63 = vpop.eup %8080  ;;  %v5618_v36 = vmul.f32 1.442695, %v5408_v21  ;;  %v11518_v6 = vadd.f32 %v11260_v49, %v4625_v1  ;;  %v11521_v35 = vadd.f32 %v11260_v49, %v4881_v10 }
 0x3cc   :  { %13896 = vst [vmem:[#allocation51_spill] sm:$0xff] %v11514_v63  ;;  %v5280_v0 = vmin.f32 %v11507_v27, 0.0  ;;  %v7341_v15 = vpop.f32.mrb[22].mxu0  ;;  %v7405_v59 = vpop.f32.mrb[22].mxu1  ;;  %8094 = vpow2.f32 %v5480_v46  ;;  %v5406_v39 = vmul.f32 10.0, %v5277_v37  ;;  %v7125_v4 = vadd.f32 -1.0, %v8077_v38 }
 0x3cd   :  { %13897 = vst [vmem:[#allocation57_spill] sm:$0xff] %v11521_v35  ;;  %v5846_v50 = vmul.f32 0.1, %v7124_v61  ;;  %v4641_v52 = vpop.f32.mrb[23].mxu0  ;;  %v11523_v16 = vpop.f32.mrb[23].mxu1  ;;  %8096 = vpow2.f32 %v5608_v26  ;;  %v5345_v19 = vmul.f32 10.0, %v5216_v53  ;;  %v11532_v46 = vadd.f32 %v7340_v14, %v11260_v49 }
 0x3ce   :  { %v5214_v21 = vmin.f32 %v11518_v6, 0.0  ;;  %vm5078_vm14 = vcmp.gt.f32.partialorder %v11410_v30, 0.0  ;;  %v5278_v1 = vmin.f32 %v11521_v35, 0.0  ;;  %v5847_v27 = vmul.f32 0.1, %v7125_v4  ;;  %v11534_v37 = vpop.eup %8082 }
 0x3cf   :  { %v5974_v10 = vsel %vm5077_vm15, %v11394_v25, %v5846_v50  ;;  %13898 = vst [vmem:[#allocation49_spill] sm:$0xff] %v11532_v46  ;;  %13899 = vst [vmem:[#allocation52_spill] sm:$0xff] %v11534_v37  ;;  %8098 = vpow2.f32 %v5490_v45  ;;  %v5486_v38 = vmul.f32 1.442695, %v5342_v54  ;;  %v5409_v26 = vmul.f32 10.0, %v5280_v0  ;;  %v11539_v61 = vpop.eup %8084 }
 0x3d0   :  { %6102 = vxpose.xlu0.b32.cont [9/16] %v5974_v10, 128  ;;  %v11537_v53 = vadd.f32 %v7404_v41, %v11260_v49  ;;  %8100 = vpow2.f32 %v5618_v36  ;;  %v5614_v32 = vmul.f32 1.442695, %v5406_v39  ;;  %v5219_v25 = vmin.f32 %v11532_v46, 0.0  ;;  %v11547_v4 = vpop.eup %8086  ;;  %v7344_v10 = vpop.f32.mrb[24].mxu0 }
 0x3d1   :  { %v11543_v50 = vadd.f32 %v11260_v49, %v4638_v12  ;;  %v11545_v14 = vpop.f32.mrb[24].mxu1  ;;  %v5492_v45 = vmul.f32 1.442695, %v5345_v19  ;;  %v5343_v54 = vmul.f32 10.0, %v5214_v21  ;;  %v11551_v41 = vadd.f32 %v11260_v49, %v4894_v60  ;;  %v4654_v19 = vpop.f32.mrb[25].mxu0 }
 0x3d2   :  { %13900 = vst [vmem:[#allocation53_spill] sm:$0xff] %v11537_v53  ;;  %v5283_v0 = vmin.f32 %v11537_v53, 0.0  ;;  %v11553_v35 = vpop.eup %8088  ;;  %v5407_v36 = vmul.f32 10.0, %v5278_v1  ;;  %v5975_v12 = vsel %vm5078_vm14, %v11410_v30, %v5847_v27  ;;  %v11560_v37 = vadd.f32 %v7341_v15, %v11260_v49  ;;  %v4910_v21 = vpop.f32.mrb[25].mxu1 }
 0x3d3   :  { %13901 = vst [vmem:[#allocation54_spill] sm:$0xff] %v11551_v41  ;;  %13902 = vst [vmem:[#allocation58_spill] sm:$0xff] %v11553_v35  ;;  %v5217_v39 = vmin.f32 %v11543_v50, 0.0  ;;  %v11562_v58 = vpop.eup %8090  ;;  %8102 = vpow2.f32 %v5486_v38  ;;  %v5620_v60 = vmul.f32 1.442695, %v5409_v26  ;;  %v7345_v53 = vpop.f32.mrb[26].mxu0  ;;  %v11570_v30 = vsel %vm5136_vm1, %v11354_v62, %v11463_v18 }
 0x3d4   :  { %13903 = vst [vmem:[#allocation62_spill] sm:$0xff] %v11560_v37  ;;  %6103 = vxpose.xlu0.b32.cont [10/16] %v5975_v12, 128  ;;  %v11564_v20 = vpop.f32.mrb[26].mxu1  ;;  %13904 = vst [vmem:[#allocation64_spill] sm:$0xff] %v11570_v30  ;;  %v11573_v27 = vadd.f32 -1.0, %v11425_v56  ;;  %v11575_v15 = vpop.eup %8092  ;;  %8104 = vpow2.f32 %v5614_v32  ;;  %v5348_v1 = vmul.f32 10.0, %v5219_v25  ;;  %v5412_v35 = vmul.f32 10.0, %v5283_v0 }
 0x3d5   :  { %13905 = vst [vmem:[#allocation65_spill] sm:$0xff] %v11575_v15  ;;  %v5281_v38 = vmin.f32 %v11551_v41, 0.0  ;;  %v11578_v26 = vpop.f32.mrb[27].mxu0  ;;  %v11580_v12 = vpop.f32.mrb[27].mxu1  ;;  %v5488_v40 = vmul.f32 1.442695, %v5343_v54  ;;  %v11583_v13 = vadd.f32 %v7405_v59, %v11260_v49  ;;  %8106 = vpow2.f32 %v5492_v45 }
 0x3d6   :  { %v5346_v24 = vmul.f32 10.0, %v5217_v39  ;;  %v7126_v62 = vadd.f32 -1.0, %v11476_v7  ;;  %v11586_v56 = vpop.eup %8094  ;;  %v5616_v18 = vmul.f32 1.442695, %v5407_v36  ;;  %v5220_v32 = vmin.f32 %v11560_v37, 0.0 }
 0x3d7   :  { %13906 = vst [vmem:[#allocation59_spill] sm:$0xff] %v11583_v13  ;;  %v11590_v25 = vadd.f32 %v11260_v49, %v4641_v52  ;;  %v11592_v0 = vpop.eup %8096  ;;  %8108 = vpow2.f32 %v5620_v60  ;;  %v11596_v59 = vadd.f32 -1.0, %v11430_v5  ;;  %v5498_v39 = vmul.f32 1.442695, %v5348_v1  ;;  %v11601_v45 = vld [vmem:[%s13205_s4] ss:$0 sm:$0xff] }
 0x3d8   :  { %13907 = vst [vmem:[#allocation60_spill] sm:$0xff] %v11592_v0  ;;  %v5848_v54 = vmul.f32 0.1, %v7126_v62  ;;  %v5626_v7 = vmul.f32 1.442695, %v5412_v35  ;;  %v5410_v41 = vmul.f32 10.0, %v5281_v38  ;;  %v11605_v49 = vadd.f32 %v11601_v45, %v11523_v16 }
 0x3d9   :  { %v11607_v52 = vpop.f32.mrb[28].mxu1  ;;  %v11609_v36 = vpop.eup %8098  ;;  %8110 = vpow2.f32 %v5488_v40  ;;  %v5494_v60 = vmul.f32 1.442695, %v5346_v24  ;;  %v5284_v5 = vmin.f32 %v11583_v13, 0.0  ;;  %v5349_v15 = vmul.f32 10.0, %v5220_v32 }
 0x3da   :  { %13908 = vst [vmem:[#allocation63_spill] sm:$0xff] %v11605_v49  ;;  %v5976_v35 = vsel %vm5079_vm0, %v11388_v2, %v5848_v54  ;;  %v11613_v1 = vpop.f32.mrb[28].mxu0  ;;  %v11615_v38 = vpop.f32.mrb[29].mxu1  ;;  %8112 = vpow2.f32 %v5616_v18  ;;  %v5218_v16 = vmin.f32 %v11590_v25, 0.0  ;;  %v7127_v0 = vadd.f32 -1.0, %v11503_v23 }
 0x3db   :  { %v11617_v62 = vpop.eup %8100  ;;  %6104 = vxpose.xlu0.b32.cont [11/16] %v5976_v35, 128  ;;  %v11621_v42 = vpop.f32.mrb[29].mxu0  ;;  %v5282_v40 = vmin.f32 %v11605_v49, 0.0  ;;  %v11627_v2 = vadd.f32 %v11601_v45, %v7344_v10  ;;  %v11631_v54 = vadd.f32 %v11601_v45, %v11545_v14  ;;  %v11634_v18 = vadd.f32 %v11601_v45, %v4654_v19 }
 0x3dc   :  { %13909 = vst [vmem:[#allocation66_spill] sm:$0xff] %v11617_v62  ;;  %v11623_v24 = vpop.f32.mrb[30].mxu1  ;;  %v11636_v32 = vpop.f32.mrb[30].mxu0  ;;  %8114 = vpow2.f32 %v5498_v39  ;;  %v5622_v23 = vmul.f32 1.442695, %v5410_v41  ;;  %v11641_v62 = vadd.f32 %v11601_v45, %v4910_v21  ;;  %v5413_v63 = vmul.f32 10.0, %v5284_v5 }
 0x3dd   :  { %13910 = vst [vmem:[#allocation67_spill] sm:$0xff] %v11627_v2  ;;  %13911 = vst [vmem:[#allocation68_spill] sm:$0xff] %v11631_v54  ;;  %v11638_v35 = vpop.f32.mrb[31].mxu1  ;;  %v5849_v13 = vmul.f32 0.1, %v7127_v0  ;;  %v11643_v49 = vpop.f32.mrb[31].mxu0  ;;  %v11650_v19 = vadd.f32 %v11601_v45, %v7345_v53  ;;  %8116 = vpow2.f32 %v5626_v7 }
 0x3de   :  { %13912 = vst [vmem:[#allocation69_spill] sm:$0xff] %v11634_v18  ;;  %13913 = vst [vmem:[#allocation70_spill] sm:$0xff] %v11641_v62  ;;  %v11645_v10 = vpop.eup %8102  ;;  %vm5080_vm2 = vcmp.gt.f32.partialorder %v11402_v57, 0.0  ;;  %v5223_v14 = vmin.f32 %v11627_v2, 0.0  ;;  %v5347_v41 = vmul.f32 10.0, %v5218_v16  ;;  %v5287_v21 = vmin.f32 %v11631_v54, 0.0 }
 0x3df   :  { %13914 = vst [vmem:[#allocation56_spill] sm:$0xff] %v11650_v19  ;;  %v11652_v22 = vpop.eup %8104  ;;  %v5977_v0 = vsel %vm5080_vm2, %v11402_v57, %v5849_v13  ;;  %8118 = vpow2.f32 %v5494_v60  ;;  %v5500_v39 = vmul.f32 1.442695, %v5349_v15  ;;  %v5411_v28 = vmul.f32 10.0, %v5282_v40 }
 0x3e0   :  { %13915 = vst [vmem:[#allocation34_spill] sm:$0xff] %v11652_v22  ;;  %6105 = vxpose.xlu0.b32.cont [12/16] %v5977_v0, 128  ;;  %v5221_v5 = vmin.f32 %v11634_v18, 0.0  ;;  %v11657_v37 = vpop.eup %8106  ;;  %8120 = vpow2.f32 %v5622_v23  ;;  %v5285_v53 = vmin.f32 %v11641_v62, 0.0  ;;  %v11662_v22 = vadd.f32 %v11601_v45, %v11564_v20  ;;  %v11678_v62 = vpop.f32.mrb[32].mxu0 }
 0x3e1   :  { %v11664_v7 = vpop.f32.mrb[32].mxu1  ;;  %v11667_v57 = vmul.f32 0.1, %v11573_v27  ;;  %v11669_v13 = vpop.eup %8108  ;;  %v5628_v15 = vmul.f32 1.442695, %v5413_v63  ;;  %v5352_v60 = vmul.f32 10.0, %v5223_v14  ;;  %v11674_v40 = vadd.f32 %v11601_v45, %v11578_v26 }
 0x3e2   :  { %13916 = vst [vmem:[#allocation35_spill] sm:$0xff] %v11662_v22  ;;  %13917 = vst [vmem:[#allocation20_spill] sm:$0xff] %v11669_v13  ;;  %v5224_v16 = vmin.f32 %v11650_v19, 0.0  ;;  %v5496_v23 = vmul.f32 1.442695, %v5347_v41  ;;  %v5416_v0 = vmul.f32 10.0, %v5287_v21  ;;  %8122 = vpow2.f32 %v5500_v39 }
 0x3e3   :  { %13918 = vst [vmem:[#allocation23_spill] sm:$0xff] %v11674_v40  ;;  %v5288_v20 = vmin.f32 %v11662_v22, 0.0  ;;  %v7128_v54 = vadd.f32 -1.0, %v11547_v4  ;;  %v11680_v27 = vpop.eup %8110  ;;  %v5624_v13 = vmul.f32 1.442695, %v5411_v28  ;;  %v5350_v63 = vmul.f32 10.0, %v5221_v5 }
 0x3e4   :  { %v11684_v14 = vadd.f32 %v11601_v45, %v11580_v12  ;;  %v11686_v19 = vpop.f32.mrb[33].mxu0  ;;  %v11688_v26 = vpop.f32.mrb[33].mxu1  ;;  %v5414_v21 = vmul.f32 10.0, %v5285_v53  ;;  %vm5081_vm3 = vcmp.gt.f32.partialorder %v11440_v34, 0.0  ;;  %v5222_v22 = vmin.f32 %v11674_v40, 0.0 }
 0x3e5   :  { %v11690_v41 = vpop.eup %8112  ;;  %v5850_v4 = vmul.f32 0.1, %v7128_v54  ;;  %v11694_v2 = vpop.f32.mrb[34].mxu0  ;;  %8124 = vpow2.f32 %v5628_v15  ;;  %v5506_v28 = vmul.f32 1.442695, %v5352_v60  ;;  %v5353_v39 = vmul.f32 10.0, %v5224_v16 }
 0x3e6   :  { %13919 = vst [vmem:[#allocation25_spill] sm:$0xff] %v11684_v14  ;;  %13920 = vst [vmem:[#allocation36_spill] sm:$0xff] %v11690_v41  ;;  %v7129_v12 = vadd.f32 -1.0, %v11586_v56  ;;  %v11697_v5 = vpop.f32.mrb[34].mxu1  ;;  %v11699_v18 = vpop.f32.mrb[35].mxu0  ;;  %v5417_v46 = vmul.f32 10.0, %v5288_v20  ;;  %8126 = vpow2.f32 %v5496_v23  ;;  %v11710_v60 = vadd.f32 %v11601_v45, %v11613_v1 }
 0x3e7   :  { %v11702_v41 = vpop.eup %8114  ;;  %v5634_v53 = vmul.f32 1.442695, %v5416_v0  ;;  %v5978_v54 = vsel %vm5081_vm3, %v11440_v34, %v5850_v4  ;;  %v5286_v40 = vmin.f32 %v11684_v14, 0.0  ;;  %v11706_v30 = vpop.f32.mrb[35].mxu1  ;;  %v5502_v15 = vmul.f32 1.442695, %v5350_v63 }
 0x3e8   :  { %6106 = vxpose.xlu0.b32.cont [13/16] %v5978_v54, 128  ;;  %v5851_v56 = vmul.f32 0.1, %v7129_v12  ;;  %13921 = vst [vmem:[#allocation19_spill] sm:$0xff] %v11710_v60  ;;  %v11712_v16 = vpop.eup %8116  ;;  %8128 = vpow2.f32 %v5624_v13  ;;  %v5630_v33 = vmul.f32 1.442695, %v5414_v21  ;;  %v5351_v0 = vmul.f32 10.0, %v5222_v22 }
 0x3e9   :  { %13922 = vst [vmem:[#allocation22_spill] sm:$0xff] %v11712_v16  ;;  %v5906_v20 = vmul.f32 0.1, %v11596_v59  ;;  %v11715_v34 = vpop.f32.mrb[36].mxu1  ;;  %v11717_v4 = vpop.eup %8118  ;;  %8130 = vpow2.f32 %v5506_v28  ;;  %v5508_v23 = vmul.f32 1.442695, %v5353_v39  ;;  %v11722_v63 = vadd.f32 %v11601_v45, %v11607_v52 }
 0x3ea   :  { %vm5082_vm7 = vcmp.gt.f32.partialorder %v11461_v9, 0.0  ;;  %v11724_v1 = vpop.f32.mrb[36].mxu0  ;;  %v11726_v12 = vpop.f32.mrb[37].mxu1  ;;  %8132 = vpow2.f32 %v5634_v53  ;;  %v5636_v22 = vmul.f32 1.442695, %v5417_v46  ;;  %v5415_v59 = vmul.f32 10.0, %v5286_v40 }
 0x3eb   :  { %13923 = vst [vmem:[#allocation21_spill] sm:$0xff] %v11722_v63  ;;  %v11728_v13 = vpop.eup %8120  ;;  %v5979_v21 = vsel %vm5082_vm7, %v11461_v9, %v5851_v56  ;;  %v11731_v54 = vpop.f32.mrb[37].mxu0  ;;  %8134 = vpow2.f32 %v5502_v15  ;;  %v5227_v52 = vmin.f32 %v11710_v60, 0.0  ;;  %v11738_v39 = vadd.f32 %v11601_v45, %v11621_v42 }
 0x3ec   :  { %13924 = vst [vmem:[#allocation24_spill] sm:$0xff] %v11728_v13  ;;  %v11733_v28 = vpop.f32.mrb[38].mxu1  ;;  %6107 = vxpose.xlu0.b32.cont [14/16] %v5979_v21, 128  ;;  %v11741_v14 = vpop.f32.mrb[38].mxu0  ;;  %8136 = vpow2.f32 %v5630_v33  ;;  %v5504_v9 = vmul.f32 1.442695, %v5351_v0  ;;  %v11747_v40 = vadd.f32 %v11601_v45, %v11615_v38  ;;  %v11751_v53 = vsel %vm5139_vm4, %v11366_v17, %v11667_v57 }
 0x3ed   :  { %13925 = vst [vmem:[#allocation42_spill] sm:$0xff] %v11738_v39  ;;  %v11743_v46 = vpop.f32.mrb[39].mxu1  ;;  %v11753_v15 = vpop.f32.mrb[39].mxu0  ;;  %8138 = vpow2.f32 %v5508_v23  ;;  %v5291_v56 = vmin.f32 %v11722_v63, 0.0  ;;  %v7132_v21 = vadd.f32 -1.0, %v11645_v10  ;;  %v11760_v33 = vadd.f32 -1.0, %v11465_v44 }
 0x3ee   :  { %13926 = vst [vmem:[#allocation37_spill] sm:$0xff] %v11747_v40  ;;  %v11755_v42 = vpop.eup %8122  ;;  %8140 = vpow2.f32 %v5636_v22  ;;  %v5632_v0 = vmul.f32 1.442695, %v5415_v59  ;;  %v11765_v38 = vsel %vm5137_vm6, %v11370_v3, %v5906_v20  ;;  %v7185_v17 = vadd.f32 -1.0, %v11470_v31 }
 0x3ef   :  { %v11768_v57 = vpop.eup %8124  ;;  %v5356_v16 = vmul.f32 10.0, %v5227_v52  ;;  %v5225_v23 = vmin.f32 %v11738_v39, 0.0  ;;  %v5854_v63 = vmul.f32 0.1, %v7132_v21  ;;  %v7130_v10 = vadd.f32 -1.0, %v11539_v61 }
 0x3f0   :  { %13927 = vst [vmem:[#allocation71_spill] sm:$0xff] %v11768_v57  ;;  %8142 = vpow2.f32 %v5504_v9  ;;  %v5289_v44 = vmin.f32 %v11747_v40, 0.0  ;;  %v11775_v22 = vadd.f32 %v11601_v45, %v11636_v32  ;;  %vm5085_vm5 = vcmp.gt.f32.partialorder %v11483_v48, 0.0  ;;  %v11780_v31 = vpop.eup %8126  ;;  %v11787_v9 = vpop.f32.mrb[40].mxu0 }
 0x3f1   :  { %v11778_v3 = vpop.f32.mrb[40].mxu1  ;;  %v5420_v20 = vmul.f32 10.0, %v5291_v56  ;;  %v11784_v59 = vadd.f32 %v11601_v45, %v11623_v24  ;;  %v5982_v61 = vsel %vm5085_vm5, %v11483_v48, %v5854_v63  ;;  %v5852_v52 = vmul.f32 0.1, %v7130_v10  ;;  %v11800_v24 = vpop.f32.mrb[41].mxu0 }
 0x3f2   :  { %13928 = vst [vmem:[#allocation72_spill] sm:$0xff] %v11775_v22  ;;  %v11789_v21 = vpop.f32.mrb[41].mxu1  ;;  %v11791_v32 = vpop.eup %8128  ;;  %8144 = vpow2.f32 %v5632_v0  ;;  %6126 = vxpose.xlu1.b32.start [1/16] %v5982_v61, 128  ;;  %vm5083_vm9 = vcmp.gt.f32.partialorder %v11433_v55, 0.0  ;;  %v11796_v56 = vadd.f32 %v11601_v45, %v11643_v49  ;;  %v11798_v40 = vmul.f32 0.1, %v7185_v17 }
 0x3f3   :  { %13929 = vst [vmem:[#allocation73_spill] sm:$0xff] %v11784_v59  ;;  %13930 = vst [vmem:[#allocation74_spill] sm:$0xff] %v11791_v32  ;;  %v11802_v48 = vpop.f32.mrb[42].mxu1  ;;  %v11804_v63 = vpop.eup %8130  ;;  %v5514_v10 = vmul.f32 1.442695, %v5356_v16  ;;  %v5354_v57 = vmul.f32 10.0, %v5225_v23  ;;  %v5980_v32 = vsel %vm5083_vm9, %v11433_v55, %v5852_v52  ;;  %v11817_v39 = vadd.f32 %v11601_v45, %v11638_v35 }
 0x3f4   :  { %13931 = vst [vmem:[#allocation75_spill] sm:$0xff] %v11796_v56  ;;  %13932 = vst [vmem:[#allocation76_spill] sm:$0xff] %v11802_v48  ;;  %v7133_v0 = vadd.f32 -1.0, %v11680_v27  ;;  %v11808_v61 = vpop.f32.mrb[42].mxu0  ;;  %v11810_v13 = vpop.f32.mrb[43].mxu1  ;;  %v5418_v17 = vmul.f32 10.0, %v5289_v44  ;;  %6108 = vxpose.xlu0.b32.cont [15/16] %v5980_v32, 128 }
 0x3f5   :  { %13933 = vst [vmem:[#allocation77_spill] sm:$0xff] %v11810_v13  ;;  %v11812_v49 = vpop.eup %8132  ;;  %v5228_v60 = vmin.f32 %v11775_v22, 0.0  ;;  %13935 = vst [vmem:[#allocation79_spill] sm:$0xff] %v11817_v39  ;;  %v7131_v16 = vadd.f32 -1.0, %v11562_v58  ;;  %v11820_v23 = vpop.f32.mrb[43].mxu0  ;;  %v5292_v52 = vmin.f32 %v11784_v59, 0.0  ;;  %v11832_v58 = vadd.f32 %v11601_v45, %v11678_v62 }
 0x3f6   :  { %13934 = vst [vmem:[#allocation78_spill] sm:$0xff] %v11812_v49  ;;  %13936 = vst [vmem:[#allocation80_spill] sm:$0xff] %v11820_v23  ;;  %v11822_v55 = vpop.eup %8134  ;;  %v5642_v27 = vmul.f32 1.442695, %v5420_v20  ;;  %v5855_v13 = vmul.f32 0.1, %v7133_v0  ;;  %8146 = vpow2.f32 %v5514_v10 }
 0x3f7   :  { %v7134_v49 = vadd.f32 -1.0, %v11609_v36  ;;  %v11826_v44 = vpop.eup %8136  ;;  %v5226_v32 = vmin.f32 %v11796_v56, 0.0  ;;  %vm5086_vm10 = vcmp.gt.f32.partialorder %v11518_v6, 0.0  ;;  %v5853_v35 = vmul.f32 0.1, %v7131_v16  ;;  %13938 = vst [vmem:[#allocation82_spill] sm:$0xff] %v11832_v58 }
 0x3f8   :  { %13937 = vst [vmem:[#allocation81_spill] sm:$0xff] %v11826_v44  ;;  %v11834_v22 = vpop.eup %8138  ;;  %v5983_v20 = vsel %vm5086_vm10, %v11518_v6, %v5855_v13  ;;  %vm5084_vm12 = vcmp.gt.f32.partialorder %v11448_v51, 0.0  ;;  %v7135_v36 = vadd.f32 -1.0, %v11657_v37  ;;  %v5510_v44 = vmul.f32 1.442695, %v5354_v57  ;;  %v11850_v37 = vpop.f32.mrb[44].mxu0 }
 0x3f9   :  { %v5856_v0 = vmul.f32 0.1, %v7134_v49  ;;  %v11839_v59 = vpop.eup %8140  ;;  %v5290_v23 = vmin.f32 %v11817_v39, 0.0  ;;  %6127 = vxpose.xlu1.b32.cont [2/16] %v5983_v20, 128  ;;  %v5981_v16 = vsel %vm5084_vm12, %v11448_v51, %v5853_v35  ;;  %v11843_v62 = vpop.f32.mrb[44].mxu1  ;;  %v5638_v56 = vmul.f32 1.442695, %v5418_v17 }
 0x3fa   :  { %13939 = vst [vmem:[#allocation83_spill] sm:$0xff] %v11839_v59  ;;  %v5357_v48 = vmul.f32 10.0, %v5228_v60  ;;  %6109 = vxpose.xlu0.b32.end [16/16] %v5981_v16, 128  ;;  %v5231_v6 = vmin.f32 %v11832_v58, 0.0  ;;  %v11848_v13 = vadd.f32 %v11601_v45, %v11664_v7  ;;  %v11852_v10 = vpop.f32.mrb[45].mxu1  ;;  %v11854_v57 = vpop.eup %8142  ;;  %8148 = vpow2.f32 %v5642_v27 }
 0x3fb   :  { %v5421_v49 = vmul.f32 10.0, %v5292_v52  ;;  %vm5087_vm8 = vcmp.gt.f32.partialorder %v11474_v47, 0.0  ;;  %v11859_v51 = vadd.f32 %v11601_v45, %v11686_v19  ;;  %v11861_v60 = vpop.f32.mrb[45].mxu0  ;;  %v11863_v17 = vpop.f32.mrb[46].mxu1  ;;  %v5355_v7 = vmul.f32 10.0, %v5226_v32 }
 0x3fc   :  { %13940 = vst [vmem:[#allocation84_spill] sm:$0xff] %v11848_v13  ;;  %v5984_v35 = vsel %vm5087_vm8, %v11474_v47, %v5856_v0  ;;  %v5857_v20 = vmul.f32 0.1, %v7135_v36  ;;  %v7136_v16 = vadd.f32 -1.0, %v11717_v4  ;;  %v11867_v39 = vpop.f32.mrb[46].mxu0  ;;  %v11869_v27 = vpop.f32.mrb[47].mxu1  ;;  %v11876_v58 = vadd.f32 %v11601_v45, %v11688_v26 }
 0x3fd   :  { %v11871_v52 = vpop.eup %8144  ;;  %v5419_v59 = vmul.f32 10.0, %v5290_v23  ;;  %6128 = vxpose.xlu1.b32.cont [3/16] %v5984_v35, 128  ;;  %v5295_v19 = vmin.f32 %v11848_v13, 0.0  ;;  %v11880_v47 = vadd.f32 %v11601_v45, %v11694_v2  ;;  %v11882_v32 = vpop.f32.mrb[47].mxu0  ;;  %8150 = vpow2.f32 %v5510_v44 }
 0x3fe   :  { %13941 = vst [vmem:[#allocation85_spill] sm:$0xff] %v11871_v52  ;;  %13942 = vst [vmem:[#allocation86_spill] sm:$0xff] %v11876_v58  ;;  %v5516_v4 = vmul.f32 1.442695, %v5357_v48  ;;  %6222 = vxpose.xlu0.b32.start [1/16] %v11423_v43, 128  ;;  %v5360_v0 = vmul.f32 10.0, %v5231_v6  ;;  %v5229_v23 = vmin.f32 %v11859_v51, 0.0  ;;  %8152 = vpow2.f32 %v5638_v56 }
 0x3ff   :  { %v5644_v36 = vmul.f32 1.442695, %v5421_v49  ;;  %vm5088_vm13 = vcmp.gt.f32.partialorder %v11496_v29, 0.0  ;;  %v11889_v26 = vadd.f32 %v11601_v45, %v11697_v5  ;;  %v5512_v35 = vmul.f32 1.442695, %v5355_v7 }
 0x400   :  { %v5985_v2 = vsel %vm5088_vm13, %v11496_v29, %v5857_v20  ;;  %v5858_v13 = vmul.f32 0.1, %v7136_v16  ;;  %v7137_v44 = vadd.f32 -1.0, %v11780_v31  ;;  %v5640_v48 = vmul.f32 1.442695, %v5419_v59  ;;  %v11900_v29 = vpop.eup %8146 }
 0x401   :  { %13943 = vst [vmem:[#allocation87_spill] sm:$0xff] %v11889_v26  ;;  %6129 = vxpose.xlu1.b32.cont [4/16] %v5985_v2, 128  ;;  %v5424_v43 = vmul.f32 10.0, %v5295_v19  ;;  %v5293_v6 = vmin.f32 %v11876_v58, 0.0  ;;  %v5232_v56 = vmin.f32 %v11880_v47, 0.0  ;;  %8154 = vpow2.f32 %v5516_v4  ;;  %v13946_v2 = vld [vmem:[#allocation39_spill] sm:$0xff] }
 0x402   :  { %6223 = vxpose.xlu0.b32.cont [2/16] %v11501_v11, 128  ;;  %v5522_v49 = vmul.f32 1.442695, %v5360_v0  ;;  %v5358_v52 = vmul.f32 10.0, %v5229_v23  ;;  %v11898_v5 = vadd.f32 %v11601_v45, %v11699_v18  ;;  %8156 = vpow2.f32 %v5644_v36 }
 0x403   :  { %vm5089_vm11 = vcmp.gt.f32.partialorder %v11543_v50, 0.0  ;;  %v5296_v31 = vmin.f32 %v11889_v26, 0.0  ;;  %v11906_v59 = vadd.f32 %v11601_v45, %v11706_v30  ;;  %8158 = vpow2.f32 %v5512_v35 }
 0x404   :  { %v5986_v11 = vsel %vm5089_vm11, %v11543_v50, %v5858_v13  ;;  %v5859_v7 = vmul.f32 0.1, %v7137_v44  ;;  %v7138_v20 = vadd.f32 -1.0, %v11702_v41  ;;  %v11910_v16 = vpop.eup %8148  ;;  %8160 = vpow2.f32 %v5640_v48 }
 0x405   :  { %13944 = vst [vmem:[#allocation88_spill] sm:$0xff] %v11906_v59  ;;  %6130 = vxpose.xlu1.b32.cont [5/16] %v5986_v11, 128  ;;  %v5650_v18 = vmul.f32 1.442695, %v5424_v43  ;;  %v5422_v19 = vmul.f32 10.0, %v5293_v6  ;;  %v5361_v4 = vmul.f32 10.0, %v5232_v56  ;;  %8162 = vpow2.f32 %v5522_v49  ;;  %v13947_v6 = vld [vmem:[#allocation64_spill] sm:$0xff] }
 0x406   :  { %6224 = vxpose.xlu0.b32.cont [3/16] %v11458_v8, 128  ;;  %v5518_v0 = vmul.f32 1.442695, %v5358_v52  ;;  %vm5090_vm15 = vcmp.gt.f32.partialorder %v11590_v25, 0.0  ;;  %v5230_v30 = vmin.f32 %v11898_v5, 0.0  ;;  %v5425_v23 = vmul.f32 10.0, %v5296_v31  ;;  %v13949_v49 = vld [vmem:[#allocation49_spill] sm:$0xff] }
 0x407   :  { %v5294_v50 = vmin.f32 %v11906_v59, 0.0  ;;  %v11918_v41 = vadd.f32 %v11601_v45, %v11724_v1  ;;  %v11922_v13 = vadd.f32 %v11601_v45, %v11715_v34  ;;  %v11924_v36 = vpop.eup %8150  ;;  %v5987_v8 = vsel %vm5090_vm15, %v11590_v25, %v5859_v7 }
 0x408   :  { %v5860_v52 = vmul.f32 0.1, %v7138_v20  ;;  %v7139_v35 = vadd.f32 -1.0, %v11755_v42  ;;  %vm5138_vm1 = vcmp.gt.f32.partialorder %v13946_v2, 0.0  ;;  %v11931_v44 = vadd.f32 %v11601_v45, %v11731_v54  ;;  %v11933_v48 = vpop.eup %8152 }
 0x409   :  { %13945 = vst [vmem:[#allocation89_spill] sm:$0xff] %v11922_v13  ;;  %8164 = vpow2.f32 %v5650_v18  ;;  %v5646_v1 = vmul.f32 1.442695, %v5422_v19  ;;  %v5524_v43 = vmul.f32 1.442695, %v5361_v4  ;;  %6131 = vxpose.xlu1.b32.cont [6/16] %v5987_v8, 128  ;;  %v5235_v34 = vmin.f32 %v11918_v41, 0.0 }
 0x40a   :  { %8166 = vpow2.f32 %v5518_v0  ;;  %6225 = vxpose.xlu0.b32.cont [4/16] %v13947_v6, 128  ;;  %v5359_v25 = vmul.f32 10.0, %v5230_v30  ;;  %v5299_v42 = vmin.f32 %v11922_v13, 0.0  ;;  %v11940_v56 = vadd.f32 %v11601_v45, %v11726_v12  ;;  %v13973_v13 = vld [vmem:[#allocation48_spill] sm:$0xff] }
 0x40b   :  { %v5423_v54 = vmul.f32 10.0, %v5294_v50  ;;  %vm5091_vm14 = vcmp.gt.f32.partialorder %v13949_v49, 0.0  ;;  %v5233_v31 = vmin.f32 %v11931_v44, 0.0  ;;  %v11946_v11 = vadd.f32 %v11601_v45, %v11741_v14  ;;  %v11948_v7 = vpop.eup %8154 }
 0x40c   :  { %13948 = vst [vmem:[#allocation39_spill] sm:$0xff] %v11940_v56  ;;  %v5988_v20 = vsel %vm5091_vm14, %v13949_v49, %v5860_v52  ;;  %v5861_v18 = vmul.f32 0.1, %v7139_v35  ;;  %v7140_v19 = vadd.f32 -1.0, %v11822_v55  ;;  %v11954_v12 = vadd.f32 %v11601_v45, %v11733_v28  ;;  %v11956_v4 = vpop.eup %8156  ;;  %v13951_v52 = vld [vmem:[#allocation62_spill] sm:$0xff] }
 0x40d   :  { %8168 = vpow2.f32 %v5646_v1  ;;  %v5652_v0 = vmul.f32 1.442695, %v5425_v23  ;;  %6132 = vxpose.xlu1.b32.cont [7/16] %v5988_v20, 128  ;;  %v5364_v30 = vmul.f32 10.0, %v5235_v34  ;;  %v5297_v14 = vmin.f32 %v11940_v56, 0.0  ;;  %v11959_v50 = vpop.eup %8158  ;;  %v13980_v56 = vld [vmem:[#allocation77_spill] sm:$0xff] }
 0x40e   :  { %13950 = vst [vmem:[#allocation64_spill] sm:$0xff] %v11954_v12  ;;  %8170 = vpow2.f32 %v5524_v43  ;;  %v5520_v8 = vmul.f32 1.442695, %v5359_v25  ;;  %6226 = vxpose.xlu0.b32.cont [5/16] %v11765_v38, 128  ;;  %vm5092_vm0 = vcmp.gt.f32.partialorder %v13951_v52, 0.0  ;;  %v5428_v55 = vmul.f32 10.0, %v5299_v42  ;;  %v11963_v35 = vpop.eup %8160 }
 0x40f   :  { %v5362_v28 = vmul.f32 10.0, %v5233_v31  ;;  %v5236_v6 = vmin.f32 %v11946_v11, 0.0  ;;  %v7141_v23 = vadd.f32 -1.0, %v11854_v57  ;;  %v11969_v1 = vadd.f32 %v11601_v45, %v11753_v15  ;;  %v11971_v34 = vpop.eup %8162  ;;  %v13952_v15 = vld [vmem:[#allocation69_spill] sm:$0xff] }
 0x410   :  { %v5648_v43 = vmul.f32 1.442695, %v5423_v54  ;;  %v5989_v25 = vsel %vm5092_vm0, %v13951_v52, %v5861_v18  ;;  %v5862_v38 = vmul.f32 0.1, %v7140_v19  ;;  %v5300_v49 = vmin.f32 %v11954_v12, 0.0 }
 0x411   :  { %8172 = vpow2.f32 %v5652_v0  ;;  %6133 = vxpose.xlu1.b32.cont [8/16] %v5989_v25, 128  ;;  %v6035_v42 = vsel %vm5138_vm1, %v13946_v2, %v11798_v40  ;;  %v5530_v57 = vmul.f32 1.442695, %v5364_v30  ;;  %v5426_v31 = vmul.f32 10.0, %v5297_v14 }
 0x412   :  { %8174 = vpow2.f32 %v5520_v8  ;;  %6227 = vxpose.xlu0.b32.cont [6/16] %v6035_v42, 128  ;;  %vm5093_vm2 = vcmp.gt.f32.partialorder %v13952_v15, 0.0  ;;  %v5658_v20 = vmul.f32 1.442695, %v5428_v55  ;;  %v11982_v54 = vadd.f32 %v11601_v45, %v11743_v46  ;;  %v13955_v8 = vld [vmem:[#allocation46_spill] sm:$0xff] }
 0x413   :  { %v11984_v18 = vpop.eup %8164  ;;  %v5526_v19 = vmul.f32 1.442695, %v5362_v28  ;;  %v5365_v0 = vmul.f32 10.0, %v5236_v6  ;;  %v5863_v52 = vmul.f32 0.1, %v7141_v23  ;;  %v5234_v25 = vmin.f32 %v11969_v1, 0.0 }
 0x414   :  { %13953 = vst [vmem:[#allocation49_spill] sm:$0xff] %v11982_v54  ;;  %13954 = vst [vmem:[#allocation62_spill] sm:$0xff] %v11984_v18  ;;  %v11987_v12 = vpop.eup %8166  ;;  %8176 = vpow2.f32 %v5648_v43  ;;  %v5990_v40 = vsel %vm5093_vm2, %v13952_v15, %v5862_v38  ;;  %v5429_v2 = vmul.f32 10.0, %v5300_v49  ;;  %v7142_v30 = vadd.f32 -1.0, %v11804_v63  ;;  %v13956_v28 = vld [vmem:[#allocation23_spill] sm:$0xff]  ;;  %v13957_v6 = vld [vmem:[#allocation38_spill] sm:$0xff] }
 0x415   :  { %6134 = vxpose.xlu1.b32.cont [9/16] %v5990_v40, 128  ;;  %8178 = vpow2.f32 %v5530_v57  ;;  %v5654_v14 = vmul.f32 1.442695, %v5426_v31  ;;  %v5909_v46 = vmul.f32 0.1, %v11760_v33  ;;  %v7188_v55 = vadd.f32 -1.0, %v13955_v8  ;;  %v13961_v40 = vld [vmem:[#allocation55_spill] sm:$0xff] }
 0x416   :  { %6228 = vxpose.xlu0.b32.cont [7/16] %v11751_v53, 128  ;;  %8180 = vpow2.f32 %v5658_v20  ;;  %vm5094_vm3 = vcmp.gt.f32.partialorder %v13956_v28, 0.0  ;;  %vm5140_vm6 = vcmp.gt.f32.partialorder %v13957_v6, 0.0  ;;  %v5298_v23 = vmin.f32 %v11982_v54, 0.0 }
 0x417   :  { %v11997_v43 = vpop.eup %8168  ;;  %8182 = vpow2.f32 %v5526_v19  ;;  %v5532_v63 = vmul.f32 1.442695, %v5365_v0  ;;  %v5991_v38 = vsel %vm5094_vm3, %v13956_v28, %v5863_v52  ;;  %v5363_v49 = vmul.f32 10.0, %v5234_v25  ;;  %v13959_v19 = vld [vmem:[#allocation51_spill] sm:$0xff] }
 0x418   :  { %13958 = vst [vmem:[#allocation69_spill] sm:$0xff] %v11997_v43  ;;  %v12000_v42 = vpop.eup %8170  ;;  %v5660_v33 = vmul.f32 1.442695, %v5429_v2  ;;  %v5864_v57 = vmul.f32 0.1, %v7142_v30  ;;  %v7143_v53 = vadd.f32 -1.0, %v11834_v22  ;;  %v12005_v31 = vadd.f32 %v11601_v45, %v11787_v9 }
 0x419   :  { %8184 = vpow2.f32 %v5654_v14  ;;  %6135 = vxpose.xlu1.b32.cont [10/16] %v5991_v38, 128  ;;  %v6037_v15 = vsel %vm5140_vm6, %v13957_v6, %v5909_v46  ;;  %v5910_v20 = vmul.f32 0.1, %v7188_v55  ;;  %v7189_v0 = vadd.f32 -1.0, %v13959_v19  ;;  %v13960_v25 = vld [vmem:[#allocation67_spill] sm:$0xff]  ;;  %v13969_v19 = vld [vmem:[#allocation76_spill] sm:$0xff] }
 0x41a   :  { %6229 = vxpose.xlu0.b32.cont [8/16] %v6037_v15, 128  ;;  %v5427_v52 = vmul.f32 10.0, %v5298_v23  ;;  %vm5095_vm7 = vcmp.gt.f32.partialorder %v13960_v25, 0.0  ;;  %vm5141_vm4 = vcmp.gt.f32.partialorder %v13961_v40, 0.0  ;;  %v12013_v22 = vadd.f32 %v11601_v45, %v11778_v3  ;;  %v13964_v23 = vld [vmem:[#allocation44_spill] sm:$0xff]  ;;  %v13968_v15 = vld [vmem:[#allocation50_spill] sm:$0xff] }
 0x41b   :  { %v12015_v2 = vpop.eup %8172  ;;  %8186 = vpow2.f32 %v5532_v63  ;;  %v5528_v9 = vmul.f32 1.442695, %v5363_v49  ;;  %v5239_v30 = vmin.f32 %v12005_v31, 0.0  ;;  %v12020_v14 = vadd.f32 %v11601_v45, %v11800_v24 }
 0x41c   :  { %13962 = vst [vmem:[#allocation46_spill] sm:$0xff] %v12013_v22  ;;  %13963 = vst [vmem:[#allocation23_spill] sm:$0xff] %v12015_v2  ;;  %v12022_v46 = vpop.eup %8174  ;;  %8188 = vpow2.f32 %v5660_v33  ;;  %v5992_v8 = vsel %vm5095_vm7, %v13960_v25, %v5864_v57  ;;  %v5865_v55 = vmul.f32 0.1, %v7143_v53  ;;  %v7144_v28 = vadd.f32 -1.0, %v11924_v36  ;;  %v13967_v33 = vld [vmem:[#allocation56_spill] sm:$0xff] }
 0x41d   :  { %6136 = vxpose.xlu1.b32.cont [11/16] %v5992_v8, 128  ;;  %v6038_v3 = vsel %vm5141_vm4, %v13961_v40, %v5910_v20  ;;  %v5911_v6 = vmul.f32 0.1, %v7189_v0  ;;  %v7190_v63 = vadd.f32 -1.0, %v13964_v23  ;;  %v12030_v38 = vadd.f32 %v11601_v45, %v11789_v21  ;;  %v13972_v40 = vld [vmem:[#allocation42_spill] sm:$0xff] }
 0x41e   :  { %v12032_v24 = vpop.eup %8176  ;;  %v5656_v49 = vmul.f32 1.442695, %v5427_v52  ;;  %6230 = vxpose.xlu0.b32.cont [9/16] %v6038_v3, 128  ;;  %vm5096_vm5 = vcmp.gt.f32.partialorder %v13967_v33, 0.0  ;;  %v5303_v57 = vmin.f32 %v12013_v22, 0.0  ;;  %v12038_v36 = vadd.f32 %v11601_v45, %v11808_v61 }
 0x41f   :  { %13965 = vst [vmem:[#allocation38_spill] sm:$0xff] %v12030_v38  ;;  %13966 = vst [vmem:[#allocation51_spill] sm:$0xff] %v12032_v24  ;;  %v12040_v53 = vpop.eup %8178  ;;  %vm5142_vm9 = vcmp.gt.f32.partialorder %v13968_v15, 0.0  ;;  %v5368_v20 = vmul.f32 10.0, %v5239_v30  ;;  %v5237_v21 = vmin.f32 %v12020_v14, 0.0  ;;  %v12046_v0 = vadd.f32 %v11601_v45, %v13969_v19 }
 0x420   :  { %v12048_v52 = vpop.eup %8180  ;;  %v5993_v25 = vsel %vm5096_vm5, %v13967_v33, %v5865_v55  ;;  %vm5097_vm10 = vcmp.gt.f32.partialorder %v13972_v40, 0.0  ;;  %v5866_v8 = vmul.f32 0.1, %v7144_v28  ;;  %v7145_v61 = vadd.f32 -1.0, %v11959_v50 }
 0x421   :  { %13970 = vst [vmem:[#allocation67_spill] sm:$0xff] %v12046_v0  ;;  %13971 = vst [vmem:[#allocation55_spill] sm:$0xff] %v12048_v52  ;;  %v12053_v3 = vpop.eup %8182  ;;  %6137 = vxpose.xlu1.b32.cont [12/16] %v5993_v25, 128  ;;  %v6039_v30 = vsel %vm5142_vm9, %v13968_v15, %v5911_v6  ;;  %v5912_v23 = vmul.f32 0.1, %v7190_v63  ;;  %v5301_v22 = vmin.f32 %v12030_v38, 0.0  ;;  %v7191_v19 = vadd.f32 -1.0, %v13973_v13 }
 0x422   :  { %8190 = vpow2.f32 %v5528_v9  ;;  %6231 = vxpose.xlu0.b32.cont [10/16] %v6039_v30, 128  ;;  %v5432_v52 = vmul.f32 10.0, %v5303_v57  ;;  %v5240_v55 = vmin.f32 %v12038_v36, 0.0  ;;  %v5538_v28 = vmul.f32 1.442695, %v5368_v20  ;;  %v13975_v63 = vld [vmem:[#allocation18_spill] sm:$0xff] }
 0x423   :  { %v12059_v33 = vpop.eup %8184  ;;  %8192 = vpow2.f32 %v5656_v49  ;;  %v5366_v50 = vmul.f32 10.0, %v5237_v21  ;;  %v5304_v54 = vmin.f32 %v12046_v0, 0.0  ;;  %v5994_v6 = vsel %vm5097_vm10, %v13972_v40, %v5866_v8  ;;  %v13976_v20 = vld [vmem:[#allocation58_spill] sm:$0xff]  ;;  %v13978_v40 = vld [vmem:[#allocation75_spill] sm:$0xff]  ;;  %v13979_v8 = vld [vmem:[#allocation80_spill] sm:$0xff] }
 0x424   :  { %13974 = vst [vmem:[#allocation44_spill] sm:$0xff] %v12059_v33  ;;  %vm5143_vm12 = vcmp.gt.f32.partialorder %v13975_v63, 0.0  ;;  %v5867_v15 = vmul.f32 0.1, %v7145_v61  ;;  %v7146_v13 = vadd.f32 -1.0, %v11900_v29  ;;  %v5430_v25 = vmul.f32 10.0, %v5301_v22 }
 0x425   :  { %v12067_v9 = vpop.eup %8186  ;;  %6138 = vxpose.xlu1.b32.cont [13/16] %v5994_v6, 128  ;;  %v6040_v57 = vsel %vm5143_vm12, %v13975_v63, %v5912_v23  ;;  %v5913_v49 = vmul.f32 0.1, %v7191_v19  ;;  %v7192_v21 = vadd.f32 -1.0, %v13976_v20  ;;  %v5666_v0 = vmul.f32 1.442695, %v5432_v52  ;;  %v13982_v19 = vld [vmem:[#allocation17_spill] sm:$0xff] }
 0x426   :  { %v12071_v30 = vpop.eup %8188  ;;  %6232 = vxpose.xlu0.b32.cont [11/16] %v6040_v57, 128  ;;  %v5369_v38 = vmul.f32 10.0, %v5240_v55  ;;  %vm5098_vm8 = vcmp.gt.f32.partialorder %v13978_v40, 0.0  ;;  %v12076_v61 = vadd.f32 %v11601_v45, %v13979_v8  ;;  %8194 = vpow2.f32 %v5538_v28  ;;  %v13983_v57 = vld [vmem:[#allocation19_spill] sm:$0xff]  ;;  %v13984_v28 = vld [vmem:[#allocation60_spill] sm:$0xff] }
 0x427   :  { %13977 = vst [vmem:[#allocation56_spill] sm:$0xff] %v12071_v30  ;;  %v5534_v29 = vmul.f32 1.442695, %v5366_v50  ;;  %v5433_v6 = vmul.f32 10.0, %v5304_v54  ;;  %v12080_v22 = vadd.f32 %v11601_v45, %v13980_v56  ;;  %v5995_v23 = vsel %vm5098_vm8, %v13978_v40, %v5867_v15  ;;  %v14000_v30 = vld [vmem:[#allocation66_spill] sm:$0xff]  ;;  %v12177_v33 = vld [vmem:[#allocation10] sm:$0xff] }
 0x428   :  { %vm5144_vm13 = vcmp.gt.f32.partialorder %v13982_v19, 0.0  ;;  %v5868_v63 = vmul.f32 0.1, %v7146_v13  ;;  %v7147_v52 = vadd.f32 -1.0, %v11948_v7  ;;  %vm5099_vm11 = vcmp.gt.f32.partialorder %v13983_v57, 0.0  ;;  %v13985_v13 = vld [vmem:[#allocation16_spill] sm:$0xff] }
 0x429   :  { %13981 = vst [vmem:[#allocation50_spill] sm:$0xff] %v12080_v22  ;;  %6139 = vxpose.xlu1.b32.cont [14/16] %v5995_v23, 128  ;;  %v6041_v55 = vsel %vm5144_vm13, %v13982_v19, %v5913_v49  ;;  %v5914_v20 = vmul.f32 0.1, %v7192_v21  ;;  %v7193_v50 = vadd.f32 -1.0, %v13984_v28  ;;  %8196 = vpow2.f32 %v5666_v0  ;;  %v13986_v23 = vld [vmem:[#allocation34_spill] sm:$0xff]  ;;  %v13987_v19 = vld [vmem:[#allocation52_spill] sm:$0xff] }
 0x42a   :  { %v5662_v54 = vmul.f32 1.442695, %v5430_v25  ;;  %6233 = vxpose.xlu0.b32.cont [12/16] %v6041_v55, 128  ;;  %v5238_v56 = vmin.f32 %v12076_v61, 0.0  ;;  %8198 = vpow2.f32 %v5534_v29  ;;  %v5540_v15 = vmul.f32 1.442695, %v5369_v38 }
 0x42b   :  { %v5302_v40 = vmin.f32 %v12080_v22, 0.0  ;;  %vm5145_vm15 = vcmp.gt.f32.partialorder %v13985_v13, 0.0  ;;  %v5996_v49 = vsel %vm5099_vm11, %v13983_v57, %v5868_v63  ;;  %v5869_v8 = vmul.f32 0.1, %v7147_v52  ;;  %v13990_v57 = vld [vmem:[#allocation72_spill] sm:$0xff] }
 0x42c   :  { %v12091_v7 = vpop.eup %8190  ;;  %v7196_v21 = vadd.f32 -1.0, %v13986_v23  ;;  %v7194_v28 = vadd.f32 -1.0, %v13987_v19  ;;  %v5668_v25 = vmul.f32 1.442695, %v5433_v6  ;;  %v6042_v29 = vsel %vm5145_vm15, %v13985_v13, %v5914_v20  ;;  %v13991_v20 = vld [vmem:[#allocation41_spill] sm:$0xff] }
 0x42d   :  { %v12096_v0 = vpop.eup %8192  ;;  %6140 = vxpose.xlu1.b32.cont [15/16] %v5996_v49, 128  ;;  %v5915_v38 = vmul.f32 0.1, %v7193_v50  ;;  %v12101_v55 = vadd.f32 %v11601_v45, %v11850_v37  ;;  %8200 = vpow2.f32 %v5662_v54  ;;  %v5367_v22 = vmul.f32 10.0, %v5238_v56  ;;  %v13992_v56 = vld [vmem:[#allocation36_spill] sm:$0xff]  ;;  %v13995_v19 = vld [vmem:[#allocation45_spill] sm:$0xff] }
 0x42e   :  { %13988 = vst [vmem:[#allocation76_spill] sm:$0xff] %v12096_v0  ;;  %6234 = vxpose.xlu0.b32.cont [13/16] %v6042_v29, 128  ;;  %v12105_v63 = vadd.f32 %v11601_v45, %v11843_v62  ;;  %v12109_v52 = vadd.f32 %v11601_v45, %v11861_v60  ;;  %8202 = vpow2.f32 %v5540_v15  ;;  %v5431_v6 = vmul.f32 10.0, %v5302_v40 }
 0x42f   :  { %vm5100_vm1 = vcmp.gt.f32.partialorder %v13990_v57, 0.0  ;;  %vm5146_vm14 = vcmp.gt.f32.partialorder %v13991_v20, 0.0  ;;  %v5918_v50 = vmul.f32 0.1, %v7196_v21  ;;  %v5916_v54 = vmul.f32 0.1, %v7194_v28 }
 0x430   :  { %13989 = vst [vmem:[#allocation42_spill] sm:$0xff] %v12105_v63  ;;  %v5997_v37 = vsel %vm5100_vm1, %v13990_v57, %v5869_v8  ;;  %v7197_v13 = vadd.f32 -1.0, %v13992_v56  ;;  %v12115_v49 = vpop.eup %8194  ;;  %8204 = vpow2.f32 %v5668_v25  ;;  %v6043_v62 = vsel %vm5146_vm14, %v13991_v20, %v5915_v38  ;;  %v13996_v28 = vld [vmem:[#allocation61_spill] sm:$0xff] }
 0x431   :  { %6141 = vxpose.xlu1.b32.end [16/16] %v5997_v37, 128  ;;  %v5243_v60 = vmin.f32 %v12101_v55, 0.0  ;;  %v12121_v15 = vadd.f32 %v11601_v45, %v11852_v10  ;;  %v5536_v40 = vmul.f32 1.442695, %v5367_v22  ;;  %v5307_v8 = vmin.f32 %v12105_v63, 0.0  ;;  %v13998_v10 = vld [vmem:[#allocation65_spill] sm:$0xff] }
 0x432   :  { %6235 = vxpose.xlu0.b32.cont [14/16] %v6043_v62, 128  ;;  %v5241_v23 = vmin.f32 %v12109_v52, 0.0  ;;  %v12127_v21 = vadd.f32 %v11601_v45, %v11867_v39  ;;  %vm5149_vm0 = vcmp.gt.f32.partialorder %v13995_v19, 0.0  ;;  %vm5147_vm2 = vcmp.gt.f32.partialorder %v13996_v28, 0.0 }
 0x433   :  { %13993 = vst [vmem:[#allocation48_spill] sm:$0xff] %v12121_v15  ;;  %v12133_v25 = vadd.f32 %v11601_v45, %v11863_v17  ;;  %v7195_v29 = vadd.f32 -1.0, %v13998_v10  ;;  %v12136_v22 = vpop.eup %8196  ;;  %v5664_v38 = vmul.f32 1.442695, %v5431_v6  ;;  %v6046_v57 = vsel %vm5149_vm0, %v13995_v19, %v5918_v50 }
 0x434   :  { %13994 = vst [vmem:[#allocation18_spill] sm:$0xff] %v12127_v21  ;;  %13999 = vst [vmem:[#allocation75_spill] sm:$0xff] %v12136_v22  ;;  %v6044_v20 = vsel %vm5147_vm2, %v13996_v28, %v5916_v54  ;;  %v5919_v37 = vmul.f32 0.1, %v7197_v13  ;;  %v12140_v39 = vpop.eup %8198  ;;  %v5372_v56 = vmul.f32 10.0, %v5243_v60  ;;  %v5305_v62 = vmin.f32 %v12121_v15, 0.0 }
 0x435   :  { %13997 = vst [vmem:[#allocation58_spill] sm:$0xff] %v12133_v25  ;;  %6254 = vxpose.xlu1.b32.start [1/16] %v6046_v57, 128  ;;  %v5917_v63 = vmul.f32 0.1, %v7195_v29  ;;  %v7198_v17 = vadd.f32 -1.0, %v14000_v30  ;;  %v5436_v0 = vmul.f32 10.0, %v5307_v8  ;;  %v5370_v10 = vmul.f32 10.0, %v5241_v23 }
 0x436   :  { %6236 = vxpose.xlu0.b32.cont [15/16] %v6044_v20, 128  ;;  %v5244_v22 = vmin.f32 %v12127_v21, 0.0  ;;  %v7148_v6 = vadd.f32 -1.0, %v11987_v12  ;;  %v5308_v50 = vmin.f32 %v12133_v25, 0.0  ;;  %v14001_v54 = vld [vmem:[#allocation57_spill] sm:$0xff]  ;;  %v14002_v13 = vld [vmem:[#allocation40_spill] sm:$0xff]  ;;  %v12151_v60 = vadd.f32 %v11601_v45, %v11882_v32 }
 0x437   :  { %vm5150_vm3 = vcmp.gt.f32.partialorder %v14001_v54, 0.0  ;;  %vm5148_vm6 = vcmp.gt.f32.partialorder %v14002_v13, 0.0  ;;  %v12153_v19 = vpop.eup %8200  ;;  %v12158_v8 = vadd.f32 %v11601_v45, %v11869_v27  ;;  %v5920_v23 = vmul.f32 0.1, %v7198_v17  ;;  %v14005_v12 = vld [vmem:[#allocation20_spill] sm:$0xff] }
 0x438   :  { %14003 = vst [vmem:[#allocation80_spill] sm:$0xff] %v12153_v19  ;;  %v6047_v30 = vsel %vm5150_vm3, %v14001_v54, %v5919_v37  ;;  %v7199_v28 = vadd.f32 -1.0, %v14005_v12  ;;  %v12161_v29 = vpop.eup %8202  ;;  %v5546_v57 = vmul.f32 1.442695, %v5372_v56  ;;  %v6045_v20 = vsel %vm5148_vm6, %v14002_v13, %v5917_v63  ;;  %v14007_v56 = vld [vmem:[#allocation43_spill] sm:$0xff] }
 0x439   :  { %14004 = vst [vmem:[#allocation77_spill] sm:$0xff] %v12158_v8  ;;  %6255 = vxpose.xlu1.b32.cont [2/16] %v6047_v30, 128  ;;  %v5870_v25 = vmul.f32 0.1, %v7148_v6  ;;  %v7149_v32 = vadd.f32 -1.0, %v12022_v46  ;;  %8206 = vpow2.f32 %v5536_v40  ;;  %v5434_v15 = vmul.f32 10.0, %v5305_v62 }
 0x43a   :  { %v5373_v19 = vmul.f32 10.0, %v5244_v22  ;;  %6237 = vxpose.xlu0.b32.end [16/16] %v6045_v20, 128  ;;  %vm5101_vm7 = vcmp.gt.f32.partialorder %v11859_v51, 0.0  ;;  %v12166_v37 = vpop.eup %8204  ;;  %8208 = vpow2.f32 %v5664_v38  ;;  %v5674_v17 = vmul.f32 1.442695, %v5436_v0 }
 0x43b   :  { %14006 = vst [vmem:[#allocation17_spill] sm:$0xff] %v12166_v37  ;;  %v5437_v54 = vmul.f32 10.0, %v5308_v50  ;;  %vm5151_vm4 = vcmp.gt.f32.partialorder %v14007_v56, 0.0  ;;  %v5242_v6 = vmin.f32 %v12151_v60, 0.0  ;;  %v5306_v46 = vmin.f32 %v12158_v8, 0.0 }
 0x43c   :  { %v7368_v45 = vpop.f32.mrb[48].mxu0  ;;  %v7432_v27 = vpop.f32.mrb[48].mxu1  ;;  %v6048_v40 = vsel %vm5151_vm4, %v14007_v56, %v5920_v23  ;;  %v5921_v13 = vmul.f32 0.1, %v7199_v28  ;;  %8210 = vpow2.f32 %v5546_v57  ;;  %v5542_v12 = vmul.f32 1.442695, %v5370_v10 }
 0x43d   :  { %v4750_v30 = vpop.f32.mrb[49].mxu0  ;;  %v5006_v63 = vpop.f32.mrb[49].mxu1  ;;  %6256 = vxpose.xlu1.b32.cont [3/16] %v6048_v40, 128  ;;  %v5998_v0 = vsel %vm5101_vm7, %v11859_v51, %v5870_v25  ;;  %v5871_v38 = vmul.f32 0.1, %v7149_v32  ;;  %v5670_v37 = vmul.f32 1.442695, %v5434_v15  ;;  %8212 = vpow2.f32 %v5674_v17 }
 0x43e   :  { %v7369_v22 = vpop.f32.mrb[50].mxu0  ;;  %v7433_v62 = vpop.f32.mrb[50].mxu1  ;;  %6158 = vxpose.xlu0.b32.start [1/16] %v5998_v0, 128  ;;  %v12182_v23 = vld [vmem:[%s13205_s4] ss:$0 sm:$0xff]  ;;  %vm5102_vm5 = vcmp.gt.f32.partialorder %v11898_v5, 0.0  ;;  %v14010_v25 = vld [vmem:[#allocation47_spill] sm:$0xff]  ;;  %8214 = vpow2.f32 %v5542_v12 }
 0x43f   :  { %v4753_v50 = vpop.f32.mrb[51].mxu0  ;;  %v12175_v20 = vpop.f32.mrb[51].mxu1  ;;  %v12185_v10 = vadd.f32 %v12182_v23, %v7368_v45  ;;  %v12188_v28 = vadd.f32 %v12182_v23, %v7432_v27  ;;  %v5548_v51 = vmul.f32 1.442695, %v5373_v19  ;;  %v5676_v15 = vmul.f32 1.442695, %v5437_v54 }
 0x440   :  { %v6110_v8 = vpop.trf.xlu0  ;;  %vm5152_vm9 = vcmp.gt.f32.partialorder %v14010_v25, 0.0  ;;  %v5371_v57 = vmul.f32 10.0, %v5242_v6  ;;  %v5435_v32 = vmul.f32 10.0, %v5306_v46  ;;  %v12193_v56 = vadd.f32 %v12182_v23, %v4750_v30  ;;  %v12196_v0 = vld [vmem:[#allocation10 + $0x8] sm:$0xff] }
 0x441   :  { %14008 = vst [vmem:[#allocation19_spill] sm:$0xff] %v12185_v10  ;;  %14009 = vst [vmem:[#allocation60_spill] sm:$0xff] %v12188_v28  ;;  %v6049_v40 = vsel %vm5152_vm9, %v14010_v25, %v5921_v13  ;;  %v6354_v45 = vmul.f32 %v12177_v33, %v6110_v8  ;;  %v12200_v27 = vadd.f32 %v12182_v23, %v5006_v63  ;;  %8216 = vpow2.f32 %v5670_v37  ;;  %v12214_v37 = vld [vmem:[#allocation10 + $0x10] sm:$0xff]  ;;  %v14016_v25 = vld [vmem:[#allocation24_spill] sm:$0xff] }
 0x442   :  { %6257 = vxpose.xlu1.b32.cont [4/16] %v6049_v40, 128  ;;  %v5999_v19 = vsel %vm5102_vm5, %v11898_v5, %v5871_v38  ;;  %v5247_v17 = vmin.f32 %v12185_v10, 0.0  ;;  %v5311_v54 = vmin.f32 %v12188_v28, 0.0  ;;  %8218 = vpow2.f32 %v5548_v51  ;;  %14013 = vst [vmem:[#allocation52_spill] sm:$0xff] %v12214_v37 }
 0x443   :  { %14011 = vst [vmem:[#allocation16_spill] sm:$0xff] %v12200_v27  ;;  %6159 = vxpose.xlu0.b32.cont [2/16] %v5999_v19, 128  ;;  %v12206_v6 = vadd.f32 %v12182_v23, %v7369_v22  ;;  %v12209_v8 = vpop.eup %8206  ;;  %8220 = vpow2.f32 %v5676_v15  ;;  %v5544_v63 = vmul.f32 1.442695, %v5371_v57  ;;  %v12211_v13 = vmul.f32 1.442695, %v5435_v32 }
 0x444   :  { %v6111_v30 = vpop.trf.xlu0  ;;  %v5245_v5 = vmin.f32 %v12193_v56, 0.0  ;;  %v12216_v12 = vpop.eup %8208  ;;  %v5309_v38 = vmin.f32 %v12200_v27, 0.0  ;;  %v12220_v51 = vadd.f32 %v12182_v23, %v7433_v62  ;;  %v7200_v40 = vadd.f32 -1.0, %v14016_v25  ;;  %v14017_v27 = vld [vmem:[#allocation82_spill] sm:$0xff] }
 0x445   :  { %14012 = vst [vmem:[#allocation34_spill] sm:$0xff] %v12206_v6  ;;  %v6355_v46 = vmul.f32 %v12196_v0, %v6111_v30  ;;  %14014 = vst [vmem:[#allocation72_spill] sm:$0xff] %v12216_v12  ;;  %v5376_v19 = vmul.f32 10.0, %v5247_v17  ;;  %v5440_v30 = vmul.f32 10.0, %v5311_v54  ;;  %v12224_v15 = vadd.f32 %v12182_v23, %v4753_v50  ;;  %v14019_v54 = vld [vmem:[#allocation74_spill] sm:$0xff] }
 0x446   :  { %14015 = vst [vmem:[#allocation41_spill] sm:$0xff] %v12220_v51  ;;  %v7150_v57 = vadd.f32 -1.0, %v11971_v34  ;;  %v12227_v28 = vpop.eup %8210  ;;  %v5248_v12 = vmin.f32 %v12206_v6, 0.0  ;;  %v5922_v26 = vmul.f32 0.1, %v7200_v40  ;;  %vm5103_vm10 = vcmp.gt.f32.partialorder %v14017_v27, 0.0 }
 0x447   :  { %v6386_v22 = vadd.f32 %v6355_v46, %v6354_v45  ;;  %v5374_v45 = vmul.f32 10.0, %v5245_v5  ;;  %v14018_v46 = vld [vmem:[#allocation54_spill] sm:$0xff]  ;;  %v7201_v25 = vadd.f32 -1.0, %v14019_v54  ;;  %v12236_v2 = vpop.eup %8212  ;;  %v5438_v34 = vmul.f32 10.0, %v5309_v38 }
 0x448   :  { %v6112_v32 = vpop.trf.xlu0  ;;  %vm5153_vm12 = vcmp.gt.f32.partialorder %v14018_v46, 0.0  ;;  %v5872_v17 = vmul.f32 0.1, %v7150_v57  ;;  %v12234_v50 = vld [vmem:[#allocation10 + $0x18] sm:$0xff]  ;;  %14021 = vst [vmem:[#allocation45_spill] sm:$0xff] %v12236_v2  ;;  %v7151_v40 = vadd.f32 -1.0, %v12000_v42  ;;  %v12242_v54 = vpop.eup %8214  ;;  %8222 = vpow2.f32 %v5544_v63 }
 0x449   :  { %v6356_v62 = vmul.f32 %v12214_v37, %v6112_v32  ;;  %14020 = vst [vmem:[#allocation36_spill] sm:$0xff] %v12234_v50  ;;  %v6050_v18 = vsel %vm5153_vm12, %v14018_v46, %v5922_v26  ;;  %v5554_v24 = vmul.f32 1.442695, %v5376_v19  ;;  %v5312_v6 = vmin.f32 %v12220_v51, 0.0  ;;  %v14027_v63 = vld [vmem:[#allocation53_spill] sm:$0xff] }
 0x44a   :  { %6258 = vxpose.xlu1.b32.cont [5/16] %v6050_v18, 128  ;;  %v6000_v5 = vsel %vm5103_vm10, %v14017_v27, %v5872_v17  ;;  %v5923_v32 = vmul.f32 0.1, %v7201_v25  ;;  %vm5104_vm8 = vcmp.gt.f32.partialorder %v11880_v47, 0.0  ;;  %v5873_v38 = vmul.f32 0.1, %v7151_v40  ;;  %v14024_v17 = vld [vmem:[#allocation63_spill] sm:$0xff] }
 0x44b   :  { %v6387_v59 = vadd.f32 %v6386_v22, %v6356_v62  ;;  %6160 = vxpose.xlu0.b32.cont [3/16] %v6000_v5, 128  ;;  %v14022_v22 = vld [vmem:[#allocation22_spill] sm:$0xff]  ;;  %v12247_v46 = vpop.eup %8216  ;;  %v5377_v18 = vmul.f32 10.0, %v5248_v12  ;;  %v5246_v27 = vmin.f32 %v12224_v15, 0.0  ;;  %vm5154_vm13 = vcmp.gt.f32.partialorder %v14024_v17, 0.0 }
 0x44c   :  { %v6113_v57 = vpop.trf.xlu0  ;;  %v7372_v58 = vpop.f32.mrb[52].mxu0  ;;  %v7202_v62 = vadd.f32 -1.0, %v14022_v22  ;;  %14023 = vst [vmem:[#allocation61_spill] sm:$0xff] %v12247_v46  ;;  %v7152_v25 = vadd.f32 -1.0, %v12053_v3  ;;  %v12258_v40 = vadd.f32 %v12182_v23, %v12175_v20  ;;  %v5682_v3 = vmul.f32 1.442695, %v5440_v30 }
 0x44d   :  { %v6357_v26 = vmul.f32 %v12234_v50, %v6113_v57  ;;  %v7436_v42 = vpop.f32.mrb[52].mxu1  ;;  %v4766_v19 = vpop.f32.mrb[53].mxu0  ;;  %v6051_v57 = vsel %vm5154_vm13, %v14024_v17, %v5923_v32  ;;  %v6001_v43 = vsel %vm5104_vm8, %v11880_v47, %v5873_v38  ;;  %8224 = vpow2.f32 %v12211_v13  ;;  %v12277_v38 = vld [vmem:[#allocation10 + $0x20] sm:$0xff] }
 0x44e   :  { %v5022_v51 = vpop.f32.mrb[53].mxu1  ;;  %v12252_v5 = vpop.f32.mrb[54].mxu0  ;;  %14025 = vst [vmem:[#allocation65_spill] sm:$0xff] %v12258_v40  ;;  %v5924_v46 = vmul.f32 0.1, %v7202_v62  ;;  %6259 = vxpose.xlu1.b32.cont [6/16] %v6051_v57, 128  ;;  %vm5105_vm11 = vcmp.gt.f32.partialorder %v11931_v44, 0.0  ;;  %8226 = vpow2.f32 %v5554_v24  ;;  %v12284_v24 = vadd.f32 %v12182_v23, %v7436_v42 }
 0x44f   :  { %v12254_v2 = vpop.eup %8218  ;;  %v6388_v22 = vadd.f32 %v6387_v59, %v6357_v26  ;;  %v12261_v12 = vpop.f32.mrb[54].mxu1  ;;  %v5874_v37 = vmul.f32 0.1, %v7152_v25  ;;  %v5550_v59 = vmul.f32 1.442695, %v5374_v45  ;;  %6161 = vxpose.xlu0.b32.cont [4/16] %v6001_v43, 128  ;;  %v5441_v26 = vmul.f32 10.0, %v5312_v6 }
 0x450   :  { %v12263_v50 = vpop.f32.mrb[55].mxu0  ;;  %v12265_v10 = vpop.eup %8220  ;;  %v5678_v32 = vmul.f32 1.442695, %v5438_v34  ;;  %v5375_v62 = vmul.f32 10.0, %v5246_v27  ;;  %vm5155_vm15 = vcmp.gt.f32.partialorder %v14027_v63, 0.0  ;;  %v5310_v17 = vmin.f32 %v12258_v40, 0.0 }
 0x451   :  { %14026 = vst [vmem:[#allocation66_spill] sm:$0xff] %v12265_v10  ;;  %v6114_v20 = vpop.trf.xlu0  ;;  %v12270_v21 = vpop.f32.mrb[55].mxu1  ;;  %v5556_v30 = vmul.f32 1.442695, %v5377_v18  ;;  %v6052_v47 = vsel %vm5155_vm15, %v14027_v63, %v5924_v46  ;;  %14028 = vst [vmem:[#allocation57_spill] sm:$0xff] %v12277_v38  ;;  %8228 = vpow2.f32 %v5682_v3  ;;  %v6002_v13 = vsel %vm5105_vm11, %v11931_v44, %v5874_v37  ;;  %v12286_v34 = vld [vmem:[#allocation10 + $0x28] sm:$0xff] }
 0x452   :  { %6260 = vxpose.xlu1.b32.cont [7/16] %v6052_v47, 128  ;;  %v12281_v43 = vadd.f32 %v12182_v23, %v7372_v58  ;;  %8230 = vpow2.f32 %v5550_v59  ;;  %v6389_v6 = vrot.slane %v6388_v22, 4  ;;  %14030 = vst [vmem:[#allocation20_spill] sm:$0xff] %v12284_v24  ;;  %14031 = vst [vmem:[#allocation43_spill] sm:$0xff] %v12286_v34  ;;  %v5684_v46 = vmul.f32 1.442695, %v5441_v26  ;;  %v14032_v27 = vld [vmem:[#allocation71_spill] sm:$0xff] }
 0x453   :  { %6162 = vxpose.xlu0.b32.cont [5/16] %v6002_v13, 128  ;;  %8232 = vpow2.f32 %v5678_v32  ;;  %v6491_v18 = vmul.f32 %v12277_v38, %v6114_v20  ;;  %v7203_v25 = vadd.f32 -1.0, %v14032_v27  ;;  %v5552_v44 = vmul.f32 1.442695, %v5375_v62  ;;  %v14034_v20 = vld [vmem:[#allocation59_spill] sm:$0xff]  ;;  %v12299_v62 = vpop.eup %8222  ;;  %v14038_v27 = vld [vmem:[#allocation81_spill] sm:$0xff] }
 0x454   :  { %14029 = vst [vmem:[#allocation40_spill] sm:$0xff] %v12281_v43  ;;  %8234 = vpow2.f32 %v5556_v30  ;;  %v5439_v37 = vmul.f32 10.0, %v5310_v17  ;;  %v12291_v58 = vadd.f32 %v12182_v23, %v4766_v19  ;;  %v5251_v57 = vmin.f32 %v12281_v43, 0.0  ;;  %v14042_v10 = vld [vmem:[#allocation85_spill] sm:$0xff] }
 0x455   :  { %v6115_v45 = vpop.trf.xlu0  ;;  %v5925_v3 = vmul.f32 0.1, %v7203_v25  ;;  %v7153_v42 = vadd.f32 -1.0, %v12091_v7  ;;  %v6390_v32 = vadd.f32 %v6389_v6, %v6388_v22  ;;  %v5315_v26 = vmin.f32 %v12284_v24, 0.0  ;;  %v12307_v22 = vld [vmem:[#allocation10 + $0x30] sm:$0xff] }
 0x456   :  { %14033 = vst [vmem:[#allocation47_spill] sm:$0xff] %v12291_v58  ;;  %v6492_v59 = vmul.f32 %v12286_v34, %v6115_v45  ;;  %vm5156_vm1 = vcmp.gt.f32.partialorder %v14034_v20, 0.0  ;;  %vm5106_vm14 = vcmp.gt.f32.partialorder %v11969_v1, 0.0  ;;  %v12302_v19 = vadd.f32 %v12182_v23, %v5022_v51  ;;  %14037 = vst [vmem:[#allocation54_spill] sm:$0xff] %v12307_v22 }
 0x457   :  { %v6053_v30 = vsel %vm5156_vm1, %v14034_v20, %v5925_v3  ;;  %v5875_v17 = vmul.f32 0.1, %v7153_v42  ;;  %v12305_v7 = vpop.eup %8224  ;;  %8236 = vpow2.f32 %v5684_v46  ;;  %v5680_v13 = vmul.f32 1.442695, %v5439_v37  ;;  %v12317_v37 = vld [vmem:[#allocation10 + $0x38] sm:$0xff] }
 0x458   :  { %14035 = vst [vmem:[#allocation24_spill] sm:$0xff] %v12302_v19  ;;  %v6523_v47 = vadd.f32 %v6492_v59, %v6491_v18  ;;  %14036 = vst [vmem:[#allocation82_spill] sm:$0xff] %v12305_v7  ;;  %6261 = vxpose.xlu1.b32.cont [8/16] %v6053_v30, 128  ;;  %8238 = vpow2.f32 %v5552_v44  ;;  %v5249_v45 = vmin.f32 %v12291_v58, 0.0  ;;  %v7204_v25 = vadd.f32 -1.0, %v14038_v27  ;;  %v12314_v3 = vpop.eup %8226 }
 0x459   :  { %v6116_v63 = vpop.trf.xlu0  ;;  %v6003_v6 = vsel %vm5106_vm14, %v11969_v1, %v5875_v17  ;;  %v6391_v18 = vrot.slane %v6390_v32, 2  ;;  %v5380_v42 = vmul.f32 10.0, %v5251_v57  ;;  %v5444_v59 = vmul.f32 10.0, %v5315_v26  ;;  %14039 = vst [vmem:[#allocation74_spill] sm:$0xff] %v12317_v37 }
 0x45a   :  { %6163 = vxpose.xlu0.b32.cont [6/16] %v6003_v6, 128  ;;  %v7154_v46 = vadd.f32 -1.0, %v12040_v53  ;;  %v5313_v30 = vmin.f32 %v12302_v19, 0.0  ;;  %v5926_v17 = vmul.f32 0.1, %v7204_v25  ;;  %vm5107_vm0 = vcmp.gt.f32.partialorder %v11918_v41, 0.0  ;;  %v14041_v6 = vld [vmem:[#allocation70_spill] sm:$0xff] }
 0x45b   :  { %v12323_v1 = vpop.eup %8228  ;;  %v6493_v27 = vmul.f32 %v12307_v22, %v6116_v63  ;;  %8240 = vpow2.f32 %v5680_v13  ;;  %vm5157_vm2 = vcmp.gt.f32.partialorder %v14041_v6, 0.0  ;;  %v7205_v7 = vadd.f32 -1.0, %v14042_v10 }
 0x45c   :  { %v12312_v24 = vpop.f32.mrb[56].mxu0  ;;  %v12319_v44 = vpop.f32.mrb[56].mxu1  ;;  %14040 = vst [vmem:[#allocation22_spill] sm:$0xff] %v12323_v1  ;;  %v5876_v40 = vmul.f32 0.1, %v7154_v46  ;;  %v5378_v43 = vmul.f32 10.0, %v5249_v45  ;;  %v12344_v63 = vadd.f32 %v12182_v23, %v12252_v5  ;;  %v6054_v22 = vsel %vm5157_vm2, %v14041_v6, %v5926_v17 }
 0x45d   :  { %v6117_v51 = vpop.trf.xlu0  ;;  %v12321_v20 = vpop.f32.mrb[57].mxu0  ;;  %v6524_v34 = vadd.f32 %v6523_v47, %v6493_v27  ;;  %v6392_v10 = vadd.f32 %v6391_v18, %v6390_v32  ;;  %6262 = vxpose.xlu1.b32.cont [9/16] %v6054_v22, 128  ;;  %v5927_v45 = vmul.f32 0.1, %v7205_v7  ;;  %v7155_v58 = vadd.f32 -1.0, %v12067_v9  ;;  %v14047_v32 = vld [vmem:[#allocation25_spill] sm:$0xff]  ;;  %v14048_v18 = vld [vmem:[#allocation78_spill] sm:$0xff] }
 0x45e   :  { %v12328_v57 = vpop.f32.mrb[57].mxu1  ;;  %v12330_v26 = vpop.f32.mrb[58].mxu0  ;;  %14044 = vst [vmem:[#allocation53_spill] sm:$0xff] %v12344_v63  ;;  %v5562_v5 = vmul.f32 1.442695, %v5380_v42  ;;  %v12359_v17 = vadd.f32 %v12182_v23, %v12261_v12  ;;  %vm5108_vm3 = vcmp.gt.f32.partialorder %v11946_v11, 0.0  ;;  %v6494_v47 = vmul.f32 %v12317_v37, %v6117_v51 }
 0x45f   :  { %v12332_v53 = vpop.eup %8230  ;;  %v12336_v1 = vpop.f32.mrb[58].mxu1  ;;  %v5442_v27 = vmul.f32 10.0, %v5313_v30  ;;  %vm5158_vm6 = vcmp.gt.f32.partialorder %v14047_v32, 0.0  ;;  %v5877_v22 = vmul.f32 0.1, %v7155_v58  ;;  %v7206_v6 = vadd.f32 -1.0, %v14048_v18 }
 0x460   :  { %v12338_v19 = vpop.f32.mrb[59].mxu0  ;;  %v12340_v25 = vpop.eup %8232  ;;  %14046 = vst [vmem:[#allocation59_spill] sm:$0xff] %v12359_v17  ;;  %v6055_v9 = vsel %vm5158_vm6, %v14047_v32, %v5927_v45  ;;  %v7156_v7 = vadd.f32 -1.0, %v12140_v39  ;;  %v12372_v51 = vadd.f32 %v12182_v23, %v12263_v50  ;;  %v5690_v37 = vmul.f32 1.442695, %v5444_v59  ;;  %v14051_v32 = vld [vmem:[#allocation68_spill] sm:$0xff] }
 0x461   :  { %14043 = vst [vmem:[#allocation63_spill] sm:$0xff] %v12340_v25  ;;  %v12347_v13 = vpop.trf.xlu0  ;;  %v12349_v38 = vpop.f32.mrb[59].mxu1  ;;  %v6004_v25 = vsel %vm5107_vm0, %v11918_v41, %v5876_v40  ;;  %v5252_v41 = vmin.f32 %v12344_v63, 0.0  ;;  %v6525_v40 = vadd.f32 %v6524_v34, %v6494_v47  ;;  %6263 = vxpose.xlu1.b32.cont [10/16] %v6055_v9, 128  ;;  %v6005_v58 = vsel %vm5108_vm3, %v11946_v11, %v5877_v22 }
 0x462   :  { %v12351_v46 = vpop.eup %8234  ;;  %6164 = vxpose.xlu0.b32.cont [7/16] %v6004_v25, 128  ;;  %v6393_v25 = vrot.slane %v6392_v10, 1  ;;  %14050 = vst [vmem:[#allocation70_spill] sm:$0xff] %v12372_v51  ;;  %v5928_v30 = vmul.f32 0.1, %v7206_v6  ;;  %vm5109_vm7 = vcmp.gt.f32.partialorder %v12020_v14, 0.0  ;;  %8242 = vpow2.f32 %v5562_v5 }
 0x463   :  { %14045 = vst [vmem:[#allocation71_spill] sm:$0xff] %v12351_v46  ;;  %v12368_v42 = vpop.eup %8236  ;;  %v6526_v45 = vrot.slane %v6525_v40, 4  ;;  %v5878_v39 = vmul.f32 0.1, %v7156_v7  ;;  %v5558_v34 = vmul.f32 1.442695, %v5378_v43  ;;  %v12388_v5 = vadd.f32 %v12182_v23, %v12270_v21 }
 0x464   :  { %14049 = vst [vmem:[#allocation81_spill] sm:$0xff] %v12368_v42  ;;  %v12375_v18 = vpop.eup %8238  ;;  %v5316_v47 = vmin.f32 %v12359_v17, 0.0  ;;  %vm5159_vm4 = vcmp.gt.f32.partialorder %v14051_v32, 0.0  ;;  %v5686_v50 = vmul.f32 1.442695, %v5442_v27  ;;  %v5381_v42 = vmul.f32 10.0, %v5252_v41 }
 0x465   :  { %v6119_v12 = vpop.trf.xlu0  ;;  %v6527_v9 = vadd.f32 %v6526_v45, %v6525_v40  ;;  %v6056_v11 = vsel %vm5159_vm4, %v14051_v32, %v5928_v30  ;;  %v12383_v6 = vpop.eup %8240  ;;  %v6394_v59 = vadd.f32 %v6393_v25, %v6392_v10  ;;  %14053 = vst [vmem:[#allocation25_spill] sm:$0xff] %v12388_v5  ;;  %v6006_v43 = vsel %vm5109_vm7, %v12020_v14, %v5878_v39  ;;  %v12396_v27 = vld [vmem:[%s13207_s6] ss:$0 sm:$0xff]  ;;  %v12398_v10 = vld [vmem:[#allocation10 + $0x40] sm:$0xff] }
 0x466   :  { %6165 = vxpose.xlu0.b32.cont [8/16] %v6005_v58, 128  ;;  %14052 = vst [vmem:[#allocation85_spill] sm:$0xff] %v12383_v6  ;;  %v5250_v58 = vmin.f32 %v12372_v51, 0.0  ;;  %6264 = vxpose.xlu1.b32.cont [11/16] %v6056_v11, 128  ;;  %14054 = vst [vmem:[#allocation78_spill] sm:$0xff] %v12396_v27  ;;  %8244 = vpow2.f32 %v5690_v37  ;;  %v5445_v40 = vmul.f32 10.0, %v5316_v47  ;;  %v5564_v21 = vmul.f32 1.442695, %v5381_v42 }
 0x467   :  { %v6528_v41 = vrot.slane %v6527_v9, 2  ;;  %14055 = vst [vmem:[#allocation68_spill] sm:$0xff] %v12398_v10  ;;  %8246 = vpow2.f32 %v5558_v34  ;;  %v14056_v25 = vld [vmem:[#allocation83_spill] sm:$0xff]  ;;  %v12401_v45 = vld [vmem:[#allocation10 + $0x48] sm:$0xff]  ;;  %v6463_v32 = vadd.f32 %v12396_v27, %v6394_v59  ;;  %v5314_v11 = vmin.f32 %v12388_v5, 0.0 }
 0x468   :  { %8248 = vpow2.f32 %v5686_v50  ;;  %v7207_v30 = vadd.f32 -1.0, %v14056_v25  ;;  %14057 = vst [vmem:[#allocation83_spill] sm:$0xff] %v12401_v45  ;;  %v5379_v37 = vmul.f32 10.0, %v5250_v58  ;;  %v6652_v34 = vmul.f32 %v12398_v10, %v12347_v13  ;;  %v12427_v13 = vld [vmem:[%s13207_s6 + $0x1] ss:$0 sm:$0xff]  ;;  %v14060_v17 = vld [vmem:[#allocation35_spill] sm:$0xff] }
 0x469   :  { %v12381_v22 = vpop.trf.xlu0  ;;  %v6529_v7 = vadd.f32 %v6528_v41, %v6527_v9  ;;  %v12417_v9 = vadd.f32 %v12182_v23, %v12312_v24  ;;  %v7157_v41 = vadd.f32 -1.0, %v12209_v8  ;;  %v12431_v58 = vadd.f32 %v12182_v23, %v12321_v20 }
 0x46a   :  { %6166 = vxpose.xlu0.b32.cont [9/16] %v6006_v43, 128  ;;  %v5929_v43 = vmul.f32 0.1, %v7207_v30  ;;  %vm5160_vm5 = vcmp.gt.f32.partialorder %v14060_v17, 0.0  ;;  %vm5110_vm9 = vcmp.gt.f32.partialorder %v12076_v61, 0.0  ;;  %v6653_v24 = vmul.f32 %v12401_v45, %v6119_v12  ;;  %v12451_v45 = vld [vmem:[#allocation10 + $0x50] sm:$0xff] }
 0x46b   :  { %v6530_v50 = vrot.slane %v6529_v7, 1  ;;  %v5879_v10 = vmul.f32 0.1, %v7157_v41  ;;  %8250 = vpow2.f32 %v5564_v21  ;;  %v12449_v12 = vmul.f32 1.442695, %v5445_v40 }
 0x46c   :  { %v12405_v39 = vpop.f32.mrb[60].mxu0  ;;  %v12411_v47 = vpop.f32.mrb[60].mxu1  ;;  %v6057_v6 = vsel %vm5160_vm5, %v14060_v17, %v5929_v43  ;;  %v5560_v46 = vmul.f32 1.442695, %v5379_v37  ;;  %v5255_v43 = vmin.f32 %v12417_v9, 0.0  ;;  %v5253_v41 = vmin.f32 %v12431_v58, 0.0 }
 0x46d   :  { %v12403_v14 = vpop.trf.xlu0  ;;  %14058 = vst [vmem:[#allocation90_spill] sm:$0xff] %v12411_v47  ;;  %v12413_v42 = vpop.f32.mrb[61].mxu0  ;;  %v14062_v47 = vld [vmem:[#allocation26_spill] sm:$0xff]  ;;  %14064 = vst [vmem:[#allocation92_spill] sm:$0xff] %v12449_v12  ;;  %6265 = vxpose.xlu1.b32.cont [12/16] %v6057_v6, 128  ;;  %v12461_v40 = vadd.f32 %v12182_v23, %v12330_v26  ;;  %v7208_v6 = vadd.f32 -1.0, %v11933_v48  ;;  %v14066_v37 = vld [vmem:[#allocation37_spill] sm:$0xff]  ;;  %v12476_v26 = vadd.f32 %v12182_v23, %v12338_v19 }
 0x46e   :  { %v12420_v25 = vpop.f32.mrb[61].mxu1  ;;  %v12422_v59 = vpop.f32.mrb[62].mxu0  ;;  %v6616_v5 = vrot.slane %v14062_v47, 1  ;;  %v6471_v51 = vmul.f32 %v14062_v47, %v6463_v32  ;;  %vm5161_vm10 = vcmp.gt.f32.partialorder %v14066_v37, 0.0  ;;  %vm5111_vm12 = vcmp.gt.f32.partialorder %v12005_v31, 0.0 }
 0x46f   :  { %14059 = vst [vmem:[#allocation91_spill] sm:$0xff] %v12420_v25  ;;  %v12436_v8 = vpop.f32.mrb[62].mxu1  ;;  %v12438_v30 = vpop.f32.mrb[63].mxu0  ;;  %v6531_v25 = vadd.f32 %v6530_v50, %v6529_v7  ;;  %v5443_v7 = vmul.f32 10.0, %v5314_v11  ;;  %v6007_v50 = vsel %vm5110_vm9, %v12076_v61, %v5879_v10  ;;  %v7158_v11 = vadd.f32 -1.0, %v12115_v49 }
 0x470   :  { %14061 = vst [vmem:[#allocation35_spill] sm:$0xff] %v12436_v8  ;;  %v12444_v20 = vpop.f32.mrb[63].mxu1  ;;  %v12446_v63 = vpop.eup %8242  ;;  %v6684_v8 = vadd.f32 %v6653_v24, %v6652_v34  ;;  %6167 = vxpose.xlu0.b32.cont [10/16] %v6007_v50, 128  ;;  %v6654_v61 = vmul.f32 %v12451_v45, %v12381_v22  ;;  %v7209_v48 = vadd.f32 -1.0, %v11963_v35  ;;  %v5256_v12 = vmin.f32 %v12461_v40, 0.0 }
 0x471   :  { %v12442_v27 = vpop.trf.xlu0  ;;  %14063 = vst [vmem:[#allocation26_spill] sm:$0xff] %v12444_v20  ;;  %v6600_v17 = vadd.f32 %v12427_v13, %v6531_v25  ;;  %v12464_v21 = vpop.eup %8244  ;;  %v5930_v25 = vmul.f32 0.1, %v7208_v6  ;;  %v5688_v49 = vmul.f32 1.442695, %v5443_v7  ;;  %v12488_v20 = vadd.f32 %v12182_v23, %v12319_v44 }
 0x472   :  { %14065 = vst [vmem:[#allocation93_spill] sm:$0xff] %v12464_v21  ;;  %v12472_v34 = vpop.eup %8246  ;;  %v5880_v22 = vmul.f32 0.1, %v7158_v11  ;;  %v6685_v50 = vadd.f32 %v6684_v8, %v6654_v61  ;;  %v5384_v21 = vmul.f32 10.0, %v5255_v43  ;;  %v5931_v6 = vmul.f32 0.1, %v7209_v48 }
 0x473   :  { %v6632_v32 = vmul.f32 %v6616_v5, %v6600_v17  ;;  %v12480_v5 = vld [vmem:[#allocation10 + $0x58] sm:$0xff]  ;;  %v12482_v24 = vpop.eup %8248  ;;  %14068 = vst [vmem:[#allocation94_spill] sm:$0xff] %v12488_v20  ;;  %v6058_v19 = vsel %vm5161_vm10, %v14066_v37, %v5930_v25  ;;  %v7159_v7 = vadd.f32 -1.0, %v12161_v29  ;;  %v5382_v44 = vmul.f32 10.0, %v5253_v41  ;;  %v14070_v48 = vld [vmem:[#allocation21_spill] sm:$0xff] }
 0x474   :  { %14067 = vst [vmem:[#allocation37_spill] sm:$0xff] %v12482_v24  ;;  %6266 = vxpose.xlu1.b32.cont [13/16] %v6058_v19, 128  ;;  %v6655_v8 = vmul.f32 %v12480_v5, %v12403_v14  ;;  %vm5112_vm8 = vcmp.gt.f32.partialorder %v12038_v36, 0.0  ;;  %v7210_v37 = vadd.f32 -1.0, %v11910_v16  ;;  %v14069_v11 = vld [vmem:[#allocation79_spill] sm:$0xff]  ;;  %vm5163_vm11 = vcmp.gt.f32.partialorder %v14070_v48, 0.0 }
 0x475   :  { %v12470_v10 = vpop.trf.xlu0  ;;  %v12484_v17 = vadd.f32 %v6632_v32, %v6471_v51  ;;  %v12493_v35 = vpop.trf.xlu1  ;;  %v6008_v51 = vsel %vm5111_vm12, %v12005_v31, %v5880_v22  ;;  %v5254_v32 = vmin.f32 %v12476_v26, 0.0  ;;  %vm5162_vm13 = vcmp.gt.f32.partialorder %v14069_v11, 0.0 }
 0x476   :  { %6168 = vxpose.xlu0.b32.cont [11/16] %v6008_v51, 128  ;;  %v5881_v61 = vmul.f32 0.1, %v7159_v7  ;;  %v6686_v25 = vadd.f32 %v6685_v50, %v6655_v8  ;;  %v7160_v31 = vadd.f32 -1.0, %v12242_v54  ;;  %v12507_v29 = vpop.eup %8250  ;;  %v6059_v14 = vsel %vm5162_vm13, %v14069_v11, %v5931_v6 }
 0x477   :  { %v5932_v41 = vmul.f32 0.1, %v7210_v37  ;;  %v12513_v22 = vadd.f32 %v12182_v23, %v12405_v39  ;;  %v12520_v54 = vadd.f32 %v12182_v23, %v12413_v42  ;;  %v5319_v6 = vmin.f32 %v12488_v20, 0.0 }
 0x478   :  { %6267 = vxpose.xlu1.b32.cont [14/16] %v6059_v14, 128  ;;  %v6009_v16 = vsel %vm5112_vm8, %v12038_v36, %v5881_v61  ;;  %v6687_v51 = vrot.slane %v6686_v25, 4  ;;  %v5882_v50 = vmul.f32 0.1, %v7160_v31  ;;  %v12527_v8 = vadd.f32 %v12182_v23, %v12328_v57 }
 0x479   :  { %v12500_v43 = vpop.trf.xlu0  ;;  %v12515_v19 = vpop.trf.xlu1  ;;  %vm5113_vm15 = vcmp.gt.f32.partialorder %v12109_v52, 0.0  ;;  %v5259_v39 = vmin.f32 %v12513_v22, 0.0  ;;  %8252 = vpow2.f32 %v5560_v46  ;;  %v5570_v36 = vmul.f32 1.442695, %v5384_v21  ;;  %v12541_v21 = vld [vmem:[#allocation10 + $0x60] sm:$0xff] }
 0x47a   :  { %14071 = vst [vmem:[#allocation79_spill] sm:$0xff] %v12527_v8  ;;  %6169 = vxpose.xlu0.b32.cont [12/16] %v6009_v16, 128  ;;  %v5385_v37 = vmul.f32 10.0, %v5256_v12  ;;  %v6688_v11 = vadd.f32 %v6687_v51, %v6686_v25  ;;  %v5566_v61 = vmul.f32 1.442695, %v5382_v44  ;;  %v5383_v42 = vmul.f32 10.0, %v5254_v32  ;;  %v12554_v51 = vld [vmem:[#allocation10 + $0x68] sm:$0xff] }
 0x47b   :  { %v6060_v31 = vsel %vm5163_vm11, %v14070_v48, %v5932_v41  ;;  %v12536_v14 = vadd.f32 %v12182_v23, %v12422_v59  ;;  %8254 = vpow2.f32 %v5688_v49  ;;  %v6010_v46 = vsel %vm5113_vm15, %v12109_v52, %v5882_v50 }
 0x47c   :  { %v6689_v16 = vrot.slane %v6688_v11, 2  ;;  %6268 = vxpose.xlu1.b32.cont [15/16] %v6060_v31, 128  ;;  %v5257_v12 = vmin.f32 %v12520_v54, 0.0  ;;  %v12546_v32 = vmul.f32 10.0, %v5319_v6  ;;  %v5317_v25 = vmin.f32 %v12527_v8, 0.0 }
 0x47d   :  { %v12522_v7 = vpop.trf.xlu0  ;;  %14072 = vst [vmem:[#allocation21_spill] sm:$0xff] %v12536_v14  ;;  %v12538_v57 = vpop.trf.xlu1  ;;  %v12551_v59 = vadd.f32 %v12182_v23, %v12336_v1  ;;  %v5388_v49 = vmul.f32 10.0, %v5259_v39  ;;  %8256 = vpow2.f32 %v5570_v36  ;;  %v5572_v48 = vmul.f32 1.442695, %v5385_v37 }
 0x47e   :  { %14073 = vst [vmem:[#allocation95_spill] sm:$0xff] %v12546_v32  ;;  %6170 = vxpose.xlu0.b32.cont [13/16] %v6010_v46, 128  ;;  %v6690_v41 = vadd.f32 %v6689_v16, %v6688_v11  ;;  %v7211_v52 = vadd.f32 -1.0, %v11956_v4  ;;  %8258 = vpow2.f32 %v5566_v61  ;;  %v5568_v50 = vmul.f32 1.442695, %v5383_v42  ;;  %v12567_v4 = vld [vmem:[%s13207_s6 + $0x2] ss:$0 sm:$0xff] }
 0x47f   :  { %v6805_v6 = vmul.f32 %v12541_v21, %v12442_v27  ;;  %v5260_v31 = vmin.f32 %v12536_v14, 0.0  ;;  %v6769_v1 = vrot.slane %v14062_v47, 2  ;;  %v5386_v39 = vmul.f32 10.0, %v5257_v12  ;;  %14074 = vst [vmem:[#allocation96_spill] sm:$0xff] %v12567_v4  ;;  %v14075_v61 = vld [vmem:[#allocation73_spill] sm:$0xff] }
 0x480   :  { %v6691_v46 = vrot.slane %v6690_v41, 1  ;;  %v5933_v36 = vmul.f32 0.1, %v7211_v52  ;;  %v5578_v11 = vmul.f32 1.442695, %v5388_v49  ;;  %vm5164_vm1 = vcmp.gt.f32.partialorder %v14075_v61, 0.0 }
 0x481   :  { %v12544_v44 = vpop.trf.xlu0  ;;  %v12559_v20 = vpop.trf.xlu1  ;;  %v7161_v27 = vadd.f32 -1.0, %v12299_v62  ;;  %v6806_v42 = vmul.f32 %v12554_v51, %v12470_v10  ;;  %vm5114_vm14 = vcmp.gt.f32.partialorder %v12151_v60, 0.0  ;;  %v12577_v12 = vadd.f32 %v12182_v23, %v12438_v30 }
 0x482   :  { %v6692_v16 = vadd.f32 %v6691_v46, %v6690_v41  ;;  %v6061_v8 = vsel %vm5164_vm1, %v14075_v61, %v5933_v36  ;;  %8260 = vpow2.f32 %v5572_v48  ;;  %v5389_v52 = vmul.f32 10.0, %v5260_v31  ;;  %v12587_v46 = vld [vmem:[#allocation10 + $0x70] sm:$0xff] }
 0x483   :  { %6269 = vxpose.xlu1.b32.end [16/16] %v6061_v8, 128  ;;  %v5883_v49 = vmul.f32 0.1, %v7161_v27  ;;  %v6837_v32 = vadd.f32 %v6806_v42, %v6805_v6  ;;  %v12581_v62 = vpop.eup %8252  ;;  %v12583_v14 = vmul.f32 10.0, %v5317_v25  ;;  %8262 = vpow2.f32 %v5568_v50 }
 0x484   :  { %v6761_v10 = vadd.f32 %v12567_v4, %v6692_v16  ;;  %v5258_v41 = vmin.f32 %v12577_v12, 0.0  ;;  %8264 = vpow2.f32 %v5578_v11  ;;  %v5574_v48 = vmul.f32 1.442695, %v5386_v39 }
 0x485   :  { %v12562_v37 = vpop.trf.xlu0  ;;  %v12579_v24 = vpop.trf.xlu1  ;;  %14076 = vst [vmem:[#allocation73_spill] sm:$0xff] %v12583_v14  ;;  %v6011_v8 = vsel %vm5114_vm14, %v12151_v60, %v5883_v49  ;;  %v7164_v6 = vadd.f32 -1.0, %v12332_v53  ;;  %vm5117_vm0 = vcmp.gt.f32.partialorder %v12193_v56, 0.0  ;;  %v7162_v36 = vadd.f32 -1.0, %v12227_v28 }
 0x486   :  { %v12595_v31 = vpop.eup %8254  ;;  %v6785_v25 = vmul.f32 %v6769_v1, %v6761_v10  ;;  %6171 = vxpose.xlu0.b32.cont [14/16] %v6011_v8, 128  ;;  %v5387_v50 = vmul.f32 10.0, %v5258_v41  ;;  %v5580_v61 = vmul.f32 1.442695, %v5389_v52  ;;  %vm5115_vm2 = vcmp.gt.f32.partialorder %v12101_v55, 0.0  ;;  %v12619_v8 = vld [vmem:[#allocation10 + $0x78] sm:$0xff] }
 0x487   :  { %14077 = vst [vmem:[#allocation97_spill] sm:$0xff] %v12595_v31  ;;  %v5886_v27 = vmul.f32 0.1, %v7164_v6  ;;  %v6807_v39 = vmul.f32 %v12587_v46, %v12500_v43  ;;  %v12604_v60 = vpop.eup %8256  ;;  %v5884_v42 = vmul.f32 0.1, %v7162_v36  ;;  %v7165_v16 = vadd.f32 -1.0, %v12375_v18 }
 0x488   :  { %v12607_v53 = vadd.f32 %v6785_v25, %v12484_v17  ;;  %v5576_v1 = vmul.f32 1.442695, %v5387_v50  ;;  %v12612_v28 = vpop.eup %8258  ;;  %v6358_v43 = vmul.f32 %v12177_v33, %v12493_v35  ;;  %v6359_v41 = vmul.f32 %v12196_v0, %v12515_v19  ;;  %14078 = vst [vmem:[#allocation98_spill] sm:$0xff] %v12619_v8  ;;  %v14080_v36 = vld [vmem:[#allocation52_spill] sm:$0xff] }
 0x489   :  { %v12589_v30 = vpop.trf.xlu0  ;;  %v12602_v11 = vpop.trf.xlu1  ;;  %v6014_v52 = vsel %vm5117_vm0, %v12193_v56, %v5886_v27  ;;  %v6838_v10 = vadd.f32 %v6837_v32, %v6807_v39  ;;  %8266 = vpow2.f32 %v5574_v48  ;;  %v6012_v18 = vsel %vm5115_vm2, %v12101_v55, %v5884_v42  ;;  %v14079_v48 = vld [vmem:[#allocation18_spill] sm:$0xff]  ;;  %v14082_v42 = vld [vmem:[#allocation19_spill] sm:$0xff] }
 0x48a   :  { %6190 = vxpose.xlu1.b32.start [1/16] %v6014_v52, 128  ;;  %vm5118_vm3 = vcmp.gt.f32.partialorder %v12224_v15, 0.0  ;;  %v5887_v17 = vmul.f32 0.1, %v7165_v16  ;;  %v12627_v56 = vadd.f32 %v12182_v23, %v12349_v38  ;;  %8268 = vpow2.f32 %v5580_v61  ;;  %6172 = vxpose.xlu0.b32.cont [15/16] %v6012_v18, 128  ;;  %v14081_v61 = vld [vmem:[#allocation69_spill] sm:$0xff] }
 0x48b   :  { %v6395_v35 = vadd.f32 %v6359_v41, %v6358_v43  ;;  %v7163_v19 = vadd.f32 -1.0, %v12254_v2  ;;  %8270 = vpow2.f32 %v5576_v1  ;;  %vm5116_vm6 = vcmp.gt.f32.partialorder %v14079_v48, 0.0  ;;  %v14083_v43 = vld [vmem:[#allocation71_spill] sm:$0xff] }
 0x48c   :  { %v6808_v55 = vmul.f32 %v12619_v8, %v12522_v7  ;;  %v7166_v6 = vadd.f32 -1.0, %v12314_v3  ;;  %v12638_v50 = vpop.eup %8260  ;;  %v6015_v23 = vsel %vm5118_vm3, %v12224_v15, %v5887_v17  ;;  %v6360_v2 = vmul.f32 %v14080_v36, %v12538_v57  ;;  %v14084_v17 = vld [vmem:[#allocation86_spill] sm:$0xff] }
 0x48d   :  { %v12610_v49 = vpop.trf.xlu0  ;;  %v12630_v32 = vpop.trf.xlu1  ;;  %v5885_v38 = vmul.f32 0.1, %v7163_v19  ;;  %v7212_v27 = vadd.f32 -1.0, %v14081_v61  ;;  %vm5119_vm7 = vcmp.gt.f32.partialorder %v14082_v42, 0.0  ;;  %v6370_v3 = vmul.f32 %v12177_v33, %v12544_v44  ;;  %v14085_v19 = vld [vmem:[#allocation34_spill] sm:$0xff]  ;;  %v14086_v33 = vld [vmem:[#allocation36_spill] sm:$0xff] }
 0x48e   :  { %v12644_v39 = vpop.eup %8262  ;;  %6191 = vxpose.xlu1.b32.cont [2/16] %v6015_v23, 128  ;;  %v6839_v1 = vadd.f32 %v6838_v10, %v6808_v55  ;;  %v5888_v7 = vmul.f32 0.1, %v7166_v6  ;;  %v6396_v52 = vadd.f32 %v6395_v35, %v6360_v2  ;;  %v7167_v41 = vadd.f32 -1.0, %v14083_v43  ;;  %v14087_v35 = vld [vmem:[#allocation51_spill] sm:$0xff] }
 0x48f   :  { %v12649_v16 = vpop.eup %8264  ;;  %v6013_v15 = vsel %vm5116_vm6, %v14079_v48, %v5885_v38  ;;  %v5934_v57 = vmul.f32 0.1, %v7212_v27  ;;  %vm5165_vm4 = vcmp.gt.f32.partialorder %v14084_v17, 0.0  ;;  %vm5120_vm5 = vcmp.gt.f32.partialorder %v14085_v19, 0.0 }
 0x490   :  { %6173 = vxpose.xlu0.b32.end [16/16] %v6013_v15, 128  ;;  %v6840_v10 = vrot.slane %v6839_v1, 4  ;;  %v6361_v44 = vmul.f32 %v14086_v33, %v12559_v20  ;;  %v6016_v6 = vsel %vm5119_vm7, %v14082_v42, %v5888_v7  ;;  %v5889_v48 = vmul.f32 0.1, %v7167_v41  ;;  %v14088_v20 = vld [vmem:[#allocation88_spill] sm:$0xff] }
 0x491   :  { %v12636_v25 = vpop.trf.xlu0  ;;  %v12655_v18 = vpop.trf.xlu1  ;;  %v7213_v23 = vadd.f32 -1.0, %v14087_v35  ;;  %v6371_v38 = vmul.f32 %v12196_v0, %v12562_v37  ;;  %v7168_v15 = vadd.f32 -1.0, %v12472_v34  ;;  %v6062_v43 = vsel %vm5165_vm4, %v14084_v17, %v5934_v57  ;;  %v14092_v17 = vld [vmem:[#allocation62_spill] sm:$0xff] }
 0x492   :  { %v6841_v61 = vadd.f32 %v6840_v10, %v6839_v1  ;;  %6192 = vxpose.xlu1.b32.cont [3/16] %v6016_v6, 128  ;;  %v6397_v27 = vadd.f32 %v6396_v52, %v6361_v44  ;;  %vm5166_vm9 = vcmp.gt.f32.partialorder %v14088_v20, 0.0  ;;  %v6017_v0 = vsel %vm5120_vm5, %v14085_v19, %v5889_v48  ;;  %v14089_v1 = vld [vmem:[#allocation47_spill] sm:$0xff] }
 0x493   :  { %v5935_v31 = vmul.f32 0.1, %v7213_v23  ;;  %v6422_v14 = vadd.f32 %v6371_v38, %v6370_v3  ;;  %v12671_v42 = vpop.eup %8266  ;;  %vm5121_vm10 = vcmp.gt.f32.partialorder %v14089_v1, 0.0  ;;  %v5890_v41 = vmul.f32 0.1, %v7168_v15  ;;  %v14091_v3 = vld [vmem:[#allocation57_spill] sm:$0xff] }
 0x494   :  { %v6842_v7 = vrot.slane %v6841_v61, 2  ;;  %6286 = vxpose.xlu0.b32.start [1/16] %v6062_v43, 128  ;;  %v6398_v37 = vrot.slane %v6397_v27, 4  ;;  %v12681_v57 = vpop.eup %8268  ;;  %v6495_v10 = vmul.f32 %v14091_v3, %v12579_v24  ;;  %v7214_v44 = vadd.f32 -1.0, %v14092_v17  ;;  %v14093_v23 = vld [vmem:[#allocation84_spill] sm:$0xff]  ;;  %v14094_v17 = vld [vmem:[#allocation43_spill] sm:$0xff] }
 0x495   :  { %v12661_v55 = vpop.trf.xlu0  ;;  %v12677_v52 = vpop.trf.xlu1  ;;  %14090 = vst [vmem:[#allocation18_spill] sm:$0xff] %v12681_v57  ;;  %v6372_v6 = vmul.f32 %v14080_v36, %v12589_v30  ;;  %vm5167_vm12 = vcmp.gt.f32.partialorder %v14093_v23, 0.0  ;;  %v7169_v38 = vadd.f32 -1.0, %v12581_v62  ;;  %v6063_v15 = vsel %vm5166_vm9, %v14088_v20, %v5935_v31  ;;  %v14095_v36 = vld [vmem:[#allocation70_spill] sm:$0xff]  ;;  %v12704_v62 = vld [vmem:[%s13207_s6 + $0x3] ss:$0 sm:$0xff] }
 0x496   :  { %v12688_v35 = vpop.eup %8270  ;;  %v6843_v19 = vadd.f32 %v6842_v7, %v6841_v61  ;;  %6193 = vxpose.xlu1.b32.cont [4/16] %v6017_v0, 128  ;;  %v6399_v48 = vadd.f32 %v6398_v37, %v6397_v27  ;;  %v5936_v43 = vmul.f32 0.1, %v7214_v44  ;;  %v6496_v2 = vmul.f32 %v14094_v17, %v12602_v11  ;;  %v14096_v61 = vld [vmem:[#allocation23_spill] sm:$0xff] }
 0x497   :  { %v6423_v24 = vadd.f32 %v6422_v14, %v6372_v6  ;;  %vm5122_vm8 = vcmp.gt.f32.partialorder %v14095_v36, 0.0  ;;  %v7215_v27 = vadd.f32 -1.0, %v14096_v61  ;;  %v6018_v14 = vsel %vm5121_vm10, %v14089_v1, %v5890_v41  ;;  %v14097_v6 = vld [vmem:[#allocation87_spill] sm:$0xff]  ;;  %v14098_v1 = vld [vmem:[#allocation54_spill] sm:$0xff] }
 0x498   :  { %v6844_v8 = vrot.slane %v6843_v19, 1  ;;  %v6400_v30 = vrot.slane %v6399_v48, 2  ;;  %6287 = vxpose.xlu0.b32.cont [2/16] %v6063_v15, 128  ;;  %v5891_v31 = vmul.f32 0.1, %v7169_v38  ;;  %v6532_v11 = vadd.f32 %v6496_v2, %v6495_v10 }
 0x499   :  { %v12679_v34 = vpop.trf.xlu0  ;;  %v6373_v20 = vmul.f32 %v14086_v33, %v12610_v49  ;;  %v6064_v44 = vsel %vm5167_vm12, %v14093_v23, %v5936_v43  ;;  %vm5168_vm13 = vcmp.gt.f32.partialorder %v14097_v6, 0.0  ;;  %v6151_v15 = vpop.trf.xlu1  ;;  %v5937_v61 = vmul.f32 0.1, %v7215_v27  ;;  %v14100_v33 = vld [vmem:[#allocation44_spill] sm:$0xff] }
 0x49a   :  { %v6845_v0 = vadd.f32 %v6844_v8, %v6843_v19  ;;  %v6401_v37 = vadd.f32 %v6400_v30, %v6399_v48  ;;  %6194 = vxpose.xlu1.b32.cont [5/16] %v6018_v14, 128  ;;  %v7170_v4 = vadd.f32 -1.0, %v12446_v63  ;;  %v6497_v2 = vmul.f32 %v14098_v1, %v12630_v32  ;;  %v14099_v8 = vld [vmem:[#allocation40_spill] sm:$0xff]  ;;  %v14102_v30 = vld [vmem:[#allocation39_spill] sm:$0xff] }
 0x49b   :  { %v6424_v57 = vadd.f32 %v6423_v24, %v6373_v20  ;;  %vm5123_vm11 = vcmp.gt.f32.partialorder %v14099_v8, 0.0  ;;  %v7216_v10 = vadd.f32 -1.0, %v14100_v33  ;;  %v6019_v19 = vsel %vm5122_vm8, %v14095_v36, %v5891_v31 }
 0x49c   :  { %v6914_v41 = vadd.f32 %v12704_v62, %v6845_v0  ;;  %v6402_v49 = vrot.slane %v6401_v37, 1  ;;  %6288 = vxpose.xlu0.b32.cont [3/16] %v6064_v44, 128  ;;  %v5892_v23 = vmul.f32 0.1, %v7170_v4  ;;  %v6533_v38 = vadd.f32 %v6532_v11, %v6497_v2  ;;  %v14103_v11 = vld [vmem:[#allocation53_spill] sm:$0xff]  ;;  %v14104_v0 = vld [vmem:[#allocation74_spill] sm:$0xff] }
 0x49d   :  { %v12699_v7 = vpop.trf.xlu0  ;;  %v6425_v48 = vrot.slane %v6424_v57, 4  ;;  %v14101_v63 = vrot.slane %v14062_v47, 3  ;;  %vm5169_vm15 = vcmp.gt.f32.partialorder %v14102_v30, 0.0  ;;  %v5938_v27 = vmul.f32 0.1, %v7216_v10  ;;  %v6152_v44 = vpop.trf.xlu1  ;;  %v14107_v2 = vld [vmem:[#allocation78_spill] sm:$0xff] }
 0x49e   :  { %v6403_v24 = vadd.f32 %v6402_v49, %v6401_v37  ;;  %6195 = vxpose.xlu1.b32.cont [6/16] %v6019_v19, 128  ;;  %v6065_v14 = vsel %vm5168_vm13, %v14097_v6, %v5937_v61  ;;  %v6507_v36 = vmul.f32 %v14091_v3, %v12636_v25  ;;  %v7171_v4 = vadd.f32 -1.0, %v12507_v29  ;;  %v14105_v61 = vld [vmem:[#allocation27_spill] sm:$0xff]  ;;  %v14106_v3 = vld [vmem:[#allocation76_spill] sm:$0xff] }
 0x49f   :  { %v6938_v32 = vmul.f32 %v14101_v63, %v6914_v41  ;;  %v6426_v20 = vadd.f32 %v6425_v48, %v6424_v57  ;;  %v6020_v47 = vsel %vm5123_vm11, %v14099_v8, %v5892_v23  ;;  %vm5124_vm1 = vcmp.gt.f32.partialorder %v14103_v11, 0.0 }
 0x4a0   :  { %6289 = vxpose.xlu0.b32.cont [4/16] %v6065_v14, 128  ;;  %v6498_v37 = vmul.f32 %v14104_v0, %v12655_v18  ;;  %v5893_v6 = vmul.f32 0.1, %v7171_v4  ;;  %v6617_v25 = vrot.slane %v14105_v61, 1  ;;  %v7217_v29 = vadd.f32 -1.0, %v14106_v3  ;;  %v14108_v18 = vld [vmem:[#allocation49_spill] sm:$0xff] }
 0x4a1   :  { %v12724_v43 = vpop.trf.xlu0  ;;  %v12736_v31 = vadd.f32 %v6938_v32, %v12607_v53  ;;  %v6427_v57 = vrot.slane %v6426_v20, 2  ;;  %v6464_v53 = vadd.f32 %v14107_v2, %v6403_v24  ;;  %v6066_v41 = vsel %vm5169_vm15, %v14102_v30, %v5938_v27  ;;  %v14110_v30 = vld [vmem:[#allocation55_spill] sm:$0xff]  ;;  %v14111_v14 = vld [vmem:[#allocation89_spill] sm:$0xff] }
 0x4a2   :  { %6196 = vxpose.xlu1.b32.cont [7/16] %v6020_v47, 128  ;;  %v6534_v49 = vadd.f32 %v6533_v38, %v6498_v37  ;;  %v6508_v8 = vmul.f32 %v14094_v17, %v12661_v55  ;;  %vm5170_vm14 = vcmp.gt.f32.partialorder %v14108_v18, 0.0  ;;  %v5939_v10 = vmul.f32 0.1, %v7217_v29  ;;  %v14109_v55 = vld [vmem:[#allocation68_spill] sm:$0xff]  ;;  %v6153_v47 = vpop.trf.xlu1 }
 0x4a3   :  { %v6428_v33 = vadd.f32 %v6427_v57, %v6426_v20  ;;  %v7172_v19 = vadd.f32 -1.0, %v12612_v28  ;;  %v6021_v23 = vsel %vm5124_vm1, %v14103_v11, %v5893_v6  ;;  %vm5125_vm0 = vcmp.gt.f32.partialorder %v12431_v58, 0.0  ;;  %v14112_v57 = vld [vmem:[#allocation83_spill] sm:$0xff] }
 0x4a4   :  { %6290 = vxpose.xlu0.b32.cont [5/16] %v6066_v41, 128  ;;  %v6535_v63 = vrot.slane %v6534_v49, 4  ;;  %v6559_v32 = vadd.f32 %v6508_v8, %v6507_v36  ;;  %v6656_v17 = vmul.f32 %v14109_v55, %v12677_v52  ;;  %v7218_v27 = vadd.f32 -1.0, %v14110_v30 }
 0x4a5   :  { %v12754_v48 = vpop.trf.xlu0  ;;  %v6429_v38 = vrot.slane %v6428_v33, 1  ;;  %v5894_v24 = vmul.f32 0.1, %v7172_v19  ;;  %vm5171_vm2 = vcmp.gt.f32.partialorder %v14111_v14, 0.0  ;;  %v6509_v20 = vmul.f32 %v14098_v1, %v12679_v34  ;;  %v14113_v1 = vld [vmem:[#allocation56_spill] sm:$0xff] }
 0x4a6   :  { %6197 = vxpose.xlu1.b32.cont [8/16] %v6021_v23, 128  ;;  %v6536_v28 = vadd.f32 %v6535_v63, %v6534_v49  ;;  %v7173_v4 = vadd.f32 -1.0, %v12644_v39  ;;  %v6067_v11 = vsel %vm5170_vm14, %v14108_v18, %v5939_v10  ;;  %v5940_v37 = vmul.f32 0.1, %v7218_v27  ;;  %v14114_v18 = vld [vmem:[#allocation64_spill] sm:$0xff] }
 0x4a7   :  { %v6430_v36 = vadd.f32 %v6429_v38, %v6428_v33  ;;  %v6657_v52 = vmul.f32 %v14112_v57, %v6151_v15  ;;  %v6560_v3 = vadd.f32 %v6559_v32, %v6509_v20  ;;  %vm5126_vm3 = vcmp.gt.f32.partialorder %v12476_v26, 0.0  ;;  %v14115_v32 = vld [vmem:[#allocation30_spill] sm:$0xff] }
 0x4a8   :  { %v6537_v6 = vrot.slane %v6536_v28, 2  ;;  %6291 = vxpose.xlu0.b32.cont [6/16] %v6067_v11, 128  ;;  %v5895_v29 = vmul.f32 0.1, %v7173_v4  ;;  %v6022_v39 = vsel %vm5125_vm0, %v12431_v58, %v5894_v24  ;;  %v7219_v49 = vadd.f32 -1.0, %v14113_v1 }
 0x4a9   :  { %v6467_v41 = vadd.f32 %v14107_v2, %v6430_v36  ;;  %v6693_v34 = vadd.f32 %v6657_v52, %v6656_v17  ;;  %v12777_v8 = vpop.trf.xlu0  ;;  %v6472_v33 = vmul.f32 %v14105_v61, %v6464_v53  ;;  %vm5172_vm6 = vcmp.gt.f32.partialorder %v14114_v18, 0.0  ;;  %v6154_v17 = vpop.trf.xlu1 }
 0x4aa   :  { %v6538_v15 = vadd.f32 %v6537_v6, %v6536_v28  ;;  %6198 = vxpose.xlu1.b32.cont [9/16] %v6022_v39, 128  ;;  %v6510_v10 = vmul.f32 %v14104_v0, %v12699_v7  ;;  %v6068_v2 = vsel %vm5171_vm2, %v14111_v14, %v5940_v37  ;;  %v6023_v58 = vsel %vm5126_vm3, %v12476_v26, %v5895_v29  ;;  %v14116_v0 = vld [vmem:[#allocation80_spill] sm:$0xff]  ;;  %v14117_v14 = vld [vmem:[#allocation38_spill] sm:$0xff] }
 0x4ab   :  { %v5941_v19 = vmul.f32 0.1, %v7219_v49  ;;  %v7174_v23 = vadd.f32 -1.0, %v12604_v60  ;;  %v6620_v53 = vrot.slane %v14115_v32, 1  ;;  %v6658_v24 = vmul.f32 %v12451_v45, %v6152_v44 }
 0x4ac   :  { %v6539_v63 = vrot.slane %v6538_v15, 1  ;;  %6292 = vxpose.xlu0.b32.cont [7/16] %v6068_v2, 128  ;;  %v6561_v38 = vadd.f32 %v6560_v3, %v6510_v10  ;;  %v12791_v30 = vmul.f32 %v14115_v32, %v6467_v41  ;;  %vm5127_vm7 = vcmp.gt.f32.partialorder %v12417_v9, 0.0  ;;  %v14118_v41 = vld [vmem:[#allocation72_spill] sm:$0xff] }
 0x4ad   :  { %v5896_v7 = vmul.f32 0.1, %v7174_v23  ;;  %v7220_v27 = vadd.f32 -1.0, %v14116_v0  ;;  %v6694_v60 = vadd.f32 %v6693_v34, %v6658_v24  ;;  %vm5173_vm4 = vcmp.gt.f32.partialorder %v14117_v14, 0.0  ;;  %v6249_v11 = vpop.trf.xlu0  ;;  %v6155_v49 = vpop.trf.xlu1 }
 0x4ae   :  { %v6540_v26 = vadd.f32 %v6539_v63, %v6538_v15  ;;  %6199 = vxpose.xlu1.b32.cont [10/16] %v6023_v58, 128  ;;  %v6562_v28 = vrot.slane %v6561_v38, 4  ;;  %v6069_v20 = vsel %vm5172_vm6, %v14114_v18, %v5941_v19  ;;  %v6668_v4 = vmul.f32 %v14109_v55, %v12724_v43  ;;  %v14120_v19 = vld [vmem:[#allocation75_spill] sm:$0xff] }
 0x4af   :  { %v5942_v44 = vmul.f32 0.1, %v7220_v27  ;;  %v7175_v36 = vadd.f32 -1.0, %v12638_v50  ;;  %vm5128_vm5 = vcmp.gt.f32.partialorder %v12461_v40, 0.0  ;;  %v6659_v6 = vmul.f32 %v12480_v5, %v6153_v47 }
 0x4b0   :  { %v6601_v37 = vadd.f32 %v12427_v13, %v6540_v26  ;;  %6293 = vxpose.xlu0.b32.cont [8/16] %v6069_v20, 128  ;;  %v6563_v52 = vadd.f32 %v6562_v28, %v6561_v38  ;;  %v6024_v3 = vsel %vm5127_vm7, %v12417_v9, %v5896_v7  ;;  %v7221_v39 = vadd.f32 -1.0, %v14118_v41 }
 0x4b1   :  { %v5897_v29 = vmul.f32 0.1, %v7175_v36  ;;  %v6669_v43 = vmul.f32 %v14112_v57, %v12754_v48  ;;  %v6770_v34 = vrot.slane %v14105_v61, 2  ;;  %v6695_v1 = vadd.f32 %v6694_v60, %v6659_v6  ;;  %v6250_v63 = vpop.trf.xlu0  ;;  %v14121_v60 = vld [vmem:[#allocation46_spill] sm:$0xff]  ;;  %v6156_v20 = vpop.trf.xlu1  ;;  %v14123_v6 = vld [vmem:[#allocation67_spill] sm:$0xff] }
 0x4b2   :  { %v6633_v50 = vmul.f32 %v6617_v25, %v6601_v37  ;;  %v6564_v55 = vrot.slane %v6563_v52, 2  ;;  %6200 = vxpose.xlu1.b32.cont [11/16] %v6024_v3, 128  ;;  %v6070_v47 = vsel %vm5173_vm4, %v14117_v14, %v5942_v44  ;;  %v5943_v9 = vmul.f32 0.1, %v7221_v39  ;;  %v14119_v25 = vld [vmem:[#allocation50_spill] sm:$0xff] }
 0x4b3   :  { %v6720_v15 = vadd.f32 %v6669_v43, %v6668_v4  ;;  %v7176_v18 = vadd.f32 -1.0, %v12671_v42  ;;  %v6696_v57 = vrot.slane %v6695_v1, 4  ;;  %vm5174_vm9 = vcmp.gt.f32.partialorder %v14119_v25, 0.0 }
 0x4b4   :  { %v12818_v10 = vadd.f32 %v6633_v50, %v6472_v33  ;;  %v6565_v48 = vadd.f32 %v6564_v55, %v6563_v52  ;;  %6294 = vxpose.xlu0.b32.cont [9/16] %v6070_v47, 128  ;;  %v6025_v2 = vsel %vm5128_vm5, %v12461_v40, %v5897_v29  ;;  %vm5129_vm10 = vcmp.gt.f32.partialorder %v12520_v54, 0.0 }
 0x4b5   :  { %v5898_v58 = vmul.f32 0.1, %v7176_v18  ;;  %v7222_v23 = vadd.f32 -1.0, %v14120_v19  ;;  %v6697_v42 = vadd.f32 %v6696_v57, %v6695_v1  ;;  %v6809_v33 = vmul.f32 %v12541_v21, %v6154_v17 }
 0x4b6   :  { %v6566_v38 = vrot.slane %v6565_v48, 1  ;;  %6201 = vxpose.xlu1.b32.cont [12/16] %v6025_v2, 128  ;;  %v6670_v24 = vmul.f32 %v12451_v45, %v12777_v8  ;;  %v6071_v7 = vsel %vm5174_vm9, %v14119_v25, %v5943_v9  ;;  %v7177_v27 = vadd.f32 -1.0, %v12688_v35  ;;  %v14122_v8 = vld [vmem:[#allocation17_spill] sm:$0xff]  ;;  %v14127_v2 = vld [vmem:[#allocation18_spill] sm:$0xff] }
 0x4b7   :  { %v5944_v0 = vmul.f32 0.1, %v7222_v23  ;;  %v6810_v40 = vmul.f32 %v12554_v51, %v6155_v49  ;;  %v6698_v28 = vrot.slane %v6697_v42, 2  ;;  %vm5175_vm12 = vcmp.gt.f32.partialorder %v14121_v60, 0.0 }
 0x4b8   :  { %v6567_v26 = vadd.f32 %v6566_v38, %v6565_v48  ;;  %6295 = vxpose.xlu0.b32.cont [10/16] %v6071_v7, 128  ;;  %v6721_v14 = vadd.f32 %v6720_v15, %v6670_v24  ;;  %v6026_v17 = vsel %vm5129_vm10, %v12520_v54, %v5898_v58  ;;  %v5899_v44 = vmul.f32 0.1, %v7177_v27  ;;  %v6251_v54 = vpop.trf.xlu0  ;;  %v14125_v48 = vld [vmem:[#allocation96_spill] sm:$0xff]  ;;  %v14128_v38 = vld [vmem:[#allocation21_spill] sm:$0xff] }
 0x4b9   :  { %v6846_v45 = vadd.f32 %v6810_v40, %v6809_v33  ;;  %v7223_v4 = vadd.f32 -1.0, %v14122_v8  ;;  %v6699_v35 = vadd.f32 %v6698_v28, %v6697_v42  ;;  %vm5130_vm8 = vcmp.gt.f32.partialorder %v12577_v12, 0.0  ;;  %v14129_v42 = vld [vmem:[#allocation98_spill] sm:$0xff] }
 0x4ba   :  { %v6604_v36 = vadd.f32 %v12427_v13, %v6567_v26  ;;  %6202 = vxpose.xlu1.b32.cont [13/16] %v6026_v17, 128  ;;  %v6671_v37 = vmul.f32 %v12480_v5, %v6249_v11  ;;  %v6072_v52 = vsel %vm5175_vm12, %v14121_v60, %v5944_v0  ;;  %vm5176_vm13 = vcmp.gt.f32.partialorder %v14123_v6, 0.0  ;;  %v14124_v11 = vld [vmem:[#allocation61_spill] sm:$0xff]  ;;  %v14130_v40 = vld [vmem:[#allocation82_spill] sm:$0xff] }
 0x4bb   :  { %v5945_v3 = vmul.f32 0.1, %v7223_v4  ;;  %v7178_v29 = vadd.f32 -1.0, %v12649_v16  ;;  %v6700_v39 = vrot.slane %v6699_v35, 1  ;;  %v6811_v43 = vmul.f32 %v12587_v46, %v6156_v20  ;;  %v14132_v17 = vld [vmem:[#allocation77_spill] sm:$0xff] }
 0x4bc   :  { %v6636_v41 = vmul.f32 %v6620_v53, %v6604_v36  ;;  %6296 = vxpose.xlu0.b32.cont [11/16] %v6072_v52, 128  ;;  %v6722_v13 = vadd.f32 %v6721_v14, %v6671_v37  ;;  %v6027_v50 = vsel %vm5130_vm8, %v12577_v12, %v5899_v44  ;;  %vm5131_vm11 = vcmp.gt.f32.partialorder %v12513_v22, 0.0  ;;  %v6157_v53 = vpop.trf.xlu1  ;;  %v6252_v24 = vpop.trf.xlu0  ;;  %v14131_v14 = vld [vmem:[#allocation63_spill] sm:$0xff] }
 0x4bd   :  { %v5900_v5 = vmul.f32 0.1, %v7178_v29  ;;  %v7224_v55 = vadd.f32 -1.0, %v14124_v11  ;;  %v6701_v16 = vadd.f32 %v6700_v39, %v6699_v35  ;;  %v6847_v47 = vadd.f32 %v6846_v45, %v6811_v43  ;;  %v14134_v35 = vld [vmem:[#allocation45_spill] sm:$0xff]  ;;  %v14136_v43 = vld [vmem:[#allocation42_spill] sm:$0xff] }
 0x4be   :  { %v12850_v1 = vadd.f32 %v6636_v41, %v12791_v30  ;;  %6203 = vxpose.xlu1.b32.cont [14/16] %v6027_v50, 128  ;;  %v6723_v49 = vrot.slane %v6722_v13, 4  ;;  %v5320_v9 = vmin.f32 %v12551_v59, 0.0  ;;  %v5318_v15 = vmin.f32 %v12627_v56, 0.0  ;;  %v14126_v30 = vld [vmem:[#allocation48_spill] sm:$0xff] }
 0x4bf   :  { %v6073_v12 = vsel %vm5176_vm13, %v14123_v6, %v5945_v3  ;;  %v5946_v18 = vmul.f32 0.1, %v7224_v55  ;;  %v6762_v57 = vadd.f32 %v14125_v48, %v6701_v16  ;;  %vm5177_vm15 = vcmp.gt.f32.partialorder %v14126_v30, 0.0 }
 0x4c0   :  { %6297 = vxpose.xlu0.b32.cont [12/16] %v6073_v12, 128  ;;  %v6724_v25 = vadd.f32 %v6723_v49, %v6722_v13  ;;  %v7179_v58 = vadd.f32 -1.0, %v14127_v2  ;;  %v6028_v19 = vsel %vm5131_vm11, %v12513_v22, %v5900_v5  ;;  %v6821_v23 = vmul.f32 %v12541_v21, %v6250_v63  ;;  %v6253_v39 = vpop.trf.xlu0 }
 0x4c1   :  { %vm5132_vm1 = vcmp.gt.f32.partialorder %v14128_v38, 0.0  ;;  %v6812_v33 = vmul.f32 %v14129_v42, %v6157_v53  ;;  %v6786_v7 = vmul.f32 %v6770_v34, %v6762_v57  ;;  %v7225_v26 = vadd.f32 -1.0, %v14130_v40  ;;  %v12889_v53 = vld [vmem:[#allocation10] sm:$0xff]  ;;  %v14142_v40 = vld [vmem:[#allocation81_spill] sm:$0xff] }
 0x4c2   :  { %v6725_v0 = vrot.slane %v6724_v25, 2  ;;  %6204 = vxpose.xlu1.b32.cont [15/16] %v6028_v19, 128  ;;  %v5901_v27 = vmul.f32 0.1, %v7179_v58  ;;  %v6074_v28 = vsel %vm5177_vm15, %v14126_v30, %v5946_v18  ;;  %v6822_v22 = vmul.f32 %v12554_v51, %v6251_v54  ;;  %v14133_v51 = vld [vmem:[#allocation16_spill] sm:$0xff]  ;;  %v14135_v54 = vld [vmem:[#allocation85_spill] sm:$0xff]  ;;  %v14139_v58 = vld [vmem:[#allocation58_spill] sm:$0xff] }
 0x4c3   :  { %v6848_v60 = vadd.f32 %v6847_v47, %v6812_v33  ;;  %v7228_v21 = vadd.f32 -1.0, %v14131_v14  ;;  %v12873_v63 = vadd.f32 %v6786_v7, %v12818_v10  ;;  %vm5178_vm14 = vcmp.gt.f32.partialorder %v14132_v17, 0.0  ;;  %v14138_v18 = vld [vmem:[#allocation65_spill] sm:$0xff] }
 0x4c4   :  { %v6726_v20 = vadd.f32 %v6725_v0, %v6724_v25  ;;  %6298 = vxpose.xlu0.b32.cont [13/16] %v6074_v28, 128  ;;  %v5947_v34 = vmul.f32 0.1, %v7225_v26  ;;  %v6029_v44 = vsel %vm5132_vm1, %v14128_v38, %v5901_v27  ;;  %v6873_v8 = vadd.f32 %v6822_v22, %v6821_v23  ;;  %v12896_v38 = vld [vmem:[#allocation10 + $0x8] sm:$0xff] }
 0x4c5   :  { %v6849_v45 = vrot.slane %v6848_v60, 4  ;;  %v5950_v4 = vmul.f32 0.1, %v7228_v21  ;;  %vm5181_vm0 = vcmp.gt.f32.partialorder %v14133_v51, 0.0  ;;  %v7226_v37 = vadd.f32 -1.0, %v14134_v35 }
 0x4c6   :  { %v6727_v36 = vrot.slane %v6726_v20, 1  ;;  %6205 = vxpose.xlu1.b32.end [16/16] %v6029_v44, 128  ;;  %v6823_v10 = vmul.f32 %v12587_v46, %v6252_v24  ;;  %v6773_v52 = vrot.slane %v14115_v32, 2  ;;  %v6075_v3 = vsel %vm5178_vm14, %v14132_v17, %v5947_v34  ;;  %v14137_v46 = vld [vmem:[#allocation66_spill] sm:$0xff] }
 0x4c7   :  { %v6850_v6 = vadd.f32 %v6849_v45, %v6848_v60  ;;  %v6270_v29 = vpop.trf.xlu1  ;;  %v7229_v41 = vadd.f32 -1.0, %v14135_v54  ;;  %vm5179_vm2 = vcmp.gt.f32.partialorder %v14136_v43, 0.0  ;;  %v5948_v50 = vmul.f32 0.1, %v7226_v37  ;;  %v14140_v24 = vld [vmem:[#allocation22_spill] sm:$0xff]  ;;  %v14143_v45 = vld [vmem:[#allocation92_spill] sm:$0xff] }
 0x4c8   :  { %v6728_v13 = vadd.f32 %v6727_v36, %v6726_v20  ;;  %6299 = vxpose.xlu0.b32.cont [14/16] %v6075_v3, 128  ;;  %v6874_v5 = vadd.f32 %v6873_v8, %v6823_v10  ;;  %v6078_v55 = vsel %vm5181_vm0, %v14133_v51, %v5950_v4  ;;  %v7227_v49 = vadd.f32 -1.0, %v14137_v46  ;;  %v14144_v8 = vld [vmem:[#allocation73_spill] sm:$0xff] }
 0x4c9   :  { %v6851_v11 = vrot.slane %v6850_v6, 2  ;;  %v5951_v16 = vmul.f32 0.1, %v7229_v41  ;;  %v6374_v12 = vmul.f32 %v12889_v53, %v6270_v29  ;;  %vm5182_vm3 = vcmp.gt.f32.partialorder %v14138_v18, 0.0  ;;  %v12914_v36 = vld [vmem:[#allocation10 + $0x10] sm:$0xff] }
 0x4ca   :  { %v6765_v47 = vadd.f32 %v14125_v48, %v6728_v13  ;;  %6318 = vxpose.xlu1.b32.start [1/16] %v6078_v55, 128  ;;  %v6824_v57 = vmul.f32 %v14129_v42, %v6253_v39  ;;  %v6076_v30 = vsel %vm5179_vm2, %v14136_v43, %v5948_v50  ;;  %vm5180_vm6 = vcmp.gt.f32.partialorder %v14139_v58, 0.0  ;;  %v14141_v42 = vld [vmem:[#allocation60_spill] sm:$0xff]  ;;  %v14145_v37 = vld [vmem:[#allocation37_spill] sm:$0xff]  ;;  %v14148_v43 = vld [vmem:[#allocation91_spill] sm:$0xff] }
 0x4cb   :  { %v6852_v25 = vadd.f32 %v6851_v11, %v6850_v6  ;;  %v6271_v2 = vpop.trf.xlu1  ;;  %v5949_v19 = vmul.f32 0.1, %v7227_v49  ;;  %v7230_v7 = vadd.f32 -1.0, %v14140_v24  ;;  %v6079_v27 = vsel %vm5182_vm3, %v14138_v18, %v5951_v16  ;;  %v14147_v54 = vld [vmem:[#allocation41_spill] sm:$0xff]  ;;  %v8302_v13 = vld [vmem:[%s13205_s4] ss:$0 sm:$0xff] }
 0x4cc   :  { %v6789_v23 = vmul.f32 %v6773_v52, %v6765_v47  ;;  %6300 = vxpose.xlu0.b32.cont [15/16] %v6076_v30, 128  ;;  %v6375_v48 = vmul.f32 %v12896_v38, %v6271_v2  ;;  %v6875_v33 = vadd.f32 %v6874_v5, %v6824_v57  ;;  %vm5183_vm7 = vcmp.gt.f32.partialorder %v14141_v42, 0.0  ;;  %v14146_v52 = vld [vmem:[#allocation95_spill] sm:$0xff]  ;;  %v14149_v55 = vld [vmem:[#allocation26_spill] sm:$0xff] }
 0x4cd   :  { %v6853_v0 = vrot.slane %v6852_v25, 1  ;;  %v7231_v26 = vadd.f32 -1.0, %v14142_v40  ;;  %v5952_v14 = vmul.f32 0.1, %v7230_v7  ;;  %v5447_v21 = vmul.f32 10.0, %v5318_v15  ;;  %v12935_v47 = vld [vmem:[#allocation10 + $0x18] sm:$0xff] }
 0x4ce   :  { %v12904_v28 = vadd.f32 %v6789_v23, %v12850_v1  ;;  %6319 = vxpose.xlu1.b32.cont [2/16] %v6079_v27, 128  ;;  %v6431_v60 = vadd.f32 %v6375_v48, %v6374_v12  ;;  %v6876_v22 = vrot.slane %v6875_v33, 4  ;;  %v6923_v20 = vrot.slane %v14105_v61, 3 }
 0x4cf   :  { %v6854_v17 = vadd.f32 %v6853_v0, %v6852_v25  ;;  %v6077_v34 = vsel %vm5180_vm6, %v14139_v58, %v5949_v19  ;;  %v6272_v44 = vpop.trf.xlu1  ;;  %8272 = vpow2.f32 %v14143_v45  ;;  %v5694_v1 = vmul.f32 1.442695, %v14144_v8  ;;  %v14150_v25 = vld [vmem:[#allocation97_spill] sm:$0xff]  ;;  %v14151_v19 = vld [vmem:[#allocation24_spill] sm:$0xff] }
 0x4d0   :  { %6301 = vxpose.xlu0.b32.end [16/16] %v6077_v34, 128  ;;  %v6877_v4 = vadd.f32 %v6876_v22, %v6875_v33  ;;  %v6376_v51 = vmul.f32 %v12914_v36, %v6272_v44  ;;  %v6080_v61 = vsel %vm5183_vm7, %v14141_v42, %v5952_v14  ;;  %v5953_v35 = vmul.f32 0.1, %v7231_v26  ;;  %v14152_v42 = vld [vmem:[#allocation93_spill] sm:$0xff]  ;;  %v14154_v44 = vld [vmem:[#allocation90_spill] sm:$0xff] }
 0x4d1   :  { %v6915_v15 = vadd.f32 %v12704_v62, %v6854_v17  ;;  %v7232_v10 = vadd.f32 -1.0, %v14145_v37  ;;  %v5698_v6 = vmul.f32 1.442695, %v14146_v52  ;;  %vm5184_vm4 = vcmp.gt.f32.partialorder %v14147_v54, 0.0  ;;  %v14153_v34 = vld [vmem:[#allocation25_spill] sm:$0xff] }
 0x4d2   :  { %v6878_v3 = vrot.slane %v6877_v4, 2  ;;  %6320 = vxpose.xlu1.b32.cont [3/16] %v6080_v61, 128  ;;  %v6432_v29 = vadd.f32 %v6431_v60, %v6376_v51  ;;  %v5449_v41 = vmul.f32 10.0, %v5320_v9  ;;  %v5696_v39 = vmul.f32 1.442695, %v5447_v21  ;;  %v12960_v37 = vld [vmem:[#allocation10 + $0x28] sm:$0xff] }
 0x4d3   :  { %v12930_v50 = vadd.f32 %v8302_v13, %v14148_v43  ;;  %v6939_v5 = vmul.f32 %v6923_v20, %v6915_v15  ;;  %v6273_v11 = vpop.trf.xlu1  ;;  %8274 = vpow2.f32 %v5694_v1  ;;  %v12933_v16 = vadd.f32 %v8302_v13, %v14149_v55  ;;  %v12957_v15 = vld [vmem:[#allocation10 + $0x20] sm:$0xff] }
 0x4d4   :  { %v6879_v46 = vadd.f32 %v6878_v3, %v6877_v4  ;;  %v6174_v49 = vpop.trf.xlu0  ;;  %v6377_v9 = vmul.f32 %v12935_v47, %v6273_v11  ;;  %v6081_v18 = vsel %vm5184_vm4, %v14147_v54, %v5953_v35  ;;  %v5954_v57 = vmul.f32 0.1, %v7232_v10  ;;  %v14155_v43 = vld [vmem:[#allocation20_spill] sm:$0xff]  ;;  %v14156_v11 = vld [vmem:[#allocation35_spill] sm:$0xff] }
 0x4d5   :  { %v6947_v12 = vadd.f32 %v6939_v5, %v12873_v63  ;;  %v7233_v30 = vadd.f32 -1.0, %v14150_v25  ;;  %vm6963_vm5 = vcmask 1041409   ;;  %vm5185_vm9 = vcmp.gt.f32.partialorder %v14151_v19, 0.0 }
 0x4d6   :  { %v6880_v2 = vrot.slane %v6879_v46, 1  ;;  %6321 = vxpose.xlu1.b32.cont [4/16] %v6081_v18, 128  ;;  %v6433_v58 = vadd.f32 %v6432_v29, %v6377_v9  ;;  %8276 = vpow2.f32 %v5696_v39  ;;  %v5321_v23 = vmin.f32 %v12930_v50, 0.0  ;;  %v12973_v18 = vld [vmem:[#allocation10 + $0x30] sm:$0xff] }
 0x4d7   :  { %v6962_v48 = vrot.slane %v6947_v12, 7  ;;  %v6362_v33 = vmul.f32 %v12889_v53, %v6174_v49  ;;  %v6274_v24 = vpop.trf.xlu1  ;;  %v5322_v63 = vmin.f32 %v12933_v16, 0.0  ;;  %v6926_v7 = vrot.slane %v14115_v32, 3 }
 0x4d8   :  { %v6881_v0 = vadd.f32 %v6880_v2, %v6879_v46  ;;  %v6175_v27 = vpop.trf.xlu0  ;;  %v7234_v40 = vadd.f32 -1.0, %v14152_v42  ;;  %v6082_v22 = vsel %vm5185_vm9, %v14151_v19, %v5954_v57  ;;  %v5955_v14 = vmul.f32 0.1, %v7233_v30  ;;  %v12980_v42 = vld [vmem:[#allocation10 + $0x38] sm:$0xff] }
 0x4d9   :  { %v12948_v26 = vsel %vm6963_vm5, %v6962_v48, %v12736_v31  ;;  %v6363_v60 = vmul.f32 %v12896_v38, %v6175_v27  ;;  %v8273_v21 = vpop.eup %8272  ;;  %8278 = vpow2.f32 %v5698_v6  ;;  %v6434_v17 = vrot.slane %v6433_v58, 4  ;;  %v14157_v48 = vld [vmem:[#allocation59_spill] sm:$0xff] }
 0x4da   :  { %v6918_v20 = vadd.f32 %v12704_v62, %v6881_v0  ;;  %6322 = vxpose.xlu1.b32.cont [5/16] %v6082_v22, 128  ;;  %vm5186_vm10 = vcmp.gt.f32.partialorder %v14153_v34, 0.0  ;;  %v5700_v32 = vmul.f32 1.442695, %v5449_v41  ;;  %v12955_v45 = vadd.f32 %v8302_v13, %v14154_v44 }
 0x4db   :  { %v5450_v8 = vmul.f32 10.0, %v5321_v23  ;;  %v6404_v31 = vadd.f32 %v6363_v60, %v6362_v33  ;;  %v6275_v1 = vpop.trf.xlu1  ;;  %v5451_v4 = vmul.f32 10.0, %v5322_v63  ;;  %v6511_v61 = vmul.f32 %v12957_v15, %v6274_v24 }
 0x4dc   :  { %v6942_v51 = vmul.f32 %v6926_v7, %v6918_v20  ;;  %v6176_v35 = vpop.trf.xlu0  ;;  %v6512_v62 = vmul.f32 %v12960_v37, %v6275_v1  ;;  %v6083_v52 = vsel %vm5186_vm10, %v14153_v34, %v5955_v14  ;;  %v5956_v6 = vmul.f32 0.1, %v7234_v40  ;;  %v14158_v34 = vld [vmem:[#allocation79_spill] sm:$0xff] }
 0x4dd   :  { %v6364_v10 = vmul.f32 %v12914_v36, %v6176_v35  ;;  %v7235_v3 = vadd.f32 -1.0, %v8273_v21  ;;  %v8275_v29 = vpop.eup %8274  ;;  %v6435_v41 = vadd.f32 %v6434_v17, %v6433_v58  ;;  %vm5187_vm12 = vcmp.gt.f32.partialorder %v14155_v43, 0.0 }
 0x4de   :  { %v12966_v54 = vadd.f32 %v6942_v51, %v12904_v28  ;;  %6323 = vxpose.xlu1.b32.cont [6/16] %v6083_v52, 128  ;;  %v6568_v39 = vadd.f32 %v6512_v62, %v6511_v61  ;;  %v5323_v5 = vmin.f32 %v12955_v45, 0.0  ;;  %v12971_v55 = vadd.f32 %v8302_v13, %v14156_v11  ;;  %v12990_v11 = vld [vmem:[#allocation10 + $0x40] sm:$0xff] }
 0x4df   :  { %v6405_v46 = vadd.f32 %v6404_v31, %v6364_v10  ;;  %v6276_v49 = vpop.trf.xlu1  ;;  %8280 = vpow2.f32 %v5700_v32  ;;  %v5702_v9 = vmul.f32 1.442695, %v5450_v8  ;;  %v6084_v30 = vsel %vm5187_vm12, %v14155_v43, %v5956_v6  ;;  %v14159_v43 = vld [vmem:[#allocation94_spill] sm:$0xff] }
 0x4e0   :  { %v6177_v12 = vpop.trf.xlu0  ;;  %v6513_v28 = vmul.f32 %v12973_v18, %v6276_v49  ;;  %v8277_v57 = vpop.eup %8276  ;;  %v5957_v2 = vmul.f32 0.1, %v7235_v3  ;;  %v7236_v58 = vadd.f32 -1.0, %v8275_v29  ;;  %v5704_v19 = vmul.f32 1.442695, %v5451_v4 }
 0x4e1   :  { %v6365_v25 = vmul.f32 %v12935_v47, %v6177_v12  ;;  %v6436_v23 = vrot.slane %v6435_v41, 2  ;;  %vm5188_vm8 = vcmp.gt.f32.partialorder %v14157_v48, 0.0  ;;  %v5452_v33 = vmul.f32 10.0, %v5323_v5 }
 0x4e2   :  { %6324 = vxpose.xlu1.b32.cont [7/16] %v6084_v30, 128  ;;  %v6569_v13 = vadd.f32 %v6568_v39, %v6513_v28  ;;  %v5324_v24 = vmin.f32 %v12971_v55, 0.0  ;;  %8282 = vpow2.f32 %v5702_v9  ;;  %v6085_v22 = vsel %vm5188_vm8, %v14157_v48, %v5957_v2  ;;  %v12993_v9 = vld [vmem:[#allocation10 + $0x48] sm:$0xff] }
 0x4e3   :  { %v6406_v63 = vadd.f32 %v6405_v46, %v6365_v25  ;;  %v6277_v7 = vpop.trf.xlu1  ;;  %v8279_v0 = vpop.eup %8278  ;;  %v5958_v14 = vmul.f32 0.1, %v7236_v58  ;;  %v7237_v21 = vadd.f32 -1.0, %v8277_v57  ;;  %8284 = vpow2.f32 %v5704_v19 }
 0x4e4   :  { %v6178_v27 = vpop.trf.xlu0  ;;  %v6514_v40 = vmul.f32 %v12980_v42, %v6277_v7  ;;  %v6437_v20 = vadd.f32 %v6436_v23, %v6435_v41  ;;  %vm5189_vm13 = vcmp.gt.f32.partialorder %v14158_v34, 0.0  ;;  %v5706_v32 = vmul.f32 1.442695, %v5452_v33 }
 0x4e5   :  { %v6407_v60 = vrot.slane %v6406_v63, 4  ;;  %v5453_v44 = vmul.f32 10.0, %v5324_v24  ;;  %v6499_v8 = vmul.f32 %v12957_v15, %v6178_v27  ;;  %v7238_v51 = vadd.f32 -1.0, %v8279_v0 }
 0x4e6   :  { %6325 = vxpose.xlu1.b32.cont [8/16] %v6085_v22, 128  ;;  %v6570_v17 = vadd.f32 %v6569_v13, %v6514_v40  ;;  %v6086_v62 = vsel %vm5189_vm13, %v14158_v34, %v5958_v14  ;;  %v5959_v10 = vmul.f32 0.1, %v7237_v21  ;;  %v6438_v6 = vrot.slane %v6437_v20, 1 }
 0x4e7   :  { %v6278_v31 = vpop.trf.xlu1  ;;  %v6408_v61 = vadd.f32 %v6407_v60, %v6406_v63  ;;  %vm5190_vm11 = vcmp.gt.f32.partialorder %v12627_v56, 0.0  ;;  %8286 = vpow2.f32 %v5706_v32  ;;  %v5708_v29 = vmul.f32 1.442695, %v5453_v44  ;;  %v14160_v63 = vld [vmem:[#allocation31_spill] sm:$0xff]  ;;  %v13002_v60 = vld [vmem:[#allocation10 + $0x50] sm:$0xff] }
 0x4e8   :  { %v6571_v1 = vrot.slane %v6570_v17, 4  ;;  %v6179_v4 = vpop.trf.xlu0  ;;  %vm5191_vm15 = vcmp.gt.f32.partialorder %v14159_v43, 0.0  ;;  %v6672_v46 = vmul.f32 %v12990_v11, %v6278_v31  ;;  %v5960_v28 = vmul.f32 0.1, %v7238_v51 }
 0x4e9   :  { %v6500_v35 = vmul.f32 %v12960_v37, %v6179_v4  ;;  %v8281_v52 = vpop.eup %8280  ;;  %v6409_v57 = vrot.slane %v6408_v61, 2  ;;  %v6087_v30 = vsel %vm5190_vm11, %v12627_v56, %v5959_v10  ;;  %v6439_v19 = vadd.f32 %v6438_v6, %v6437_v20  ;;  %v13016_v4 = vld [vmem:[%s13207_s6 + $0x1] ss:$0 sm:$0xff] }
 0x4ea   :  { %v6572_v3 = vadd.f32 %v6571_v1, %v6570_v17  ;;  %6326 = vxpose.xlu1.b32.cont [9/16] %v6086_v62, 128  ;;  %v7239_v2 = vadd.f32 -1.0, %v8281_v52  ;;  %8288 = vpow2.f32 %v5708_v29  ;;  %v6621_v7 = vrot.slane %v14160_v63, 1  ;;  %v13009_v17 = vld [vmem:[%s13207_s6] ss:$0 sm:$0xff] }
 0x4eb   :  { %v6541_v41 = vadd.f32 %v6500_v35, %v6499_v8  ;;  %v6279_v39 = vpop.trf.xlu1  ;;  %v6088_v40 = vsel %vm5191_vm15, %v14159_v43, %v5960_v28  ;;  %v6410_v22 = vadd.f32 %v6409_v57, %v6408_v61  ;;  %v6468_v34 = vadd.f32 %v13009_v17, %v6439_v19  ;;  %v13019_v35 = vld [vmem:[#allocation10 + $0x58] sm:$0xff] }
 0x4ec   :  { %v6573_v5 = vrot.slane %v6572_v3, 2  ;;  %v6180_v49 = vpop.trf.xlu0  ;;  %v6673_v12 = vmul.f32 %v12993_v9, %v6279_v39  ;;  %v8283_v58 = vpop.eup %8282  ;;  %v5961_v21 = vmul.f32 0.1, %v7239_v2  ;;  %vm5192_vm1 = vcmp.gt.f32.partialorder %v12551_v59, 0.0 }
 0x4ed   :  { %v6501_v25 = vmul.f32 %v12973_v18, %v6180_v49  ;;  %v8285_v24 = vpop.eup %8284  ;;  %v7240_v20 = vadd.f32 -1.0, %v8283_v58  ;;  %v6411_v52 = vrot.slane %v6410_v22, 1  ;;  %vm5193_vm14 = vcmp.gt.f32.partialorder %v12930_v50, 0.0 }
 0x4ee   :  { %v6574_v23 = vadd.f32 %v6573_v5, %v6572_v3  ;;  %6327 = vxpose.xlu1.b32.cont [10/16] %v6087_v30, 128  ;;  %v6729_v13 = vadd.f32 %v6673_v12, %v6672_v46  ;;  %v7241_v1 = vadd.f32 -1.0, %v8285_v24  ;;  %v6089_v3 = vsel %vm5192_vm1, %v12551_v59, %v5961_v21 }
 0x4ef   :  { %v6542_v48 = vadd.f32 %v6541_v41, %v6501_v25  ;;  %v6280_v33 = vpop.trf.xlu1  ;;  %v5962_v29 = vmul.f32 0.1, %v7240_v20  ;;  %v6476_v41 = vmul.f32 %v14160_v63, %v6468_v34  ;;  %vm5194_vm0 = vcmp.gt.f32.partialorder %v12933_v16, 0.0 }
 0x4f0   :  { %v6575_v0 = vrot.slane %v6574_v23, 1  ;;  %v6181_v27 = vpop.trf.xlu0  ;;  %v6674_v56 = vmul.f32 %v13002_v60, %v6280_v33  ;;  %v5963_v12 = vmul.f32 0.1, %v7241_v1  ;;  %v6412_v2 = vadd.f32 %v6411_v52, %v6410_v22  ;;  %v13036_v22 = vld [vmem:[#allocation10 + $0x68] sm:$0xff] }
 0x4f1   :  { %v6502_v14 = vmul.f32 %v12980_v42, %v6181_v27  ;;  %v8287_v10 = vpop.eup %8286  ;;  %vm5195_vm2 = vcmp.gt.f32.partialorder %v12955_v45, 0.0  ;;  %v13033_v27 = vld [vmem:[#allocation10 + $0x60] sm:$0xff]  ;;  %vm5196_vm3 = vcmp.gt.f32.partialorder %v12971_v55, 0.0  ;;  %vm6966_vm6 = vcmask 1042434  }
 0x4f2   :  { %v6576_v32 = vadd.f32 %v6575_v0, %v6574_v23  ;;  %6328 = vxpose.xlu1.b32.cont [11/16] %v6088_v40, 128  ;;  %v6730_v44 = vadd.f32 %v6729_v13, %v6674_v56  ;;  %v7242_v59 = vadd.f32 -1.0, %v8287_v10  ;;  %v6090_v23 = vsel %vm5193_vm14, %v12930_v50, %v5962_v29 }
 0x4f3   :  { %v6543_v8 = vadd.f32 %v6542_v48, %v6502_v14  ;;  %v6281_v31 = vpop.trf.xlu1  ;;  %v6091_v24 = vsel %vm5194_vm0, %v12933_v16, %v5963_v12  ;;  %v6465_v21 = vadd.f32 %v13009_v17, %v6412_v2  ;;  %v13059_v2 = vld [vmem:[#allocation10 + $0x78] sm:$0xff]  ;;  %vm6969_vm7 = vcmask 1043459  }
 0x4f4   :  { %v6605_v51 = vadd.f32 %v13016_v4, %v6576_v32  ;;  %v6182_v61 = vpop.trf.xlu0  ;;  %v6675_v62 = vmul.f32 %v13019_v35, %v6281_v31  ;;  %v8289_v30 = vpop.eup %8288  ;;  %v5964_v50 = vmul.f32 0.1, %v7242_v59  ;;  %vm6972_vm4 = vcmask 1044484  }
 0x4f5   :  { %v6544_v6 = vrot.slane %v6543_v8, 4  ;;  %v6660_v46 = vmul.f32 %v12990_v11, %v6182_v61  ;;  %v7243_v16 = vadd.f32 -1.0, %v8289_v30  ;;  %vm6975_vm5 = vcmask 1045509  }
 0x4f6   :  { %v6637_v39 = vmul.f32 %v6621_v7, %v6605_v51  ;;  %6329 = vxpose.xlu1.b32.cont [12/16] %v6089_v3, 128  ;;  %v6731_v43 = vadd.f32 %v6730_v44, %v6675_v62  ;;  %v6092_v52 = vsel %vm5195_vm2, %v12955_v45, %v5964_v50  ;;  %vm6978_vm9 = vcmask 1046534  }
 0x4f7   :  { %v6545_v5 = vadd.f32 %v6544_v6, %v6543_v8  ;;  %v6282_v49 = vpop.trf.xlu1  ;;  %v14161_v8 = vld [vmem:[#allocation28_spill] sm:$0xff]  ;;  %v13045_v6 = vld [vmem:[#allocation10 + $0x70] sm:$0xff]  ;;  %vm6981_vm10 = vcmask 1047559  }
 0x4f8   :  { %v13026_v28 = vadd.f32 %v6637_v39, %v6476_v41  ;;  %v6732_v57 = vrot.slane %v6731_v43, 4  ;;  %v6183_v25 = vpop.trf.xlu0  ;;  %v6825_v40 = vmul.f32 %v13033_v27, %v6282_v49  ;;  %v6618_v31 = vrot.slane %v14161_v8, 1 }
 0x4f9   :  { %v6546_v58 = vrot.slane %v6545_v5, 2  ;;  %v6661_v19 = vmul.f32 %v12993_v9, %v6183_v25  ;;  %v6473_v29 = vmul.f32 %v14161_v8, %v6465_v21  ;;  %v13056_v25 = vld [vmem:[%s13207_s6 + $0x2] ss:$0 sm:$0xff] }
 0x4fa   :  { %v6733_v13 = vadd.f32 %v6732_v57, %v6731_v43  ;;  %6330 = vxpose.xlu1.b32.cont [13/16] %v6090_v23, 128  ;;  %v5965_v43 = vmul.f32 0.1, %v7243_v16 }
 0x4fb   :  { %v6547_v48 = vadd.f32 %v6546_v58, %v6545_v5  ;;  %v6702_v33 = vadd.f32 %v6661_v19, %v6660_v46  ;;  %v6283_v7 = vpop.trf.xlu1  ;;  %v6774_v5 = vrot.slane %v14160_v63, 2 }
 0x4fc   :  { %v6734_v0 = vrot.slane %v6733_v13, 2  ;;  %v6184_v56 = vpop.trf.xlu0  ;;  %v6826_v14 = vmul.f32 %v13036_v22, %v6283_v7 }
 0x4fd   :  { %v6548_v20 = vrot.slane %v6547_v48, 1  ;;  %v6662_v34 = vmul.f32 %v13002_v60, %v6184_v56 }
 0x4fe   :  { %v6735_v32 = vadd.f32 %v6734_v0, %v6733_v13  ;;  %6331 = vxpose.xlu1.b32.cont [14/16] %v6091_v24, 128  ;;  %v6882_v44 = vadd.f32 %v6826_v14, %v6825_v40  ;;  %v6093_v13 = vsel %vm5196_vm3, %v12971_v55, %v5965_v43 }
 0x4ff   :  { %v6549_v1 = vadd.f32 %v6548_v20, %v6547_v48  ;;  %v6703_v51 = vadd.f32 %v6702_v33, %v6662_v34  ;;  %v6284_v61 = vpop.trf.xlu1 }
 0x500   :  { %v6736_v62 = vrot.slane %v6735_v32, 1  ;;  %v6185_v10 = vpop.trf.xlu0  ;;  %v6827_v3 = vmul.f32 %v13045_v6, %v6284_v61 }
 0x501   :  { %v6602_v41 = vadd.f32 %v13016_v4, %v6549_v1  ;;  %v6663_v39 = vmul.f32 %v13019_v35, %v6185_v10  ;;  %v6771_v1 = vrot.slane %v14161_v8, 2 }
 0x502   :  { %v6737_v46 = vadd.f32 %v6736_v62, %v6735_v32  ;;  %6332 = vxpose.xlu1.b32.cont [15/16] %v6092_v52, 128  ;;  %v6883_v49 = vadd.f32 %v6882_v44, %v6827_v3 }
 0x503   :  { %v6634_v12 = vmul.f32 %v6618_v31, %v6602_v41  ;;  %v6704_v45 = vadd.f32 %v6703_v51, %v6663_v39  ;;  %v6285_v57 = vpop.trf.xlu1 }
 0x504   :  { %v6766_v59 = vadd.f32 %v13056_v25, %v6737_v46  ;;  %v6186_v30 = vpop.trf.xlu0  ;;  %v6828_v58 = vmul.f32 %v13059_v2, %v6285_v57 }
 0x505   :  { %v6642_v19 = vadd.f32 %v6634_v12, %v6473_v29  ;;  %v6705_v23 = vrot.slane %v6704_v45, 4  ;;  %v6813_v7 = vmul.f32 %v13033_v27, %v6186_v30 }
 0x506   :  { %v6790_v48 = vmul.f32 %v6774_v5, %v6766_v59  ;;  %6333 = vxpose.xlu1.b32.end [16/16] %v6093_v13, 128  ;;  %v6884_v33 = vadd.f32 %v6883_v49, %v6828_v58  ;;  %v6927_v5 = vrot.slane %v14160_v63, 3  ;;  %v13077_v59 = vld [vmem:[%s13207_s6 + $0x3] ss:$0 sm:$0xff]  ;;  %s8477_s6 = smov [#allocation11]  }
 0x507   :  { %v6706_v24 = vadd.f32 %v6705_v23, %v6704_v45  ;;  %s6998_s15 = sshll.u32 %s8477_s6, 4  ;;  %s6999_s15 = int_to_ptr.vmem [resolvable:$true] %s6998_s15 }
 0x508   :  { %v6798_v0 = vadd.f32 %v6790_v48, %v13026_v28  ;;  %v6885_v40 = vrot.slane %v6884_v33, 4  ;;  %v6187_v56 = vpop.trf.xlu0  ;;  %s8430_s17 = scalar_lea.vmem %s6999_s15, 16  ;;  %s8434_s18 = scalar_lea.vmem %s6999_s15, 32 }
 0x509   :  { %v6707_v14 = vrot.slane %v6706_v24, 2  ;;  %v6814_v50 = vmul.f32 %v13036_v22, %v6187_v56  ;;  %p8431_p12 = scmp.ne.s32.totalorder %s6999_s15, %s8430_s17  ;;  %p8435_p13 = scmp.lt.s32.totalorder %s6999_s15, %s6999_s15 }
 0x50a   :  { %v6886_v21 = vadd.f32 %v6885_v40, %v6884_v33  ;;  %v6206_v20 = vpop.trf.xlu1  ;;  %p8436_p0 = scmp.lt.s32.totalorder %s8434_s18, %s8430_s17 }
 0x50b   :  { %v6708_v34 = vadd.f32 %v6707_v14, %v6706_v24  ;;  %v6855_v16 = vadd.f32 %v6814_v50, %v6813_v7  ;;  %v6366_v28 = vmul.f32 %v12889_v53, %v6206_v20 }
 0x50c   :  { %v6887_v32 = vrot.slane %v6886_v21, 2  ;;  %v6188_v44 = vpop.trf.xlu0  ;;  %p8437_p1 = por %p8436_p0, %p8435_p13 }
 0x50d   :  { %v6709_v55 = vrot.slane %v6708_v34, 1  ;;  %v6815_v31 = vmul.f32 %v13045_v6, %v6188_v44  ;;  %v6924_v44 = vrot.slane %v14161_v8, 3 }
 0x50e   :  { %v6888_v51 = vadd.f32 %v6887_v32, %v6886_v21  ;;  %v6207_v61 = vpop.trf.xlu1  ;;  %p8438_p2 = pnand %p8437_p1, %p8431_p12 }
 0x50f   :  { %v6710_v62 = vadd.f32 %v6709_v55, %v6708_v34  ;;  %v6856_v10 = vadd.f32 %v6855_v16, %v6815_v31  ;;  %v6367_v52 = vmul.f32 %v12896_v38, %v6207_v61 }
 0x510   :  { %v6889_v3 = vrot.slane %v6888_v51, 1  ;;  %v6189_v29 = vpop.trf.xlu0 }
 0x511   :  { %v6763_v41 = vadd.f32 %v13056_v25, %v6710_v62  ;;  %v6413_v39 = vadd.f32 %v6367_v52, %v6366_v28  ;;  %v6816_v43 = vmul.f32 %v13059_v2, %v6189_v29 }
 0x512   :  { %v6890_v46 = vadd.f32 %v6889_v3, %v6888_v51  ;;  %v6208_v49 = vpop.trf.xlu1 }
 0x513   :  { %v6787_v12 = vmul.f32 %v6771_v1, %v6763_v41  ;;  %v6857_v45 = vadd.f32 %v6856_v10, %v6816_v43  ;;  %v6368_v57 = vmul.f32 %v12914_v36, %v6208_v49 }
 0x514   :  { %v6919_v30 = vadd.f32 %v13077_v59, %v6890_v46  ;;  %v13080_v58 = vpop.trf.xlu0 }
 0x515   :  { %v6795_v23 = vadd.f32 %v6787_v12, %v6642_v19  ;;  %v6858_v13 = vrot.slane %v6857_v45, 4  ;;  %v6414_v48 = vadd.f32 %v6413_v39, %v6368_v57 }
 0x516   :  { %v6943_v33 = vmul.f32 %v6927_v5, %v6919_v30  ;;  %v6209_v63 = vpop.trf.xlu1 }
 0x517   :  { %v6859_v24 = vadd.f32 %v6858_v13, %v6857_v45  ;;  %v6369_v7 = vmul.f32 %v12935_v47, %v6209_v63 }
 0x518   :  { %v13083_v40 = vadd.f32 %v6943_v33, %v6798_v0  ;;  %v13085_v56 = vpop.trf.xlu0 }
 0x519   :  { %v6860_v14 = vrot.slane %v6859_v24, 2  ;;  %v6415_v50 = vadd.f32 %v6414_v48, %v6369_v7 }
 0x51a   :  { %v6210_v21 = vpop.trf.xlu1 }
 0x51b   :  { %v6861_v20 = vadd.f32 %v6860_v14, %v6859_v24  ;;  %v6416_v16 = vrot.slane %v6415_v50, 4  ;;  %v6503_v31 = vmul.f32 %v12957_v15, %v6210_v21 }
 0x51c   :  { %v13087_v32 = vpop.trf.xlu0 }
 0x51d   :  { %v6862_v34 = vrot.slane %v6861_v20, 1  ;;  %v6417_v51 = vadd.f32 %v6416_v16, %v6415_v50  ;;  %v14162_v16 = vld [vmem:[#allocation29_spill] sm:$0xff] }
 0x51e   :  { %v6211_v19 = vpop.trf.xlu1 }
 0x51f   :  { %v6863_v55 = vadd.f32 %v6862_v34, %v6861_v20  ;;  %v6504_v1 = vmul.f32 %v12960_v37, %v6211_v19  ;;  %v6418_v29 = vrot.slane %v6417_v51, 2  ;;  %v6619_v19 = vrot.slane %v14162_v16, 1 }
 0x520   :  { %v13093_v10 = vpop.trf.xlu0 }
 0x521   :  { %v6916_v0 = vadd.f32 %v13077_v59, %v6863_v55  ;;  %v6550_v61 = vadd.f32 %v6504_v1, %v6503_v31  ;;  %v6419_v46 = vadd.f32 %v6418_v29, %v6417_v51 }
 0x522   :  { %v6212_v62 = vpop.trf.xlu1 }
 0x523   :  { %v6940_v28 = vmul.f32 %v6924_v44, %v6916_v0  ;;  %v6505_v52 = vmul.f32 %v12973_v18, %v6212_v62  ;;  %v6420_v30 = vrot.slane %v6419_v46, 1 }
 0x524   :  { %v13100_v49 = vpop.trf.xlu0 }
 0x525   :  { %v6948_v3 = vadd.f32 %v6940_v28, %v6795_v23  ;;  %v6551_v41 = vadd.f32 %v6550_v61, %v6505_v52  ;;  %v6421_v7 = vadd.f32 %v6420_v30, %v6419_v46 }
 0x526   :  { %v6213_v8 = vpop.trf.xlu1 }
 0x527   :  { %v6965_v39 = vrot.slane %v6948_v3, 6  ;;  %v6506_v43 = vmul.f32 %v12980_v42, %v6213_v8  ;;  %v6466_v34 = vadd.f32 %v13009_v17, %v6421_v7 }
 0x528   :  { %v13102_v33 = vpop.trf.xlu0 }
 0x529   :  { %v13098_v5 = vsel %vm6966_vm6, %v6965_v39, %v12948_v26  ;;  %v6552_v12 = vadd.f32 %v6551_v41, %v6506_v43  ;;  %v6474_v61 = vmul.f32 %v14162_v16, %v6466_v34 }
 0x52a   :  { %v6214_v45 = vpop.trf.xlu1 }
 0x52b   :  { %v6553_v57 = vrot.slane %v6552_v12, 4  ;;  %v6664_v63 = vmul.f32 %v12990_v11, %v6214_v45 }
 0x52c   :  { %v13109_v55 = vpop.trf.xlu0 }
 0x52d   :  { %v6554_v13 = vadd.f32 %v6553_v57, %v6552_v12 }
 0x52e   :  { %v6215_v48 = vpop.trf.xlu1 }
 0x52f   :  { %v6555_v23 = vrot.slane %v6554_v13, 2  ;;  %v6665_v24 = vmul.f32 %v12993_v9, %v6215_v48 }
 0x530   :  { %v13114_v29 = vpop.trf.xlu0 }
 0x531   :  { %v6556_v14 = vadd.f32 %v6555_v23, %v6554_v13  ;;  %v6711_v26 = vadd.f32 %v6665_v24, %v6664_v63  ;;  %v6772_v63 = vrot.slane %v14162_v16, 2 }
 0x532   :  { %v6216_v50 = vpop.trf.xlu1 }
 0x533   :  { %v6557_v21 = vrot.slane %v6556_v14, 1  ;;  %v6666_v20 = vmul.f32 %v13002_v60, %v6216_v50 }
 0x534   :  { %v6310_v45 = vpop.trf.xlu0 }
 0x535   :  { %v6558_v44 = vadd.f32 %v6557_v21, %v6556_v14  ;;  %v6712_v31 = vadd.f32 %v6711_v26, %v6666_v20 }
 0x536   :  { %v6217_v1 = vpop.trf.xlu1 }
 0x537   :  { %v6603_v0 = vadd.f32 %v13016_v4, %v6558_v44  ;;  %v6667_v51 = vmul.f32 %v13019_v35, %v6217_v1 }
 0x538   :  { %v6311_v26 = vpop.trf.xlu0 }
 0x539   :  { %v6635_v62 = vmul.f32 %v6619_v19, %v6603_v0  ;;  %v6713_v28 = vadd.f32 %v6712_v31, %v6667_v51 }
 0x53a   :  { %v6218_v52 = vpop.trf.xlu1 }
 0x53b   :  { %v6643_v3 = vadd.f32 %v6635_v62, %v6474_v61  ;;  %v6714_v41 = vrot.slane %v6713_v28, 4  ;;  %v6817_v46 = vmul.f32 %v13033_v27, %v6218_v52 }
 0x53c   :  { %v6312_v1 = vpop.trf.xlu0 }
 0x53d   :  { %v6715_v8 = vadd.f32 %v6714_v41, %v6713_v28 }
 0x53e   :  { %v6219_v39 = vpop.trf.xlu1 }
 0x53f   :  { %v6716_v43 = vrot.slane %v6715_v8, 2  ;;  %v6818_v12 = vmul.f32 %v13036_v22, %v6219_v39 }
 0x540   :  { %v6313_v52 = vpop.trf.xlu0 }
 0x541   :  { %v6717_v57 = vadd.f32 %v6716_v43, %v6715_v8  ;;  %v6864_v30 = vadd.f32 %v6818_v12, %v6817_v46  ;;  %v6925_v8 = vrot.slane %v14162_v16, 3  ;;  %v6378_v16 = vmul.f32 %v12889_v53, %v13080_v58 }
 0x542   :  { %v6220_v13 = vpop.trf.xlu1  ;;  %v6380_v58 = vmul.f32 %v12914_v36, %v13087_v32  ;;  %v6518_v32 = vmul.f32 %v12980_v42, %v13114_v29 }
 0x543   :  { %v6718_v48 = vrot.slane %v6717_v57, 1  ;;  %v6819_v23 = vmul.f32 %v13045_v6, %v6220_v13 }
 0x544   :  { %v6314_v12 = vpop.trf.xlu0 }
 0x545   :  { %v6719_v24 = vadd.f32 %v6718_v48, %v6717_v57  ;;  %v6865_v50 = vadd.f32 %v6864_v30, %v6819_v23  ;;  %v6971_v48 = vrot.slane %v12966_v54, 4 }
 0x546   :  { %v6221_v7 = vpop.trf.xlu1 }
 0x547   :  { %v6764_v14 = vadd.f32 %v13056_v25, %v6719_v24  ;;  %v6820_v21 = vmul.f32 %v13059_v2, %v6221_v7  ;;  %v6379_v24 = vmul.f32 %v12896_v38, %v13085_v56  ;;  %v6517_v56 = vmul.f32 %v12973_v18, %v13109_v55 }
 0x548   :  { %v6315_v7 = vpop.trf.xlu0  ;;  %v6678_v55 = vmul.f32 %v13002_v60, %v6312_v1 }
 0x549   :  { %v6788_v20 = vmul.f32 %v6772_v63, %v6764_v14  ;;  %v6866_v34 = vadd.f32 %v6865_v50, %v6820_v21  ;;  %v6974_v63 = vrot.slane %v13083_v40, 3  ;;  %v6515_v50 = vmul.f32 %v12957_v15, %v13100_v49 }
 0x54a   :  { %v13122_v19 = vpop.trf.xlu1  ;;  %v6516_v21 = vmul.f32 %v12960_v37, %v13102_v33  ;;  %v6440_v40 = vadd.f32 %v6379_v24, %v6378_v16  ;;  %v6830_v33 = vmul.f32 %v13036_v22, %v6315_v7 }
 0x54b   :  { %v6796_v44 = vadd.f32 %v6788_v20, %v6643_v3  ;;  %v6867_v31 = vrot.slane %v6866_v34, 4 }
 0x54c   :  { %v6316_v49 = vpop.trf.xlu0 }
 0x54d   :  { %v6868_v0 = vadd.f32 %v6867_v31, %v6866_v34  ;;  %v6677_v31 = vmul.f32 %v12993_v9, %v6311_v26  ;;  %v6831_v26 = vmul.f32 %v13045_v6, %v6316_v49 }
 0x54e   :  { %v6335_v51 = vpop.trf.xlu1 }
 0x54f   :  { %v6869_v61 = vrot.slane %v6868_v0, 2 }
 0x551   :  { %v6870_v62 = vadd.f32 %v6869_v61, %v6868_v0  ;;  %v6829_v0 = vmul.f32 %v13033_v27, %v6314_v12 }
 0x552   :  { %v6336_v28 = vpop.trf.xlu1 }
 0x553   :  { %v6871_v41 = vrot.slane %v6870_v62, 1 }
 0x555   :  { %v6872_v39 = vadd.f32 %v6871_v41, %v6870_v62  ;;  %v6441_v62 = vadd.f32 %v6440_v40, %v6380_v58  ;;  %v6381_v41 = vmul.f32 %v12935_v47, %v13093_v10  ;;  %v6383_v10 = vmul.f32 %v12896_v38, %v6335_v51 }
 0x556   :  { %v6337_v43 = vpop.trf.xlu1 }
 0x557   :  { %v6917_v46 = vadd.f32 %v13077_v59, %v6872_v39 }
 0x559   :  { %v6941_v57 = vmul.f32 %v6925_v8, %v6917_v46 }
 0x55a   :  { %v6338_v30 = vpop.trf.xlu1 }
 0x55b   :  { %v6949_v13 = vadd.f32 %v6941_v57, %v6796_v44  ;;  %v6577_v44 = vadd.f32 %v6516_v21, %v6515_v50  ;;  %v6317_v57 = vpop.trf.xlu0  ;;  %v6519_v16 = vmul.f32 %v12957_v15, %v6338_v30  ;;  %v6385_v15 = vmul.f32 %v12935_v47, %v6337_v43 }
 0x55c   :  { %v6832_v1 = vmul.f32 %v13059_v2, %v6317_v57 }
 0x55d   :  { %v6968_v3 = vrot.slane %v6949_v13, 5  ;;  %v6578_v8 = vadd.f32 %v6577_v44, %v6517_v56  ;;  %v6442_v13 = vadd.f32 %v6441_v62, %v6381_v41 }
 0x55e   :  { %v6339_v23 = vpop.trf.xlu1 }
 0x55f   :  { %v6970_v14 = vsel %vm6969_vm7, %v6968_v3, %v13098_v5  ;;  %v6676_v5 = vmul.f32 %v12990_v11, %v6310_v45  ;;  %v6891_v45 = vadd.f32 %v6830_v33, %v6829_v0  ;;  %v6520_v12 = vmul.f32 %v12960_v37, %v6339_v23 }
 0x560   :  { %v6973_v54 = vsel %vm6972_vm4, %v6971_v48, %v6970_v14  ;;  %v6579_v3 = vadd.f32 %v6578_v8, %v6518_v32  ;;  %v6382_v14 = vmul.f32 %v12889_v53, %v13122_v19  ;;  %v6384_v37 = vmul.f32 %v12914_v36, %v6336_v28 }
 0x561   :  { %v13137_v20 = vsel %vm6975_vm5, %v6974_v63, %v6973_v54  ;;  %v6738_v39 = vadd.f32 %v6677_v31, %v6676_v5  ;;  %v6679_v63 = vmul.f32 %v13019_v35, %v6313_v52  ;;  %v6892_v24 = vadd.f32 %v6891_v45, %v6831_v26 }
 0x562   :  { %v6340_v34 = vpop.trf.xlu1  ;;  %v6586_v23 = vadd.f32 %v6520_v12, %v6519_v16  ;;  %v6443_v21 = vrot.slane %v6442_v13, 4  ;;  %v6580_v52 = vrot.slane %v6579_v3, 4  ;;  %v6449_v38 = vadd.f32 %v6383_v10, %v6382_v14 }
 0x563   :  { %v6739_v48 = vadd.f32 %v6738_v39, %v6678_v55  ;;  %v6521_v29 = vmul.f32 %v12973_v18, %v6340_v34  ;;  %v6893_v30 = vadd.f32 %v6892_v24, %v6832_v1 }
 0x564   :  { %v6450_v40 = vadd.f32 %v6449_v38, %v6384_v37  ;;  %v6444_v19 = vadd.f32 %v6443_v21, %v6442_v13  ;;  %v6581_v28 = vadd.f32 %v6580_v52, %v6579_v3 }
 0x565   :  { %v6740_v54 = vadd.f32 %v6739_v48, %v6679_v63  ;;  %v6587_v51 = vadd.f32 %v6586_v23, %v6521_v29  ;;  %v6894_v5 = vrot.slane %v6893_v30, 4 }
 0x566   :  { %v6341_v61 = vpop.trf.xlu1  ;;  %v6451_v44 = vadd.f32 %v6450_v40, %v6385_v15  ;;  %v6582_v0 = vrot.slane %v6581_v28, 2 }
 0x567   :  { %v6522_v50 = vmul.f32 %v12980_v42, %v6341_v61  ;;  %v6741_v42 = vrot.slane %v6740_v54, 4  ;;  %v6895_v41 = vadd.f32 %v6894_v5, %v6893_v30  ;;  %v14163_v30 = vld [vmem:[#allocation32_spill] sm:$0xff] }
 0x568   :  { %v6452_v61 = vrot.slane %v6451_v44, 4  ;;  %v6583_v39 = vadd.f32 %v6582_v0, %v6581_v28 }
 0x569   :  { %v6588_v58 = vadd.f32 %v6587_v51, %v6522_v50  ;;  %v6742_v33 = vadd.f32 %v6741_v42, %v6740_v54 }
 0x56a   :  { %v6342_v46 = vpop.trf.xlu1  ;;  %v6453_v45 = vadd.f32 %v6452_v61, %v6451_v44  ;;  %v6584_v3 = vrot.slane %v6583_v39, 1 }
 0x56b   :  { %v6680_v53 = vmul.f32 %v12990_v11, %v6342_v46  ;;  %v6589_v49 = vrot.slane %v6588_v58, 4  ;;  %v6743_v55 = vrot.slane %v6742_v33, 2  ;;  %v6896_v46 = vrot.slane %v6895_v41, 2 }
 0x56c   :  { %v6454_v48 = vrot.slane %v6453_v45, 2  ;;  %v6585_v37 = vadd.f32 %v6584_v3, %v6583_v39 }
 0x56d   :  { %v6590_v8 = vadd.f32 %v6589_v49, %v6588_v58  ;;  %v6897_v16 = vadd.f32 %v6896_v46, %v6895_v41 }
 0x56e   :  { %v6343_v7 = vpop.trf.xlu1  ;;  %v6455_v50 = vadd.f32 %v6454_v48, %v6453_v45 }
 0x56f   :  { %v6681_v18 = vmul.f32 %v12993_v9, %v6343_v7  ;;  %v6445_v9 = vrot.slane %v6444_v19, 2  ;;  %v6591_v12 = vrot.slane %v6590_v8, 2  ;;  %v6898_v54 = vrot.slane %v6897_v16, 1 }
 0x571   :  { %v6747_v56 = vadd.f32 %v6681_v18, %v6680_v53  ;;  %v6446_v32 = vadd.f32 %v6445_v9, %v6444_v19  ;;  %v6592_v24 = vadd.f32 %v6591_v12, %v6590_v8  ;;  %v14164_v9 = vld [vmem:[#allocation33_spill] sm:$0xff] }
 0x572   :  { %v6344_v34 = vpop.trf.xlu1  ;;  %v6623_v0 = vrot.slane %v14164_v9, 1  ;;  %v6776_v8 = vrot.slane %v14164_v9, 2  ;;  %v6929_v12 = vrot.slane %v14164_v9, 3 }
 0x573   :  { %v6682_v36 = vmul.f32 %v13002_v60, %v6344_v34  ;;  %v6447_v13 = vrot.slane %v6446_v32, 1  ;;  %v6593_v15 = vrot.slane %v6592_v24, 1  ;;  %v6622_v34 = vrot.slane %v14163_v30, 1 }
 0x575   :  { %v6748_v47 = vadd.f32 %v6747_v56, %v6682_v36  ;;  %v6448_v14 = vadd.f32 %v6447_v13, %v6446_v32  ;;  %v6899_v36 = vadd.f32 %v6898_v54, %v6897_v16  ;;  %v6594_v19 = vadd.f32 %v6593_v15, %v6592_v24 }
 0x576   :  { %v6345_v31 = vpop.trf.xlu1  ;;  %v6775_v56 = vrot.slane %v14163_v30, 2 }
 0x577   :  { %v6683_v43 = vmul.f32 %v13019_v35, %v6345_v31  ;;  %v6744_v35 = vadd.f32 %v6743_v55, %v6742_v33  ;;  %v6607_v33 = vadd.f32 %v13016_v4, %v6594_v19 }
 0x579   :  { %v6749_v62 = vadd.f32 %v6748_v47, %v6683_v43  ;;  %v6745_v23 = vrot.slane %v6744_v35, 1  ;;  %v6928_v47 = vrot.slane %v14163_v30, 3  ;;  %v6920_v43 = vadd.f32 %v13077_v59, %v6899_v36 }
 0x57a   :  { %v6346_v11 = vpop.trf.xlu1  ;;  %v6639_v55 = vmul.f32 %v6623_v0, %v6607_v33 }
 0x57b   :  { %v6750_v60 = vrot.slane %v6749_v62, 4  ;;  %v6833_v1 = vmul.f32 %v13033_v27, %v6346_v11  ;;  %v6606_v27 = vadd.f32 %v13016_v4, %v6585_v37  ;;  %v6746_v40 = vadd.f32 %v6745_v23, %v6744_v35 }
 0x57c   :  { %v6944_v39 = vmul.f32 %v6928_v47, %v6920_v43 }
 0x57d   :  { %v6751_v26 = vadd.f32 %v6750_v60, %v6749_v62  ;;  %v6638_v44 = vmul.f32 %v6622_v34, %v6606_v27 }
 0x57e   :  { %v6347_v57 = vpop.trf.xlu1 }
 0x57f   :  { %v6752_v63 = vrot.slane %v6751_v26, 2  ;;  %v6834_v10 = vmul.f32 %v13036_v22, %v6347_v57  ;;  %v6469_v22 = vadd.f32 %v13009_v17, %v6448_v14 }
 0x581   :  { %v6753_v21 = vadd.f32 %v6752_v63, %v6751_v26  ;;  %v6900_v52 = vadd.f32 %v6834_v10, %v6833_v1  ;;  %v6477_v42 = vmul.f32 %v14163_v30, %v6469_v22 }
 0x582   :  { %v6348_v29 = vpop.trf.xlu1 }
 0x583   :  { %v6835_v7 = vmul.f32 %v13045_v6, %v6348_v29  ;;  %v6456_v6 = vrot.slane %v6455_v50, 1  ;;  %v6754_v58 = vrot.slane %v6753_v21, 1  ;;  %v6646_v62 = vadd.f32 %v6638_v44, %v6477_v42 }
 0x585   :  { %v6901_v51 = vadd.f32 %v6900_v52, %v6835_v7  ;;  %v6457_v5 = vadd.f32 %v6456_v6, %v6455_v50  ;;  %v6755_v31 = vadd.f32 %v6754_v58, %v6753_v21 }
 0x586   :  { %v6349_v38 = vpop.trf.xlu1 }
 0x587   :  { %v6836_v18 = vmul.f32 %v13059_v2, %v6349_v38  ;;  %v6767_v2 = vadd.f32 %v13056_v25, %v6746_v40  ;;  %v6470_v11 = vadd.f32 %v13009_v17, %v6457_v5  ;;  %v6768_v60 = vadd.f32 %v13056_v25, %v6755_v31 }
 0x589   :  { %v6902_v53 = vadd.f32 %v6901_v51, %v6836_v18  ;;  %v6791_v41 = vmul.f32 %v6775_v56, %v6767_v2  ;;  %v6478_v46 = vmul.f32 %v14164_v9, %v6470_v11  ;;  %v6792_v57 = vmul.f32 %v6776_v8, %v6768_v60 }
 0x58b   :  { %v6903_v28 = vrot.slane %v6902_v53, 4  ;;  %v6799_v26 = vadd.f32 %v6791_v41, %v6646_v62  ;;  %v6647_v3 = vadd.f32 %v6639_v55, %v6478_v46 }
 0x58d   :  { %v6904_v49 = vadd.f32 %v6903_v28, %v6902_v53  ;;  %v6952_v13 = vadd.f32 %v6944_v39, %v6799_v26  ;;  %v6800_v17 = vadd.f32 %v6792_v57, %v6647_v3 }
 0x58f   :  { %v6905_v61 = vrot.slane %v6904_v49, 2  ;;  %v6977_v63 = vrot.slane %v6952_v13, 2 }
 0x591   :  { %v6906_v32 = vadd.f32 %v6905_v61, %v6904_v49  ;;  %v6979_v16 = vsel %vm6978_vm9, %v6977_v63, %v13137_v20 }
 0x593   :  { %v6907_v45 = vrot.slane %v6906_v32, 1 }
 0x595   :  { %v6908_v4 = vadd.f32 %v6907_v45, %v6906_v32 }
 0x597   :  { %v6921_v35 = vadd.f32 %v13077_v59, %v6908_v4 }
 0x599   :  { %v6945_v48 = vmul.f32 %v6929_v12, %v6921_v35 }
 0x59b   :  { %v6953_v10 = vadd.f32 %v6945_v48, %v6800_v17 }
 0x59d   :  { %v6980_v25 = vrot.slane %v6953_v10, 1 }
 0x59f   :  { %v6982_v29 = vsel %vm6981_vm10, %v6980_v25, %v6979_v16 }
 0x5a0   :  { %v6984_v24 = vrot.slane %v6982_v29, 4 }
 0x5a2   :  { %v6985_v1 = vadd.f32 %v6984_v24, %v6982_v29 }
 0x5a4   :  { %v6986_v7 = vrot.slane %v6985_v1, 2 }
 0x5a6   :  { %v6987_v14 = vadd.f32 %v6986_v7, %v6985_v1 }
 0x5a8   :  { %v6988_v37 = vrot.slane %v6987_v14, 1 }
 0x5aa   :  { %v6989_v23 = vadd.f32 %v6988_v37, %v6987_v14 }
 0x5ac   :  { %v6990_v50 = vmul.f32 27.211386, %v6989_v23 }
 0x5ae   :  { %6991 = vst [vmem:[#allocation11] sm:$0x1] %v6990_v50 }
 0x5af   :  { %8441 = shalt.err (!%p8438_p2)
}
 0x5b0   :  { %s8442_s5 = scalar_lea.hbm %s13208_s7, 16 }
 0x5b1   :  { %p8443_p3 = scmp.ne.s32.totalorder %s13208_s7, %s8442_s5  ;;  %p8446_p4 = scmp.lt.u32.totalorder %s8442_s5, %s13208_s7 }
 0x5b3   :  { %p8448_p5 = pnand %p8446_p4, %p8443_p3 }
 0x5b5   :  { %8451 = shalt.err (!%p8448_p5)
}
 0x5b6   :  { %7001 = dma.vmem_to_hbm [thread:$0]  %s6999_s15, 16, %s13208_s7, [#allocation4]  }
 0x5b7   :  { %8458 = dma.done.wait [#allocation4], 16  }
 0x5b8   :  { %8459 = vsyncadd [#allocation4], 4294967280 }
 0x5b9   :  { %7005 = vsyncpa [#allocation3], 1 }
 0x5ba   :  { %7006 = vsyncpa [#allocation6], 1 }
 0x5bb   :  { %7007 = vsyncpa [#allocation9], 1 }
 0x5bc   :  { %7008 = vsyncpa [#allocation4], 1 }

</bundles_post_ra>
